<compile_context>
chip_gen: v5e
topology: v5e:2x2
jax: 0.10.0
libtpu: 0.0.40
codegen_flags: <defaults>
</compile_context>

<pallas_src>
import numpy as np
import jax
import jax.numpy as jnp
from jax import lax
from jax.experimental import pallas as pl
from jax.experimental.pallas import tpu as pltpu


# ------------------------------ tiling helpers --------------------------------

_VMEM_LIMIT = 48 * 1024 * 1024          # < v7x physical 64 MiB, < v5e/v6e 128 MiB
_VMEM_BUDGET = 20 * 1024 * 1024         # per-call working-set target


def _compiler_params(*sem):
    return pltpu.CompilerParams(dimension_semantics=sem,
                                vmem_limit_bytes=_VMEM_LIMIT)


def _choose_row_tile(m, per_row_bytes, fixed_bytes,
                     max_tile=512, budget=_VMEM_BUDGET):
    """Largest row tile (multiple of 8, <= max_tile) whose double-buffered
    working set fits the VMEM budget.  If m fits in a single block, use m."""
    tile = max_tile
    while tile > 8 and fixed_bytes + 2 * tile * per_row_bytes > budget:
        tile //= 2
    if m <= tile:
        return m, m
    m_pad = ((m + tile - 1) // tile) * tile
    return tile, m_pad


def _pad_rows(x, m_pad):
    m = x.shape[0]
    if m == m_pad:
        return x
    return jnp.pad(x, ((0, m_pad - m),) + ((0, 0),) * (x.ndim - 1))


# ------------------------------ Pallas kernels ---------------------------------

def _pool_kernel(s_ref, x_ref, o_ref):
    # pooled = S @ feat for one (batch, row-tile) grid cell.  No bias.
    o_ref[0] = jnp.dot(s_ref[0], x_ref[0], preferred_element_type=jnp.float32)


def pallas_batched_pool(S, x):
    """pooled[b] = S[b] @ x[b].  S: (B, R, HW), x: (B, HW, C) -> (B, R, C) f32."""
    B, R, HW = S.shape
    C = x.shape[2]
    esz = np.dtype(S.dtype).itemsize
    tile, r_pad = _choose_row_tile(R, (HW + C) * esz, 2 * HW * C * esz)
    if r_pad != R:
        S = jnp.pad(S, ((0, 0), (0, r_pad - R), (0, 0)))
    out = pl.pallas_call(
        _pool_kernel,
        out_shape=jax.ShapeDtypeStruct((B, r_pad, C), jnp.float32),
        grid=(B, r_pad // tile),
        in_specs=[pl.BlockSpec((1, tile, HW), lambda b, i: (b, i, 0)),
                  pl.BlockSpec((1, HW, C), lambda b, i: (b, 0, 0))],
        out_specs=pl.BlockSpec((1, tile, C), lambda b, i: (b, i, 0)),
        compiler_params=_compiler_params("parallel", "parallel"),
    )(S, x)
    return out[:, :R]


def _mm_bias_kernel(x_ref, s_ref, w_ref, b_ref, o_ref):
    # y = x @ w + scale * b   (scale is a per-row column; bias kept in f32)
    y = jnp.dot(x_ref[...], w_ref[...], preferred_element_type=jnp.float32)
    o_ref[...] = y + s_ref[...] * b_ref[...]


def pallas_mm_bias(x, w, b, scale=None):
    """Row-tiled y = x @ w + scale * b (scale defaults to 1)."""
    M, K = x.shape
    N = w.shape[1]
    if scale is None:
        scale = jnp.ones((M, 1), jnp.float32)
    esz = np.dtype(x.dtype).itemsize
    tile, m_pad = _choose_row_tile(M, (K + 1) * esz + 4 * N,
                                   (K * N) * esz + 4 * N)
    xp = _pad_rows(x, m_pad)
    sp = _pad_rows(scale, m_pad)
    out = pl.pallas_call(
        _mm_bias_kernel,
        out_shape=jax.ShapeDtypeStruct((m_pad, N), jnp.float32),
        grid=(m_pad // tile,),
        in_specs=[pl.BlockSpec((tile, K), lambda i: (i, 0)),
                  pl.BlockSpec((tile, 1), lambda i: (i, 0)),
                  pl.BlockSpec((K, N), lambda i: (0, 0)),
                  pl.BlockSpec((1, N), lambda i: (0, 0))],
        out_specs=pl.BlockSpec((tile, N), lambda i: (i, 0)),
        compiler_params=_compiler_params("parallel"),
    )(xp, sp, w, b.reshape(1, N).astype(jnp.float32))
    return out[:M]


def _fc_norm_kernel(x_ref, w_ref, b_ref, o_ref):
    # Sequential(ReLU, Linear) followed by L2 row-normalization (_norm).
    x = jnp.maximum(x_ref[...], 0.0)
    y = jnp.dot(x, w_ref[...], preferred_element_type=jnp.float32) + b_ref[...]
    inv = lax.rsqrt(jnp.sum(y * y, axis=-1, keepdims=True) + 1e-12)
    o_ref[...] = y * inv


def pallas_fc_norm(x, w, b):
    M, K = x.shape
    N = w.shape[1]
    esz = np.dtype(x.dtype).itemsize
    tile, m_pad = _choose_row_tile(M, K * esz + 4 * N, (K * N) * esz + 4 * N)
    xp = _pad_rows(x, m_pad)
    out = pl.pallas_call(
        _fc_norm_kernel,
        out_shape=jax.ShapeDtypeStruct((m_pad, N), jnp.float32),
        grid=(m_pad // tile,),
        in_specs=[pl.BlockSpec((tile, K), lambda i: (i, 0)),
                  pl.BlockSpec((K, N), lambda i: (0, 0)),
                  pl.BlockSpec((1, N), lambda i: (0, 0))],
        out_specs=pl.BlockSpec((tile, N), lambda i: (i, 0)),
        compiler_params=_compiler_params("parallel"),
    )(xp, w, b.reshape(1, N).astype(jnp.float32))
    return out[:M]


# ----------------------- host-side geometric glue (no_grad) --------------------

def roi_align_matrix_np(boxes, spatial_scale, P, H, W):
    """Dense bilinear sampling matrix S [K*P*P, H*W] matching torchvision
    roi_align(aligned=False, sampling_ratio=-1).  pooled = S @ feat[H*W, C]."""
    K = boxes.shape[0]
    S = np.zeros((K * P * P, H * W), dtype=np.float32)
    for k in range(K):
        x1, y1, x2, y2 = [float(v) for v in boxes[k]]
        rsw, rsh = x1 * spatial_scale, y1 * spatial_scale
        rew, reh = x2 * spatial_scale, y2 * spatial_scale
        roi_w = max(rew - rsw, 1.0)
        roi_h = max(reh - rsh, 1.0)
        bin_w, bin_h = roi_w / P, roi_h / P
        grid_h = max(int(np.ceil(roi_h / P)), 1)
        grid_w = max(int(np.ceil(roi_w / P)), 1)
        count = grid_h * grid_w
        for ph in range(P):
            for pw in range(P):
                row = k * P * P + ph * P + pw
                for iy in range(grid_h):
                    yy = rsh + ph * bin_h + (iy + 0.5) * bin_h / grid_h
                    for ix in range(grid_w):
                        xx = rsw + pw * bin_w + (ix + 0.5) * bin_w / grid_w
                        if yy < -1.0 or yy > H or xx < -1.0 or xx > W:
                            continue
                        y = max(yy, 0.0)
                        x = max(xx, 0.0)
                        y_lo, x_lo = int(y), int(x)
                        if y_lo >= H - 1:
                            y_hi = y_lo = H - 1
                            y = float(y_lo)
                        else:
                            y_hi = y_lo + 1
                        if x_lo >= W - 1:
                            x_hi = x_lo = W - 1
                            x = float(x_lo)
                        else:
                            x_hi = x_lo + 1
                        ly, lx = y - y_lo, x - x_lo
                        hy, hx = 1.0 - ly, 1.0 - lx
                        S[row, y_lo * W + x_lo] += hy * hx / count
                        S[row, y_lo * W + x_hi] += hy * lx / count
                        S[row, y_hi * W + x_lo] += ly * hx / count
                        S[row, y_hi * W + x_hi] += ly * lx / count
    return S


def intersection_map_np(box1, box2, P):
    """Intersection map of box1 over the P x P pooled grid of box2 -> (N, P, P).
    # TODO(synk): NSCL's functional.generate_intersection_map source not available;
    # fractional cell-coverage (area overlap / cell area) is used here."""
    b1 = box1.astype(np.float32)
    b2 = box2.astype(np.float32)
    cw = (b2[:, 2] - b2[:, 0]) / P
    ch = (b2[:, 3] - b2[:, 1]) / P
    idx = np.arange(P, dtype=np.float32)
    cx1 = b2[:, None, 0] + idx[None, :] * cw[:, None]
    cx2 = cx1 + cw[:, None]
    cy1 = b2[:, None, 1] + idx[None, :] * ch[:, None]
    cy2 = cy1 + ch[:, None]
    ow = np.clip(np.minimum(cx2, b1[:, None, 2]) - np.maximum(cx1, b1[:, None, 0]), 0.0, None)
    oh = np.clip(np.minimum(cy2, b1[:, None, 3]) - np.maximum(cy1, b1[:, None, 1]), 0.0, None)
    area = np.maximum(cw * ch, 1e-12)
    imap = (oh[:, :, None] * ow[:, None, :]) / area[:, None, None]   # (N, Ph, Pw)
    return imap.astype(np.float32)


# --------------------------------- SceneGraph ----------------------------------

class SceneGraphPallas:
    def __init__(self, feature_dim, output_dims, downsample_rate, key,
                 use_bf16=False):
        self.pool_size = 7
        self.feature_dim = feature_dim
        self.output_dims = output_dims
        self.downsample_rate = downsample_rate
        # bf16 MXU operands (f32 accumulation) ~2x MXU/DMA on v5e/v6e/v7x;
        # defaults to f32 to keep reference numerics exactly.
        self.compute_dtype = jnp.bfloat16 if use_bf16 else jnp.float32

        C = feature_dim
        C2 = C // 2
        D1 = output_dims[1]
        D2 = output_dims[2]
        P = self.pool_size

        def kaiming(k, fan_in, shape):
            return jax.random.normal(k, shape, dtype=jnp.float32) * np.sqrt(2.0 / fan_in)

        ks = jax.random.split(key, 6)
        # 1x1 convs stored as (in_channels, out_channels) matmul weights; biases zero.
        self.Wc = kaiming(ks[0], C, (C, C));          self.bc = jnp.zeros((C,), jnp.float32)
        self.Wr = kaiming(ks[1], C, (C, 3 * C2));     self.br = jnp.zeros((3 * C2,), jnp.float32)
        self.W_of = kaiming(ks[2], 2 * C, (2 * C, D1))
        self.b_of = jnp.zeros((D1,), jnp.float32)
        rin = 2 * D1 + 3 * C2
        self.W_rf = kaiming(ks[3], rin, (rin, D2))
        self.b_rf = jnp.zeros((D2,), jnp.float32)

        # FC weights with the NCHW-flatten permutation folded in:
        # reference flatten order is (channel, ph, pw); our fused layout is
        # (ph, pw, channel), so permute the FC input rows once at init.
        W_ofc = kaiming(ks[4], D1 * P * P, (D1 * P * P, D1))
        self.W_ofc = W_ofc.reshape(D1, P * P, D1).transpose(1, 0, 2).reshape(P * P * D1, D1)
        self.b_ofc = jnp.zeros((D1,), jnp.float32)
        W_rfc = kaiming(ks[5], D2 * P * P, (D2 * P * P, D2))
        self.W_rfc = W_rfc.reshape(D2, P * P, D2).transpose(1, 0, 2).reshape(P * P * D2, D2)
        self.b_rfc = jnp.zeros((D2,), jnp.float32)

        # Single jitted device-side forward over the padded batch.
        self._fwd = jax.jit(self._device_forward)

    # --------------------------- jitted device forward -------------------------

    def _device_forward(self, x_pix, S_all, rs_img, rs_uni,
                        im_ctx, im_sub, im_obj, sub_id, obj_id):
        B, HW, C = x_pix.shape
        C2 = C // 2
        P = self.pool_size
        n49 = rs_img.shape[1]              # n_max * P * P
        nn49 = rs_uni.shape[1]             # n_max^2 * P * P
        n_max = n49 // (P * P)
        cd = self.compute_dtype

        # ---- one batched pooling matmul for [S_img; S_box; S_uni] ----
        pooled = pallas_batched_pool(S_all.astype(cd), x_pix.astype(cd))   # (B, R, C)
        pool_img = pooled[:, :n49].reshape(B * n49, C)
        pool_box = pooled[:, n49:2 * n49].reshape(B * n49, C)
        pool_uni = pooled[:, 2 * n49:2 * n49 + nn49].reshape(B * nn49, C)

        rs_img_f = rs_img.reshape(B * n49, 1)
        rs_uni_f = rs_uni.reshape(B * nn49, 1)
        im_ctx_f = im_ctx.reshape(B * n49, 1)
        im_sub_f = im_sub.reshape(B * nn49, 1)
        im_obj_f = im_obj.reshape(B * nn49, 1)

        # ---- 1x1 convs commuted after pooling (bias scaled by S row-sums) ----
        ctx = pallas_mm_bias(pool_img.astype(cd), self.Wc.astype(cd), self.bc, rs_img_f)
        rel = pallas_mm_bias(pool_uni.astype(cd), self.Wr.astype(cd), self.br, rs_uni_f)

        # ---- object_feature_fuse: single MXU pass on a concatenated operand ----
        obj_in = jnp.concatenate(
            [pool_box, ctx[:, :C2], ctx[:, C2:] * im_ctx_f], axis=1)
        obj_fused = pallas_mm_bias(obj_in.astype(cd), self.W_of.astype(cd), self.b_of)
        D1 = obj_fused.shape[1]

        obj_f = obj_fused.reshape(B, n_max, P * P, D1)
        obj_s = obj_f[:, sub_id].reshape(B * nn49, D1)
        obj_o = obj_f[:, obj_id].reshape(B * nn49, D1)

        # ---- relation_feature_fuse: single MXU pass ----
        rel_in = jnp.concatenate(
            [obj_s, obj_o, rel[:, :C2],
             rel[:, C2:2 * C2] * im_sub_f,
             rel[:, 2 * C2:] * im_obj_f], axis=1)
        rel_fused = pallas_mm_bias(rel_in.astype(cd), self.W_rf.astype(cd), self.b_rf)
        D2 = rel_fused.shape[1]

        # ---- FC + L2 norm (flatten permutation already folded into weights) ----
        obj_fc_in = obj_fused.reshape(B * n_max, P * P * D1)
        rel_fc_in = rel_fused.reshape(B * n_max * n_max, P * P * D2)
        obj_out = pallas_fc_norm(obj_fc_in.astype(cd), self.W_ofc.astype(cd), self.b_ofc)
        rel_out = pallas_fc_norm(rel_fc_in.astype(cd), self.W_rfc.astype(cd), self.b_rfc)
        return (obj_out.reshape(B, n_max, D1),
                rel_out.reshape(B, n_max, n_max, D2))

    # ------------------------------- public call --------------------------------

    def __call__(self, inputs, objects, objects_length):
        B, C, H, W = inputs.shape
        P = self.pool_size
        ds = self.downsample_rate
        HW = H * W

        boxes_np = np.asarray(objects, dtype=np.float32)
        lengths = [int(v) for v in np.asarray(objects_length)]
        n_max = max(max(lengths), 1)

        # ---- torch.no_grad() geometry, padded to n_max (host-side glue) ----
        sub_id_np = np.repeat(np.arange(n_max), n_max)
        obj_id_np = np.tile(np.arange(n_max), n_max)
        scale = 1.0 / ds

        S_all_l, rs_img_l, rs_uni_l = [], [], []
        im_ctx_l, im_sub_l, im_obj_l = [], [], []
        obj_index = 0
        for i in range(B):
            n = lengths[i]
            box = np.zeros((n_max, 4), np.float32)
            box[:n] = boxes_np[obj_index:obj_index + n]
            obj_index += n

            image_box = np.tile(np.array([0.0, 0.0, W * ds, H * ds], np.float32),
                                (n_max, 1))
            sub_box = box[sub_id_np]
            obj_box = box[obj_id_np]
            union_box = np.concatenate(
                [np.minimum(sub_box[:, :2], obj_box[:, :2]),
                 np.maximum(sub_box[:, 2:], obj_box[:, 2:])], axis=1)

            S_img = roi_align_matrix_np(image_box, scale, P, H, W)   # (n_max*49, HW)
            S_box = roi_align_matrix_np(box, scale, P, H, W)
            S_uni = roi_align_matrix_np(union_box, scale, P, H, W)   # (n_max^2*49, HW)
            S_all_l.append(np.concatenate([S_img, S_box, S_uni], axis=0))
            rs_img_l.append(S_img.sum(axis=1, keepdims=True))
            rs_uni_l.append(S_uni.sum(axis=1, keepdims=True))
            im_ctx_l.append(intersection_map_np(box, image_box, P).reshape(-1, 1))
            im_sub_l.append(intersection_map_np(sub_box, union_box, P).reshape(-1, 1))
            im_obj_l.append(intersection_map_np(obj_box, union_box, P).reshape(-1, 1))

        S_all = jnp.asarray(np.stack(S_all_l))         # (B, (2n+n^2)*49, HW)
        rs_img = jnp.asarray(np.stack(rs_img_l))       # (B, n*49, 1)
        rs_uni = jnp.asarray(np.stack(rs_uni_l))       # (B, n^2*49, 1)
        im_ctx = jnp.asarray(np.stack(im_ctx_l))
        im_sub = jnp.asarray(np.stack(im_sub_l))
        im_obj = jnp.asarray(np.stack(im_obj_l))

        # NCHW -> (B, H*W, C) pixels x channels
        x_pix = jnp.transpose(inputs, (0, 2, 3, 1)).reshape(B, HW, C).astype(jnp.float32)

        obj_out, rel_out = self._fwd(x_pix, S_all, rs_img, rs_uni,
                                     im_ctx, im_sub, im_obj,
                                     jnp.asarray(sub_id_np, jnp.int32),
                                     jnp.asarray(obj_id_np, jnp.int32))

        outputs = []
        for i, n in enumerate(lengths):
            outputs.append([None, obj_out[i, :n], rel_out[i, :n, :n]])
        return outputs


# ------------------------------------ main --------------------------------------

if __name__ == "__main__":
    B, C, H, W = 2, 4, 16, 16
    output_dims = (None, 32, 32)
    downsample_rate = 16

    keys = jax.random.split(jax.random.PRNGKey(0), 4)
    inputs = jax.random.normal(keys[0], (B, C, H, W), dtype=jnp.float32)

    objects_length = np.array([3, 2], dtype=np.int32)
    n_total = int(objects_length.sum())
    xy = jax.random.uniform(keys[1], (n_total, 2), minval=0.0, maxval=180.0)
    wh = jax.random.uniform(keys[2], (n_total, 2), minval=24.0, maxval=70.0)
    objects = jnp.concatenate([xy, xy + wh], axis=-1)   # (n_total, 4)  x1,y1,x2,y2

    model = SceneGraphPallas(C, output_dims, downsample_rate, keys[3])
    outputs = model(inputs, objects, objects_length)

    for out in outputs:
        jax.block_until_ready(out[1])
        jax.block_until_ready(out[2])

    print("KERNEL_OK")
</pallas_src>

<mosaic_0001>
module attributes {stable_mosaic.version = 11 : i64} {
  func.func @_pool_kernel(%arg0: i32, %arg1: i32, %arg2: memref<1x512x256xf32, #tpu.memory_space<vmem>>, %arg3: memref<1x256x4xf32, #tpu.memory_space<vmem>>, %arg4: memref<1x512x4xf32, #tpu.memory_space<vmem>>) attributes {dimension_semantics = [#tpu.dimension_semantics<parallel>, #tpu.dimension_semantics<parallel>], iteration_bounds = array<i64: 2, 2>, scalar_prefetch = 0 : i64, scratch_operands = 0 : i64, tpu.core_type = #tpu.core_type<tc>, window_params = [{transform_indices = @transform_0, window_bounds = array<i64: 1, 512, 256>}, {transform_indices = @transform_1, window_bounds = array<i64: 1, 256, 4>}, {transform_indices = @transform_2, window_bounds = array<i64: 1, 512, 4>}]} {
    %c0 = arith.constant 0 : index
    %c0_0 = arith.constant 0 : index
    %c0_1 = arith.constant 0 : index
    %0 = vector.load %arg2[%c0, %c0_0, %c0_1] : memref<1x512x256xf32, #tpu.memory_space<vmem>>, vector<1x512x256xf32>
    %1 = vector.shape_cast %0 : vector<1x512x256xf32> to vector<512x256xf32>
    %c0_2 = arith.constant 0 : index
    %c0_3 = arith.constant 0 : index
    %c0_4 = arith.constant 0 : index
    %2 = vector.load %arg3[%c0_2, %c0_3, %c0_4] : memref<1x256x4xf32, #tpu.memory_space<vmem>>, vector<1x256x4xf32>
    %3 = vector.shape_cast %2 : vector<1x256x4xf32> to vector<256x4xf32>
    %cst = arith.constant dense<0.000000e+00> : vector<512x4xf32>
    %4 = tpu.matmul %1, %3, %cst {dimension_numbers = #tpu.dot_dimension_numbers<[1], [0], [0], [1], [0, 0, 1, 1], [], []>} : vector<512x256xf32>, vector<256x4xf32>, vector<512x4xf32> -> vector<512x4xf32>
    %c0_5 = arith.constant 0 : index
    %c0_6 = arith.constant 0 : index
    %c0_7 = arith.constant 0 : index
    %5 = vector.load %arg4[%c0_5, %c0_6, %c0_7] : memref<1x512x4xf32, #tpu.memory_space<vmem>>, vector<1x512x4xf32>
    %6 = vector.shape_cast %5 : vector<1x512x4xf32> to vector<512x4xf32>
    %7 = vector.shape_cast %4 : vector<512x4xf32> to vector<1x512x4xf32>
    tpu.vector_store %arg4[%c0_5, %c0_6, %c0_7], %7 {strides = array<i32>} : memref<1x512x4xf32, #tpu.memory_space<vmem>>, vector<1x512x4xf32>,
    return
  }
  func.func @transform_0(%arg0: i32, %arg1: i32) -> (i32, i32, i32) {
    %c0_i32 = arith.constant 0 : i32
    %c0_i32_0 = arith.constant 0 : i32
    return %arg0, %arg1, %c0_i32 : i32, i32, i32
  }
  func.func @transform_1(%arg0: i32, %arg1: i32) -> (i32, i32, i32) {
    %c0_i32 = arith.constant 0 : i32
    %c0_i32_0 = arith.constant 0 : i32
    %c0_i32_1 = arith.constant 0 : i32
    return %arg0, %c0_i32, %c0_i32_0 : i32, i32, i32
  }
  func.func @transform_2(%arg0: i32, %arg1: i32) -> (i32, i32, i32) {
    %c0_i32 = arith.constant 0 : i32
    %c0_i32_0 = arith.constant 0 : i32
    return %arg0, %arg1, %c0_i32 : i32, i32, i32
  }
}

module attributes {stable_mosaic.version = 11 : i64} {
  func.func @_mm_bias_kernel(%arg0: i32, %arg1: memref<294x4xf32, #tpu.memory_space<vmem>>, %arg2: memref<294x1xf32, #tpu.memory_space<vmem>>, %arg3: memref<4x4xf32, #tpu.memory_space<vmem>>, %arg4: memref<1x4xf32, #tpu.memory_space<vmem>>, %arg5: memref<294x4xf32, #tpu.memory_space<vmem>>) attributes {dimension_semantics = [#tpu.dimension_semantics<parallel>], iteration_bounds = array<i64: 1>, scalar_prefetch = 0 : i64, scratch_operands = 0 : i64, tpu.core_type = #tpu.core_type<tc>, window_params = [{transform_indices = @transform_0, window_bounds = array<i64: 294, 4>}, {transform_indices = @transform_1, window_bounds = array<i64: 294, 1>}, {pipeline_mode = #tpu.pipeline_mode<synchronous>, transform_indices = @transform_2, window_bounds = array<i64: 4, 4>}, {pipeline_mode = #tpu.pipeline_mode<synchronous>, transform_indices = @transform_3, window_bounds = array<i64: 1, 4>}, {transform_indices = @transform_4, window_bounds = array<i64: 294, 4>}]} {
    %c0 = arith.constant 0 : index
    %c0_0 = arith.constant 0 : index
    %0 = vector.load %arg1[%c0, %c0_0] : memref<294x4xf32, #tpu.memory_space<vmem>>, vector<294x4xf32>
    %c0_1 = arith.constant 0 : index
    %c0_2 = arith.constant 0 : index
    %1 = vector.load %arg3[%c0_1, %c0_2] : memref<4x4xf32, #tpu.memory_space<vmem>>, vector<4x4xf32>
    %cst = arith.constant dense<0.000000e+00> : vector<294x4xf32>
    %2 = tpu.matmul %0, %1, %cst {dimension_numbers = #tpu.dot_dimension_numbers<[1], [0], [0], [1], [0, 0, 1, 1], [], []>} : vector<294x4xf32>, vector<4x4xf32>, vector<294x4xf32> -> vector<294x4xf32>
    %c0_3 = arith.constant 0 : index
    %c0_4 = arith.constant 0 : index
    %3 = vector.load %arg2[%c0_3, %c0_4] : memref<294x1xf32, #tpu.memory_space<vmem>>, vector<294x1xf32>
    %c0_5 = arith.constant 0 : index
    %c0_6 = arith.constant 0 : index
    %4 = vector.load %arg4[%c0_5, %c0_6] : memref<1x4xf32, #tpu.memory_space<vmem>>, vector<1x4xf32>
    %5 = vector.broadcast %3 : vector<294x1xf32> to vector<294x4xf32>
    %6 = vector.broadcast %4 : vector<1x4xf32> to vector<294x4xf32>
    %7 = arith.mulf %5, %6 : vector<294x4xf32>
    %8 = arith.addf %2, %7 : vector<294x4xf32>
    %c0_7 = arith.constant 0 : index
    %c0_8 = arith.constant 0 : index
    %9 = vector.load %arg5[%c0_7, %c0_8] : memref<294x4xf32, #tpu.memory_space<vmem>>, vector<294x4xf32>
    tpu.vector_store %arg5[%c0_7, %c0_8], %8 {strides = array<i32>} : memref<294x4xf32, #tpu.memory_space<vmem>>, vector<294x4xf32>,
    return
  }
  func.func @transform_0(%arg0: i32) -> (i32, i32) {
    %c0_i32 = arith.constant 0 : i32
    %c0_i32_0 = arith.constant 0 : i32
    return %arg0, %c0_i32 : i32, i32
  }
  func.func @transform_1(%arg0: i32) -> (i32, i32) {
    %c0_i32 = arith.constant 0 : i32
    %c0_i32_0 = arith.constant 0 : i32
    return %arg0, %c0_i32 : i32, i32
  }
  func.func @transform_2(%arg0: i32) -> (i32, i32) {
    %c0_i32 = arith.constant 0 : i32
    %c0_i32_0 = arith.constant 0 : i32
    %c0_i32_1 = arith.constant 0 : i32
    return %c0_i32, %c0_i32_0 : i32, i32
  }
  func.func @transform_3(%arg0: i32) -> (i32, i32) {
    %c0_i32 = arith.constant 0 : i32
    %c0_i32_0 = arith.constant 0 : i32
    %c0_i32_1 = arith.constant 0 : i32
    return %c0_i32, %c0_i32_0 : i32, i32
  }
  func.func @transform_4(%arg0: i32) -> (i32, i32) {
    %c0_i32 = arith.constant 0 : i32
    %c0_i32_0 = arith.constant 0 : i32
    return %arg0, %c0_i32 : i32, i32
  }
}

module attributes {stable_mosaic.version = 11 : i64} {
  func.func @_mm_bias_kernel(%arg0: i32, %arg1: memref<294x8xf32, #tpu.memory_space<vmem>>, %arg2: memref<294x1xf32, #tpu.memory_space<vmem>>, %arg3: memref<8x32xf32, #tpu.memory_space<vmem>>, %arg4: memref<1x32xf32, #tpu.memory_space<vmem>>, %arg5: memref<294x32xf32, #tpu.memory_space<vmem>>) attributes {dimension_semantics = [#tpu.dimension_semantics<parallel>], iteration_bounds = array<i64: 1>, scalar_prefetch = 0 : i64, scratch_operands = 0 : i64, tpu.core_type = #tpu.core_type<tc>, window_params = [{transform_indices = @transform_0, window_bounds = array<i64: 294, 8>}, {transform_indices = @transform_1, window_bounds = array<i64: 294, 1>}, {pipeline_mode = #tpu.pipeline_mode<synchronous>, transform_indices = @transform_2, window_bounds = array<i64: 8, 32>}, {pipeline_mode = #tpu.pipeline_mode<synchronous>, transform_indices = @transform_3, window_bounds = array<i64: 1, 32>}, {transform_indices = @transform_4, window_bounds = array<i64: 294, 32>}]} {
    %c0 = arith.constant 0 : index
    %c0_0 = arith.constant 0 : index
    %0 = vector.load %arg1[%c0, %c0_0] : memref<294x8xf32, #tpu.memory_space<vmem>>, vector<294x8xf32>
    %c0_1 = arith.constant 0 : index
    %c0_2 = arith.constant 0 : index
    %1 = vector.load %arg3[%c0_1, %c0_2] : memref<8x32xf32, #tpu.memory_space<vmem>>, vector<8x32xf32>
    %cst = arith.constant dense<0.000000e+00> : vector<294x32xf32>
    %2 = tpu.matmul %0, %1, %cst {dimension_numbers = #tpu.dot_dimension_numbers<[1], [0], [0], [1], [0, 0, 1, 1], [], []>} : vector<294x8xf32>, vector<8x32xf32>, vector<294x32xf32> -> vector<294x32xf32>
    %c0_3 = arith.constant 0 : index
    %c0_4 = arith.constant 0 : index
    %3 = vector.load %arg2[%c0_3, %c0_4] : memref<294x1xf32, #tpu.memory_space<vmem>>, vector<294x1xf32>
    %c0_5 = arith.constant 0 : index
    %c0_6 = arith.constant 0 : index
    %4 = vector.load %arg4[%c0_5, %c0_6] : memref<1x32xf32, #tpu.memory_space<vmem>>, vector<1x32xf32>
    %5 = vector.broadcast %3 : vector<294x1xf32> to vector<294x32xf32>
    %6 = vector.broadcast %4 : vector<1x32xf32> to vector<294x32xf32>
    %7 = arith.mulf %5, %6 : vector<294x32xf32>
    %8 = arith.addf %2, %7 : vector<294x32xf32>
    %c0_7 = arith.constant 0 : index
    %c0_8 = arith.constant 0 : index
    %9 = vector.load %arg5[%c0_7, %c0_8] : memref<294x32xf32, #tpu.memory_space<vmem>>, vector<294x32xf32>
    tpu.vector_store %arg5[%c0_7, %c0_8], %8 {strides = array<i32>} : memref<294x32xf32, #tpu.memory_space<vmem>>, vector<294x32xf32>,
    return
  }
  func.func @transform_0(%arg0: i32) -> (i32, i32) {
    %c0_i32 = arith.constant 0 : i32
    %c0_i32_0 = arith.constant 0 : i32
    return %arg0, %c0_i32 : i32, i32
  }
  func.func @transform_1(%arg0: i32) -> (i32, i32) {
    %c0_i32 = arith.constant 0 : i32
    %c0_i32_0 = arith.constant 0 : i32
    return %arg0, %c0_i32 : i32, i32
  }
  func.func @transform_2(%arg0: i32) -> (i32, i32) {
    %c0_i32 = arith.constant 0 : i32
    %c0_i32_0 = arith.constant 0 : i32
    %c0_i32_1 = arith.constant 0 : i32
    return %c0_i32, %c0_i32_0 : i32, i32
  }
  func.func @transform_3(%arg0: i32) -> (i32, i32) {
    %c0_i32 = arith.constant 0 : i32
    %c0_i32_0 = arith.constant 0 : i32
    %c0_i32_1 = arith.constant 0 : i32
    return %c0_i32, %c0_i32_0 : i32, i32
  }
  func.func @transform_4(%arg0: i32) -> (i32, i32) {
    %c0_i32 = arith.constant 0 : i32
    %c0_i32_0 = arith.constant 0 : i32
    return %arg0, %c0_i32 : i32, i32
  }
}

module attributes {stable_mosaic.version = 11 : i64} {
  func.func @_mm_bias_kernel(%arg0: i32, %arg1: memref<512x4xf32, #tpu.memory_space<vmem>>, %arg2: memref<512x1xf32, #tpu.memory_space<vmem>>, %arg3: memref<4x6xf32, #tpu.memory_space<vmem>>, %arg4: memref<1x6xf32, #tpu.memory_space<vmem>>, %arg5: memref<512x6xf32, #tpu.memory_space<vmem>>) attributes {dimension_semantics = [#tpu.dimension_semantics<parallel>], iteration_bounds = array<i64: 2>, scalar_prefetch = 0 : i64, scratch_operands = 0 : i64, tpu.core_type = #tpu.core_type<tc>, window_params = [{transform_indices = @transform_0, window_bounds = array<i64: 512, 4>}, {transform_indices = @transform_1, window_bounds = array<i64: 512, 1>}, {pipeline_mode = #tpu.pipeline_mode<synchronous>, transform_indices = @transform_2, window_bounds = array<i64: 4, 6>}, {pipeline_mode = #tpu.pipeline_mode<synchronous>, transform_indices = @transform_3, window_bounds = array<i64: 1, 6>}, {transform_indices = @transform_4, window_bounds = array<i64: 512, 6>}]} {
    %c0 = arith.constant 0 : index
    %c0_0 = arith.constant 0 : index
    %0 = vector.load %arg1[%c0, %c0_0] : memref<512x4xf32, #tpu.memory_space<vmem>>, vector<512x4xf32>
    %c0_1 = arith.constant 0 : index
    %c0_2 = arith.constant 0 : index
    %1 = vector.load %arg3[%c0_1, %c0_2] : memref<4x6xf32, #tpu.memory_space<vmem>>, vector<4x6xf32>
    %cst = arith.constant dense<0.000000e+00> : vector<512x6xf32>
    %2 = tpu.matmul %0, %1, %cst {dimension_numbers = #tpu.dot_dimension_numbers<[1], [0], [0], [1], [0, 0, 1, 1], [], []>} : vector<512x4xf32>, vector<4x6xf32>, vector<512x6xf32> -> vector<512x6xf32>
    %c0_3 = arith.constant 0 : index
    %c0_4 = arith.constant 0 : index
    %3 = vector.load %arg2[%c0_3, %c0_4] : memref<512x1xf32, #tpu.memory_space<vmem>>, vector<512x1xf32>
    %c0_5 = arith.constant 0 : index
    %c0_6 = arith.constant 0 : index
    %4 = vector.load %arg4[%c0_5, %c0_6] : memref<1x6xf32, #tpu.memory_space<vmem>>, vector<1x6xf32>
    %5 = vector.broadcast %3 : vector<512x1xf32> to vector<512x6xf32>
    %6 = vector.broadcast %4 : vector<1x6xf32> to vector<512x6xf32>
    %7 = arith.mulf %5, %6 : vector<512x6xf32>
    %8 = arith.addf %2, %7 : vector<512x6xf32>
    %c0_7 = arith.constant 0 : index
    %c0_8 = arith.constant 0 : index
    %9 = vector.load %arg5[%c0_7, %c0_8] : memref<512x6xf32, #tpu.memory_space<vmem>>, vector<512x6xf32>
    tpu.vector_store %arg5[%c0_7, %c0_8], %8 {strides = array<i32>} : memref<512x6xf32, #tpu.memory_space<vmem>>, vector<512x6xf32>,
    return
  }
  func.func @transform_0(%arg0: i32) -> (i32, i32) {
    %c0_i32 = arith.constant 0 : i32
    %c0_i32_0 = arith.constant 0 : i32
    return %arg0, %c0_i32 : i32, i32
  }
  func.func @transform_1(%arg0: i32) -> (i32, i32) {
    %c0_i32 = arith.constant 0 : i32
    %c0_i32_0 = arith.constant 0 : i32
    return %arg0, %c0_i32 : i32, i32
  }
  func.func @transform_2(%arg0: i32) -> (i32, i32) {
    %c0_i32 = arith.constant 0 : i32
    %c0_i32_0 = arith.constant 0 : i32
    %c0_i32_1 = arith.constant 0 : i32
    return %c0_i32, %c0_i32_0 : i32, i32
  }
  func.func @transform_3(%arg0: i32) -> (i32, i32) {
    %c0_i32 = arith.constant 0 : i32
    %c0_i32_0 = arith.constant 0 : i32
    %c0_i32_1 = arith.constant 0 : i32
    return %c0_i32, %c0_i32_0 : i32, i32
  }
  func.func @transform_4(%arg0: i32) -> (i32, i32) {
    %c0_i32 = arith.constant 0 : i32
    %c0_i32_0 = arith.constant 0 : i32
    return %arg0, %c0_i32 : i32, i32
  }
}

module attributes {stable_mosaic.version = 11 : i64} {
  func.func @_mm_bias_kernel(%arg0: i32, %arg1: memref<512x70xf32, #tpu.memory_space<vmem>>, %arg2: memref<512x1xf32, #tpu.memory_space<vmem>>, %arg3: memref<70x32xf32, #tpu.memory_space<vmem>>, %arg4: memref<1x32xf32, #tpu.memory_space<vmem>>, %arg5: memref<512x32xf32, #tpu.memory_space<vmem>>) attributes {dimension_semantics = [#tpu.dimension_semantics<parallel>], iteration_bounds = array<i64: 2>, scalar_prefetch = 0 : i64, scratch_operands = 0 : i64, tpu.core_type = #tpu.core_type<tc>, window_params = [{transform_indices = @transform_0, window_bounds = array<i64: 512, 70>}, {transform_indices = @transform_1, window_bounds = array<i64: 512, 1>}, {pipeline_mode = #tpu.pipeline_mode<synchronous>, transform_indices = @transform_2, window_bounds = array<i64: 70, 32>}, {pipeline_mode = #tpu.pipeline_mode<synchronous>, transform_indices = @transform_3, window_bounds = array<i64: 1, 32>}, {transform_indices = @transform_4, window_bounds = array<i64: 512, 32>}]} {
    %c0 = arith.constant 0 : index
    %c0_0 = arith.constant 0 : index
    %0 = vector.load %arg1[%c0, %c0_0] : memref<512x70xf32, #tpu.memory_space<vmem>>, vector<512x70xf32>
    %c0_1 = arith.constant 0 : index
    %c0_2 = arith.constant 0 : index
    %1 = vector.load %arg3[%c0_1, %c0_2] : memref<70x32xf32, #tpu.memory_space<vmem>>, vector<70x32xf32>
    %cst = arith.constant dense<0.000000e+00> : vector<512x32xf32>
    %2 = tpu.matmul %0, %1, %cst {dimension_numbers = #tpu.dot_dimension_numbers<[1], [0], [0], [1], [0, 0, 1, 1], [], []>} : vector<512x70xf32>, vector<70x32xf32>, vector<512x32xf32> -> vector<512x32xf32>
    %c0_3 = arith.constant 0 : index
    %c0_4 = arith.constant 0 : index
    %3 = vector.load %arg2[%c0_3, %c0_4] : memref<512x1xf32, #tpu.memory_space<vmem>>, vector<512x1xf32>
    %c0_5 = arith.constant 0 : index
    %c0_6 = arith.constant 0 : index
    %4 = vector.load %arg4[%c0_5, %c0_6] : memref<1x32xf32, #tpu.memory_space<vmem>>, vector<1x32xf32>
    %5 = vector.broadcast %3 : vector<512x1xf32> to vector<512x32xf32>
    %6 = vector.broadcast %4 : vector<1x32xf32> to vector<512x32xf32>
    %7 = arith.mulf %5, %6 : vector<512x32xf32>
    %8 = arith.addf %2, %7 : vector<512x32xf32>
    %c0_7 = arith.constant 0 : index
    %c0_8 = arith.constant 0 : index
    %9 = vector.load %arg5[%c0_7, %c0_8] : memref<512x32xf32, #tpu.memory_space<vmem>>, vector<512x32xf32>
    tpu.vector_store %arg5[%c0_7, %c0_8], %8 {strides = array<i32>} : memref<512x32xf32, #tpu.memory_space<vmem>>, vector<512x32xf32>,
    return
  }
  func.func @transform_0(%arg0: i32) -> (i32, i32) {
    %c0_i32 = arith.constant 0 : i32
    %c0_i32_0 = arith.constant 0 : i32
    return %arg0, %c0_i32 : i32, i32
  }
  func.func @transform_1(%arg0: i32) -> (i32, i32) {
    %c0_i32 = arith.constant 0 : i32
    %c0_i32_0 = arith.constant 0 : i32
    return %arg0, %c0_i32 : i32, i32
  }
  func.func @transform_2(%arg0: i32) -> (i32, i32) {
    %c0_i32 = arith.constant 0 : i32
    %c0_i32_0 = arith.constant 0 : i32
    %c0_i32_1 = arith.constant 0 : i32
    return %c0_i32, %c0_i32_0 : i32, i32
  }
  func.func @transform_3(%arg0: i32) -> (i32, i32) {
    %c0_i32 = arith.constant 0 : i32
    %c0_i32_0 = arith.constant 0 : i32
    %c0_i32_1 = arith.constant 0 : i32
    return %c0_i32, %c0_i32_0 : i32, i32
  }
  func.func @transform_4(%arg0: i32) -> (i32, i32) {
    %c0_i32 = arith.constant 0 : i32
    %c0_i32_0 = arith.constant 0 : i32
    return %arg0, %c0_i32 : i32, i32
  }
}

module attributes {stable_mosaic.version = 11 : i64} {
  func.func @_fc_norm_kernel(%arg0: i32, %arg1: memref<18x1568xf32, #tpu.memory_space<vmem>>, %arg2: memref<1568x32xf32, #tpu.memory_space<vmem>>, %arg3: memref<1x32xf32, #tpu.memory_space<vmem>>, %arg4: memref<18x32xf32, #tpu.memory_space<vmem>>) attributes {dimension_semantics = [#tpu.dimension_semantics<parallel>], iteration_bounds = array<i64: 1>, scalar_prefetch = 0 : i64, scratch_operands = 0 : i64, tpu.core_type = #tpu.core_type<tc>, window_params = [{transform_indices = @transform_0, window_bounds = array<i64: 18, 1568>}, {pipeline_mode = #tpu.pipeline_mode<synchronous>, transform_indices = @transform_1, window_bounds = array<i64: 1568, 32>}, {pipeline_mode = #tpu.pipeline_mode<synchronous>, transform_indices = @transform_2, window_bounds = array<i64: 1, 32>}, {transform_indices = @transform_3, window_bounds = array<i64: 18, 32>}]} {
    %c0 = arith.constant 0 : index
    %c0_0 = arith.constant 0 : index
    %0 = vector.load %arg1[%c0, %c0_0] : memref<18x1568xf32, #tpu.memory_space<vmem>>, vector<18x1568xf32>
    %cst = arith.constant 0.000000e+00 : f32
    %1 = vector.broadcast %cst : f32 to vector<18x1568xf32>
    %2 = arith.maximumf %0, %1 : vector<18x1568xf32>
    %c0_1 = arith.constant 0 : index
    %c0_2 = arith.constant 0 : index
    %3 = vector.load %arg2[%c0_1, %c0_2] : memref<1568x32xf32, #tpu.memory_space<vmem>>, vector<1568x32xf32>
    %cst_3 = arith.constant dense<0.000000e+00> : vector<18x32xf32>
    %4 = tpu.matmul %2, %3, %cst_3 {dimension_numbers = #tpu.dot_dimension_numbers<[1], [0], [0], [1], [0, 0, 1, 1], [], []>} : vector<18x1568xf32>, vector<1568x32xf32>, vector<18x32xf32> -> vector<18x32xf32>
    %c0_4 = arith.constant 0 : index
    %c0_5 = arith.constant 0 : index
    %5 = vector.load %arg3[%c0_4, %c0_5] : memref<1x32xf32, #tpu.memory_space<vmem>>, vector<1x32xf32>
    %6 = vector.broadcast %5 : vector<1x32xf32> to vector<18x32xf32>
    %7 = arith.addf %4, %6 : vector<18x32xf32>
    %8 = arith.mulf %7, %7 : vector<18x32xf32>
    %cst_6 = arith.constant dense<0.000000e+00> : vector<18xf32>
    %9 = vector.multi_reduction <add>, %8, %cst_6 [1] : vector<18x32xf32> to vector<18xf32>
    %10 = vector.shape_cast %9 : vector<18xf32> to vector<18x1xf32>
    %cst_7 = arith.constant 9.99999996E-13 : f32
    %11 = vector.broadcast %cst_7 : f32 to vector<18x1xf32>
    %12 = arith.addf %10, %11 : vector<18x1xf32>
    %13 = math.rsqrt %12 : vector<18x1xf32>
    %14 = vector.broadcast %13 : vector<18x1xf32> to vector<18x32xf32>
    %15 = arith.mulf %7, %14 : vector<18x32xf32>
    %c0_8 = arith.constant 0 : index
    %c0_9 = arith.constant 0 : index
    %16 = vector.load %arg4[%c0_8, %c0_9] : memref<18x32xf32, #tpu.memory_space<vmem>>, vector<18x32xf32>
    tpu.vector_store %arg4[%c0_8, %c0_9], %15 {strides = array<i32>} : memref<18x32xf32, #tpu.memory_space<vmem>>, vector<18x32xf32>,
    return
  }
  func.func @transform_0(%arg0: i32) -> (i32, i32) {
    %c0_i32 = arith.constant 0 : i32
    %c0_i32_0 = arith.constant 0 : i32
    return %arg0, %c0_i32 : i32, i32
  }
  func.func @transform_1(%arg0: i32) -> (i32, i32) {
    %c0_i32 = arith.constant 0 : i32
    %c0_i32_0 = arith.constant 0 : i32
    %c0_i32_1 = arith.constant 0 : i32
    return %c0_i32, %c0_i32_0 : i32, i32
  }
  func.func @transform_2(%arg0: i32) -> (i32, i32) {
    %c0_i32 = arith.constant 0 : i32
    %c0_i32_0 = arith.constant 0 : i32
    %c0_i32_1 = arith.constant 0 : i32
    return %c0_i32, %c0_i32_0 : i32, i32
  }
  func.func @transform_3(%arg0: i32) -> (i32, i32) {
    %c0_i32 = arith.constant 0 : i32
    %c0_i32_0 = arith.constant 0 : i32
    return %arg0, %c0_i32 : i32, i32
  }
}

module attributes {stable_mosaic.version = 11 : i64} {
  func.func @_fc_norm_kernel(%arg0: i32, %arg1: memref<6x1568xf32, #tpu.memory_space<vmem>>, %arg2: memref<1568x32xf32, #tpu.memory_space<vmem>>, %arg3: memref<1x32xf32, #tpu.memory_space<vmem>>, %arg4: memref<6x32xf32, #tpu.memory_space<vmem>>) attributes {dimension_semantics = [#tpu.dimension_semantics<parallel>], iteration_bounds = array<i64: 1>, scalar_prefetch = 0 : i64, scratch_operands = 0 : i64, tpu.core_type = #tpu.core_type<tc>, window_params = [{transform_indices = @transform_0, window_bounds = array<i64: 6, 1568>}, {pipeline_mode = #tpu.pipeline_mode<synchronous>, transform_indices = @transform_1, window_bounds = array<i64: 1568, 32>}, {pipeline_mode = #tpu.pipeline_mode<synchronous>, transform_indices = @transform_2, window_bounds = array<i64: 1, 32>}, {transform_indices = @transform_3, window_bounds = array<i64: 6, 32>}]} {
    %c0 = arith.constant 0 : index
    %c0_0 = arith.constant 0 : index
    %0 = vector.load %arg1[%c0, %c0_0] : memref<6x1568xf32, #tpu.memory_space<vmem>>, vector<6x1568xf32>
    %cst = arith.constant 0.000000e+00 : f32
    %1 = vector.broadcast %cst : f32 to vector<6x1568xf32>
    %2 = arith.maximumf %0, %1 : vector<6x1568xf32>
    %c0_1 = arith.constant 0 : index
    %c0_2 = arith.constant 0 : index
    %3 = vector.load %arg2[%c0_1, %c0_2] : memref<1568x32xf32, #tpu.memory_space<vmem>>, vector<1568x32xf32>
    %cst_3 = arith.constant dense<0.000000e+00> : vector<6x32xf32>
    %4 = tpu.matmul %2, %3, %cst_3 {dimension_numbers = #tpu.dot_dimension_numbers<[1], [0], [0], [1], [0, 0, 1, 1], [], []>} : vector<6x1568xf32>, vector<1568x32xf32>, vector<6x32xf32> -> vector<6x32xf32>
    %c0_4 = arith.constant 0 : index
    %c0_5 = arith.constant 0 : index
    %5 = vector.load %arg3[%c0_4, %c0_5] : memref<1x32xf32, #tpu.memory_space<vmem>>, vector<1x32xf32>
    %6 = vector.broadcast %5 : vector<1x32xf32> to vector<6x32xf32>
    %7 = arith.addf %4, %6 : vector<6x32xf32>
    %8 = arith.mulf %7, %7 : vector<6x32xf32>
    %cst_6 = arith.constant dense<0.000000e+00> : vector<6xf32>
    %9 = vector.multi_reduction <add>, %8, %cst_6 [1] : vector<6x32xf32> to vector<6xf32>
    %10 = vector.shape_cast %9 : vector<6xf32> to vector<6x1xf32>
    %cst_7 = arith.constant 9.99999996E-13 : f32
    %11 = vector.broadcast %cst_7 : f32 to vector<6x1xf32>
    %12 = arith.addf %10, %11 : vector<6x1xf32>
    %13 = math.rsqrt %12 : vector<6x1xf32>
    %14 = vector.broadcast %13 : vector<6x1xf32> to vector<6x32xf32>
    %15 = arith.mulf %7, %14 : vector<6x32xf32>
    %c0_8 = arith.constant 0 : index
    %c0_9 = arith.constant 0 : index
    %16 = vector.load %arg4[%c0_8, %c0_9] : memref<6x32xf32, #tpu.memory_space<vmem>>, vector<6x32xf32>
    tpu.vector_store %arg4[%c0_8, %c0_9], %15 {strides = array<i32>} : memref<6x32xf32, #tpu.memory_space<vmem>>, vector<6x32xf32>,
    return
  }
  func.func @transform_0(%arg0: i32) -> (i32, i32) {
    %c0_i32 = arith.constant 0 : i32
    %c0_i32_0 = arith.constant 0 : i32
    return %arg0, %c0_i32 : i32, i32
  }
  func.func @transform_1(%arg0: i32) -> (i32, i32) {
    %c0_i32 = arith.constant 0 : i32
    %c0_i32_0 = arith.constant 0 : i32
    %c0_i32_1 = arith.constant 0 : i32
    return %c0_i32, %c0_i32_0 : i32, i32
  }
  func.func @transform_2(%arg0: i32) -> (i32, i32) {
    %c0_i32 = arith.constant 0 : i32
    %c0_i32_0 = arith.constant 0 : i32
    %c0_i32_1 = arith.constant 0 : i32
    return %c0_i32, %c0_i32_0 : i32, i32
  }
  func.func @transform_3(%arg0: i32) -> (i32, i32) {
    %c0_i32 = arith.constant 0 : i32
    %c0_i32_0 = arith.constant 0 : i32
    return %arg0, %c0_i32 : i32, i32
  }
}

</mosaic_0001>

<bundles_post_ra>
// kernel: mul.13
= control target key start
LH: loop header
LB: loop body
LE: loop exit
PB: predicated region body
PF: predicated region fallthrough
CT: control target
= control target key end

     0   :  { %vm21_vm0 = vcmask 891904   ;;  %vm12_vm1 = vcmask 154624   ;;  %vm28_vm2 = vcmask 310424   ;;  %vm35_vm3 = vcmask 1047704   ;;  %s66_s0 = inlined_call_operand.vmem [shape: f32[2,147], index: 0, kind: input, shape index: {}]   ;;  %s67_s1 = inlined_call_operand.vmem [shape: f32[294], index: 1, kind: output, shape index: {}]  }
   0x1   :  { %v44_v0 = vld [vmem:[%s66_s0 + $0x2] sm:$0x3]  ;;  %v8_v1 = vld [vmem:[%s66_s0] sm:$0x3]  ;;  %s46_s0 = smov 19  }
   0x2   :  { %7 = vst [vmem:[#allocation1 + $0x8] sm:$0x3] %v44_v0 }
   0x3   :  { %9 = vst [vmem:[#allocation1] sm:$0x3] %v8_v1 }
   0x9   :  { %v20_v2 = vld [vmem:[#allocation1 + $0x9] sm:$0x1]   ;;  %v11_v7 = vld [vmem:[#allocation1 + $0x8] sm:$0x1]  }
   0xa   :  { %v18_v3 = vld [vmem:[#allocation1 + $0x1] sm:$0x1]   ;;  %v15_v4 = vld [vmem:[#allocation1] sm:$0x1]   ;;  %14 = vst.msk [vmem:[#allocation0 + $0x1] sm:$0x1] %vm12_vm1, %v11_v7  }
   0xb   :  { %v22_v5 = vsel %vm21_vm0, %v20_v2, %v18_v3  ;;  %16 = vst [vmem:[#allocation0] sm:$0x1] %v15_v4   ;;  %v32_v6 = vld [vmem:[#allocation1 + $0x1] sm:$0x1]  }
   0xc   :  { %23 = vrot.lane.b32.xlu0 %v22_v5, %s46_s0 }
  0x14   :  { %33 = vrot.lane.b32.xlu0 %v32_v6, %s46_s0 }
  0x7e   :  { %v24_v8 = vpop.permute.xlu0 %23  }
  0x7f   :  { %27 = vst.msk [vmem:[#allocation0 + $0x2] sm:$0x1] %vm12_vm1, %v24_v8  }
  0x80   :  { %30 = vst.msk [vmem:[#allocation0 + $0x2] sm:$0x1] %vm28_vm2, %v24_v8  }
  0x86   :  { %v34_v9 = vpop.permute.xlu0 %33  }
  0x87   :  { %37 = vst.msk [vmem:[#allocation0 + $0x1] sm:$0x1] %vm35_vm3, %v34_v9  }
  0x8e   :  { %v40_v10 = vld [vmem:[#allocation0] sm:$0xf] }
  0x8f   :  { %43 = vst [vmem:[%s67_s1] sm:$0xf] %v40_v10 }

// kernel: _device_forward.8
= control target key start
LH: loop header
LB: loop body
LE: loop exit
PB: predicated region body
PF: predicated region fallthrough
CT: control target
= control target key end

     0   :  { %vm430_vm0 = vcmask 1043456   ;;  %v650_v0 = vmov 0   ;;  %vm318_vm1 = vcmask 31744   ;;  %vm598_vm2 = vcmask 29696   ;;  %s1173_s2 = inlined_call_operand.vmem [shape: f32[4,4], index: 2, kind: input, shape index: {}]   ;;  %s1174_s1 = inlined_call_operand.vmem [shape: f32[294,1], index: 1, kind: input, shape index: {}]   ;;  %s1175_s0 = inlined_call_operand.vmem [shape: f32[294,4], index: 0, kind: input, shape index: {}]   ;;  %s1176_s3 = inlined_call_operand.vmem [shape: f32[1,4], index: 3, kind: input, shape index: {}]   ;;  %s1177_s4 = inlined_call_operand.vmem [shape: f32[294,4], index: 4, kind: output, shape index: {}]  }
   0x1   :  { %648 = vset.pattern.permute.xlu2 %v650_v0  ;;  %647 = vset.pattern.permute.xlu1 %v650_v0  ;;  %v54_v1 = vld [vmem:[%s1173_s2] sm:$0xf]  ;;  %v57_v3 = vld [vmem:[%s1174_s1 + $0x10] sm:$0xff]  ;;  %v60_v9 = vld [vmem:[%s1174_s1 + $0x28] sm:$0xff] }
   0x2   :  { %v59_v2 = vld [vmem:[%s1174_s1 + $0x20] sm:$0xff]  ;;  %646 = vset.pattern.permute.xlu0 %v650_v0  ;;  %604 = vmatpush.msk.msra.mxu0 %vm430_vm0, %v54_v1  ;;  %v27_v6 = vld [vmem:[%s1175_s0 + $0x50] sm:$0xff]  ;;  %v58_v10 = vld [vmem:[%s1174_s1 + $0x18] sm:$0xff] }
   0x3   :  { %v55_v4 = vld [vmem:[%s1174_s1] sm:$0xff]  ;;  %642 = vmatpush.msk.msra.mxu1 %vm430_vm0, %v54_v1  ;;  %643 = vmatpush.msk.msra.mxu2 %vm430_vm0, %v54_v1  ;;  %v47_v8 = vld [vmem:[%s1175_s0 + $0xf0] sm:$0xff]  ;;  %v56_v11 = vld [vmem:[%s1174_s1 + $0x8] sm:$0xff] }
   0x4   :  { %v17_v5 = vld [vmem:[%s1175_s0] sm:$0xff]  ;;  %115 = vperm.xlu2 %648, %v59_v2   ;;  %105 = vperm.xlu1 %647, %v57_v3   ;;  %v18_v12 = vld [vmem:[%s1175_s0 + $0x8] sm:$0xff]  ;;  %v28_v13 = vld [vmem:[%s1175_s0 + $0x58] sm:$0xff] }
   0x5   :  { %v37_v7 = vld [vmem:[%s1175_s0 + $0xa0] sm:$0xff]  ;;  %95 = vperm.xlu0 %646, %v55_v4   ;;  %605 = vmatmul.msk.f32.vlgmr.msra.gmra.mxu0 %vm318_vm1, %v17_v5  ;;  %v38_v14 = vld [vmem:[%s1175_s0 + $0xa8] sm:$0xff]  ;;  %v48_v15 = vld [vmem:[%s1175_s0 + $0xf8] sm:$0xff] }
   0x6   :  { %615 = vmatmul.msk.f32.vlgmr.msra.gmra.mxu1 %vm318_vm1, %v27_v6  ;;  %625 = vmatmul.msk.f32.vlgmr.msra.gmra.mxu2 %vm318_vm1, %v37_v7  ;;  %v63_v16 = vld [vmem:[%s1174_s1 + $0x40] sm:$0xff]  ;;  %v62_v17 = vld [vmem:[%s1174_s1 + $0x38] sm:$0xff]  ;;  %v61_v18 = vld [vmem:[%s1174_s1 + $0x30] sm:$0xff] }
   0x7   :  { %644 = vmatpush.msk.msra.mxu3 %vm430_vm0, %v54_v1  ;;  %v19_v19 = vld [vmem:[%s1175_s0 + $0x10] sm:$0xff]  ;;  %v29_v20 = vld [vmem:[%s1175_s0 + $0x60] sm:$0xff]  ;;  %v66_v23 = vld [vmem:[%s1174_s1 + $0x58] sm:$0xff] }
   0x8   :  { %635 = vmatmul.msk.f32.vlgmr.msra.gmra.mxu3 %vm318_vm1, %v47_v8  ;;  %v39_v21 = vld [vmem:[%s1175_s0 + $0xb0] sm:$0xff]  ;;  %v49_v22 = vld [vmem:[%s1175_s0 + $0x100] sm:$0xff]  ;;  %v64_v25 = vld [vmem:[%s1174_s1 + $0x48] sm:$0xff] }
   0x9   :  { %v65_v24 = vld [vmem:[%s1174_s1 + $0x50] sm:$0xff]  ;;  %v20_v26 = vld [vmem:[%s1175_s0 + $0x18] sm:$0xff]  ;;  %v30_v27 = vld [vmem:[%s1175_s0 + $0x68] sm:$0xff] }
   0xa   :  { %v40_v28 = vld [vmem:[%s1175_s0 + $0xb8] sm:$0xff]  ;;  %v50_v29 = vld [vmem:[%s1175_s0 + $0x108] sm:$0xff]  ;;  %v69_v30 = vld [vmem:[%s1174_s1 + $0x70] sm:$0xff] }
   0xb   :  { %v68_v31 = vld [vmem:[%s1174_s1 + $0x68] sm:$0xff]  ;;  %v67_v32 = vld [vmem:[%s1174_s1 + $0x60] sm:$0xff]  ;;  %v31_v34 = vld [vmem:[%s1175_s0 + $0x70] sm:$0xff] }
   0xc   :  { %120 = vperm.xlu2 %648, %v60_v9   ;;  %110 = vperm.xlu1 %647, %v58_v10   ;;  %v21_v33 = vld [vmem:[%s1175_s0 + $0x20] sm:$0xff]  ;;  %v51_v36 = vld [vmem:[%s1175_s0 + $0x110] sm:$0xff]  ;;  %v72_v37 = vld [vmem:[%s1174_s1 + $0x88] sm:$0xff] }
   0xd   :  { %100 = vperm.xlu0 %646, %v56_v11   ;;  %606 = vmatmul.msk.f32.gmra.mxu0 %vm318_vm1, %v18_v12  ;;  %v41_v35 = vld [vmem:[%s1175_s0 + $0xc0] sm:$0xff]  ;;  %v70_v39 = vld [vmem:[%s1174_s1 + $0x78] sm:$0xff]  ;;  %v22_v40 = vld [vmem:[%s1175_s0 + $0x28] sm:$0xff] }
   0xe   :  { %616 = vmatmul.msk.f32.gmra.mxu1 %vm318_vm1, %v28_v13  ;;  %626 = vmatmul.msk.f32.gmra.mxu2 %vm318_vm1, %v38_v14  ;;  %v71_v38 = vld [vmem:[%s1174_s1 + $0x80] sm:$0xff]  ;;  %v32_v41 = vld [vmem:[%s1175_s0 + $0x78] sm:$0xff]  ;;  %v42_v42 = vld [vmem:[%s1175_s0 + $0xc8] sm:$0xff] }
   0xf   :  { %v52_v43 = vld [vmem:[%s1175_s0 + $0x118] sm:$0xff]  ;;  %v75_v44 = vld [vmem:[%s1174_s1 + $0xa0] sm:$0xff]  ;;  %v73_v46 = vld [vmem:[%s1174_s1 + $0x90] sm:$0xff] }
  0x10   :  { %636 = vmatmul.msk.f32.gmra.mxu3 %vm318_vm1, %v48_v15  ;;  %v74_v45 = vld [vmem:[%s1174_s1 + $0x98] sm:$0xff]  ;;  %v23_v47 = vld [vmem:[%s1175_s0 + $0x30] sm:$0xff]  ;;  %v33_v48 = vld [vmem:[%s1175_s0 + $0x80] sm:$0xff] }
  0x11   :  { %v43_v49 = vld [vmem:[%s1175_s0 + $0xd0] sm:$0xff]  ;;  %v53_v50 = vld [vmem:[%s1175_s0 + $0x120] sm:$0x3f]  ;;  %v78_v51 = vld [vmem:[%s1174_s1 + $0xb8] sm:$0xff] }
  0x12   :  { %v77_v52 = vld [vmem:[%s1174_s1 + $0xb0] sm:$0xff]  ;;  %v76_v53 = vld [vmem:[%s1174_s1 + $0xa8] sm:$0xff]  ;;  %v24_v54 = vld [vmem:[%s1175_s0 + $0x38] sm:$0xff] }
  0x13   :  { %v34_v55 = vld [vmem:[%s1175_s0 + $0x88] sm:$0xff]  ;;  %v44_v56 = vld [vmem:[%s1175_s0 + $0xd8] sm:$0xff]  ;;  %v81_v57 = vld [vmem:[%s1174_s1 + $0xd0] sm:$0xff] }
  0x14   :  { %135 = vperm.xlu2 %648, %v63_v16   ;;  %130 = vperm.xlu1 %647, %v62_v17   ;;  %v80_v58 = vld [vmem:[%s1174_s1 + $0xc8] sm:$0xff]  ;;  %v79_v59 = vld [vmem:[%s1174_s1 + $0xc0] sm:$0xff]  ;;  %v35_v61 = vld [vmem:[%s1175_s0 + $0x90] sm:$0xff] }
  0x15   :  { %125 = vperm.xlu0 %646, %v61_v18   ;;  %607 = vmatmul.msk.f32.gmra.mxu0 %vm318_vm1, %v19_v19  ;;  %v25_v60 = vld [vmem:[%s1175_s0 + $0x40] sm:$0xff]  ;;  %v84_v63 = vld [vmem:[%s1174_s1 + $0xe8] sm:$0xff]  ;;  %v82_v1 = vld [vmem:[%s1174_s1 + $0xd8] sm:$0xff] }
  0x16   :  { %617 = vmatmul.msk.f32.gmra.mxu1 %vm318_vm1, %v29_v20  ;;  %627 = vmatmul.msk.f32.gmra.mxu2 %vm318_vm1, %v39_v21  ;;  %v45_v62 = vld [vmem:[%s1175_s0 + $0xe0] sm:$0xff]  ;;  %v26_v2 = vld [vmem:[%s1175_s0 + $0x48] sm:$0xff]  ;;  %v36_v3 = vld [vmem:[%s1175_s0 + $0x98] sm:$0xff] }
  0x17   :  { %v83_v0 = vld [vmem:[%s1174_s1 + $0xe0] sm:$0xff]  ;;  %v46_v4 = vld [vmem:[%s1175_s0 + $0xe8] sm:$0xff]  ;;  %v86_v6 = vld [vmem:[%s1174_s1 + $0xf8] sm:$0xff] }
  0x18   :  { %637 = vmatmul.msk.f32.gmra.mxu3 %vm318_vm1, %v49_v22  ;;  %v87_v5 = vld [vmem:[%s1174_s1 + $0x100] sm:$0xff]  ;;  %v85_v7 = vld [vmem:[%s1174_s1 + $0xf0] sm:$0xff]  ;;  %v90_v8 = vld [vmem:[%s1174_s1 + $0x118] sm:$0xff] }
  0x19   :  { %v89_v9 = vld [vmem:[%s1174_s1 + $0x110] sm:$0xff]  ;;  %v88_v10 = vld [vmem:[%s1174_s1 + $0x108] sm:$0xff]  ;;  %v91_v12 = vld [vmem:[%s1174_s1 + $0x120] sm:$0x3f] }
  0x1a   :  { %v951_v18 = vld [vmem:[%s1176_s3] ss:$0 sm:$0xff] }
  0x1c   :  { %150 = vperm.xlu2 %648, %v66_v23   ;;  %145 = vperm.xlu1 %647, %v65_v24  }
  0x1d   :  { %140 = vperm.xlu0 %646, %v64_v25   ;;  %608 = vmatmul.msk.f32.gmra.mxu0 %vm318_vm1, %v20_v26 }
  0x1e   :  { %618 = vmatmul.msk.f32.gmra.mxu1 %vm318_vm1, %v30_v27  ;;  %628 = vmatmul.msk.f32.gmra.mxu2 %vm318_vm1, %v40_v28 }
  0x20   :  { %638 = vmatmul.msk.f32.gmra.mxu3 %vm318_vm1, %v50_v29 }
  0x24   :  { %165 = vperm.xlu2 %648, %v69_v30   ;;  %160 = vperm.xlu1 %647, %v68_v31  }
  0x25   :  { %155 = vperm.xlu0 %646, %v67_v32   ;;  %609 = vmatmul.msk.f32.gmra.mxu0 %vm318_vm1, %v21_v33 }
  0x26   :  { %619 = vmatmul.msk.f32.gmra.mxu1 %vm318_vm1, %v31_v34  ;;  %629 = vmatmul.msk.f32.gmra.mxu2 %vm318_vm1, %v41_v35 }
  0x28   :  { %639 = vmatmul.msk.f32.gmra.mxu3 %vm318_vm1, %v51_v36 }
  0x2c   :  { %180 = vperm.xlu2 %648, %v72_v37   ;;  %175 = vperm.xlu1 %647, %v71_v38  }
  0x2d   :  { %170 = vperm.xlu0 %646, %v70_v39   ;;  %610 = vmatmul.msk.f32.gmra.mxu0 %vm318_vm1, %v22_v40 }
  0x2e   :  { %620 = vmatmul.msk.f32.gmra.mxu1 %vm318_vm1, %v32_v41  ;;  %630 = vmatmul.msk.f32.gmra.mxu2 %vm318_vm1, %v42_v42 }
  0x30   :  { %640 = vmatmul.msk.f32.gmra.mxu3 %vm318_vm1, %v52_v43 }
  0x34   :  { %195 = vperm.xlu2 %648, %v75_v44   ;;  %190 = vperm.xlu1 %647, %v74_v45  }
  0x35   :  { %185 = vperm.xlu0 %646, %v73_v46   ;;  %611 = vmatmul.msk.f32.gmra.mxu0 %vm318_vm1, %v23_v47 }
  0x36   :  { %621 = vmatmul.msk.f32.gmra.mxu1 %vm318_vm1, %v33_v48  ;;  %631 = vmatmul.msk.f32.gmra.mxu2 %vm318_vm1, %v43_v49 }
  0x38   :  { %641 = vmatmul.msk.f32.gmra.mxu3 %vm318_vm1, %v53_v50 }
  0x3c   :  { %210 = vperm.xlu2 %648, %v78_v51   ;;  %205 = vperm.xlu1 %647, %v77_v52  }
  0x3d   :  { %200 = vperm.xlu0 %646, %v76_v53   ;;  %612 = vmatmul.msk.f32.gmra.mxu0 %vm318_vm1, %v24_v54 }
  0x3e   :  { %622 = vmatmul.msk.f32.gmra.mxu1 %vm318_vm1, %v34_v55  ;;  %632 = vmatmul.msk.f32.gmra.mxu2 %vm318_vm1, %v44_v56 }
  0x44   :  { %225 = vperm.xlu2 %648, %v81_v57   ;;  %220 = vperm.xlu1 %647, %v80_v58  }
  0x45   :  { %215 = vperm.xlu0 %646, %v79_v59   ;;  %613 = vmatmul.msk.f32.gmra.mxu0 %vm318_vm1, %v25_v60 }
  0x46   :  { %623 = vmatmul.msk.f32.gmra.mxu1 %vm318_vm1, %v35_v61  ;;  %633 = vmatmul.msk.f32.gmra.mxu2 %vm318_vm1, %v45_v62 }
  0x4c   :  { %240 = vperm.xlu2 %648, %v84_v63   ;;  %235 = vperm.xlu1 %647, %v83_v0  }
  0x4d   :  { %230 = vperm.xlu0 %646, %v82_v1   ;;  %614 = vmatmul.msk.f32.gmra.mxu0 %vm318_vm1, %v26_v2 }
  0x4e   :  { %624 = vmatmul.msk.f32.gmra.mxu1 %vm318_vm1, %v36_v3  ;;  %634 = vmatmul.msk.f32.gmra.mxu2 %vm318_vm1, %v46_v4 }
  0x54   :  { %255 = vperm.xlu2 %648, %v87_v5   ;;  %250 = vperm.xlu1 %647, %v86_v6  }
  0x55   :  { %245 = vperm.xlu0 %646, %v85_v7  }
  0x5c   :  { %270 = vperm.xlu2 %648, %v90_v8   ;;  %265 = vperm.xlu1 %647, %v89_v9  }
  0x5d   :  { %260 = vperm.xlu0 %646, %v88_v10  }
  0x5e   :  { %v939_v11 = vpop.permute.xlu2 %115 }
  0x5f   :  { %v285_v3 = vmul.f32 %v951_v18, %v939_v11 }
  0x65   :  { %275 = vperm.xlu0 %646, %v91_v12  }
  0x66   :  { %v944_v13 = vpop.permute.xlu2 %120 }
  0x6e   :  { %v946_v14 = vpop.permute.xlu2 %135 }
  0x76   :  { %v151_v15 = vpop.permute.xlu2 %150  ;;  %v106_v16 = vpop.permute.xlu1 %105 }
  0x77   :  { %v96_v17 = vpop.permute.xlu0 %95  ;;  %v292_v31 = vmul.f32 %v951_v18, %v151_v15  ;;  %v283_v42 = vmul.f32 %v951_v18, %v106_v16 }
  0x78   :  { %v281_v22 = vmul.f32 %v951_v18, %v96_v17  ;;  %v286_v17 = vmul.f32 %v951_v18, %v944_v13 }
  0x7e   :  { %v166_v19 = vpop.permute.xlu2 %165  ;;  %v111_v20 = vpop.permute.xlu1 %110 }
  0x7f   :  { %v101_v21 = vpop.permute.xlu0 %100  ;;  %v284_v54 = vmul.f32 %v951_v18, %v111_v20  ;;  %v295_v5 = vmul.f32 %v951_v18, %v166_v19 }
  0x80   :  { %v282_v29 = vmul.f32 %v951_v18, %v101_v21 }
  0x82   :  { %v451_v23 = vpop.f32.mrf.mxu0 }
  0x83   :  { %v452_v24 = vadd.f32 %v451_v23, %v281_v22  ;;  %v481_v25 = vpop.f32.mrf.mxu1 }
  0x85   :  { %562 = vst.msk [vmem:[%s1177_s4] sm:$0xff] %vm318_vm1, %v452_v24 }
  0x86   :  { %v958_v26 = vpop.permute.xlu2 %180  ;;  %v960_v27 = vpop.permute.xlu1 %130 }
  0x87   :  { %v962_v28 = vpop.permute.xlu0 %125 }
  0x89   :  { %v511_v30 = vpop.f32.mrf.mxu2 }
  0x8a   :  { %v454_v32 = vpop.f32.mrf.mxu0 }
  0x8b   :  { %v455_v33 = vadd.f32 %v454_v32, %v282_v29  ;;  %v484_v34 = vpop.f32.mrf.mxu1  ;;  %v966_v35 = vpop.f32.mrf.mxu3 }
  0x8c   :  { %v485_v36 = vadd.f32 %v484_v34, %v292_v31  ;;  %v287_v34 = vmul.f32 %v951_v18, %v962_v28 }
  0x8d   :  { %563 = vst.msk [vmem:[%s1177_s4 + $0x8] sm:$0xff] %vm318_vm1, %v455_v33 }
  0x8e   :  { %573 = vst.msk [vmem:[%s1177_s4 + $0x58] sm:$0xff] %vm318_vm1, %v485_v36  ;;  %v196_v37 = vpop.permute.xlu2 %195  ;;  %v146_v38 = vpop.permute.xlu1 %145 }
  0x8f   :  { %v301_v39 = vmul.f32 %v951_v18, %v196_v37  ;;  %v291_v40 = vmul.f32 %v951_v18, %v146_v38  ;;  %v978_v41 = vpop.permute.xlu0 %140 }
  0x91   :  { %v512_v43 = vadd.f32 %v511_v30, %v301_v39  ;;  %v482_v44 = vadd.f32 %v481_v25, %v291_v40  ;;  %v981_v45 = vpop.f32.mrf.mxu2 }
  0x92   :  { %v457_v46 = vpop.f32.mrf.mxu0 }
  0x93   :  { %582 = vst.msk [vmem:[%s1177_s4 + $0xa0] sm:$0xff] %vm318_vm1, %v512_v43  ;;  %v458_v47 = vadd.f32 %v457_v46, %v283_v42  ;;  %v487_v48 = vpop.f32.mrf.mxu1  ;;  %v987_v49 = vpop.f32.mrf.mxu3 }
  0x94   :  { %572 = vst.msk [vmem:[%s1177_s4 + $0x50] sm:$0xff] %vm318_vm1, %v482_v44 }
  0x95   :  { %564 = vst.msk [vmem:[%s1177_s4 + $0x10] sm:$0xff] %vm318_vm1, %v458_v47 }
  0x96   :  { %v211_v50 = vpop.permute.xlu2 %210  ;;  %v161_v51 = vpop.permute.xlu1 %160 }
  0x97   :  { %v156_v52 = vpop.permute.xlu0 %155  ;;  %v294_v56 = vmul.f32 %v951_v18, %v161_v51  ;;  %v304_v2 = vmul.f32 %v951_v18, %v211_v50 }
  0x98   :  { %v293_v53 = vmul.f32 %v951_v18, %v156_v52 }
  0x99   :  { %v517_v55 = vpop.f32.mrf.mxu2 }
  0x9a   :  { %v488_v57 = vadd.f32 %v487_v48, %v293_v53  ;;  %v460_v58 = vpop.f32.mrf.mxu0 }
  0x9b   :  { %v461_v59 = vadd.f32 %v460_v58, %v284_v54  ;;  %v490_v60 = vpop.f32.mrf.mxu1  ;;  %v547_v61 = vpop.f32.mrf.mxu3  ;;  %v288_v54 = vmul.f32 %v951_v18, %v960_v27 }
  0x9c   :  { %574 = vst.msk [vmem:[%s1177_s4 + $0x60] sm:$0xff] %vm318_vm1, %v488_v57  ;;  %v491_v62 = vadd.f32 %v490_v60, %v294_v56  ;;  %v298_v57 = vmul.f32 %v951_v18, %v958_v26 }
  0x9d   :  { %565 = vst.msk [vmem:[%s1177_s4 + $0x18] sm:$0xff] %vm318_vm1, %v461_v59 }
  0x9e   :  { %575 = vst.msk [vmem:[%s1177_s4 + $0x68] sm:$0xff] %vm318_vm1, %v491_v62  ;;  %v226_v63 = vpop.permute.xlu2 %225  ;;  %v176_v0 = vpop.permute.xlu1 %175 }
  0x9f   :  { %v171_v1 = vpop.permute.xlu0 %170  ;;  %v297_v39 = vmul.f32 %v951_v18, %v176_v0  ;;  %v307_v52 = vmul.f32 %v951_v18, %v226_v63 }
  0xa0   :  { %v296_v20 = vmul.f32 %v951_v18, %v171_v1 }
  0xa1   :  { %v520_v4 = vpop.f32.mrf.mxu2 }
  0xa2   :  { %v521_v6 = vadd.f32 %v520_v4, %v304_v2  ;;  %v463_v7 = vpop.f32.mrf.mxu0  ;;  %v289_v2 = vmul.f32 %v951_v18, %v946_v14 }
  0xa3   :  { %v464_v8 = vadd.f32 %v463_v7, %v285_v3  ;;  %v493_v9 = vpop.f32.mrf.mxu1  ;;  %v1016_v10 = vpop.f32.mrf.mxu3 }
  0xa4   :  { %585 = vst.msk [vmem:[%s1177_s4 + $0xb8] sm:$0xff] %vm318_vm1, %v521_v6  ;;  %v494_v12 = vadd.f32 %v493_v9, %v295_v5 }
  0xa5   :  { %566 = vst.msk [vmem:[%s1177_s4 + $0x20] sm:$0xff] %vm318_vm1, %v464_v8 }
  0xa6   :  { %576 = vst.msk [vmem:[%s1177_s4 + $0x70] sm:$0xff] %vm318_vm1, %v494_v12  ;;  %v1030_v11 = vpop.permute.xlu2 %240  ;;  %v1032_v15 = vpop.permute.xlu1 %190 }
  0xa7   :  { %v186_v16 = vpop.permute.xlu0 %185 }
  0xa8   :  { %v299_v4 = vmul.f32 %v951_v18, %v186_v16 }
  0xa9   :  { %v523_v19 = vpop.f32.mrf.mxu2 }
  0xaa   :  { %v466_v21 = vpop.f32.mrf.mxu0 }
  0xab   :  { %v467_v22 = vadd.f32 %v466_v21, %v286_v17  ;;  %v496_v23 = vpop.f32.mrf.mxu1  ;;  %v1041_v25 = vpop.f32.mrf.mxu3 }
  0xac   :  { %v497_v24 = vadd.f32 %v496_v23, %v296_v20  ;;  %v290_v20 = vmul.f32 %v951_v18, %v978_v41  ;;  %v300_v23 = vmul.f32 %v951_v18, %v1032_v15 }
  0xad   :  { %567 = vst.msk [vmem:[%s1177_s4 + $0x28] sm:$0xff] %vm318_vm1, %v467_v22 }
  0xae   :  { %577 = vst.msk [vmem:[%s1177_s4 + $0x78] sm:$0xff] %vm318_vm1, %v497_v24  ;;  %v256_v13 = vpop.permute.xlu2 %255  ;;  %v206_v29 = vpop.permute.xlu1 %205 }
  0xaf   :  { %v313_v30 = vmul.f32 %v951_v18, %v256_v13  ;;  %v303_v31 = vmul.f32 %v951_v18, %v206_v29  ;;  %v201_v32 = vpop.permute.xlu0 %200 }
  0xb0   :  { %v302_v33 = vmul.f32 %v951_v18, %v201_v32  ;;  %v310_v32 = vmul.f32 %v951_v18, %v1030_v11 }
  0xb1   :  { %v548_v36 = vadd.f32 %v547_v61, %v313_v30  ;;  %v518_v37 = vadd.f32 %v517_v55, %v303_v31  ;;  %v526_v38 = vpop.f32.mrf.mxu2 }
  0xb2   :  { %v515_v40 = vadd.f32 %v981_v45, %v302_v33  ;;  %v469_v42 = vpop.f32.mrf.mxu0 }
  0xb3   :  { %594 = vst.msk [vmem:[%s1177_s4 + $0x100] sm:$0xff] %vm318_vm1, %v548_v36  ;;  %v470_v43 = vadd.f32 %v469_v42, %v287_v34  ;;  %v499_v44 = vpop.f32.mrf.mxu1  ;;  %v556_v51 = vpop.f32.mrf.mxu3 }
  0xb4   :  { %584 = vst.msk [vmem:[%s1177_s4 + $0xb0] sm:$0xff] %vm318_vm1, %v518_v37  ;;  %v500_v28 = vadd.f32 %v499_v44, %v297_v39 }
  0xb5   :  { %583 = vst.msk [vmem:[%s1177_s4 + $0xa8] sm:$0xff] %vm318_vm1, %v515_v40 }
  0xb6   :  { %568 = vst.msk [vmem:[%s1177_s4 + $0x30] sm:$0xff] %vm318_vm1, %v470_v43  ;;  %v271_v45 = vpop.permute.xlu2 %270  ;;  %v221_v46 = vpop.permute.xlu1 %220 }
  0xb7   :  { %578 = vst.msk [vmem:[%s1177_s4 + $0x80] sm:$0xff] %vm318_vm1, %v500_v28  ;;  %v316_v47 = vmul.f32 %v951_v18, %v271_v45  ;;  %v306_v48 = vmul.f32 %v951_v18, %v221_v46  ;;  %v216_v50 = vpop.permute.xlu0 %215 }
  0xb8   :  { %v305_v53 = vmul.f32 %v951_v18, %v216_v50 }
  0xb9   :  { %v527_v55 = vadd.f32 %v526_v38, %v306_v48  ;;  %v529_v56 = vpop.f32.mrf.mxu2  ;;  %v557_v60 = vadd.f32 %v556_v51, %v316_v47 }
  0xba   :  { %v524_v58 = vadd.f32 %v523_v19, %v305_v53  ;;  %v530_v59 = vadd.f32 %v529_v56, %v307_v52  ;;  %v472_v61 = vpop.f32.mrf.mxu0 }
  0xbb   :  { %587 = vst.msk [vmem:[%s1177_s4 + $0xc8] sm:$0xff] %vm318_vm1, %v527_v55  ;;  %v473_v62 = vadd.f32 %v472_v61, %v288_v54  ;;  %v502_v63 = vpop.f32.mrf.mxu1 }
  0xbc   :  { %586 = vst.msk [vmem:[%s1177_s4 + $0xc0] sm:$0xff] %vm318_vm1, %v524_v58  ;;  %v503_v27 = vadd.f32 %v502_v63, %v298_v57 }
  0xbd   :  { %588 = vst.msk [vmem:[%s1177_s4 + $0xd0] sm:$0xff] %vm318_vm1, %v530_v59 }
  0xbe   :  { %597 = vst.msk [vmem:[%s1177_s4 + $0x118] sm:$0xff] %vm318_vm1, %v557_v60  ;;  %v236_v26 = vpop.permute.xlu1 %235 }
  0xbf   :  { %569 = vst.msk [vmem:[%s1177_s4 + $0x38] sm:$0xff] %vm318_vm1, %v473_v62  ;;  %v231_v0 = vpop.permute.xlu0 %230  ;;  %v309_v17 = vmul.f32 %v951_v18, %v236_v26 }
  0xc0   :  { %579 = vst.msk [vmem:[%s1177_s4 + $0x88] sm:$0xff] %vm318_vm1, %v503_v27  ;;  %v308_v1 = vmul.f32 %v951_v18, %v231_v0 }
  0xc1   :  { %v532_v3 = vpop.f32.mrf.mxu2 }
  0xc2   :  { %v533_v5 = vadd.f32 %v532_v3, %v308_v1  ;;  %v475_v6 = vpop.f32.mrf.mxu0 }
  0xc3   :  { %v476_v7 = vadd.f32 %v475_v6, %v289_v2  ;;  %v505_v8 = vpop.f32.mrf.mxu1 }
  0xc4   :  { %589 = vst.msk [vmem:[%s1177_s4 + $0xd8] sm:$0xff] %vm318_vm1, %v533_v5  ;;  %v506_v9 = vadd.f32 %v505_v8, %v299_v4 }
  0xc5   :  { %570 = vst.msk [vmem:[%s1177_s4 + $0x40] sm:$0xff] %vm318_vm1, %v476_v7 }
  0xc6   :  { %580 = vst.msk [vmem:[%s1177_s4 + $0x90] sm:$0xff] %vm318_vm1, %v506_v9  ;;  %v251_v14 = vpop.permute.xlu1 %250 }
  0xc7   :  { %v312_v12 = vmul.f32 %v951_v18, %v251_v14  ;;  %v246_v16 = vpop.permute.xlu0 %245 }
  0xc8   :  { %v311_v19 = vmul.f32 %v951_v18, %v246_v16 }
  0xc9   :  { %v545_v21 = vadd.f32 %v987_v49, %v312_v12  ;;  %v535_v22 = vpop.f32.mrf.mxu2 }
  0xca   :  { %v542_v24 = vadd.f32 %v966_v35, %v311_v19  ;;  %v536_v13 = vadd.f32 %v535_v22, %v309_v17  ;;  %v478_v29 = vpop.f32.mrf.mxu0 }
  0xcb   :  { %593 = vst.msk [vmem:[%s1177_s4 + $0xf8] sm:$0xff] %vm318_vm1, %v545_v21  ;;  %v479_v30 = vadd.f32 %v478_v29, %v290_v20  ;;  %v508_v31 = vpop.f32.mrf.mxu1 }
  0xcc   :  { %592 = vst.msk [vmem:[%s1177_s4 + $0xf0] sm:$0xff] %vm318_vm1, %v542_v24  ;;  %v509_v41 = vadd.f32 %v508_v31, %v300_v23 }
  0xcd   :  { %590 = vst.msk [vmem:[%s1177_s4 + $0xe0] sm:$0xff] %vm318_vm1, %v536_v13 }
  0xce   :  { %571 = vst.msk [vmem:[%s1177_s4 + $0x48] sm:$0xff] %vm318_vm1, %v479_v30  ;;  %v266_v35 = vpop.permute.xlu1 %265 }
  0xcf   :  { %581 = vst.msk [vmem:[%s1177_s4 + $0x98] sm:$0xff] %vm318_vm1, %v509_v41  ;;  %v315_v49 = vmul.f32 %v951_v18, %v266_v35  ;;  %v261_v15 = vpop.permute.xlu0 %260 }
  0xd0   :  { %v314_v33 = vmul.f32 %v951_v18, %v261_v15 }
  0xd1   :  { %v554_v34 = vadd.f32 %v1041_v25, %v315_v49  ;;  %v538_v36 = vpop.f32.mrf.mxu2  ;;  %v559_v25 = vpop.f32.mrf.mxu3 }
  0xd2   :  { %v551_v37 = vadd.f32 %v1016_v10, %v314_v33  ;;  %v539_v38 = vadd.f32 %v538_v36, %v310_v32 }
  0xd3   :  { %596 = vst.msk [vmem:[%s1177_s4 + $0x110] sm:$0xff] %vm318_vm1, %v554_v34 }
  0xd4   :  { %595 = vst.msk [vmem:[%s1177_s4 + $0x108] sm:$0xff] %vm318_vm1, %v551_v37 }
  0xd5   :  { %591 = vst.msk [vmem:[%s1177_s4 + $0xe8] sm:$0xff] %vm318_vm1, %v539_v38 }
  0xd7   :  { %v276_v11 = vpop.permute.xlu0 %275 }
  0xd8   :  { %v317_v10 = vmul.f32 %v951_v18, %v276_v11 }
  0xda   :  { %v560_v39 = vadd.f32 %v559_v25, %v317_v10 }
  0xdc   :  { %599 = vst.msk [vmem:[%s1177_s4 + $0x120] sm:$0x3f] %vm598_vm2, %v560_v39 }

// kernel: _device_forward.7
= control target key start
LH: loop header
LB: loop body
LE: loop exit
PB: predicated region body
PF: predicated region fallthrough
CT: control target
= control target key end

     0   :  { %s1098_s9 = smov 0   ;;  %s1100_s10 = smov 0   ;;  %s1461_s0 = inlined_call_operand.vmem [shape: f32[2,1024,256], index: 0, kind: input, shape index: {}]   ;;  %s1462_s1 = inlined_call_operand.vmem [shape: f32[2,256,4], index: 1, kind: input, shape index: {}]   ;;  %s1463_s2 = inlined_call_operand.vmem [shape: f32[2,1024,4], index: 2, kind: output, shape index: {}]  }
   0x1   :  { %s1102_s11 = smov 0   ;;  %s1104_s12 = smov 0  }
   0x2   :  { %s1106_s13 = smov 0  }
   0x3 LB: > { %s21_s14 = sadd.s32 1, %s1073_s11  ;;  %s24_s15 = sadd.s32 1, %s1077_s12  ;;  %s1081_s13 = sphi %s1106_s13, %s12_s13   ;;  %s1077_s12 = sphi %s1104_s12, %s1467_s12   ;;  %s1073_s11 = sphi %s1102_s11, %s1466_s11   ;;  %s1069_s10 = sphi %s1100_s10, %s1465_s10   ;;  %s1065_s9 = sphi %s1098_s9, %s1464_s9  }
   0x4   : > { %p22_p0 = scmp.ge.s32.totalorder %s21_s14, 2  ;;  %p958_p1 = scmp.ge.s32.totalorder %s1081_s13, 1 }
   0x5   : > { %p144_p2 = scmp.lt.s32.totalorder %s1081_s13, 5 }
   0x6   : > { %s1469_s14 = smov (%p22_p0, %s21_s14), 0  ;;  %s1471_s15 = smov (!%p22_p0, %s24_s15), %s1077_s12 }
   0x7   : > { %p145_p3 = pnand %p958_p1, %p144_p2  ;;  %p26_p4 = scmp.ge.s32.totalorder %s1471_s15, 2 }
   0x8   : > { %s959_s16 = sshll.u32 (!%p145_p3), %s1065_s9, 6  ;;  %p181_p5 = scmp.lt.s32.totalorder (!%p145_p3), %s1069_s10, 1 }
   0x9   : > { %s1473_s15 = smov (%p26_p4, %s1471_s15), 0  ;;  %148 = sbr.rel (%p145_p3) target bundleno = 433 (0x1b1), region = 28 }
   0xa   : > { %p183_p6 = scmp.lt.s32.totalorder (!%p145_p3), %s959_s16, 127 }
   0xe   : > { %s1475_s10 = smov (!%p181_p5, %s1069_s10), 1  ;;  %s1477_s16 = smov (!%p183_p6, %s959_s16), 127  ;;  %vm784_vm0 = vcmask 31744  }
   0xf   : > { %s961_s17 = sshll.u32 %s1475_s10, 8  ;;  %s966_s18 = sshll.u32 %s1475_s10, 7 }
  0x10   : > { %s1139_s21 = scalar_lea.vmem %s1462_s1, %s961_s17  ;;  %s1142_s22 = sadd.s32 %s966_s18, %s1477_s16 }
  0x11   : > { %v349_v0 = vld [vmem:[%s1139_s21 + $0x78] sm:$0xff]  ;;  %v348_v2 = vld [vmem:[%s1139_s21 + $0x70] sm:$0xff]  ;;  %v347_v4 = vld [vmem:[%s1139_s21 + $0x68] sm:$0xff]  ;;  %s960_s23 = sshll.u32 %s1477_s16, 1  ;;  %s967_s29 = sshll.u32 %s1142_s22, 3 }
  0x12   : > { %v365_v1 = vld [vmem:[%s1139_s21 + $0xf8] sm:$0xff]  ;;  %971 = vmatpush.msra.mxu2 %v349_v0  ;;  %v364_v3 = vld [vmem:[%s1139_s21 + $0xf0] sm:$0xff]  ;;  %v363_v5 = vld [vmem:[%s1139_s21 + $0xe8] sm:$0xff]  ;;  %366 = vmatpush.msra.mxu0 %v349_v0  ;;  %s187_s24 = sadd.s32 %s961_s17, %s960_s23  ;;  %s1254_s4 = scalar_lea.vmem %s1463_s2, %s967_s29 }
  0x13   : > { %987 = vmatpush.msra.mxu3 %v365_v1  ;;  %575 = vmatpush.msra.mxu1 %v365_v1  ;;  %v346_v6 = vld [vmem:[%s1139_s21 + $0x60] sm:$0xff]  ;;  %v345_v8 = vld [vmem:[%s1139_s21 + $0x58] sm:$0xff]  ;;  %v344_v10 = vld [vmem:[%s1139_s21 + $0x50] sm:$0xff]  ;;  %s962_s25 = sshll.u32 %s187_s24, 3 }
  0x14   : > { %972 = vmatpush.msra.mxu2 %v348_v2  ;;  %v362_v7 = vld [vmem:[%s1139_s21 + $0xe0] sm:$0xff]  ;;  %367 = vmatpush.msra.mxu0 %v348_v2  ;;  %v361_v9 = vld [vmem:[%s1139_s21 + $0xd8] sm:$0xff]  ;;  %v360_v11 = vld [vmem:[%s1139_s21 + $0xd0] sm:$0xff]  ;;  %s1178_s28 = scalar_lea.vmem %s1461_s0, %s962_s25 }
  0x15   : > { %988 = vmatpush.msra.mxu3 %v364_v3  ;;  %576 = vmatpush.msra.mxu1 %v364_v3  ;;  %v343_v12 = vld [vmem:[%s1139_s21 + $0x48] sm:$0xff]  ;;  %v342_v14 = vld [vmem:[%s1139_s21 + $0x40] sm:$0xff]  ;;  %v341_v16 = vld [vmem:[%s1139_s21 + $0x38] sm:$0xff] }
  0x16   : > { %973 = vmatpush.msra.mxu2 %v347_v4  ;;  %368 = vmatpush.msra.mxu0 %v347_v4  ;;  %v359_v13 = vld [vmem:[%s1139_s21 + $0xc8] sm:$0xff]  ;;  %v358_v15 = vld [vmem:[%s1139_s21 + $0xc0] sm:$0xff]  ;;  %v357_v17 = vld [vmem:[%s1139_s21 + $0xb8] sm:$0xff] }
  0x17   : > { %989 = vmatpush.msra.mxu3 %v363_v5  ;;  %577 = vmatpush.msra.mxu1 %v363_v5  ;;  %v340_v18 = vld [vmem:[%s1139_s21 + $0x30] sm:$0xff]  ;;  %v339_v20 = vld [vmem:[%s1139_s21 + $0x28] sm:$0xff]  ;;  %v338_v22 = vld [vmem:[%s1139_s21 + $0x20] sm:$0xff] }
  0x18   : > { %974 = vmatpush.msra.mxu2 %v346_v6  ;;  %369 = vmatpush.msra.mxu0 %v346_v6  ;;  %v356_v19 = vld [vmem:[%s1139_s21 + $0xb0] sm:$0xff]  ;;  %v355_v21 = vld [vmem:[%s1139_s21 + $0xa8] sm:$0xff]  ;;  %v354_v23 = vld [vmem:[%s1139_s21 + $0xa0] sm:$0xff] }
  0x19   : > { %990 = vmatpush.msra.mxu3 %v362_v7  ;;  %578 = vmatpush.msra.mxu1 %v362_v7  ;;  %v337_v24 = vld [vmem:[%s1139_s21 + $0x18] sm:$0xff]  ;;  %v336_v26 = vld [vmem:[%s1139_s21 + $0x10] sm:$0xff]  ;;  %v335_v28 = vld [vmem:[%s1139_s21 + $0x8] sm:$0xff] }
  0x1a   : > { %975 = vmatpush.msra.mxu2 %v345_v8  ;;  %370 = vmatpush.msra.mxu0 %v345_v8  ;;  %v353_v25 = vld [vmem:[%s1139_s21 + $0x98] sm:$0xff]  ;;  %v352_v27 = vld [vmem:[%s1139_s21 + $0x90] sm:$0xff]  ;;  %v351_v29 = vld [vmem:[%s1139_s21 + $0x88] sm:$0xff] }
  0x1b   : > { %991 = vmatpush.msra.mxu3 %v361_v9  ;;  %579 = vmatpush.msra.mxu1 %v361_v9  ;;  %v334_v30 = vld [vmem:[%s1139_s21] sm:$0xff]  ;;  %v271_v33 = vld [vmem:[%s1178_s28 + $0x208] sm:$0xff]  ;;  %v272_v36 = vld [vmem:[%s1178_s28 + $0x210] sm:$0xff] }
  0x1c   : > { %976 = vmatpush.msra.mxu2 %v344_v10  ;;  %371 = vmatpush.msra.mxu0 %v344_v10  ;;  %v350_v31 = vld [vmem:[%s1139_s21 + $0x80] sm:$0xff]  ;;  %v207_v35 = vld [vmem:[%s1178_s28 + $0x8] sm:$0xff]  ;;  %v273_v37 = vld [vmem:[%s1178_s28 + $0x218] sm:$0xff] }
  0x1d   : > { %992 = vmatpush.msra.mxu3 %v360_v11  ;;  %580 = vmatpush.msra.mxu1 %v360_v11  ;;  %v270_v32 = vld [vmem:[%s1178_s28 + $0x200] sm:$0xff]  ;;  %v208_v38 = vld [vmem:[%s1178_s28 + $0x10] sm:$0xff]  ;;  %v209_v39 = vld [vmem:[%s1178_s28 + $0x18] sm:$0xff] }
  0x1e   : > { %977 = vmatpush.msra.mxu2 %v343_v12  ;;  %372 = vmatpush.msra.mxu0 %v343_v12  ;;  %v206_v34 = vld [vmem:[%s1178_s28] sm:$0xff]  ;;  %v275_v41 = vld [vmem:[%s1178_s28 + $0x228] sm:$0xff]  ;;  %v276_v44 = vld [vmem:[%s1178_s28 + $0x230] sm:$0xff] }
  0x1f   : > { %993 = vmatpush.msra.mxu3 %v359_v13  ;;  %581 = vmatpush.msra.mxu1 %v359_v13  ;;  %v274_v40 = vld [vmem:[%s1178_s28 + $0x220] sm:$0xff]  ;;  %v211_v43 = vld [vmem:[%s1178_s28 + $0x28] sm:$0xff]  ;;  %v277_v45 = vld [vmem:[%s1178_s28 + $0x238] sm:$0xff] }
  0x20   : > { %978 = vmatpush.msra.mxu2 %v342_v14  ;;  %373 = vmatpush.msra.mxu0 %v342_v14  ;;  %v210_v42 = vld [vmem:[%s1178_s28 + $0x20] sm:$0xff]  ;;  %v212_v46 = vld [vmem:[%s1178_s28 + $0x30] sm:$0xff]  ;;  %v213_v47 = vld [vmem:[%s1178_s28 + $0x38] sm:$0xff] }
  0x21   : > { %994 = vmatpush.msra.mxu3 %v358_v15  ;;  %582 = vmatpush.msra.mxu1 %v358_v15  ;;  %v278_v48 = vld [vmem:[%s1178_s28 + $0x240] sm:$0xff]  ;;  %v279_v49 = vld [vmem:[%s1178_s28 + $0x248] sm:$0xff]  ;;  %v280_v52 = vld [vmem:[%s1178_s28 + $0x250] sm:$0xff] }
  0x22   : > { %979 = vmatpush.msra.mxu2 %v341_v16  ;;  %374 = vmatpush.msra.mxu0 %v341_v16  ;;  %v214_v50 = vld [vmem:[%s1178_s28 + $0x40] sm:$0xff]  ;;  %v215_v51 = vld [vmem:[%s1178_s28 + $0x48] sm:$0xff]  ;;  %v281_v53 = vld [vmem:[%s1178_s28 + $0x258] sm:$0xff] }
  0x23   : > { %995 = vmatpush.msra.mxu3 %v357_v17  ;;  %583 = vmatpush.msra.mxu1 %v357_v17  ;;  %v216_v54 = vld [vmem:[%s1178_s28 + $0x50] sm:$0xff]  ;;  %v217_v55 = vld [vmem:[%s1178_s28 + $0x58] sm:$0xff]  ;;  %v282_v56 = vld [vmem:[%s1178_s28 + $0x260] sm:$0xff] }
  0x24   : > { %980 = vmatpush.msra.mxu2 %v340_v18  ;;  %375 = vmatpush.msra.mxu0 %v340_v18  ;;  %v283_v57 = vld [vmem:[%s1178_s28 + $0x268] sm:$0xff]  ;;  %v218_v58 = vld [vmem:[%s1178_s28 + $0x60] sm:$0xff]  ;;  %v284_v60 = vld [vmem:[%s1178_s28 + $0x270] sm:$0xff] }
  0x25   : > { %996 = vmatpush.msra.mxu3 %v356_v19  ;;  %584 = vmatpush.msra.mxu1 %v356_v19  ;;  %v219_v59 = vld [vmem:[%s1178_s28 + $0x68] sm:$0xff]  ;;  %v285_v61 = vld [vmem:[%s1178_s28 + $0x278] sm:$0xff]  ;;  %v220_v62 = vld [vmem:[%s1178_s28 + $0x70] sm:$0xff] }
  0x26   : > { %981 = vmatpush.msra.mxu2 %v339_v20  ;;  %376 = vmatpush.msra.mxu0 %v339_v20  ;;  %v221_v63 = vld [vmem:[%s1178_s28 + $0x78] sm:$0xff]  ;;  %v286_v0 = vld [vmem:[%s1178_s28 + $0x280] sm:$0xff]  ;;  %v287_v1 = vld [vmem:[%s1178_s28 + $0x288] sm:$0xff] }
  0x27   : > { %997 = vmatpush.msra.mxu3 %v355_v21  ;;  %585 = vmatpush.msra.mxu1 %v355_v21  ;;  %v222_v2 = vld [vmem:[%s1178_s28 + $0x80] sm:$0xff]  ;;  %v223_v3 = vld [vmem:[%s1178_s28 + $0x88] sm:$0xff]  ;;  %v288_v4 = vld [vmem:[%s1178_s28 + $0x290] sm:$0xff] }
  0x28   : > { %982 = vmatpush.msra.mxu2 %v338_v22  ;;  %377 = vmatpush.msra.mxu0 %v338_v22  ;;  %v289_v5 = vld [vmem:[%s1178_s28 + $0x298] sm:$0xff]  ;;  %v224_v6 = vld [vmem:[%s1178_s28 + $0x90] sm:$0xff]  ;;  %v290_v8 = vld [vmem:[%s1178_s28 + $0x2a0] sm:$0xff] }
  0x29   : > { %998 = vmatpush.msra.mxu3 %v354_v23  ;;  %586 = vmatpush.msra.mxu1 %v354_v23  ;;  %v225_v7 = vld [vmem:[%s1178_s28 + $0x98] sm:$0xff]  ;;  %v291_v9 = vld [vmem:[%s1178_s28 + $0x2a8] sm:$0xff]  ;;  %v226_v10 = vld [vmem:[%s1178_s28 + $0xa0] sm:$0xff] }
  0x2a   : > { %983 = vmatpush.msra.mxu2 %v337_v24  ;;  %378 = vmatpush.msra.mxu0 %v337_v24  ;;  %v227_v11 = vld [vmem:[%s1178_s28 + $0xa8] sm:$0xff]  ;;  %v292_v12 = vld [vmem:[%s1178_s28 + $0x2b0] sm:$0xff]  ;;  %v293_v13 = vld [vmem:[%s1178_s28 + $0x2b8] sm:$0xff] }
  0x2b   : > { %999 = vmatpush.msra.mxu3 %v353_v25  ;;  %587 = vmatpush.msra.mxu1 %v353_v25  ;;  %v228_v14 = vld [vmem:[%s1178_s28 + $0xb0] sm:$0xff]  ;;  %v229_v15 = vld [vmem:[%s1178_s28 + $0xb8] sm:$0xff]  ;;  %v294_v16 = vld [vmem:[%s1178_s28 + $0x2c0] sm:$0xff] }
  0x2c   : > { %984 = vmatpush.msra.mxu2 %v336_v26  ;;  %379 = vmatpush.msra.mxu0 %v336_v26  ;;  %v295_v17 = vld [vmem:[%s1178_s28 + $0x2c8] sm:$0xff]  ;;  %v230_v18 = vld [vmem:[%s1178_s28 + $0xc0] sm:$0xff]  ;;  %v296_v20 = vld [vmem:[%s1178_s28 + $0x2d0] sm:$0xff] }
  0x2d   : > { %1000 = vmatpush.msra.mxu3 %v352_v27  ;;  %588 = vmatpush.msra.mxu1 %v352_v27  ;;  %v231_v19 = vld [vmem:[%s1178_s28 + $0xc8] sm:$0xff]  ;;  %v297_v21 = vld [vmem:[%s1178_s28 + $0x2d8] sm:$0xff]  ;;  %v232_v22 = vld [vmem:[%s1178_s28 + $0xd0] sm:$0xff] }
  0x2e   : > { %985 = vmatpush.msra.mxu2 %v335_v28  ;;  %380 = vmatpush.msra.mxu0 %v335_v28  ;;  %v233_v23 = vld [vmem:[%s1178_s28 + $0xd8] sm:$0xff]  ;;  %v298_v24 = vld [vmem:[%s1178_s28 + $0x2e0] sm:$0xff]  ;;  %v299_v25 = vld [vmem:[%s1178_s28 + $0x2e8] sm:$0xff] }
  0x2f   : > { %1001 = vmatpush.msra.mxu3 %v351_v29  ;;  %589 = vmatpush.msra.mxu1 %v351_v29  ;;  %v234_v26 = vld [vmem:[%s1178_s28 + $0xe0] sm:$0xff]  ;;  %v235_v27 = vld [vmem:[%s1178_s28 + $0xe8] sm:$0xff]  ;;  %v300_v28 = vld [vmem:[%s1178_s28 + $0x2f0] sm:$0xff] }
  0x30   : > { %986 = vmatpush.msra.mxu2 %v334_v30  ;;  %381 = vmatpush.msra.mxu0 %v334_v30  ;;  %v301_v29 = vld [vmem:[%s1178_s28 + $0x2f8] sm:$0xff]  ;;  %v236_v30 = vld [vmem:[%s1178_s28 + $0xf0] sm:$0xff] }
  0x31   : > { %1002 = vmatpush.msra.mxu3 %v350_v31  ;;  %478 = vmatmul.f32.vlgmr.msra.gmra.mxu2 %v270_v32  ;;  %v302_v32 = vld [vmem:[%s1178_s28 + $0x300] sm:$0xff] }
  0x32   : > { %687 = vmatmul.f32.vlgmr.msra.gmra.mxu3 %v271_v33  ;;  %590 = vmatpush.msra.mxu1 %v350_v31  ;;  %v237_v31 = vld [vmem:[%s1178_s28 + $0xf8] sm:$0xff]  ;;  %v303_v33 = vld [vmem:[%s1178_s28 + $0x308] sm:$0xff] }
  0x33   : > { %382 = vmatmul.f32.vlgmr.msra.gmra.mxu0 %v206_v34  ;;  %591 = vmatmul.f32.vlgmr.msra.gmra.mxu1 %v207_v35 }
  0x39   : > { %481 = vmatmul.f32.gmra.mxu2 %v272_v36  ;;  %v238_v36 = vld [vmem:[%s1178_s28 + $0x100] sm:$0xff] }
  0x3a   : > { %690 = vmatmul.f32.gmra.mxu3 %v273_v37  ;;  %v239_v37 = vld [vmem:[%s1178_s28 + $0x108] sm:$0xff] }
  0x3b   : > { %385 = vmatmul.f32.gmra.mxu0 %v208_v38  ;;  %594 = vmatmul.f32.gmra.mxu1 %v209_v39 }
  0x41   : > { %484 = vmatmul.f32.gmra.mxu2 %v274_v40 }
  0x42   : > { %693 = vmatmul.f32.gmra.mxu3 %v275_v41 }
  0x43   : > { %388 = vmatmul.f32.gmra.mxu0 %v210_v42  ;;  %597 = vmatmul.f32.gmra.mxu1 %v211_v43  ;;  %v304_v42 = vld [vmem:[%s1178_s28 + $0x310] sm:$0xff]  ;;  %v305_v43 = vld [vmem:[%s1178_s28 + $0x318] sm:$0xff] }
  0x49   : > { %487 = vmatmul.f32.gmra.mxu2 %v276_v44 }
  0x4a   : > { %696 = vmatmul.f32.gmra.mxu3 %v277_v45 }
  0x4b   : > { %391 = vmatmul.f32.gmra.mxu0 %v212_v46  ;;  %600 = vmatmul.f32.gmra.mxu1 %v213_v47  ;;  %v240_v46 = vld [vmem:[%s1178_s28 + $0x110] sm:$0xff]  ;;  %v241_v47 = vld [vmem:[%s1178_s28 + $0x118] sm:$0xff] }
  0x51   : > { %490 = vmatmul.f32.gmra.mxu2 %v278_v48 }
  0x52   : > { %699 = vmatmul.f32.gmra.mxu3 %v279_v49 }
  0x53   : > { %394 = vmatmul.f32.gmra.mxu0 %v214_v50  ;;  %603 = vmatmul.f32.gmra.mxu1 %v215_v51 }
  0x59   : > { %493 = vmatmul.f32.gmra.mxu2 %v280_v52  ;;  %v306_v52 = vld [vmem:[%s1178_s28 + $0x320] sm:$0xff] }
  0x5a   : > { %702 = vmatmul.f32.gmra.mxu3 %v281_v53  ;;  %v307_v53 = vld [vmem:[%s1178_s28 + $0x328] sm:$0xff] }
  0x5b   : > { %397 = vmatmul.f32.gmra.mxu0 %v216_v54  ;;  %606 = vmatmul.f32.gmra.mxu1 %v217_v55 }
  0x61   : > { %496 = vmatmul.f32.gmra.mxu2 %v282_v56  ;;  %v242_v56 = vld [vmem:[%s1178_s28 + $0x120] sm:$0xff] }
  0x62   : > { %705 = vmatmul.f32.gmra.mxu3 %v283_v57  ;;  %v243_v57 = vld [vmem:[%s1178_s28 + $0x128] sm:$0xff] }
  0x63   : > { %400 = vmatmul.f32.gmra.mxu0 %v218_v58  ;;  %609 = vmatmul.f32.gmra.mxu1 %v219_v59 }
  0x69   : > { %499 = vmatmul.f32.gmra.mxu2 %v284_v60 }
  0x6a   : > { %708 = vmatmul.f32.gmra.mxu3 %v285_v61 }
  0x6b   : > { %403 = vmatmul.f32.gmra.mxu0 %v220_v62  ;;  %612 = vmatmul.f32.gmra.mxu1 %v221_v63  ;;  %v308_v62 = vld [vmem:[%s1178_s28 + $0x330] sm:$0xff]  ;;  %v309_v63 = vld [vmem:[%s1178_s28 + $0x338] sm:$0xff] }
  0x71   : > { %502 = vmatmul.f32.gmra.mxu2 %v286_v0 }
  0x72   : > { %711 = vmatmul.f32.gmra.mxu3 %v287_v1 }
  0x73   : > { %406 = vmatmul.f32.gmra.mxu0 %v222_v2  ;;  %615 = vmatmul.f32.gmra.mxu1 %v223_v3  ;;  %v244_v2 = vld [vmem:[%s1178_s28 + $0x130] sm:$0xff]  ;;  %v245_v3 = vld [vmem:[%s1178_s28 + $0x138] sm:$0xff] }
  0x79   : > { %505 = vmatmul.f32.gmra.mxu2 %v288_v4 }
  0x7a   : > { %714 = vmatmul.f32.gmra.mxu3 %v289_v5 }
  0x7b   : > { %409 = vmatmul.f32.gmra.mxu0 %v224_v6  ;;  %618 = vmatmul.f32.gmra.mxu1 %v225_v7 }
  0x81   : > { %508 = vmatmul.f32.gmra.mxu2 %v290_v8  ;;  %v310_v8 = vld [vmem:[%s1178_s28 + $0x340] sm:$0xff] }
  0x82   : > { %717 = vmatmul.f32.gmra.mxu3 %v291_v9  ;;  %v311_v9 = vld [vmem:[%s1178_s28 + $0x348] sm:$0xff] }
  0x83   : > { %412 = vmatmul.f32.gmra.mxu0 %v226_v10  ;;  %621 = vmatmul.f32.gmra.mxu1 %v227_v11 }
  0x89   : > { %511 = vmatmul.f32.gmra.mxu2 %v292_v12  ;;  %v246_v12 = vld [vmem:[%s1178_s28 + $0x140] sm:$0xff] }
  0x8a   : > { %720 = vmatmul.f32.gmra.mxu3 %v293_v13  ;;  %v247_v13 = vld [vmem:[%s1178_s28 + $0x148] sm:$0xff] }
  0x8b   : > { %415 = vmatmul.f32.gmra.mxu0 %v228_v14  ;;  %624 = vmatmul.f32.gmra.mxu1 %v229_v15 }
  0x91   : > { %514 = vmatmul.f32.gmra.mxu2 %v294_v16 }
  0x92   : > { %723 = vmatmul.f32.gmra.mxu3 %v295_v17 }
  0x93   : > { %418 = vmatmul.f32.gmra.mxu0 %v230_v18  ;;  %627 = vmatmul.f32.gmra.mxu1 %v231_v19  ;;  %v312_v18 = vld [vmem:[%s1178_s28 + $0x350] sm:$0xff]  ;;  %v313_v19 = vld [vmem:[%s1178_s28 + $0x358] sm:$0xff] }
  0x99   : > { %517 = vmatmul.f32.gmra.mxu2 %v296_v20 }
  0x9a   : > { %726 = vmatmul.f32.gmra.mxu3 %v297_v21 }
  0x9b   : > { %421 = vmatmul.f32.gmra.mxu0 %v232_v22  ;;  %630 = vmatmul.f32.gmra.mxu1 %v233_v23  ;;  %v248_v22 = vld [vmem:[%s1178_s28 + $0x150] sm:$0xff]  ;;  %v249_v23 = vld [vmem:[%s1178_s28 + $0x158] sm:$0xff] }
  0xa1   : > { %520 = vmatmul.f32.gmra.mxu2 %v298_v24 }
  0xa2   : > { %729 = vmatmul.f32.gmra.mxu3 %v299_v25 }
  0xa3   : > { %424 = vmatmul.f32.gmra.mxu0 %v234_v26  ;;  %633 = vmatmul.f32.gmra.mxu1 %v235_v27 }
  0xa9   : > { %523 = vmatmul.f32.gmra.mxu2 %v300_v28  ;;  %v314_v28 = vld [vmem:[%s1178_s28 + $0x360] sm:$0xff] }
  0xaa   : > { %732 = vmatmul.f32.gmra.mxu3 %v301_v29  ;;  %v315_v29 = vld [vmem:[%s1178_s28 + $0x368] sm:$0xff] }
  0xab   : > { %427 = vmatmul.f32.gmra.mxu0 %v236_v30  ;;  %636 = vmatmul.f32.gmra.mxu1 %v237_v31 }
  0xb0   : > { %v383_v34 = vpop.f32.mrf.mxu0  ;;  %v592_v35 = vpop.f32.mrf.mxu1 }
  0xb1   : > { %526 = vmatmul.f32.gmra.mxu2 %v302_v32  ;;  %v593_v38 = vadd.f32 %v592_v35, %v383_v34  ;;  %v250_v32 = vld [vmem:[%s1178_s28 + $0x160] sm:$0xff] }
  0xb2   : > { %735 = vmatmul.f32.gmra.mxu3 %v303_v33  ;;  %v251_v33 = vld [vmem:[%s1178_s28 + $0x168] sm:$0xff] }
  0xb3   : > { %785 = vst.msk [vmem:[%s1254_s4] sm:$0xff] %vm784_vm0, %v593_v38  ;;  %430 = vmatmul.f32.gmra.mxu0 %v238_v36  ;;  %639 = vmatmul.f32.gmra.mxu1 %v239_v37  ;;  %v316_v38 = vld [vmem:[%s1178_s28 + $0x370] sm:$0xff] }
  0xb4   : > { %v479_v39 = vpop.f32.mrf.mxu2 }
  0xb5   : > { %v688_v40 = vpop.f32.mrf.mxu3 }
  0xb6   : > { %v689_v41 = vadd.f32 %v688_v40, %v479_v39  ;;  %v317_v39 = vld [vmem:[%s1178_s28 + $0x378] sm:$0xff] }
  0xb8   : > { %817 = vst.msk [vmem:[%s1254_s4 + $0x100] sm:$0xff] %vm784_vm0, %v689_v41  ;;  %v386_v44 = vpop.f32.mrf.mxu0  ;;  %v595_v45 = vpop.f32.mrf.mxu1 }
  0xb9   : > { %529 = vmatmul.f32.gmra.mxu2 %v304_v42  ;;  %v596_v48 = vadd.f32 %v595_v45, %v386_v44  ;;  %v252_v42 = vld [vmem:[%s1178_s28 + $0x170] sm:$0xff] }
  0xba   : > { %738 = vmatmul.f32.gmra.mxu3 %v305_v43  ;;  %v253_v43 = vld [vmem:[%s1178_s28 + $0x178] sm:$0xff] }
  0xbb   : > { %786 = vst.msk [vmem:[%s1254_s4 + $0x8] sm:$0xff] %vm784_vm0, %v596_v48  ;;  %433 = vmatmul.f32.gmra.mxu0 %v240_v46  ;;  %642 = vmatmul.f32.gmra.mxu1 %v241_v47  ;;  %v318_v48 = vld [vmem:[%s1178_s28 + $0x380] sm:$0xff] }
  0xbc   : > { %v482_v49 = vpop.f32.mrf.mxu2 }
  0xbd   : > { %v691_v50 = vpop.f32.mrf.mxu3 }
  0xbe   : > { %v692_v51 = vadd.f32 %v691_v50, %v482_v49  ;;  %v319_v49 = vld [vmem:[%s1178_s28 + $0x388] sm:$0xff] }
  0xc0   : > { %818 = vst.msk [vmem:[%s1254_s4 + $0x108] sm:$0xff] %vm784_vm0, %v692_v51  ;;  %v389_v54 = vpop.f32.mrf.mxu0  ;;  %v598_v55 = vpop.f32.mrf.mxu1 }
  0xc1   : > { %532 = vmatmul.f32.gmra.mxu2 %v306_v52  ;;  %v599_v58 = vadd.f32 %v598_v55, %v389_v54  ;;  %v254_v52 = vld [vmem:[%s1178_s28 + $0x180] sm:$0xff] }
  0xc2   : > { %741 = vmatmul.f32.gmra.mxu3 %v307_v53  ;;  %v255_v53 = vld [vmem:[%s1178_s28 + $0x188] sm:$0xff] }
  0xc3   : > { %787 = vst.msk [vmem:[%s1254_s4 + $0x10] sm:$0xff] %vm784_vm0, %v599_v58  ;;  %436 = vmatmul.f32.gmra.mxu0 %v242_v56  ;;  %645 = vmatmul.f32.gmra.mxu1 %v243_v57  ;;  %v320_v58 = vld [vmem:[%s1178_s28 + $0x390] sm:$0xff] }
  0xc4   : > { %v485_v59 = vpop.f32.mrf.mxu2 }
  0xc5   : > { %v694_v60 = vpop.f32.mrf.mxu3 }
  0xc6   : > { %v695_v61 = vadd.f32 %v694_v60, %v485_v59  ;;  %v321_v59 = vld [vmem:[%s1178_s28 + $0x398] sm:$0xff] }
  0xc8   : > { %819 = vst.msk [vmem:[%s1254_s4 + $0x110] sm:$0xff] %vm784_vm0, %v695_v61  ;;  %v392_v0 = vpop.f32.mrf.mxu0  ;;  %v601_v1 = vpop.f32.mrf.mxu1 }
  0xc9   : > { %535 = vmatmul.f32.gmra.mxu2 %v308_v62  ;;  %v602_v4 = vadd.f32 %v601_v1, %v392_v0  ;;  %v256_v62 = vld [vmem:[%s1178_s28 + $0x190] sm:$0xff] }
  0xca   : > { %744 = vmatmul.f32.gmra.mxu3 %v309_v63  ;;  %v257_v63 = vld [vmem:[%s1178_s28 + $0x198] sm:$0xff] }
  0xcb   : > { %788 = vst.msk [vmem:[%s1254_s4 + $0x18] sm:$0xff] %vm784_vm0, %v602_v4  ;;  %439 = vmatmul.f32.gmra.mxu0 %v244_v2  ;;  %648 = vmatmul.f32.gmra.mxu1 %v245_v3  ;;  %v322_v4 = vld [vmem:[%s1178_s28 + $0x3a0] sm:$0xff] }
  0xcc   : > { %v488_v5 = vpop.f32.mrf.mxu2 }
  0xcd   : > { %v697_v6 = vpop.f32.mrf.mxu3 }
  0xce   : > { %v698_v7 = vadd.f32 %v697_v6, %v488_v5  ;;  %v323_v5 = vld [vmem:[%s1178_s28 + $0x3a8] sm:$0xff] }
  0xd0   : > { %820 = vst.msk [vmem:[%s1254_s4 + $0x118] sm:$0xff] %vm784_vm0, %v698_v7  ;;  %v395_v10 = vpop.f32.mrf.mxu0  ;;  %v604_v11 = vpop.f32.mrf.mxu1 }
  0xd1   : > { %538 = vmatmul.f32.gmra.mxu2 %v310_v8  ;;  %v605_v14 = vadd.f32 %v604_v11, %v395_v10  ;;  %v258_v8 = vld [vmem:[%s1178_s28 + $0x1a0] sm:$0xff] }
  0xd2   : > { %747 = vmatmul.f32.gmra.mxu3 %v311_v9  ;;  %v259_v9 = vld [vmem:[%s1178_s28 + $0x1a8] sm:$0xff] }
  0xd3   : > { %789 = vst.msk [vmem:[%s1254_s4 + $0x20] sm:$0xff] %vm784_vm0, %v605_v14  ;;  %442 = vmatmul.f32.gmra.mxu0 %v246_v12  ;;  %651 = vmatmul.f32.gmra.mxu1 %v247_v13  ;;  %v324_v14 = vld [vmem:[%s1178_s28 + $0x3b0] sm:$0xff] }
  0xd4   : > { %v491_v15 = vpop.f32.mrf.mxu2 }
  0xd5   : > { %v700_v16 = vpop.f32.mrf.mxu3 }
  0xd6   : > { %v701_v17 = vadd.f32 %v700_v16, %v491_v15  ;;  %v325_v15 = vld [vmem:[%s1178_s28 + $0x3b8] sm:$0xff] }
  0xd8   : > { %821 = vst.msk [vmem:[%s1254_s4 + $0x120] sm:$0xff] %vm784_vm0, %v701_v17  ;;  %v398_v20 = vpop.f32.mrf.mxu0  ;;  %v607_v21 = vpop.f32.mrf.mxu1 }
  0xd9   : > { %541 = vmatmul.f32.gmra.mxu2 %v312_v18  ;;  %v608_v24 = vadd.f32 %v607_v21, %v398_v20  ;;  %v260_v18 = vld [vmem:[%s1178_s28 + $0x1b0] sm:$0xff] }
  0xda   : > { %750 = vmatmul.f32.gmra.mxu3 %v313_v19  ;;  %v261_v19 = vld [vmem:[%s1178_s28 + $0x1b8] sm:$0xff] }
  0xdb   : > { %790 = vst.msk [vmem:[%s1254_s4 + $0x28] sm:$0xff] %vm784_vm0, %v608_v24  ;;  %445 = vmatmul.f32.gmra.mxu0 %v248_v22  ;;  %654 = vmatmul.f32.gmra.mxu1 %v249_v23  ;;  %v326_v24 = vld [vmem:[%s1178_s28 + $0x3c0] sm:$0xff] }
  0xdc   : > { %v494_v25 = vpop.f32.mrf.mxu2 }
  0xdd   : > { %v703_v26 = vpop.f32.mrf.mxu3 }
  0xde   : > { %v704_v27 = vadd.f32 %v703_v26, %v494_v25  ;;  %v327_v25 = vld [vmem:[%s1178_s28 + $0x3c8] sm:$0xff] }
  0xe0   : > { %822 = vst.msk [vmem:[%s1254_s4 + $0x128] sm:$0xff] %vm784_vm0, %v704_v27  ;;  %v401_v30 = vpop.f32.mrf.mxu0  ;;  %v610_v31 = vpop.f32.mrf.mxu1 }
  0xe1   : > { %544 = vmatmul.f32.gmra.mxu2 %v314_v28  ;;  %v611_v34 = vadd.f32 %v610_v31, %v401_v30  ;;  %v262_v28 = vld [vmem:[%s1178_s28 + $0x1c0] sm:$0xff] }
  0xe2   : > { %753 = vmatmul.f32.gmra.mxu3 %v315_v29  ;;  %v263_v29 = vld [vmem:[%s1178_s28 + $0x1c8] sm:$0xff] }
  0xe3   : > { %791 = vst.msk [vmem:[%s1254_s4 + $0x30] sm:$0xff] %vm784_vm0, %v611_v34  ;;  %448 = vmatmul.f32.gmra.mxu0 %v250_v32  ;;  %657 = vmatmul.f32.gmra.mxu1 %v251_v33  ;;  %v328_v34 = vld [vmem:[%s1178_s28 + $0x3d0] sm:$0xff] }
  0xe4   : > { %v497_v35 = vpop.f32.mrf.mxu2 }
  0xe5   : > { %v706_v36 = vpop.f32.mrf.mxu3 }
  0xe6   : > { %v707_v37 = vadd.f32 %v706_v36, %v497_v35  ;;  %v329_v35 = vld [vmem:[%s1178_s28 + $0x3d8] sm:$0xff] }
  0xe8   : > { %823 = vst.msk [vmem:[%s1254_s4 + $0x130] sm:$0xff] %vm784_vm0, %v707_v37  ;;  %v404_v40 = vpop.f32.mrf.mxu0  ;;  %v613_v41 = vpop.f32.mrf.mxu1 }
  0xe9   : > { %547 = vmatmul.f32.gmra.mxu2 %v316_v38  ;;  %v614_v44 = vadd.f32 %v613_v41, %v404_v40  ;;  %v264_v38 = vld [vmem:[%s1178_s28 + $0x1d0] sm:$0xff] }
  0xea   : > { %756 = vmatmul.f32.gmra.mxu3 %v317_v39  ;;  %v265_v39 = vld [vmem:[%s1178_s28 + $0x1d8] sm:$0xff] }
  0xeb   : > { %792 = vst.msk [vmem:[%s1254_s4 + $0x38] sm:$0xff] %vm784_vm0, %v614_v44  ;;  %451 = vmatmul.f32.gmra.mxu0 %v252_v42  ;;  %660 = vmatmul.f32.gmra.mxu1 %v253_v43  ;;  %v330_v44 = vld [vmem:[%s1178_s28 + $0x3e0] sm:$0xff] }
  0xec   : > { %v500_v45 = vpop.f32.mrf.mxu2 }
  0xed   : > { %v709_v46 = vpop.f32.mrf.mxu3 }
  0xee   : > { %v710_v47 = vadd.f32 %v709_v46, %v500_v45  ;;  %v331_v45 = vld [vmem:[%s1178_s28 + $0x3e8] sm:$0xff] }
  0xf0   : > { %824 = vst.msk [vmem:[%s1254_s4 + $0x138] sm:$0xff] %vm784_vm0, %v710_v47  ;;  %v407_v50 = vpop.f32.mrf.mxu0  ;;  %v616_v51 = vpop.f32.mrf.mxu1 }
  0xf1   : > { %550 = vmatmul.f32.gmra.mxu2 %v318_v48  ;;  %v617_v54 = vadd.f32 %v616_v51, %v407_v50  ;;  %v266_v48 = vld [vmem:[%s1178_s28 + $0x1e0] sm:$0xff] }
  0xf2   : > { %759 = vmatmul.f32.gmra.mxu3 %v319_v49  ;;  %v267_v49 = vld [vmem:[%s1178_s28 + $0x1e8] sm:$0xff] }
  0xf3   : > { %793 = vst.msk [vmem:[%s1254_s4 + $0x40] sm:$0xff] %vm784_vm0, %v617_v54  ;;  %454 = vmatmul.f32.gmra.mxu0 %v254_v52  ;;  %663 = vmatmul.f32.gmra.mxu1 %v255_v53  ;;  %v332_v54 = vld [vmem:[%s1178_s28 + $0x3f0] sm:$0xff] }
  0xf4   : > { %v503_v55 = vpop.f32.mrf.mxu2 }
  0xf5   : > { %v712_v56 = vpop.f32.mrf.mxu3 }
  0xf6   : > { %v713_v57 = vadd.f32 %v712_v56, %v503_v55  ;;  %v333_v55 = vld [vmem:[%s1178_s28 + $0x3f8] sm:$0xff] }
  0xf8   : > { %825 = vst.msk [vmem:[%s1254_s4 + $0x140] sm:$0xff] %vm784_vm0, %v713_v57  ;;  %v410_v60 = vpop.f32.mrf.mxu0  ;;  %v619_v61 = vpop.f32.mrf.mxu1 }
  0xf9   : > { %553 = vmatmul.f32.gmra.mxu2 %v320_v58  ;;  %v620_v0 = vadd.f32 %v619_v61, %v410_v60  ;;  %v268_v58 = vld [vmem:[%s1178_s28 + $0x1f0] sm:$0xff] }
  0xfa   : > { %762 = vmatmul.f32.gmra.mxu3 %v321_v59  ;;  %v269_v59 = vld [vmem:[%s1178_s28 + $0x1f8] sm:$0xff] }
  0xfb   : > { %794 = vst.msk [vmem:[%s1254_s4 + $0x48] sm:$0xff] %vm784_vm0, %v620_v0  ;;  %457 = vmatmul.f32.gmra.mxu0 %v256_v62  ;;  %666 = vmatmul.f32.gmra.mxu1 %v257_v63 }
  0xfc   : > { %v506_v1 = vpop.f32.mrf.mxu2 }
  0xfd   : > { %v715_v2 = vpop.f32.mrf.mxu3 }
  0xfe   : > { %v716_v3 = vadd.f32 %v715_v2, %v506_v1 }
 0x100   : > { %826 = vst.msk [vmem:[%s1254_s4 + $0x148] sm:$0xff] %vm784_vm0, %v716_v3  ;;  %v413_v6 = vpop.f32.mrf.mxu0  ;;  %v622_v7 = vpop.f32.mrf.mxu1 }
 0x101   : > { %556 = vmatmul.f32.gmra.mxu2 %v322_v4  ;;  %v623_v10 = vadd.f32 %v622_v7, %v413_v6 }
 0x102   : > { %765 = vmatmul.f32.gmra.mxu3 %v323_v5 }
 0x103   : > { %795 = vst.msk [vmem:[%s1254_s4 + $0x50] sm:$0xff] %vm784_vm0, %v623_v10  ;;  %460 = vmatmul.f32.gmra.mxu0 %v258_v8  ;;  %669 = vmatmul.f32.gmra.mxu1 %v259_v9 }
 0x104   : > { %v509_v11 = vpop.f32.mrf.mxu2 }
 0x105   : > { %v718_v12 = vpop.f32.mrf.mxu3 }
 0x106   : > { %v719_v13 = vadd.f32 %v718_v12, %v509_v11 }
 0x108   : > { %827 = vst.msk [vmem:[%s1254_s4 + $0x150] sm:$0xff] %vm784_vm0, %v719_v13  ;;  %v416_v16 = vpop.f32.mrf.mxu0  ;;  %v625_v17 = vpop.f32.mrf.mxu1 }
 0x109   : > { %559 = vmatmul.f32.gmra.mxu2 %v324_v14  ;;  %v626_v20 = vadd.f32 %v625_v17, %v416_v16 }
 0x10a   : > { %768 = vmatmul.f32.gmra.mxu3 %v325_v15 }
 0x10b   : > { %796 = vst.msk [vmem:[%s1254_s4 + $0x58] sm:$0xff] %vm784_vm0, %v626_v20  ;;  %463 = vmatmul.f32.gmra.mxu0 %v260_v18  ;;  %672 = vmatmul.f32.gmra.mxu1 %v261_v19 }
 0x10c   : > { %v512_v21 = vpop.f32.mrf.mxu2 }
 0x10d   : > { %v721_v22 = vpop.f32.mrf.mxu3 }
 0x10e   : > { %v722_v23 = vadd.f32 %v721_v22, %v512_v21 }
 0x110   : > { %828 = vst.msk [vmem:[%s1254_s4 + $0x158] sm:$0xff] %vm784_vm0, %v722_v23  ;;  %v419_v26 = vpop.f32.mrf.mxu0  ;;  %v628_v27 = vpop.f32.mrf.mxu1 }
 0x111   : > { %562 = vmatmul.f32.gmra.mxu2 %v326_v24  ;;  %v629_v30 = vadd.f32 %v628_v27, %v419_v26 }
 0x112   : > { %771 = vmatmul.f32.gmra.mxu3 %v327_v25 }
 0x113   : > { %797 = vst.msk [vmem:[%s1254_s4 + $0x60] sm:$0xff] %vm784_vm0, %v629_v30  ;;  %466 = vmatmul.f32.gmra.mxu0 %v262_v28  ;;  %675 = vmatmul.f32.gmra.mxu1 %v263_v29 }
 0x114   : > { %v515_v31 = vpop.f32.mrf.mxu2 }
 0x115   : > { %v724_v32 = vpop.f32.mrf.mxu3 }
 0x116   : > { %v725_v33 = vadd.f32 %v724_v32, %v515_v31 }
 0x118   : > { %829 = vst.msk [vmem:[%s1254_s4 + $0x160] sm:$0xff] %vm784_vm0, %v725_v33  ;;  %v422_v36 = vpop.f32.mrf.mxu0  ;;  %v631_v37 = vpop.f32.mrf.mxu1 }
 0x119   : > { %565 = vmatmul.f32.gmra.mxu2 %v328_v34  ;;  %v632_v40 = vadd.f32 %v631_v37, %v422_v36 }
 0x11a   : > { %774 = vmatmul.f32.gmra.mxu3 %v329_v35 }
 0x11b   : > { %798 = vst.msk [vmem:[%s1254_s4 + $0x68] sm:$0xff] %vm784_vm0, %v632_v40  ;;  %469 = vmatmul.f32.gmra.mxu0 %v264_v38  ;;  %678 = vmatmul.f32.gmra.mxu1 %v265_v39 }
 0x11c   : > { %v518_v41 = vpop.f32.mrf.mxu2 }
 0x11d   : > { %v727_v42 = vpop.f32.mrf.mxu3 }
 0x11e   : > { %v728_v43 = vadd.f32 %v727_v42, %v518_v41 }
 0x120   : > { %830 = vst.msk [vmem:[%s1254_s4 + $0x168] sm:$0xff] %vm784_vm0, %v728_v43  ;;  %v425_v46 = vpop.f32.mrf.mxu0  ;;  %v634_v47 = vpop.f32.mrf.mxu1 }
 0x121   : > { %568 = vmatmul.f32.gmra.mxu2 %v330_v44  ;;  %v635_v50 = vadd.f32 %v634_v47, %v425_v46 }
 0x122   : > { %777 = vmatmul.f32.gmra.mxu3 %v331_v45 }
 0x123   : > { %799 = vst.msk [vmem:[%s1254_s4 + $0x70] sm:$0xff] %vm784_vm0, %v635_v50  ;;  %472 = vmatmul.f32.gmra.mxu0 %v266_v48  ;;  %681 = vmatmul.f32.gmra.mxu1 %v267_v49 }
 0x124   : > { %v521_v51 = vpop.f32.mrf.mxu2 }
 0x125   : > { %v730_v52 = vpop.f32.mrf.mxu3 }
 0x126   : > { %v731_v53 = vadd.f32 %v730_v52, %v521_v51 }
 0x128   : > { %831 = vst.msk [vmem:[%s1254_s4 + $0x170] sm:$0xff] %vm784_vm0, %v731_v53  ;;  %v428_v56 = vpop.f32.mrf.mxu0  ;;  %v637_v57 = vpop.f32.mrf.mxu1 }
 0x129   : > { %571 = vmatmul.f32.gmra.mxu2 %v332_v54  ;;  %v638_v60 = vadd.f32 %v637_v57, %v428_v56 }
 0x12a   : > { %780 = vmatmul.f32.gmra.mxu3 %v333_v55 }
 0x12b   : > { %800 = vst.msk [vmem:[%s1254_s4 + $0x78] sm:$0xff] %vm784_vm0, %v638_v60  ;;  %475 = vmatmul.f32.gmra.mxu0 %v268_v58  ;;  %684 = vmatmul.f32.gmra.mxu1 %v269_v59 }
 0x12c   : > { %v524_v61 = vpop.f32.mrf.mxu2 }
 0x12d   : > { %v733_v62 = vpop.f32.mrf.mxu3 }
 0x12e   : > { %v734_v63 = vadd.f32 %v733_v62, %v524_v61 }
 0x130   : > { %832 = vst.msk [vmem:[%s1254_s4 + $0x178] sm:$0xff] %vm784_vm0, %v734_v63  ;;  %v431_v0 = vpop.f32.mrf.mxu0  ;;  %v640_v1 = vpop.f32.mrf.mxu1 }
 0x131   : > { %v641_v2 = vadd.f32 %v640_v1, %v431_v0 }
 0x133   : > { %801 = vst.msk [vmem:[%s1254_s4 + $0x80] sm:$0xff] %vm784_vm0, %v641_v2 }
 0x134   : > { %v527_v3 = vpop.f32.mrf.mxu2 }
 0x135   : > { %v736_v4 = vpop.f32.mrf.mxu3 }
 0x136   : > { %v737_v5 = vadd.f32 %v736_v4, %v527_v3 }
 0x138   : > { %833 = vst.msk [vmem:[%s1254_s4 + $0x180] sm:$0xff] %vm784_vm0, %v737_v5  ;;  %v434_v6 = vpop.f32.mrf.mxu0  ;;  %v643_v7 = vpop.f32.mrf.mxu1 }
 0x139   : > { %v644_v8 = vadd.f32 %v643_v7, %v434_v6 }
 0x13b   : > { %802 = vst.msk [vmem:[%s1254_s4 + $0x88] sm:$0xff] %vm784_vm0, %v644_v8 }
 0x13c   : > { %v530_v9 = vpop.f32.mrf.mxu2 }
 0x13d   : > { %v739_v10 = vpop.f32.mrf.mxu3 }
 0x13e   : > { %v740_v11 = vadd.f32 %v739_v10, %v530_v9 }
 0x140   : > { %834 = vst.msk [vmem:[%s1254_s4 + $0x188] sm:$0xff] %vm784_vm0, %v740_v11  ;;  %v437_v12 = vpop.f32.mrf.mxu0  ;;  %v646_v13 = vpop.f32.mrf.mxu1 }
 0x141   : > { %v647_v14 = vadd.f32 %v646_v13, %v437_v12 }
 0x143   : > { %803 = vst.msk [vmem:[%s1254_s4 + $0x90] sm:$0xff] %vm784_vm0, %v647_v14 }
 0x144   : > { %v533_v15 = vpop.f32.mrf.mxu2 }
 0x145   : > { %v742_v16 = vpop.f32.mrf.mxu3 }
 0x146   : > { %v743_v17 = vadd.f32 %v742_v16, %v533_v15 }
 0x148   : > { %835 = vst.msk [vmem:[%s1254_s4 + $0x190] sm:$0xff] %vm784_vm0, %v743_v17  ;;  %v440_v18 = vpop.f32.mrf.mxu0  ;;  %v649_v19 = vpop.f32.mrf.mxu1 }
 0x149   : > { %v650_v20 = vadd.f32 %v649_v19, %v440_v18 }
 0x14b   : > { %804 = vst.msk [vmem:[%s1254_s4 + $0x98] sm:$0xff] %vm784_vm0, %v650_v20 }
 0x14c   : > { %v536_v21 = vpop.f32.mrf.mxu2 }
 0x14d   : > { %v745_v22 = vpop.f32.mrf.mxu3 }
 0x14e   : > { %v746_v23 = vadd.f32 %v745_v22, %v536_v21 }
 0x150   : > { %836 = vst.msk [vmem:[%s1254_s4 + $0x198] sm:$0xff] %vm784_vm0, %v746_v23  ;;  %v443_v24 = vpop.f32.mrf.mxu0  ;;  %v652_v25 = vpop.f32.mrf.mxu1 }
 0x151   : > { %v653_v26 = vadd.f32 %v652_v25, %v443_v24 }
 0x153   : > { %805 = vst.msk [vmem:[%s1254_s4 + $0xa0] sm:$0xff] %vm784_vm0, %v653_v26 }
 0x154   : > { %v539_v27 = vpop.f32.mrf.mxu2 }
 0x155   : > { %v748_v28 = vpop.f32.mrf.mxu3 }
 0x156   : > { %v749_v29 = vadd.f32 %v748_v28, %v539_v27 }
 0x158   : > { %837 = vst.msk [vmem:[%s1254_s4 + $0x1a0] sm:$0xff] %vm784_vm0, %v749_v29  ;;  %v446_v30 = vpop.f32.mrf.mxu0  ;;  %v655_v31 = vpop.f32.mrf.mxu1 }
 0x159   : > { %v656_v32 = vadd.f32 %v655_v31, %v446_v30 }
 0x15b   : > { %806 = vst.msk [vmem:[%s1254_s4 + $0xa8] sm:$0xff] %vm784_vm0, %v656_v32 }
 0x15c   : > { %v542_v33 = vpop.f32.mrf.mxu2 }
 0x15d   : > { %v751_v34 = vpop.f32.mrf.mxu3 }
 0x15e   : > { %v752_v35 = vadd.f32 %v751_v34, %v542_v33 }
 0x160   : > { %838 = vst.msk [vmem:[%s1254_s4 + $0x1a8] sm:$0xff] %vm784_vm0, %v752_v35  ;;  %v449_v36 = vpop.f32.mrf.mxu0  ;;  %v658_v37 = vpop.f32.mrf.mxu1 }
 0x161   : > { %v659_v38 = vadd.f32 %v658_v37, %v449_v36 }
 0x163   : > { %807 = vst.msk [vmem:[%s1254_s4 + $0xb0] sm:$0xff] %vm784_vm0, %v659_v38 }
 0x164   : > { %v545_v39 = vpop.f32.mrf.mxu2 }
 0x165   : > { %v754_v40 = vpop.f32.mrf.mxu3 }
 0x166   : > { %v755_v41 = vadd.f32 %v754_v40, %v545_v39 }
 0x168   : > { %839 = vst.msk [vmem:[%s1254_s4 + $0x1b0] sm:$0xff] %vm784_vm0, %v755_v41  ;;  %v452_v42 = vpop.f32.mrf.mxu0  ;;  %v661_v43 = vpop.f32.mrf.mxu1 }
 0x169   : > { %v662_v44 = vadd.f32 %v661_v43, %v452_v42 }
 0x16b   : > { %808 = vst.msk [vmem:[%s1254_s4 + $0xb8] sm:$0xff] %vm784_vm0, %v662_v44 }
 0x16c   : > { %v548_v45 = vpop.f32.mrf.mxu2 }
 0x16d   : > { %v757_v46 = vpop.f32.mrf.mxu3 }
 0x16e   : > { %v758_v47 = vadd.f32 %v757_v46, %v548_v45 }
 0x170   : > { %840 = vst.msk [vmem:[%s1254_s4 + $0x1b8] sm:$0xff] %vm784_vm0, %v758_v47  ;;  %v455_v48 = vpop.f32.mrf.mxu0  ;;  %v664_v49 = vpop.f32.mrf.mxu1 }
 0x171   : > { %v665_v50 = vadd.f32 %v664_v49, %v455_v48 }
 0x173   : > { %809 = vst.msk [vmem:[%s1254_s4 + $0xc0] sm:$0xff] %vm784_vm0, %v665_v50 }
 0x174   : > { %v551_v51 = vpop.f32.mrf.mxu2 }
 0x175   : > { %v760_v52 = vpop.f32.mrf.mxu3 }
 0x176   : > { %v761_v53 = vadd.f32 %v760_v52, %v551_v51 }
 0x178   : > { %841 = vst.msk [vmem:[%s1254_s4 + $0x1c0] sm:$0xff] %vm784_vm0, %v761_v53  ;;  %v458_v54 = vpop.f32.mrf.mxu0  ;;  %v667_v55 = vpop.f32.mrf.mxu1 }
 0x179   : > { %v668_v56 = vadd.f32 %v667_v55, %v458_v54 }
 0x17b   : > { %810 = vst.msk [vmem:[%s1254_s4 + $0xc8] sm:$0xff] %vm784_vm0, %v668_v56 }
 0x17c   : > { %v554_v57 = vpop.f32.mrf.mxu2 }
 0x17d   : > { %v763_v58 = vpop.f32.mrf.mxu3 }
 0x17e   : > { %v764_v59 = vadd.f32 %v763_v58, %v554_v57 }
 0x180   : > { %842 = vst.msk [vmem:[%s1254_s4 + $0x1c8] sm:$0xff] %vm784_vm0, %v764_v59  ;;  %v461_v60 = vpop.f32.mrf.mxu0  ;;  %v670_v61 = vpop.f32.mrf.mxu1 }
 0x181   : > { %v671_v62 = vadd.f32 %v670_v61, %v461_v60 }
 0x183   : > { %811 = vst.msk [vmem:[%s1254_s4 + $0xd0] sm:$0xff] %vm784_vm0, %v671_v62 }
 0x184   : > { %v557_v63 = vpop.f32.mrf.mxu2 }
 0x185   : > { %v766_v0 = vpop.f32.mrf.mxu3 }
 0x186   : > { %v767_v1 = vadd.f32 %v766_v0, %v557_v63 }
 0x188   : > { %843 = vst.msk [vmem:[%s1254_s4 + $0x1d0] sm:$0xff] %vm784_vm0, %v767_v1  ;;  %v464_v2 = vpop.f32.mrf.mxu0  ;;  %v673_v3 = vpop.f32.mrf.mxu1 }
 0x189   : > { %v674_v4 = vadd.f32 %v673_v3, %v464_v2 }
 0x18b   : > { %812 = vst.msk [vmem:[%s1254_s4 + $0xd8] sm:$0xff] %vm784_vm0, %v674_v4 }
 0x18c   : > { %v560_v5 = vpop.f32.mrf.mxu2 }
 0x18d   : > { %v769_v6 = vpop.f32.mrf.mxu3 }
 0x18e   : > { %v770_v7 = vadd.f32 %v769_v6, %v560_v5 }
 0x190   : > { %844 = vst.msk [vmem:[%s1254_s4 + $0x1d8] sm:$0xff] %vm784_vm0, %v770_v7  ;;  %v467_v8 = vpop.f32.mrf.mxu0  ;;  %v676_v9 = vpop.f32.mrf.mxu1 }
 0x191   : > { %v677_v10 = vadd.f32 %v676_v9, %v467_v8 }
 0x193   : > { %813 = vst.msk [vmem:[%s1254_s4 + $0xe0] sm:$0xff] %vm784_vm0, %v677_v10 }
 0x194   : > { %v563_v11 = vpop.f32.mrf.mxu2 }
 0x195   : > { %v772_v12 = vpop.f32.mrf.mxu3 }
 0x196   : > { %v773_v13 = vadd.f32 %v772_v12, %v563_v11 }
 0x198   : > { %845 = vst.msk [vmem:[%s1254_s4 + $0x1e0] sm:$0xff] %vm784_vm0, %v773_v13  ;;  %v470_v14 = vpop.f32.mrf.mxu0  ;;  %v679_v15 = vpop.f32.mrf.mxu1 }
 0x199   : > { %v680_v16 = vadd.f32 %v679_v15, %v470_v14 }
 0x19b   : > { %814 = vst.msk [vmem:[%s1254_s4 + $0xe8] sm:$0xff] %vm784_vm0, %v680_v16 }
 0x19c   : > { %v566_v17 = vpop.f32.mrf.mxu2 }
 0x19d   : > { %v775_v18 = vpop.f32.mrf.mxu3 }
 0x19e   : > { %v776_v19 = vadd.f32 %v775_v18, %v566_v17 }
 0x1a0   : > { %846 = vst.msk [vmem:[%s1254_s4 + $0x1e8] sm:$0xff] %vm784_vm0, %v776_v19  ;;  %v473_v20 = vpop.f32.mrf.mxu0  ;;  %v682_v21 = vpop.f32.mrf.mxu1 }
 0x1a1   : > { %v683_v22 = vadd.f32 %v682_v21, %v473_v20 }
 0x1a3   : > { %815 = vst.msk [vmem:[%s1254_s4 + $0xf0] sm:$0xff] %vm784_vm0, %v683_v22 }
 0x1a4   : > { %v569_v23 = vpop.f32.mrf.mxu2 }
 0x1a5   : > { %v778_v24 = vpop.f32.mrf.mxu3 }
 0x1a6   : > { %v779_v25 = vadd.f32 %v778_v24, %v569_v23 }
 0x1a8   : > { %847 = vst.msk [vmem:[%s1254_s4 + $0x1f0] sm:$0xff] %vm784_vm0, %v779_v25  ;;  %v476_v26 = vpop.f32.mrf.mxu0  ;;  %v685_v27 = vpop.f32.mrf.mxu1 }
 0x1a9   : > { %v686_v28 = vadd.f32 %v685_v27, %v476_v26 }
 0x1ab   : > { %816 = vst.msk [vmem:[%s1254_s4 + $0xf8] sm:$0xff] %vm784_vm0, %v686_v28 }
 0x1ac   : > { %v572_v29 = vpop.f32.mrf.mxu2 }
 0x1ad   : > { %v781_v30 = vpop.f32.mrf.mxu3 }
 0x1ae   : > { %v782_v31 = vadd.f32 %v781_v30, %v572_v29 }
 0x1b0   : > { %848 = vst.msk [vmem:[%s1254_s4 + $0x1f8] sm:$0xff] %vm784_vm0, %v782_v31 }
 0x1b1 PF: > { %s12_s13 = sadd.s32 1, %s1081_s13   ;;  %s1464_s9 = smov %s1073_s11 }
 0x1b2   : > { %p9_p7 = scmp.ge.s32.totalorder %s12_s13, 6   ;;  %s1465_s10 = smov %s1077_s12 }
 0x1b3   : > { %s1466_s11 = smov %s1469_s14  ;;  %s1467_s12 = smov %s1473_s15 }
 0x1b4   :  { %11 = sbr.rel (!%p9_p7) target bundleno = 3 (0x3), region = 61 }

// kernel: _device_forward.10
= control target key start
LH: loop header
LB: loop body
LE: loop exit
PB: predicated region body
PF: predicated region fallthrough
CT: control target
= control target key end

     0   :  { %v646_v0 = vmov 0   ;;  %vm318_vm0 = vcmask 64512   ;;  %vm558_vm1 = vcmask 261120   ;;  %vm595_vm2 = vcmask 259072   ;;  %s1165_s2 = inlined_call_operand.vmem [shape: f32[8,32], index: 2, kind: input, shape index: {}]   ;;  %s1166_s1 = inlined_call_operand.vmem [shape: f32[294,1], index: 1, kind: input, shape index: {}]   ;;  %s1167_s0 = inlined_call_operand.vmem [shape: f32[294,8], index: 0, kind: input, shape index: {}]   ;;  %s1168_s3 = inlined_call_operand.vmem [shape: f32[1,32], index: 3, kind: input, shape index: {}]   ;;  %s1169_s4 = inlined_call_operand.vmem [shape: f32[294,32], index: 4, kind: output, shape index: {}]  }
   0x1   :  { %644 = vset.pattern.permute.xlu2 %v646_v0  ;;  %643 = vset.pattern.permute.xlu1 %v646_v0  ;;  %v54_v1 = vld [vmem:[%s1165_s2] sm:$0xff]  ;;  %v57_v3 = vld [vmem:[%s1166_s1 + $0x10] sm:$0xff]  ;;  %v60_v9 = vld [vmem:[%s1166_s1 + $0x28] sm:$0xff] }
   0x2   :  { %v59_v2 = vld [vmem:[%s1166_s1 + $0x20] sm:$0xff]  ;;  %642 = vset.pattern.permute.xlu0 %v646_v0  ;;  %445 = vmatpush.msra.mxu0 %v54_v1  ;;  %v27_v6 = vld [vmem:[%s1167_s0 + $0x50] sm:$0xff]  ;;  %v58_v10 = vld [vmem:[%s1166_s1 + $0x18] sm:$0xff] }
   0x3   :  { %v55_v4 = vld [vmem:[%s1166_s1] sm:$0xff]  ;;  %638 = vmatpush.msra.mxu1 %v54_v1  ;;  %639 = vmatpush.msra.mxu2 %v54_v1  ;;  %v47_v8 = vld [vmem:[%s1167_s0 + $0xf0] sm:$0xff]  ;;  %v56_v11 = vld [vmem:[%s1166_s1 + $0x8] sm:$0xff] }
   0x4   :  { %v17_v5 = vld [vmem:[%s1167_s0] sm:$0xff]  ;;  %115 = vperm.xlu2 %644, %v59_v2   ;;  %105 = vperm.xlu1 %643, %v57_v3   ;;  %v18_v12 = vld [vmem:[%s1167_s0 + $0x8] sm:$0xff]  ;;  %v28_v13 = vld [vmem:[%s1167_s0 + $0x58] sm:$0xff] }
   0x5   :  { %v37_v7 = vld [vmem:[%s1167_s0 + $0xa0] sm:$0xff]  ;;  %95 = vperm.xlu0 %642, %v55_v4   ;;  %601 = vmatmul.msk.f32.vlgmr.msra.gmra.mxu0 %vm318_vm0, %v17_v5  ;;  %v38_v14 = vld [vmem:[%s1167_s0 + $0xa8] sm:$0xff]  ;;  %v48_v15 = vld [vmem:[%s1167_s0 + $0xf8] sm:$0xff] }
   0x6   :  { %611 = vmatmul.msk.f32.vlgmr.msra.gmra.mxu1 %vm318_vm0, %v27_v6  ;;  %621 = vmatmul.msk.f32.vlgmr.msra.gmra.mxu2 %vm318_vm0, %v37_v7  ;;  %v63_v16 = vld [vmem:[%s1166_s1 + $0x40] sm:$0xff]  ;;  %v62_v17 = vld [vmem:[%s1166_s1 + $0x38] sm:$0xff]  ;;  %v61_v18 = vld [vmem:[%s1166_s1 + $0x30] sm:$0xff] }
   0x7   :  { %640 = vmatpush.msra.mxu3 %v54_v1  ;;  %v19_v19 = vld [vmem:[%s1167_s0 + $0x10] sm:$0xff]  ;;  %v29_v20 = vld [vmem:[%s1167_s0 + $0x60] sm:$0xff]  ;;  %v66_v23 = vld [vmem:[%s1166_s1 + $0x58] sm:$0xff] }
   0x8   :  { %631 = vmatmul.msk.f32.vlgmr.msra.gmra.mxu3 %vm318_vm0, %v47_v8  ;;  %v39_v21 = vld [vmem:[%s1167_s0 + $0xb0] sm:$0xff]  ;;  %v49_v22 = vld [vmem:[%s1167_s0 + $0x100] sm:$0xff]  ;;  %v64_v25 = vld [vmem:[%s1166_s1 + $0x48] sm:$0xff] }
   0x9   :  { %v65_v24 = vld [vmem:[%s1166_s1 + $0x50] sm:$0xff]  ;;  %v20_v26 = vld [vmem:[%s1167_s0 + $0x18] sm:$0xff]  ;;  %v30_v27 = vld [vmem:[%s1167_s0 + $0x68] sm:$0xff] }
   0xa   :  { %v40_v28 = vld [vmem:[%s1167_s0 + $0xb8] sm:$0xff]  ;;  %v50_v29 = vld [vmem:[%s1167_s0 + $0x108] sm:$0xff]  ;;  %v69_v30 = vld [vmem:[%s1166_s1 + $0x70] sm:$0xff] }
   0xb   :  { %v68_v31 = vld [vmem:[%s1166_s1 + $0x68] sm:$0xff]  ;;  %v67_v32 = vld [vmem:[%s1166_s1 + $0x60] sm:$0xff]  ;;  %v31_v34 = vld [vmem:[%s1167_s0 + $0x70] sm:$0xff] }
   0xc   :  { %120 = vperm.xlu2 %644, %v60_v9   ;;  %110 = vperm.xlu1 %643, %v58_v10   ;;  %v21_v33 = vld [vmem:[%s1167_s0 + $0x20] sm:$0xff]  ;;  %v51_v36 = vld [vmem:[%s1167_s0 + $0x110] sm:$0xff]  ;;  %v72_v37 = vld [vmem:[%s1166_s1 + $0x88] sm:$0xff] }
   0xd   :  { %100 = vperm.xlu0 %642, %v56_v11   ;;  %602 = vmatmul.msk.f32.gmra.mxu0 %vm318_vm0, %v18_v12  ;;  %v41_v35 = vld [vmem:[%s1167_s0 + $0xc0] sm:$0xff]  ;;  %v70_v39 = vld [vmem:[%s1166_s1 + $0x78] sm:$0xff]  ;;  %v22_v40 = vld [vmem:[%s1167_s0 + $0x28] sm:$0xff] }
   0xe   :  { %612 = vmatmul.msk.f32.gmra.mxu1 %vm318_vm0, %v28_v13  ;;  %622 = vmatmul.msk.f32.gmra.mxu2 %vm318_vm0, %v38_v14  ;;  %v71_v38 = vld [vmem:[%s1166_s1 + $0x80] sm:$0xff]  ;;  %v32_v41 = vld [vmem:[%s1167_s0 + $0x78] sm:$0xff]  ;;  %v42_v42 = vld [vmem:[%s1167_s0 + $0xc8] sm:$0xff] }
   0xf   :  { %v52_v43 = vld [vmem:[%s1167_s0 + $0x118] sm:$0xff]  ;;  %v75_v44 = vld [vmem:[%s1166_s1 + $0xa0] sm:$0xff]  ;;  %v73_v46 = vld [vmem:[%s1166_s1 + $0x90] sm:$0xff] }
  0x10   :  { %632 = vmatmul.msk.f32.gmra.mxu3 %vm318_vm0, %v48_v15  ;;  %v74_v45 = vld [vmem:[%s1166_s1 + $0x98] sm:$0xff]  ;;  %v23_v47 = vld [vmem:[%s1167_s0 + $0x30] sm:$0xff]  ;;  %v33_v48 = vld [vmem:[%s1167_s0 + $0x80] sm:$0xff] }
  0x11   :  { %v43_v49 = vld [vmem:[%s1167_s0 + $0xd0] sm:$0xff]  ;;  %v53_v50 = vld [vmem:[%s1167_s0 + $0x120] sm:$0x3f]  ;;  %v78_v51 = vld [vmem:[%s1166_s1 + $0xb8] sm:$0xff] }
  0x12   :  { %v77_v52 = vld [vmem:[%s1166_s1 + $0xb0] sm:$0xff]  ;;  %v76_v53 = vld [vmem:[%s1166_s1 + $0xa8] sm:$0xff]  ;;  %v24_v54 = vld [vmem:[%s1167_s0 + $0x38] sm:$0xff] }
  0x13   :  { %v34_v55 = vld [vmem:[%s1167_s0 + $0x88] sm:$0xff]  ;;  %v44_v56 = vld [vmem:[%s1167_s0 + $0xd8] sm:$0xff]  ;;  %v81_v57 = vld [vmem:[%s1166_s1 + $0xd0] sm:$0xff] }
  0x14   :  { %135 = vperm.xlu2 %644, %v63_v16   ;;  %130 = vperm.xlu1 %643, %v62_v17   ;;  %v80_v58 = vld [vmem:[%s1166_s1 + $0xc8] sm:$0xff]  ;;  %v79_v59 = vld [vmem:[%s1166_s1 + $0xc0] sm:$0xff]  ;;  %v35_v61 = vld [vmem:[%s1167_s0 + $0x90] sm:$0xff] }
  0x15   :  { %125 = vperm.xlu0 %642, %v61_v18   ;;  %603 = vmatmul.msk.f32.gmra.mxu0 %vm318_vm0, %v19_v19  ;;  %v25_v60 = vld [vmem:[%s1167_s0 + $0x40] sm:$0xff]  ;;  %v84_v63 = vld [vmem:[%s1166_s1 + $0xe8] sm:$0xff]  ;;  %v82_v1 = vld [vmem:[%s1166_s1 + $0xd8] sm:$0xff] }
  0x16   :  { %613 = vmatmul.msk.f32.gmra.mxu1 %vm318_vm0, %v29_v20  ;;  %623 = vmatmul.msk.f32.gmra.mxu2 %vm318_vm0, %v39_v21  ;;  %v45_v62 = vld [vmem:[%s1167_s0 + $0xe0] sm:$0xff]  ;;  %v26_v2 = vld [vmem:[%s1167_s0 + $0x48] sm:$0xff]  ;;  %v36_v3 = vld [vmem:[%s1167_s0 + $0x98] sm:$0xff] }
  0x17   :  { %v83_v0 = vld [vmem:[%s1166_s1 + $0xe0] sm:$0xff]  ;;  %v46_v4 = vld [vmem:[%s1167_s0 + $0xe8] sm:$0xff]  ;;  %v86_v6 = vld [vmem:[%s1166_s1 + $0xf8] sm:$0xff] }
  0x18   :  { %633 = vmatmul.msk.f32.gmra.mxu3 %vm318_vm0, %v49_v22  ;;  %v87_v5 = vld [vmem:[%s1166_s1 + $0x100] sm:$0xff]  ;;  %v85_v7 = vld [vmem:[%s1166_s1 + $0xf0] sm:$0xff]  ;;  %v90_v8 = vld [vmem:[%s1166_s1 + $0x118] sm:$0xff] }
  0x19   :  { %v89_v9 = vld [vmem:[%s1166_s1 + $0x110] sm:$0xff]  ;;  %v88_v10 = vld [vmem:[%s1166_s1 + $0x108] sm:$0xff]  ;;  %v91_v12 = vld [vmem:[%s1166_s1 + $0x120] sm:$0x3f] }
  0x1a   :  { %v943_v18 = vld [vmem:[%s1168_s3] ss:$0 sm:$0xff] }
  0x1c   :  { %150 = vperm.xlu2 %644, %v66_v23   ;;  %145 = vperm.xlu1 %643, %v65_v24  }
  0x1d   :  { %140 = vperm.xlu0 %642, %v64_v25   ;;  %604 = vmatmul.msk.f32.gmra.mxu0 %vm318_vm0, %v20_v26 }
  0x1e   :  { %614 = vmatmul.msk.f32.gmra.mxu1 %vm318_vm0, %v30_v27  ;;  %624 = vmatmul.msk.f32.gmra.mxu2 %vm318_vm0, %v40_v28 }
  0x20   :  { %634 = vmatmul.msk.f32.gmra.mxu3 %vm318_vm0, %v50_v29 }
  0x24   :  { %165 = vperm.xlu2 %644, %v69_v30   ;;  %160 = vperm.xlu1 %643, %v68_v31  }
  0x25   :  { %155 = vperm.xlu0 %642, %v67_v32   ;;  %605 = vmatmul.msk.f32.gmra.mxu0 %vm318_vm0, %v21_v33 }
  0x26   :  { %615 = vmatmul.msk.f32.gmra.mxu1 %vm318_vm0, %v31_v34  ;;  %625 = vmatmul.msk.f32.gmra.mxu2 %vm318_vm0, %v41_v35 }
  0x28   :  { %635 = vmatmul.msk.f32.gmra.mxu3 %vm318_vm0, %v51_v36 }
  0x2c   :  { %180 = vperm.xlu2 %644, %v72_v37   ;;  %175 = vperm.xlu1 %643, %v71_v38  }
  0x2d   :  { %170 = vperm.xlu0 %642, %v70_v39   ;;  %606 = vmatmul.msk.f32.gmra.mxu0 %vm318_vm0, %v22_v40 }
  0x2e   :  { %616 = vmatmul.msk.f32.gmra.mxu1 %vm318_vm0, %v32_v41  ;;  %626 = vmatmul.msk.f32.gmra.mxu2 %vm318_vm0, %v42_v42 }
  0x30   :  { %636 = vmatmul.msk.f32.gmra.mxu3 %vm318_vm0, %v52_v43 }
  0x34   :  { %195 = vperm.xlu2 %644, %v75_v44   ;;  %190 = vperm.xlu1 %643, %v74_v45  }
  0x35   :  { %185 = vperm.xlu0 %642, %v73_v46   ;;  %607 = vmatmul.msk.f32.gmra.mxu0 %vm318_vm0, %v23_v47 }
  0x36   :  { %617 = vmatmul.msk.f32.gmra.mxu1 %vm318_vm0, %v33_v48  ;;  %627 = vmatmul.msk.f32.gmra.mxu2 %vm318_vm0, %v43_v49 }
  0x38   :  { %637 = vmatmul.msk.f32.gmra.mxu3 %vm318_vm0, %v53_v50 }
  0x3c   :  { %210 = vperm.xlu2 %644, %v78_v51   ;;  %205 = vperm.xlu1 %643, %v77_v52  }
  0x3d   :  { %200 = vperm.xlu0 %642, %v76_v53   ;;  %608 = vmatmul.msk.f32.gmra.mxu0 %vm318_vm0, %v24_v54 }
  0x3e   :  { %618 = vmatmul.msk.f32.gmra.mxu1 %vm318_vm0, %v34_v55  ;;  %628 = vmatmul.msk.f32.gmra.mxu2 %vm318_vm0, %v44_v56 }
  0x44   :  { %225 = vperm.xlu2 %644, %v81_v57   ;;  %220 = vperm.xlu1 %643, %v80_v58  }
  0x45   :  { %215 = vperm.xlu0 %642, %v79_v59   ;;  %609 = vmatmul.msk.f32.gmra.mxu0 %vm318_vm0, %v25_v60 }
  0x46   :  { %619 = vmatmul.msk.f32.gmra.mxu1 %vm318_vm0, %v35_v61  ;;  %629 = vmatmul.msk.f32.gmra.mxu2 %vm318_vm0, %v45_v62 }
  0x4c   :  { %240 = vperm.xlu2 %644, %v84_v63   ;;  %235 = vperm.xlu1 %643, %v83_v0  }
  0x4d   :  { %230 = vperm.xlu0 %642, %v82_v1   ;;  %610 = vmatmul.msk.f32.gmra.mxu0 %vm318_vm0, %v26_v2 }
  0x4e   :  { %620 = vmatmul.msk.f32.gmra.mxu1 %vm318_vm0, %v36_v3  ;;  %630 = vmatmul.msk.f32.gmra.mxu2 %vm318_vm0, %v46_v4 }
  0x54   :  { %255 = vperm.xlu2 %644, %v87_v5   ;;  %250 = vperm.xlu1 %643, %v86_v6  }
  0x55   :  { %245 = vperm.xlu0 %642, %v85_v7  }
  0x5c   :  { %270 = vperm.xlu2 %644, %v90_v8   ;;  %265 = vperm.xlu1 %643, %v89_v9  }
  0x5d   :  { %260 = vperm.xlu0 %642, %v88_v10  }
  0x5e   :  { %v931_v11 = vpop.permute.xlu2 %115 }
  0x5f   :  { %v285_v3 = vmul.f32 %v943_v18, %v931_v11 }
  0x65   :  { %275 = vperm.xlu0 %642, %v91_v12  }
  0x66   :  { %v936_v13 = vpop.permute.xlu2 %120 }
  0x6e   :  { %v938_v14 = vpop.permute.xlu2 %135 }
  0x76   :  { %v151_v15 = vpop.permute.xlu2 %150  ;;  %v106_v16 = vpop.permute.xlu1 %105 }
  0x77   :  { %v96_v17 = vpop.permute.xlu0 %95  ;;  %v292_v31 = vmul.f32 %v943_v18, %v151_v15  ;;  %v283_v42 = vmul.f32 %v943_v18, %v106_v16 }
  0x78   :  { %v281_v22 = vmul.f32 %v943_v18, %v96_v17  ;;  %v286_v17 = vmul.f32 %v943_v18, %v936_v13 }
  0x7e   :  { %v166_v19 = vpop.permute.xlu2 %165  ;;  %v111_v20 = vpop.permute.xlu1 %110 }
  0x7f   :  { %v101_v21 = vpop.permute.xlu0 %100  ;;  %v284_v54 = vmul.f32 %v943_v18, %v111_v20  ;;  %v295_v5 = vmul.f32 %v943_v18, %v166_v19 }
  0x80   :  { %v282_v29 = vmul.f32 %v943_v18, %v101_v21 }
  0x82   :  { %v447_v23 = vpop.f32.mrf.mxu0 }
  0x83   :  { %v448_v24 = vadd.f32 %v447_v23, %v281_v22  ;;  %v477_v25 = vpop.f32.mrf.mxu1 }
  0x85   :  { %559 = vst.msk [vmem:[%s1169_s4] sm:$0xff] %vm558_vm1, %v448_v24 }
  0x86   :  { %v950_v26 = vpop.permute.xlu2 %180  ;;  %v952_v27 = vpop.permute.xlu1 %130 }
  0x87   :  { %v954_v28 = vpop.permute.xlu0 %125 }
  0x89   :  { %v507_v30 = vpop.f32.mrf.mxu2 }
  0x8a   :  { %v450_v32 = vpop.f32.mrf.mxu0 }
  0x8b   :  { %v451_v33 = vadd.f32 %v450_v32, %v282_v29  ;;  %v480_v34 = vpop.f32.mrf.mxu1  ;;  %v958_v35 = vpop.f32.mrf.mxu3 }
  0x8c   :  { %v481_v36 = vadd.f32 %v480_v34, %v292_v31  ;;  %v287_v34 = vmul.f32 %v943_v18, %v954_v28 }
  0x8d   :  { %560 = vst.msk [vmem:[%s1169_s4 + $0x8] sm:$0xff] %vm558_vm1, %v451_v33 }
  0x8e   :  { %570 = vst.msk [vmem:[%s1169_s4 + $0x58] sm:$0xff] %vm558_vm1, %v481_v36  ;;  %v196_v37 = vpop.permute.xlu2 %195  ;;  %v146_v38 = vpop.permute.xlu1 %145 }
  0x8f   :  { %v301_v39 = vmul.f32 %v943_v18, %v196_v37  ;;  %v291_v40 = vmul.f32 %v943_v18, %v146_v38  ;;  %v970_v41 = vpop.permute.xlu0 %140 }
  0x91   :  { %v508_v43 = vadd.f32 %v507_v30, %v301_v39  ;;  %v478_v44 = vadd.f32 %v477_v25, %v291_v40  ;;  %v973_v45 = vpop.f32.mrf.mxu2 }
  0x92   :  { %v453_v46 = vpop.f32.mrf.mxu0 }
  0x93   :  { %579 = vst.msk [vmem:[%s1169_s4 + $0xa0] sm:$0xff] %vm558_vm1, %v508_v43  ;;  %v454_v47 = vadd.f32 %v453_v46, %v283_v42  ;;  %v483_v48 = vpop.f32.mrf.mxu1  ;;  %v979_v49 = vpop.f32.mrf.mxu3 }
  0x94   :  { %569 = vst.msk [vmem:[%s1169_s4 + $0x50] sm:$0xff] %vm558_vm1, %v478_v44 }
  0x95   :  { %561 = vst.msk [vmem:[%s1169_s4 + $0x10] sm:$0xff] %vm558_vm1, %v454_v47 }
  0x96   :  { %v211_v50 = vpop.permute.xlu2 %210  ;;  %v161_v51 = vpop.permute.xlu1 %160 }
  0x97   :  { %v156_v52 = vpop.permute.xlu0 %155  ;;  %v294_v56 = vmul.f32 %v943_v18, %v161_v51  ;;  %v304_v2 = vmul.f32 %v943_v18, %v211_v50 }
  0x98   :  { %v293_v53 = vmul.f32 %v943_v18, %v156_v52 }
  0x99   :  { %v513_v55 = vpop.f32.mrf.mxu2 }
  0x9a   :  { %v484_v57 = vadd.f32 %v483_v48, %v293_v53  ;;  %v456_v58 = vpop.f32.mrf.mxu0 }
  0x9b   :  { %v457_v59 = vadd.f32 %v456_v58, %v284_v54  ;;  %v486_v60 = vpop.f32.mrf.mxu1  ;;  %v543_v61 = vpop.f32.mrf.mxu3  ;;  %v288_v54 = vmul.f32 %v943_v18, %v952_v27 }
  0x9c   :  { %571 = vst.msk [vmem:[%s1169_s4 + $0x60] sm:$0xff] %vm558_vm1, %v484_v57  ;;  %v487_v62 = vadd.f32 %v486_v60, %v294_v56  ;;  %v298_v57 = vmul.f32 %v943_v18, %v950_v26 }
  0x9d   :  { %562 = vst.msk [vmem:[%s1169_s4 + $0x18] sm:$0xff] %vm558_vm1, %v457_v59 }
  0x9e   :  { %572 = vst.msk [vmem:[%s1169_s4 + $0x68] sm:$0xff] %vm558_vm1, %v487_v62  ;;  %v226_v63 = vpop.permute.xlu2 %225  ;;  %v176_v0 = vpop.permute.xlu1 %175 }
  0x9f   :  { %v171_v1 = vpop.permute.xlu0 %170  ;;  %v297_v39 = vmul.f32 %v943_v18, %v176_v0  ;;  %v307_v52 = vmul.f32 %v943_v18, %v226_v63 }
  0xa0   :  { %v296_v20 = vmul.f32 %v943_v18, %v171_v1 }
  0xa1   :  { %v516_v4 = vpop.f32.mrf.mxu2 }
  0xa2   :  { %v517_v6 = vadd.f32 %v516_v4, %v304_v2  ;;  %v459_v7 = vpop.f32.mrf.mxu0  ;;  %v289_v2 = vmul.f32 %v943_v18, %v938_v14 }
  0xa3   :  { %v460_v8 = vadd.f32 %v459_v7, %v285_v3  ;;  %v489_v9 = vpop.f32.mrf.mxu1  ;;  %v1008_v10 = vpop.f32.mrf.mxu3 }
  0xa4   :  { %582 = vst.msk [vmem:[%s1169_s4 + $0xb8] sm:$0xff] %vm558_vm1, %v517_v6  ;;  %v490_v12 = vadd.f32 %v489_v9, %v295_v5 }
  0xa5   :  { %563 = vst.msk [vmem:[%s1169_s4 + $0x20] sm:$0xff] %vm558_vm1, %v460_v8 }
  0xa6   :  { %573 = vst.msk [vmem:[%s1169_s4 + $0x70] sm:$0xff] %vm558_vm1, %v490_v12  ;;  %v1022_v11 = vpop.permute.xlu2 %240  ;;  %v1024_v15 = vpop.permute.xlu1 %190 }
  0xa7   :  { %v186_v16 = vpop.permute.xlu0 %185 }
  0xa8   :  { %v299_v4 = vmul.f32 %v943_v18, %v186_v16 }
  0xa9   :  { %v519_v19 = vpop.f32.mrf.mxu2 }
  0xaa   :  { %v462_v21 = vpop.f32.mrf.mxu0 }
  0xab   :  { %v463_v22 = vadd.f32 %v462_v21, %v286_v17  ;;  %v492_v23 = vpop.f32.mrf.mxu1  ;;  %v1033_v25 = vpop.f32.mrf.mxu3 }
  0xac   :  { %v493_v24 = vadd.f32 %v492_v23, %v296_v20  ;;  %v290_v20 = vmul.f32 %v943_v18, %v970_v41  ;;  %v300_v23 = vmul.f32 %v943_v18, %v1024_v15 }
  0xad   :  { %564 = vst.msk [vmem:[%s1169_s4 + $0x28] sm:$0xff] %vm558_vm1, %v463_v22 }
  0xae   :  { %574 = vst.msk [vmem:[%s1169_s4 + $0x78] sm:$0xff] %vm558_vm1, %v493_v24  ;;  %v256_v13 = vpop.permute.xlu2 %255  ;;  %v206_v29 = vpop.permute.xlu1 %205 }
  0xaf   :  { %v313_v30 = vmul.f32 %v943_v18, %v256_v13  ;;  %v303_v31 = vmul.f32 %v943_v18, %v206_v29  ;;  %v201_v32 = vpop.permute.xlu0 %200 }
  0xb0   :  { %v302_v33 = vmul.f32 %v943_v18, %v201_v32  ;;  %v310_v32 = vmul.f32 %v943_v18, %v1022_v11 }
  0xb1   :  { %v544_v36 = vadd.f32 %v543_v61, %v313_v30  ;;  %v514_v37 = vadd.f32 %v513_v55, %v303_v31  ;;  %v522_v38 = vpop.f32.mrf.mxu2 }
  0xb2   :  { %v511_v40 = vadd.f32 %v973_v45, %v302_v33  ;;  %v465_v42 = vpop.f32.mrf.mxu0 }
  0xb3   :  { %591 = vst.msk [vmem:[%s1169_s4 + $0x100] sm:$0xff] %vm558_vm1, %v544_v36  ;;  %v466_v43 = vadd.f32 %v465_v42, %v287_v34  ;;  %v495_v44 = vpop.f32.mrf.mxu1  ;;  %v552_v51 = vpop.f32.mrf.mxu3 }
  0xb4   :  { %581 = vst.msk [vmem:[%s1169_s4 + $0xb0] sm:$0xff] %vm558_vm1, %v514_v37  ;;  %v496_v28 = vadd.f32 %v495_v44, %v297_v39 }
  0xb5   :  { %580 = vst.msk [vmem:[%s1169_s4 + $0xa8] sm:$0xff] %vm558_vm1, %v511_v40 }
  0xb6   :  { %565 = vst.msk [vmem:[%s1169_s4 + $0x30] sm:$0xff] %vm558_vm1, %v466_v43  ;;  %v271_v45 = vpop.permute.xlu2 %270  ;;  %v221_v46 = vpop.permute.xlu1 %220 }
  0xb7   :  { %575 = vst.msk [vmem:[%s1169_s4 + $0x80] sm:$0xff] %vm558_vm1, %v496_v28  ;;  %v316_v47 = vmul.f32 %v943_v18, %v271_v45  ;;  %v306_v48 = vmul.f32 %v943_v18, %v221_v46  ;;  %v216_v50 = vpop.permute.xlu0 %215 }
  0xb8   :  { %v305_v53 = vmul.f32 %v943_v18, %v216_v50 }
  0xb9   :  { %v523_v55 = vadd.f32 %v522_v38, %v306_v48  ;;  %v525_v56 = vpop.f32.mrf.mxu2  ;;  %v553_v60 = vadd.f32 %v552_v51, %v316_v47 }
  0xba   :  { %v520_v58 = vadd.f32 %v519_v19, %v305_v53  ;;  %v526_v59 = vadd.f32 %v525_v56, %v307_v52  ;;  %v468_v61 = vpop.f32.mrf.mxu0 }
  0xbb   :  { %584 = vst.msk [vmem:[%s1169_s4 + $0xc8] sm:$0xff] %vm558_vm1, %v523_v55  ;;  %v469_v62 = vadd.f32 %v468_v61, %v288_v54  ;;  %v498_v63 = vpop.f32.mrf.mxu1 }
  0xbc   :  { %583 = vst.msk [vmem:[%s1169_s4 + $0xc0] sm:$0xff] %vm558_vm1, %v520_v58  ;;  %v499_v27 = vadd.f32 %v498_v63, %v298_v57 }
  0xbd   :  { %585 = vst.msk [vmem:[%s1169_s4 + $0xd0] sm:$0xff] %vm558_vm1, %v526_v59 }
  0xbe   :  { %594 = vst.msk [vmem:[%s1169_s4 + $0x118] sm:$0xff] %vm558_vm1, %v553_v60  ;;  %v236_v26 = vpop.permute.xlu1 %235 }
  0xbf   :  { %566 = vst.msk [vmem:[%s1169_s4 + $0x38] sm:$0xff] %vm558_vm1, %v469_v62  ;;  %v231_v0 = vpop.permute.xlu0 %230  ;;  %v309_v17 = vmul.f32 %v943_v18, %v236_v26 }
  0xc0   :  { %576 = vst.msk [vmem:[%s1169_s4 + $0x88] sm:$0xff] %vm558_vm1, %v499_v27  ;;  %v308_v1 = vmul.f32 %v943_v18, %v231_v0 }
  0xc1   :  { %v528_v3 = vpop.f32.mrf.mxu2 }
  0xc2   :  { %v529_v5 = vadd.f32 %v528_v3, %v308_v1  ;;  %v471_v6 = vpop.f32.mrf.mxu0 }
  0xc3   :  { %v472_v7 = vadd.f32 %v471_v6, %v289_v2  ;;  %v501_v8 = vpop.f32.mrf.mxu1 }
  0xc4   :  { %586 = vst.msk [vmem:[%s1169_s4 + $0xd8] sm:$0xff] %vm558_vm1, %v529_v5  ;;  %v502_v9 = vadd.f32 %v501_v8, %v299_v4 }
  0xc5   :  { %567 = vst.msk [vmem:[%s1169_s4 + $0x40] sm:$0xff] %vm558_vm1, %v472_v7 }
  0xc6   :  { %577 = vst.msk [vmem:[%s1169_s4 + $0x90] sm:$0xff] %vm558_vm1, %v502_v9  ;;  %v251_v14 = vpop.permute.xlu1 %250 }
  0xc7   :  { %v312_v12 = vmul.f32 %v943_v18, %v251_v14  ;;  %v246_v16 = vpop.permute.xlu0 %245 }
  0xc8   :  { %v311_v19 = vmul.f32 %v943_v18, %v246_v16 }
  0xc9   :  { %v541_v21 = vadd.f32 %v979_v49, %v312_v12  ;;  %v531_v22 = vpop.f32.mrf.mxu2 }
  0xca   :  { %v538_v24 = vadd.f32 %v958_v35, %v311_v19  ;;  %v532_v13 = vadd.f32 %v531_v22, %v309_v17  ;;  %v474_v29 = vpop.f32.mrf.mxu0 }
  0xcb   :  { %590 = vst.msk [vmem:[%s1169_s4 + $0xf8] sm:$0xff] %vm558_vm1, %v541_v21  ;;  %v475_v30 = vadd.f32 %v474_v29, %v290_v20  ;;  %v504_v31 = vpop.f32.mrf.mxu1 }
  0xcc   :  { %589 = vst.msk [vmem:[%s1169_s4 + $0xf0] sm:$0xff] %vm558_vm1, %v538_v24  ;;  %v505_v41 = vadd.f32 %v504_v31, %v300_v23 }
  0xcd   :  { %587 = vst.msk [vmem:[%s1169_s4 + $0xe0] sm:$0xff] %vm558_vm1, %v532_v13 }
  0xce   :  { %568 = vst.msk [vmem:[%s1169_s4 + $0x48] sm:$0xff] %vm558_vm1, %v475_v30  ;;  %v266_v35 = vpop.permute.xlu1 %265 }
  0xcf   :  { %578 = vst.msk [vmem:[%s1169_s4 + $0x98] sm:$0xff] %vm558_vm1, %v505_v41  ;;  %v315_v49 = vmul.f32 %v943_v18, %v266_v35  ;;  %v261_v15 = vpop.permute.xlu0 %260 }
  0xd0   :  { %v314_v33 = vmul.f32 %v943_v18, %v261_v15 }
  0xd1   :  { %v550_v34 = vadd.f32 %v1033_v25, %v315_v49  ;;  %v534_v36 = vpop.f32.mrf.mxu2  ;;  %v555_v25 = vpop.f32.mrf.mxu3 }
  0xd2   :  { %v547_v37 = vadd.f32 %v1008_v10, %v314_v33  ;;  %v535_v38 = vadd.f32 %v534_v36, %v310_v32 }
  0xd3   :  { %593 = vst.msk [vmem:[%s1169_s4 + $0x110] sm:$0xff] %vm558_vm1, %v550_v34 }
  0xd4   :  { %592 = vst.msk [vmem:[%s1169_s4 + $0x108] sm:$0xff] %vm558_vm1, %v547_v37 }
  0xd5   :  { %588 = vst.msk [vmem:[%s1169_s4 + $0xe8] sm:$0xff] %vm558_vm1, %v535_v38 }
  0xd7   :  { %v276_v11 = vpop.permute.xlu0 %275 }
  0xd8   :  { %v317_v10 = vmul.f32 %v943_v18, %v276_v11 }
  0xda   :  { %v556_v39 = vadd.f32 %v555_v25, %v317_v10 }
  0xdc   :  { %596 = vst.msk [vmem:[%s1169_s4 + $0x120] sm:$0x3f] %vm595_vm2, %v556_v39 }

// kernel: mul.17
= control target key start
LH: loop header
LB: loop body
LE: loop exit
PB: predicated region body
PF: predicated region fallthrough
CT: control target
= control target key end

     0   :  { %vm29_vm0 = vcmask 580608   ;;  %s54_s15 = smov 57   ;;  %vm20_vm1 = vcmask 465920   ;;  %vm36_vm2 = vcmask 933320   ;;  %vm43_vm3 = vcmask 1048008   ;;  %s92_s0 = inlined_call_operand.vmem [shape: f32[2,441], index: 0, kind: input, shape index: {}]   ;;  %s93_s1 = inlined_call_operand.vmem [shape: f32[882], index: 1, kind: output, shape index: {}]  }
   0x1   :  { %v46_v0 = vld [vmem:[%s92_s0 + $0x6] sm:$0x3]  ;;  %v47_v1 = vld [vmem:[%s92_s0 + $0x4] sm:$0x3]  ;;  %v48_v2 = vld [vmem:[%s92_s0 + $0x2] sm:$0x3] }
   0x2   :  { %7 = vst [vmem:[#allocation0 + $0x18] sm:$0x3] %v46_v0  ;;  %v16_v3 = vld [vmem:[%s92_s0] sm:$0x3] }
   0x3   :  { %11 = vst [vmem:[#allocation0 + $0x10] sm:$0x3] %v47_v1 }
   0x4   :  { %15 = vst [vmem:[#allocation0 + $0x8] sm:$0x3] %v48_v2 }
   0x5   :  { %17 = vst [vmem:[#allocation0] sm:$0x3] %v16_v3 }
   0x9   :  { %v28_v4 = vld [vmem:[#allocation0 + $0x19] sm:$0x1]   ;;  %v19_v9 = vld [vmem:[#allocation0 + $0x18] sm:$0x1]  }
   0xa   :  { %49 = vst.msk [vmem:[%s93_s1 + $0x3] sm:$0x1] %vm20_vm1, %v19_v9  }
   0xc   :  { %v26_v5 = vld [vmem:[#allocation0 + $0x1] ss:$8 sm:$0x7]   ;;  %v23_v6 = vld [vmem:[#allocation0] ss:$8 sm:$0x7]  }
   0xd   :  { %v30_v7 = vsel %vm29_vm0, %v28_v4, %v26_v5  ;;  %24 = vst [vmem:[%s93_s1] sm:$0x7] %v23_v6   ;;  %v40_v8 = vld [vmem:[#allocation0 + $0x1] ss:$8 sm:$0x7]  }
   0xe   :  { %31 = vrot.lane.b32.xlu0 %v30_v7, %s54_s15 }
  0x16   :  { %41 = vrot.lane.b32.xlu0 %v40_v8, %s54_s15 }
  0x80   :  { %v32_v10 = vpop.permute.xlu0 %31  }
  0x81   :  { %50 = vst.msk [vmem:[%s93_s1 + $0x4] sm:$0x7] %vm20_vm1, %v32_v10  }
  0x82   :  { %51 = vst.msk [vmem:[%s93_s1 + $0x6] sm:$0x1] %vm36_vm2, %v32_v10  }
  0x88   :  { %v42_v11 = vpop.permute.xlu0 %41  }
  0x89   :  { %52 = vst.msk [vmem:[%s93_s1 + $0x3] sm:$0x7] %vm43_vm3, %v42_v11  }

// kernel: _device_forward.9
= control target key start
LH: loop header
LB: loop body
LE: loop exit
PB: predicated region body
PF: predicated region fallthrough
CT: control target
= control target key end

     0   :  { %s1407_s15 = smov 0   ;;  %s1947_s0 = inlined_call_operand.vmem [shape: f32[1024,4], index: 0, kind: input, shape index: {}]   ;;  %s1948_s1 = inlined_call_operand.vmem [shape: f32[1024,1], index: 1, kind: input, shape index: {}]   ;;  %s1949_s2 = inlined_call_operand.vmem [shape: f32[4,6], index: 2, kind: input, shape index: {}]   ;;  %s1950_s3 = inlined_call_operand.vmem [shape: f32[1,6], index: 3, kind: input, shape index: {}]   ;;  %s1951_s4 = inlined_call_operand.vmem [shape: f32[1024,6], index: 4, kind: output, shape index: {}]  }
   0x1 LB: > { %s1279_s16 = sadd.s32 4294967295, %s1379_s15   ;;  %p1283_p0 = scmp.ge.s32.totalorder %s1379_s15, 1  ;;  %s1379_s15 = sphi %s1407_s15, %s14_s15  }
   0x2   : > { %p174_p1 = scmp.lt.s32.totalorder %s1379_s15, 3 }
   0x4   : > { %p175_p2 = pnand %p1283_p0, %p174_p1 }
   0x5   : > { %s1284_s19 = sshll.u32 (!%p175_p2), %s1279_s16, 6 }
   0x6   : > { %178 = sbr.rel (%p175_p2) target bundleno = 304 (0x130), region = 36  ;;  %p206_p3 = scmp.lt.s32.totalorder (!%p175_p2), %s1284_s19, 127 }
   0xb   : > { %v287_v0 = vld [vmem:[%s1949_s2] sm:$0xf]  ;;  %vm933_vm0 = vcmask 1043456   ;;  %v1381_v1 = vmov 0   ;;  %s1953_s19 = smov (!%p206_p3, %s1284_s19), 127  ;;  %vm740_vm1 = vcmask 31744  }
   0xc   : > { %1371 = vset.pattern.permute.xlu2 %v1381_v1  ;;  %1370 = vset.pattern.permute.xlu1 %v1381_v1  ;;  %s1418_s20 = sshll.u32 %s1953_s19, 3  ;;  %vm1146_vm2 = vcmask 48128  }
   0xd   : > { %1369 = vset.pattern.permute.xlu0 %v1381_v1  ;;  %1290 = vmatpush.msk.msra.mxu0 %vm933_vm0, %v287_v0  ;;  %s1424_s23 = scalar_lea.vmem %s1948_s1, %s1418_s20  ;;  %s1430_s26 = scalar_lea.vmem %s1947_s0, %s1418_s20 }
   0xe   : > { %1357 = vmatpush.msk.msra.mxu1 %vm933_vm0, %v287_v0  ;;  %1358 = vmatpush.msk.msra.mxu2 %vm933_vm0, %v287_v0  ;;  %v292_v2 = vld [vmem:[%s1424_s23 + $0x20] sm:$0xff]  ;;  %v290_v3 = vld [vmem:[%s1424_s23 + $0x10] sm:$0xff]  ;;  %v293_v9 = vld [vmem:[%s1424_s23 + $0x28] sm:$0xff]  ;;  %s1630_s5 = scalar_lea.vmem %s1951_s4, %s1418_s20 }
   0xf   : > { %1359 = vmatpush.msk.msra.mxu3 %vm933_vm0, %v287_v0  ;;  %v288_v4 = vld [vmem:[%s1424_s23] sm:$0xff]  ;;  %375 = vperm.xlu2 %1371, %v292_v2   ;;  %v291_v10 = vld [vmem:[%s1424_s23 + $0x18] sm:$0xff]  ;;  %v289_v11 = vld [vmem:[%s1424_s23 + $0x8] sm:$0xff] }
  0x10   : > { %365 = vperm.xlu1 %1370, %v290_v3   ;;  %v223_v5 = vld [vmem:[%s1430_s26] sm:$0xff]  ;;  %355 = vperm.xlu0 %1369, %v288_v4   ;;  %v224_v12 = vld [vmem:[%s1430_s26 + $0x8] sm:$0xff]  ;;  %v295_v17 = vld [vmem:[%s1424_s23 + $0x38] sm:$0xff] }
  0x11   : > { %v239_v6 = vld [vmem:[%s1430_s26 + $0x80] sm:$0xff]  ;;  %1291 = vmatmul.msk.f32.vlgmr.msra.gmra.mxu0 %vm740_vm1, %v223_v5  ;;  %v240_v13 = vld [vmem:[%s1430_s26 + $0x88] sm:$0xff]  ;;  %v294_v18 = vld [vmem:[%s1424_s23 + $0x30] sm:$0xff] }
  0x12   : > { %v255_v7 = vld [vmem:[%s1430_s26 + $0x100] sm:$0xff]  ;;  %1307 = vmatmul.msk.f32.vlgmr.msra.gmra.mxu1 %vm740_vm1, %v239_v6  ;;  %v256_v14 = vld [vmem:[%s1430_s26 + $0x108] sm:$0xff]  ;;  %v225_v19 = vld [vmem:[%s1430_s26 + $0x10] sm:$0xff] }
  0x13   : > { %1323 = vmatmul.msk.f32.vlgmr.msra.gmra.mxu2 %vm740_vm1, %v255_v7  ;;  %v271_v8 = vld [vmem:[%s1430_s26 + $0x180] sm:$0xff]  ;;  %v272_v15 = vld [vmem:[%s1430_s26 + $0x188] sm:$0xff]  ;;  %v241_v20 = vld [vmem:[%s1430_s26 + $0x90] sm:$0xff] }
  0x14   : > { %1339 = vmatmul.msk.f32.vlgmr.msra.gmra.mxu3 %vm740_vm1, %v271_v8  ;;  %v296_v16 = vld [vmem:[%s1424_s23 + $0x40] sm:$0xff]  ;;  %v257_v21 = vld [vmem:[%s1430_s26 + $0x110] sm:$0xff]  ;;  %v299_v23 = vld [vmem:[%s1424_s23 + $0x58] sm:$0xff] }
  0x15   : > { %v273_v22 = vld [vmem:[%s1430_s26 + $0x190] sm:$0xff]  ;;  %v297_v25 = vld [vmem:[%s1424_s23 + $0x48] sm:$0xff]  ;;  %v226_v26 = vld [vmem:[%s1430_s26 + $0x18] sm:$0xff] }
  0x16   : > { %v298_v24 = vld [vmem:[%s1424_s23 + $0x50] sm:$0xff]  ;;  %v242_v27 = vld [vmem:[%s1430_s26 + $0x98] sm:$0xff]  ;;  %v301_v31 = vld [vmem:[%s1424_s23 + $0x68] sm:$0xff] }
  0x17   : > { %380 = vperm.xlu2 %1371, %v293_v9   ;;  %v258_v28 = vld [vmem:[%s1430_s26 + $0x118] sm:$0xff]  ;;  %v302_v30 = vld [vmem:[%s1424_s23 + $0x70] sm:$0xff]  ;;  %v300_v32 = vld [vmem:[%s1424_s23 + $0x60] sm:$0xff] }
  0x18   : > { %370 = vperm.xlu1 %1370, %v291_v10   ;;  %360 = vperm.xlu0 %1369, %v289_v11   ;;  %v274_v29 = vld [vmem:[%s1430_s26 + $0x198] sm:$0xff]  ;;  %v227_v33 = vld [vmem:[%s1430_s26 + $0x20] sm:$0xff]  ;;  %v305_v37 = vld [vmem:[%s1424_s23 + $0x88] sm:$0xff] }
  0x19   : > { %1292 = vmatmul.msk.f32.gmra.mxu0 %vm740_vm1, %v224_v12  ;;  %v243_v34 = vld [vmem:[%s1430_s26 + $0xa0] sm:$0xff]  ;;  %v303_v39 = vld [vmem:[%s1424_s23 + $0x78] sm:$0xff]  ;;  %v228_v40 = vld [vmem:[%s1430_s26 + $0x28] sm:$0xff] }
  0x1a   : > { %1308 = vmatmul.msk.f32.gmra.mxu1 %vm740_vm1, %v240_v13  ;;  %v259_v35 = vld [vmem:[%s1430_s26 + $0x120] sm:$0xff]  ;;  %v244_v41 = vld [vmem:[%s1430_s26 + $0xa8] sm:$0xff]  ;;  %v307_v45 = vld [vmem:[%s1424_s23 + $0x98] sm:$0xff] }
  0x1b   : > { %1324 = vmatmul.msk.f32.gmra.mxu2 %vm740_vm1, %v256_v14  ;;  %v275_v36 = vld [vmem:[%s1430_s26 + $0x1a0] sm:$0xff]  ;;  %v260_v42 = vld [vmem:[%s1430_s26 + $0x128] sm:$0xff]  ;;  %v306_v46 = vld [vmem:[%s1424_s23 + $0x90] sm:$0xff] }
  0x1c   : > { %1340 = vmatmul.msk.f32.gmra.mxu3 %vm740_vm1, %v272_v15  ;;  %v304_v38 = vld [vmem:[%s1424_s23 + $0x80] sm:$0xff]  ;;  %v276_v43 = vld [vmem:[%s1430_s26 + $0x1a8] sm:$0xff]  ;;  %v229_v47 = vld [vmem:[%s1430_s26 + $0x30] sm:$0xff] }
  0x1d   : > { %v308_v44 = vld [vmem:[%s1424_s23 + $0xa0] sm:$0xff]  ;;  %v245_v48 = vld [vmem:[%s1430_s26 + $0xb0] sm:$0xff]  ;;  %v311_v51 = vld [vmem:[%s1424_s23 + $0xb8] sm:$0xff] }
  0x1e   : > { %v261_v49 = vld [vmem:[%s1430_s26 + $0x130] sm:$0xff]  ;;  %v309_v53 = vld [vmem:[%s1424_s23 + $0xa8] sm:$0xff]  ;;  %v230_v54 = vld [vmem:[%s1430_s26 + $0x38] sm:$0xff] }
  0x1f   : > { %395 = vperm.xlu2 %1371, %v296_v16   ;;  %v277_v50 = vld [vmem:[%s1430_s26 + $0x1b0] sm:$0xff]  ;;  %v246_v55 = vld [vmem:[%s1430_s26 + $0xb8] sm:$0xff]  ;;  %v313_v59 = vld [vmem:[%s1424_s23 + $0xc8] sm:$0xff] }
  0x20   : > { %390 = vperm.xlu1 %1370, %v295_v17   ;;  %385 = vperm.xlu0 %1369, %v294_v18   ;;  %v310_v52 = vld [vmem:[%s1424_s23 + $0xb0] sm:$0xff]  ;;  %v262_v56 = vld [vmem:[%s1430_s26 + $0x138] sm:$0xff]  ;;  %v312_v60 = vld [vmem:[%s1424_s23 + $0xc0] sm:$0xff] }
  0x21   : > { %1293 = vmatmul.msk.f32.gmra.mxu0 %vm740_vm1, %v225_v19  ;;  %v278_v57 = vld [vmem:[%s1430_s26 + $0x1b8] sm:$0xff]  ;;  %v314_v58 = vld [vmem:[%s1424_s23 + $0xd0] sm:$0xff]  ;;  %v231_v61 = vld [vmem:[%s1430_s26 + $0x40] sm:$0xff] }
  0x22   : > { %1309 = vmatmul.msk.f32.gmra.mxu1 %vm740_vm1, %v241_v20  ;;  %v247_v62 = vld [vmem:[%s1430_s26 + $0xc0] sm:$0xff]  ;;  %v317_v1 = vld [vmem:[%s1424_s23 + $0xe8] sm:$0xff]  ;;  %v315_v3 = vld [vmem:[%s1424_s23 + $0xd8] sm:$0xff] }
  0x23   : > { %1325 = vmatmul.msk.f32.gmra.mxu2 %vm740_vm1, %v257_v21  ;;  %v263_v63 = vld [vmem:[%s1430_s26 + $0x140] sm:$0xff]  ;;  %v232_v4 = vld [vmem:[%s1430_s26 + $0x48] sm:$0xff]  ;;  %v319_v9 = vld [vmem:[%s1424_s23 + $0xf8] sm:$0xff] }
  0x24   : > { %1341 = vmatmul.msk.f32.gmra.mxu3 %vm740_vm1, %v273_v22  ;;  %v279_v0 = vld [vmem:[%s1430_s26 + $0x1c0] sm:$0xff]  ;;  %v248_v5 = vld [vmem:[%s1430_s26 + $0xc8] sm:$0xff]  ;;  %v318_v10 = vld [vmem:[%s1424_s23 + $0xf0] sm:$0xff] }
  0x25   : > { %v316_v2 = vld [vmem:[%s1424_s23 + $0xe0] sm:$0xff]  ;;  %v264_v6 = vld [vmem:[%s1430_s26 + $0x148] sm:$0xff]  ;;  %v233_v11 = vld [vmem:[%s1430_s26 + $0x50] sm:$0xff] }
  0x26   : > { %v280_v7 = vld [vmem:[%s1430_s26 + $0x1c8] sm:$0xff]  ;;  %v320_v8 = vld [vmem:[%s1424_s23 + $0x100] sm:$0xff]  ;;  %v249_v12 = vld [vmem:[%s1430_s26 + $0xd0] sm:$0xff] }
  0x27   : > { %410 = vperm.xlu2 %1371, %v299_v23   ;;  %v265_v13 = vld [vmem:[%s1430_s26 + $0x150] sm:$0xff]  ;;  %v323_v15 = vld [vmem:[%s1424_s23 + $0x118] sm:$0xff]  ;;  %v321_v17 = vld [vmem:[%s1424_s23 + $0x108] sm:$0xff] }
  0x28   : > { %405 = vperm.xlu1 %1370, %v298_v24   ;;  %400 = vperm.xlu0 %1369, %v297_v25   ;;  %v281_v14 = vld [vmem:[%s1430_s26 + $0x1d0] sm:$0xff]  ;;  %v234_v18 = vld [vmem:[%s1430_s26 + $0x58] sm:$0xff]  ;;  %v325_v24 = vld [vmem:[%s1424_s23 + $0x128] sm:$0xff] }
  0x29   : > { %1294 = vmatmul.msk.f32.gmra.mxu0 %vm740_vm1, %v226_v26  ;;  %v322_v16 = vld [vmem:[%s1424_s23 + $0x110] sm:$0xff]  ;;  %v250_v19 = vld [vmem:[%s1430_s26 + $0xd8] sm:$0xff]  ;;  %v324_v25 = vld [vmem:[%s1424_s23 + $0x120] sm:$0xff] }
  0x2a   : > { %1310 = vmatmul.msk.f32.gmra.mxu1 %vm740_vm1, %v242_v27  ;;  %v266_v20 = vld [vmem:[%s1430_s26 + $0x158] sm:$0xff]  ;;  %v326_v23 = vld [vmem:[%s1424_s23 + $0x130] sm:$0xff]  ;;  %v235_v26 = vld [vmem:[%s1430_s26 + $0x60] sm:$0xff] }
  0x2b   : > { %1326 = vmatmul.msk.f32.gmra.mxu2 %vm740_vm1, %v258_v28  ;;  %v282_v21 = vld [vmem:[%s1430_s26 + $0x1d8] sm:$0xff]  ;;  %v251_v27 = vld [vmem:[%s1430_s26 + $0xe0] sm:$0xff] }
  0x2c   : > { %1342 = vmatmul.msk.f32.gmra.mxu3 %vm740_vm1, %v274_v29  ;;  %v267_v28 = vld [vmem:[%s1430_s26 + $0x160] sm:$0xff] }
  0x2d   : > { %v283_v29 = vld [vmem:[%s1430_s26 + $0x1e0] sm:$0xff] }
  0x2f   : > { %425 = vperm.xlu2 %1371, %v302_v30  }
  0x30   : > { %420 = vperm.xlu1 %1370, %v301_v31   ;;  %415 = vperm.xlu0 %1369, %v300_v32   ;;  %v329_v31 = vld [vmem:[%s1424_s23 + $0x148] sm:$0xff]  ;;  %v328_v32 = vld [vmem:[%s1424_s23 + $0x140] sm:$0xff] }
  0x31   : > { %1295 = vmatmul.msk.f32.gmra.mxu0 %vm740_vm1, %v227_v33  ;;  %v327_v33 = vld [vmem:[%s1424_s23 + $0x138] sm:$0xff] }
  0x32   : > { %1311 = vmatmul.msk.f32.gmra.mxu1 %vm740_vm1, %v243_v34  ;;  %v236_v34 = vld [vmem:[%s1430_s26 + $0x68] sm:$0xff] }
  0x33   : > { %1327 = vmatmul.msk.f32.gmra.mxu2 %vm740_vm1, %v259_v35  ;;  %v252_v35 = vld [vmem:[%s1430_s26 + $0xe8] sm:$0xff] }
  0x34   : > { %1343 = vmatmul.msk.f32.gmra.mxu3 %vm740_vm1, %v275_v36  ;;  %v268_v36 = vld [vmem:[%s1430_s26 + $0x168] sm:$0xff] }
  0x37   : > { %440 = vperm.xlu2 %1371, %v305_v37   ;;  %v284_v37 = vld [vmem:[%s1430_s26 + $0x1e8] sm:$0xff] }
  0x38   : > { %435 = vperm.xlu1 %1370, %v304_v38   ;;  %430 = vperm.xlu0 %1369, %v303_v39   ;;  %v332_v39 = vld [vmem:[%s1424_s23 + $0x160] sm:$0xff] }
  0x39   : > { %1296 = vmatmul.msk.f32.gmra.mxu0 %vm740_vm1, %v228_v40  ;;  %v331_v40 = vld [vmem:[%s1424_s23 + $0x158] sm:$0xff] }
  0x3a   : > { %1312 = vmatmul.msk.f32.gmra.mxu1 %vm740_vm1, %v244_v41  ;;  %v330_v41 = vld [vmem:[%s1424_s23 + $0x150] sm:$0xff] }
  0x3b   : > { %1328 = vmatmul.msk.f32.gmra.mxu2 %vm740_vm1, %v260_v42  ;;  %v237_v42 = vld [vmem:[%s1430_s26 + $0x70] sm:$0xff] }
  0x3c   : > { %1344 = vmatmul.msk.f32.gmra.mxu3 %vm740_vm1, %v276_v43  ;;  %v253_v43 = vld [vmem:[%s1430_s26 + $0xf0] sm:$0xff] }
  0x3f   : > { %455 = vperm.xlu2 %1371, %v308_v44   ;;  %v269_v44 = vld [vmem:[%s1430_s26 + $0x170] sm:$0xff] }
  0x40   : > { %450 = vperm.xlu1 %1370, %v307_v45   ;;  %445 = vperm.xlu0 %1369, %v306_v46   ;;  %v285_v45 = vld [vmem:[%s1430_s26 + $0x1f0] sm:$0xff] }
  0x41   : > { %1297 = vmatmul.msk.f32.gmra.mxu0 %vm740_vm1, %v229_v47 }
  0x42   : > { %1313 = vmatmul.msk.f32.gmra.mxu1 %vm740_vm1, %v245_v48 }
  0x43   : > { %1329 = vmatmul.msk.f32.gmra.mxu2 %vm740_vm1, %v261_v49  ;;  %v335_v49 = vld [vmem:[%s1424_s23 + $0x178] sm:$0xff] }
  0x44   : > { %1345 = vmatmul.msk.f32.gmra.mxu3 %vm740_vm1, %v277_v50  ;;  %v334_v50 = vld [vmem:[%s1424_s23 + $0x170] sm:$0xff] }
  0x47   : > { %470 = vperm.xlu2 %1371, %v311_v51   ;;  %v333_v51 = vld [vmem:[%s1424_s23 + $0x168] sm:$0xff] }
  0x48   : > { %465 = vperm.xlu1 %1370, %v310_v52   ;;  %460 = vperm.xlu0 %1369, %v309_v53   ;;  %v238_v52 = vld [vmem:[%s1430_s26 + $0x78] sm:$0xff] }
  0x49   : > { %1298 = vmatmul.msk.f32.gmra.mxu0 %vm740_vm1, %v230_v54  ;;  %v254_v53 = vld [vmem:[%s1430_s26 + $0xf8] sm:$0xff] }
  0x4a   : > { %1314 = vmatmul.msk.f32.gmra.mxu1 %vm740_vm1, %v246_v55  ;;  %v270_v54 = vld [vmem:[%s1430_s26 + $0x178] sm:$0xff]  ;;  %v1614_v55 = vld [vmem:[%s1950_s3] ss:$0 sm:$0xff] }
  0x4b   : > { %1330 = vmatmul.msk.f32.gmra.mxu2 %vm740_vm1, %v262_v56 }
  0x4c   : > { %1346 = vmatmul.msk.f32.gmra.mxu3 %vm740_vm1, %v278_v57 }
  0x4f   : > { %485 = vperm.xlu2 %1371, %v314_v58   ;;  %v286_v58 = vld [vmem:[%s1430_s26 + $0x1f8] sm:$0xff] }
  0x50   : > { %480 = vperm.xlu1 %1370, %v313_v59   ;;  %475 = vperm.xlu0 %1369, %v312_v60  }
  0x51   : > { %1299 = vmatmul.msk.f32.gmra.mxu0 %vm740_vm1, %v231_v61  ;;  %v338_v61 = vld [vmem:[%s1424_s23 + $0x190] sm:$0xff] }
  0x52   : > { %1315 = vmatmul.msk.f32.gmra.mxu1 %vm740_vm1, %v247_v62  ;;  %v337_v62 = vld [vmem:[%s1424_s23 + $0x188] sm:$0xff] }
  0x53   : > { %1331 = vmatmul.msk.f32.gmra.mxu2 %vm740_vm1, %v263_v63 }
  0x54   : > { %1347 = vmatmul.msk.f32.gmra.mxu3 %vm740_vm1, %v279_v0  ;;  %v336_v0 = vld [vmem:[%s1424_s23 + $0x180] sm:$0xff] }
  0x57   : > { %500 = vperm.xlu2 %1371, %v317_v1  }
  0x58   : > { %495 = vperm.xlu1 %1370, %v316_v2   ;;  %490 = vperm.xlu0 %1369, %v315_v3  }
  0x59   : > { %1300 = vmatmul.msk.f32.gmra.mxu0 %vm740_vm1, %v232_v4 }
  0x5a   : > { %1316 = vmatmul.msk.f32.gmra.mxu1 %vm740_vm1, %v248_v5 }
  0x5b   : > { %1332 = vmatmul.msk.f32.gmra.mxu2 %vm740_vm1, %v264_v6 }
  0x5c   : > { %1348 = vmatmul.msk.f32.gmra.mxu3 %vm740_vm1, %v280_v7 }
  0x5f   : > { %515 = vperm.xlu2 %1371, %v320_v8  }
  0x60   : > { %510 = vperm.xlu1 %1370, %v319_v9   ;;  %505 = vperm.xlu0 %1369, %v318_v10   ;;  %v341_v9 = vld [vmem:[%s1424_s23 + $0x1a8] sm:$0xff]  ;;  %v340_v10 = vld [vmem:[%s1424_s23 + $0x1a0] sm:$0xff] }
  0x61   : > { %1301 = vmatmul.msk.f32.gmra.mxu0 %vm740_vm1, %v233_v11 }
  0x62   : > { %1317 = vmatmul.msk.f32.gmra.mxu1 %vm740_vm1, %v249_v12  ;;  %v339_v12 = vld [vmem:[%s1424_s23 + $0x198] sm:$0xff] }
  0x63   : > { %1333 = vmatmul.msk.f32.gmra.mxu2 %vm740_vm1, %v265_v13 }
  0x64   : > { %1349 = vmatmul.msk.f32.gmra.mxu3 %vm740_vm1, %v281_v14 }
  0x67   : > { %530 = vperm.xlu2 %1371, %v323_v15  }
  0x68   : > { %525 = vperm.xlu1 %1370, %v322_v16   ;;  %520 = vperm.xlu0 %1369, %v321_v17  }
  0x69   : > { %1302 = vmatmul.msk.f32.gmra.mxu0 %vm740_vm1, %v234_v18  ;;  %v1563_v22 = vpop.permute.xlu2 %375 }
  0x6a   : > { %1318 = vmatmul.msk.f32.gmra.mxu1 %vm740_vm1, %v250_v19 }
  0x6b   : > { %1334 = vmatmul.msk.f32.gmra.mxu2 %vm740_vm1, %v266_v20 }
  0x6c   : > { %1350 = vmatmul.msk.f32.gmra.mxu3 %vm740_vm1, %v282_v21 }
  0x6f   : > { %545 = vperm.xlu2 %1371, %v326_v23   ;;  %v344_v23 = vld [vmem:[%s1424_s23 + $0x1c0] sm:$0xff] }
  0x70   : > { %540 = vperm.xlu1 %1370, %v325_v24   ;;  %535 = vperm.xlu0 %1369, %v324_v25   ;;  %v343_v24 = vld [vmem:[%s1424_s23 + $0x1b8] sm:$0xff] }
  0x71   : > { %1303 = vmatmul.msk.f32.gmra.mxu0 %vm740_vm1, %v235_v26  ;;  %v1576_v30 = vpop.permute.xlu2 %380  ;;  %v342_v26 = vld [vmem:[%s1424_s23 + $0x1b0] sm:$0xff] }
  0x72   : > { %1319 = vmatmul.msk.f32.gmra.mxu1 %vm740_vm1, %v251_v27 }
  0x73   : > { %1335 = vmatmul.msk.f32.gmra.mxu2 %vm740_vm1, %v267_v28 }
  0x74   : > { %1351 = vmatmul.msk.f32.gmra.mxu3 %vm740_vm1, %v283_v29 }
  0x77   : > { %560 = vperm.xlu2 %1371, %v329_v31  }
  0x78   : > { %555 = vperm.xlu1 %1370, %v328_v32   ;;  %550 = vperm.xlu0 %1369, %v327_v33  }
  0x79   : > { %1304 = vmatmul.msk.f32.gmra.mxu0 %vm740_vm1, %v236_v34  ;;  %v1589_v38 = vpop.permute.xlu2 %395 }
  0x7a   : > { %1320 = vmatmul.msk.f32.gmra.mxu1 %vm740_vm1, %v252_v35 }
  0x7b   : > { %1336 = vmatmul.msk.f32.gmra.mxu2 %vm740_vm1, %v268_v36  ;;  %v347_v36 = vld [vmem:[%s1424_s23 + $0x1d8] sm:$0xff] }
  0x7c   : > { %1352 = vmatmul.msk.f32.gmra.mxu3 %vm740_vm1, %v284_v37  ;;  %v346_v37 = vld [vmem:[%s1424_s23 + $0x1d0] sm:$0xff] }
  0x7f   : > { %575 = vperm.xlu2 %1371, %v332_v39  }
  0x80   : > { %570 = vperm.xlu1 %1370, %v331_v40   ;;  %565 = vperm.xlu0 %1369, %v330_v41   ;;  %v345_v40 = vld [vmem:[%s1424_s23 + $0x1c8] sm:$0xff] }
  0x81   : > { %1305 = vmatmul.msk.f32.gmra.mxu0 %vm740_vm1, %v237_v42  ;;  %v1602_v46 = vpop.permute.xlu2 %410 }
  0x82   : > { %1321 = vmatmul.msk.f32.gmra.mxu1 %vm740_vm1, %v253_v43  ;;  %v366_v47 = vpop.permute.xlu1 %365  ;;  %v356_v48 = vpop.permute.xlu0 %355 }
  0x83   : > { %1337 = vmatmul.msk.f32.gmra.mxu2 %vm740_vm1, %v269_v44  ;;  %v676_v60 = vmul.f32 %v1614_v55, %v356_v48  ;;  %v678_v20 = vmul.f32 %v1614_v55, %v366_v47 }
  0x84   : > { %1353 = vmatmul.msk.f32.gmra.mxu3 %vm740_vm1, %v285_v45 }
  0x87   : > { %590 = vperm.xlu2 %1371, %v335_v49   ;;  %v680_v49 = vmul.f32 %v1614_v55, %v1563_v22 }
  0x88   : > { %585 = vperm.xlu1 %1370, %v334_v50   ;;  %580 = vperm.xlu0 %1369, %v333_v51  }
  0x89   : > { %1306 = vmatmul.msk.f32.gmra.mxu0 %vm740_vm1, %v238_v52  ;;  %v1619_v56 = vpop.permute.xlu2 %425  ;;  %v350_v52 = vld [vmem:[%s1424_s23 + $0x1f0] sm:$0xff] }
  0x8a   : > { %1322 = vmatmul.msk.f32.gmra.mxu1 %vm740_vm1, %v254_v53  ;;  %v371_v57 = vpop.permute.xlu1 %370  ;;  %v361_v59 = vpop.permute.xlu0 %360  ;;  %v349_v53 = vld [vmem:[%s1424_s23 + $0x1e8] sm:$0xff] }
  0x8b   : > { %1338 = vmatmul.msk.f32.gmra.mxu2 %vm740_vm1, %v270_v54  ;;  %v677_v7 = vmul.f32 %v1614_v55, %v361_v59  ;;  %v679_v34 = vmul.f32 %v1614_v55, %v371_v57 }
  0x8c   : > { %1354 = vmatmul.msk.f32.gmra.mxu3 %vm740_vm1, %v286_v58  ;;  %v348_v58 = vld [vmem:[%s1424_s23 + $0x1e0] sm:$0xff] }
  0x8e   : > { %v954_v63 = vpop.f32.mrf.mxu0 }
  0x8f   : > { %v955_v1 = vadd.f32 %v954_v63, %v676_v60  ;;  %v1002_v2 = vpop.f32.mrf.mxu1  ;;  %605 = vperm.xlu2 %1371, %v338_v61  }
  0x90   : > { %600 = vperm.xlu1 %1370, %v337_v62   ;;  %595 = vperm.xlu0 %1369, %v336_v0  }
  0x91   : > { %1147 = vst.msk [vmem:[%s1630_s5] sm:$0xff] %vm1146_vm2, %v955_v1  ;;  %v441_v3 = vpop.permute.xlu2 %440 }
  0x92   : > { %v1635_v4 = vpop.permute.xlu1 %390  ;;  %v1637_v5 = vpop.permute.xlu0 %385  ;;  %v693_v6 = vmul.f32 %v1614_v55, %v441_v3  ;;  %v681_v3 = vmul.f32 %v1614_v55, %v1576_v30 }
  0x96   : > { %v1641_v8 = vpop.f32.mrf.mxu2  ;;  %v957_v11 = vpop.f32.mrf.mxu0 }
  0x97   : > { %v958_v13 = vadd.f32 %v957_v11, %v677_v7  ;;  %v1005_v14 = vpop.f32.mrf.mxu1  ;;  %v1646_v15 = vpop.f32.mrf.mxu3  ;;  %620 = vperm.xlu2 %1371, %v341_v9   ;;  %v351_v11 = vld [vmem:[%s1424_s23 + $0x1f8] sm:$0xff] }
  0x98   : > { %v1006_v16 = vadd.f32 %v1005_v14, %v693_v6  ;;  %615 = vperm.xlu1 %1370, %v340_v10   ;;  %610 = vperm.xlu0 %1369, %v339_v12  }
  0x99   : > { %1148 = vst.msk [vmem:[%s1630_s5 + $0x8] sm:$0xff] %vm1146_vm2, %v958_v13  ;;  %v456_v17 = vpop.permute.xlu2 %455 }
  0x9a   : > { %1164 = vst.msk [vmem:[%s1630_s5 + $0x88] sm:$0xff] %vm1146_vm2, %v1006_v16  ;;  %v1652_v18 = vpop.permute.xlu1 %405  ;;  %v1654_v19 = vpop.permute.xlu0 %400  ;;  %v696_v54 = vmul.f32 %v1614_v55, %v456_v17 }
  0x9e   : > { %v1657_v21 = vpop.f32.mrf.mxu2  ;;  %v960_v25 = vpop.f32.mrf.mxu0 }
  0x9f   : > { %v961_v27 = vadd.f32 %v960_v25, %v678_v20  ;;  %v1008_v28 = vpop.f32.mrf.mxu1  ;;  %v1662_v29 = vpop.f32.mrf.mxu3  ;;  %635 = vperm.xlu2 %1371, %v344_v23   ;;  %v682_v25 = vmul.f32 %v1614_v55, %v1637_v5 }
  0xa0   : > { %630 = vperm.xlu1 %1370, %v343_v24   ;;  %625 = vperm.xlu0 %1369, %v342_v26  }
  0xa1   : > { %1149 = vst.msk [vmem:[%s1630_s5 + $0x10] sm:$0xff] %vm1146_vm2, %v961_v27  ;;  %v1666_v31 = vpop.permute.xlu2 %470 }
  0xa2   : > { %v1668_v32 = vpop.permute.xlu1 %420  ;;  %v1670_v33 = vpop.permute.xlu0 %415 }
  0xa6   : > { %v1673_v35 = vpop.f32.mrf.mxu2  ;;  %v963_v39 = vpop.f32.mrf.mxu0 }
  0xa7   : > { %v964_v41 = vadd.f32 %v963_v39, %v679_v34  ;;  %v1011_v42 = vpop.f32.mrf.mxu1  ;;  %v1678_v43 = vpop.f32.mrf.mxu3  ;;  %650 = vperm.xlu2 %1371, %v347_v36  }
  0xa8   : > { %645 = vperm.xlu1 %1370, %v346_v37   ;;  %640 = vperm.xlu0 %1369, %v345_v40  }
  0xa9   : > { %1150 = vst.msk [vmem:[%s1630_s5 + $0x18] sm:$0xff] %vm1146_vm2, %v964_v41  ;;  %v1682_v44 = vpop.permute.xlu2 %485 }
  0xaa   : > { %v436_v45 = vpop.permute.xlu1 %435  ;;  %v1685_v48 = vpop.permute.xlu0 %430 }
  0xab   : > { %v692_v47 = vmul.f32 %v1614_v55, %v436_v45  ;;  %v683_v45 = vmul.f32 %v1614_v55, %v1635_v4 }
  0xad   : > { %v1003_v50 = vadd.f32 %v1002_v2, %v692_v47 }
  0xae   : > { %v1059_v51 = vpop.f32.mrf.mxu2  ;;  %v966_v57 = vpop.f32.mrf.mxu0 }
  0xaf   : > { %1163 = vst.msk [vmem:[%s1630_s5 + $0x80] sm:$0xff] %vm1146_vm2, %v1003_v50  ;;  %v967_v59 = vadd.f32 %v966_v57, %v680_v49  ;;  %v1014_v60 = vpop.f32.mrf.mxu1  ;;  %v1695_v61 = vpop.f32.mrf.mxu3  ;;  %665 = vperm.xlu2 %1371, %v350_v52   ;;  %v699_v50 = vmul.f32 %v1614_v55, %v1666_v31 }
  0xb0   : > { %v1015_v62 = vadd.f32 %v1014_v60, %v696_v54  ;;  %660 = vperm.xlu1 %1370, %v349_v53   ;;  %655 = vperm.xlu0 %1369, %v348_v58   ;;  %v684_v60 = vmul.f32 %v1614_v55, %v1589_v38 }
  0xb1   : > { %1151 = vst.msk [vmem:[%s1630_s5 + $0x20] sm:$0xff] %vm1146_vm2, %v967_v59  ;;  %v1701_v22 = vpop.permute.xlu2 %500 }
  0xb2   : > { %1167 = vst.msk [vmem:[%s1630_s5 + $0xa0] sm:$0xff] %vm1146_vm2, %v1015_v62  ;;  %v451_v63 = vpop.permute.xlu1 %450  ;;  %v446_v1 = vpop.permute.xlu0 %445 }
  0xb3   : > { %v695_v0 = vmul.f32 %v1614_v55, %v451_v63  ;;  %v694_v2 = vmul.f32 %v1614_v55, %v446_v1 }
  0xb5   : > { %v1012_v6 = vadd.f32 %v1011_v42, %v695_v0  ;;  %v1009_v9 = vadd.f32 %v1008_v28, %v694_v2 }
  0xb6   : > { %v1707_v7 = vpop.f32.mrf.mxu2  ;;  %v969_v10 = vpop.f32.mrf.mxu0 }
  0xb7   : > { %1166 = vst.msk [vmem:[%s1630_s5 + $0x98] sm:$0xff] %vm1146_vm2, %v1012_v6  ;;  %v970_v12 = vadd.f32 %v969_v10, %v681_v3  ;;  %v1017_v13 = vpop.f32.mrf.mxu1  ;;  %v1712_v14 = vpop.f32.mrf.mxu3 }
  0xb8   : > { %1165 = vst.msk [vmem:[%s1630_s5 + $0x90] sm:$0xff] %vm1146_vm2, %v1009_v9  ;;  %670 = vperm.xlu0 %1369, %v351_v11  }
  0xb9   : > { %1152 = vst.msk [vmem:[%s1630_s5 + $0x28] sm:$0xff] %vm1146_vm2, %v970_v12  ;;  %v516_v30 = vpop.permute.xlu2 %515  ;;  %v685_v12 = vmul.f32 %v1614_v55, %v1654_v19 }
  0xba   : > { %v466_v16 = vpop.permute.xlu1 %465  ;;  %v708_v17 = vmul.f32 %v1614_v55, %v516_v30  ;;  %v461_v20 = vpop.permute.xlu0 %460 }
  0xbb   : > { %v698_v23 = vmul.f32 %v1614_v55, %v466_v16  ;;  %v697_v24 = vmul.f32 %v1614_v55, %v461_v20 }
  0xbc   : > { %v1051_v26 = vadd.f32 %v1641_v8, %v708_v17 }
  0xbd   : > { %v1018_v28 = vadd.f32 %v1017_v13, %v697_v24 }
  0xbe   : > { %v1724_v27 = vpop.f32.mrf.mxu2  ;;  %v972_v34 = vpop.f32.mrf.mxu0  ;;  %1179 = vst.msk [vmem:[%s1630_s5 + $0x100] sm:$0xff] %vm1146_vm2, %v1051_v26 }
  0xbf   : > { %v973_v36 = vadd.f32 %v972_v34, %v682_v25  ;;  %v1020_v37 = vpop.f32.mrf.mxu1  ;;  %v1728_v39 = vpop.f32.mrf.mxu3  ;;  %1168 = vst.msk [vmem:[%s1630_s5 + $0xa8] sm:$0xff] %vm1146_vm2, %v1018_v28 }
  0xc0   : > { %v1021_v40 = vadd.f32 %v1020_v37, %v698_v23  ;;  %v686_v37 = vmul.f32 %v1614_v55, %v1652_v18 }
  0xc1   : > { %1153 = vst.msk [vmem:[%s1630_s5 + $0x30] sm:$0xff] %vm1146_vm2, %v973_v36  ;;  %v531_v5 = vpop.permute.xlu2 %530 }
  0xc2   : > { %1169 = vst.msk [vmem:[%s1630_s5 + $0xb0] sm:$0xff] %vm1146_vm2, %v1021_v40  ;;  %v481_v8 = vpop.permute.xlu1 %480  ;;  %v711_v41 = vmul.f32 %v1614_v55, %v531_v5  ;;  %v476_v42 = vpop.permute.xlu0 %475 }
  0xc3   : > { %v700_v0 = vmul.f32 %v1614_v55, %v476_v42  ;;  %v701_v30 = vmul.f32 %v1614_v55, %v481_v8  ;;  %v702_v8 = vmul.f32 %v1614_v55, %v1682_v44 }
  0xc4   : > { %v1060_v47 = vadd.f32 %v1059_v51, %v711_v41 }
  0xc6   : > { %v1068_v49 = vpop.f32.mrf.mxu2  ;;  %v975_v52 = vpop.f32.mrf.mxu0  ;;  %1182 = vst.msk [vmem:[%s1630_s5 + $0x118] sm:$0xff] %vm1146_vm2, %v1060_v47 }
  0xc7   : > { %v976_v53 = vadd.f32 %v975_v52, %v683_v45  ;;  %v1023_v54 = vpop.f32.mrf.mxu1  ;;  %v1743_v57 = vpop.f32.mrf.mxu3 }
  0xc8   : > { %v1024_v58 = vadd.f32 %v1023_v54, %v699_v50  ;;  %v687_v54 = vmul.f32 %v1614_v55, %v1602_v46 }
  0xc9   : > { %1154 = vst.msk [vmem:[%s1630_s5 + $0x38] sm:$0xff] %vm1146_vm2, %v976_v53  ;;  %v546_v4 = vpop.permute.xlu2 %545 }
  0xca   : > { %1170 = vst.msk [vmem:[%s1630_s5 + $0xb8] sm:$0xff] %vm1146_vm2, %v1024_v58  ;;  %v1749_v51 = vpop.permute.xlu1 %495  ;;  %v714_v31 = vmul.f32 %v1614_v55, %v546_v4  ;;  %v491_v59 = vpop.permute.xlu0 %490 }
  0xcc   : > { %v1069_v62 = vadd.f32 %v1068_v49, %v714_v31  ;;  %v703_v31 = vmul.f32 %v1614_v55, %v491_v59 }
  0xce   : > { %v1754_v63 = vpop.f32.mrf.mxu2  ;;  %v978_v1 = vpop.f32.mrf.mxu0  ;;  %1185 = vst.msk [vmem:[%s1630_s5 + $0x130] sm:$0xff] %vm1146_vm2, %v1069_v62 }
  0xcf   : > { %v979_v2 = vadd.f32 %v978_v1, %v684_v60  ;;  %v1026_v3 = vpop.f32.mrf.mxu1  ;;  %v1759_v6 = vpop.f32.mrf.mxu3 }
  0xd0   : > { %v1027_v9 = vadd.f32 %v1026_v3, %v700_v0 }
  0xd1   : > { %1155 = vst.msk [vmem:[%s1630_s5 + $0x40] sm:$0xff] %vm1146_vm2, %v979_v2  ;;  %v561_v38 = vpop.permute.xlu2 %560 }
  0xd2   : > { %1171 = vst.msk [vmem:[%s1630_s5 + $0xc0] sm:$0xff] %vm1146_vm2, %v1027_v9  ;;  %v1765_v10 = vpop.permute.xlu1 %510  ;;  %v1767_v11 = vpop.permute.xlu0 %505  ;;  %v717_v34 = vmul.f32 %v1614_v55, %v561_v38 }
  0xd6   : > { %v1074_v13 = vpop.f32.mrf.mxu2  ;;  %v981_v16 = vpop.f32.mrf.mxu0 }
  0xd7   : > { %v982_v17 = vadd.f32 %v981_v16, %v685_v12  ;;  %v1029_v20 = vpop.f32.mrf.mxu1  ;;  %v1772_v23 = vpop.f32.mrf.mxu3  ;;  %v688_v12 = vmul.f32 %v1614_v55, %v1670_v33 }
  0xd8   : > { %v1030_v24 = vadd.f32 %v1029_v20, %v701_v30  ;;  %v704_v20 = vmul.f32 %v1614_v55, %v1749_v51 }
  0xd9   : > { %1156 = vst.msk [vmem:[%s1630_s5 + $0x48] sm:$0xff] %vm1146_vm2, %v982_v17  ;;  %v1778_v25 = vpop.permute.xlu2 %575 }
  0xda   : > { %1172 = vst.msk [vmem:[%s1630_s5 + $0xc8] sm:$0xff] %vm1146_vm2, %v1030_v24  ;;  %v526_v26 = vpop.permute.xlu1 %525  ;;  %v521_v28 = vpop.permute.xlu0 %520 }
  0xdb   : > { %v710_v19 = vmul.f32 %v1614_v55, %v526_v26  ;;  %v709_v36 = vmul.f32 %v1614_v55, %v521_v28 }
  0xdd   : > { %v1057_v40 = vadd.f32 %v1673_v35, %v710_v19  ;;  %v1054_v41 = vadd.f32 %v1657_v21, %v709_v36 }
  0xde   : > { %v1077_v5 = vpop.f32.mrf.mxu2  ;;  %v984_v45 = vpop.f32.mrf.mxu0 }
  0xdf   : > { %v1078_v42 = vadd.f32 %v1077_v5, %v717_v34  ;;  %1181 = vst.msk [vmem:[%s1630_s5 + $0x110] sm:$0xff] %vm1146_vm2, %v1057_v40  ;;  %v985_v47 = vadd.f32 %v984_v45, %v686_v37  ;;  %v1032_v49 = vpop.f32.mrf.mxu1  ;;  %v1791_v50 = vpop.f32.mrf.mxu3  ;;  %v720_v37 = vmul.f32 %v1614_v55, %v1778_v25  ;;  %v689_v5 = vmul.f32 %v1614_v55, %v1668_v32 }
  0xe0   : > { %1180 = vst.msk [vmem:[%s1630_s5 + $0x108] sm:$0xff] %vm1146_vm2, %v1054_v41  ;;  %v1033_v18 = vadd.f32 %v1032_v49, %v702_v8  ;;  %v705_v45 = vmul.f32 %v1614_v55, %v1701_v22 }
  0xe1   : > { %1188 = vst.msk [vmem:[%s1630_s5 + $0x148] sm:$0xff] %vm1146_vm2, %v1078_v42  ;;  %v1799_v35 = vpop.permute.xlu2 %590 }
  0xe2   : > { %1157 = vst.msk [vmem:[%s1630_s5 + $0x50] sm:$0xff] %vm1146_vm2, %v985_v47  ;;  %v541_v21 = vpop.permute.xlu1 %540  ;;  %v536_v52 = vpop.permute.xlu0 %535 }
  0xe3   : > { %1173 = vst.msk [vmem:[%s1630_s5 + $0xd0] sm:$0xff] %vm1146_vm2, %v1033_v18  ;;  %v713_v44 = vmul.f32 %v1614_v55, %v541_v21  ;;  %v712_v53 = vmul.f32 %v1614_v55, %v536_v52 }
  0xe5   : > { %v1066_v58 = vadd.f32 %v1724_v27, %v713_v44  ;;  %v1063_v60 = vadd.f32 %v1707_v7, %v712_v53 }
  0xe6   : > { %v1080_v4 = vpop.f32.mrf.mxu2  ;;  %v987_v62 = vpop.f32.mrf.mxu0 }
  0xe7   : > { %1184 = vst.msk [vmem:[%s1630_s5 + $0x128] sm:$0xff] %vm1146_vm2, %v1066_v58  ;;  %v988_v0 = vadd.f32 %v987_v62, %v687_v54  ;;  %v1035_v1 = vpop.f32.mrf.mxu1  ;;  %v1812_v2 = vpop.f32.mrf.mxu3  ;;  %v690_v58 = vmul.f32 %v1614_v55, %v1619_v56 }
  0xe8   : > { %1183 = vst.msk [vmem:[%s1630_s5 + $0x120] sm:$0xff] %vm1146_vm2, %v1063_v60  ;;  %v1036_v3 = vadd.f32 %v1035_v1, %v703_v31  ;;  %v706_v60 = vmul.f32 %v1614_v55, %v1767_v11 }
  0xe9   : > { %1158 = vst.msk [vmem:[%s1630_s5 + $0x58] sm:$0xff] %vm1146_vm2, %v988_v0  ;;  %v606_v46 = vpop.permute.xlu2 %605 }
  0xea   : > { %1174 = vst.msk [vmem:[%s1630_s5 + $0xd8] sm:$0xff] %vm1146_vm2, %v1036_v3  ;;  %v556_v27 = vpop.permute.xlu1 %555  ;;  %v726_v7 = vmul.f32 %v1614_v55, %v606_v46  ;;  %v551_v9 = vpop.permute.xlu0 %550 }
  0xeb   : > { %v716_v59 = vmul.f32 %v1614_v55, %v556_v27  ;;  %v715_v38 = vmul.f32 %v1614_v55, %v551_v9 }
  0xec   : > { %v1105_v30 = vadd.f32 %v1678_v43, %v726_v7 }
  0xed   : > { %v1075_v16 = vadd.f32 %v1074_v13, %v716_v59  ;;  %v1072_v24 = vadd.f32 %v1754_v63, %v715_v38 }
  0xee   : > { %v1083_v17 = vpop.f32.mrf.mxu2  ;;  %v990_v26 = vpop.f32.mrf.mxu0  ;;  %1197 = vst.msk [vmem:[%s1630_s5 + $0x190] sm:$0xff] %vm1146_vm2, %v1105_v30 }
  0xef   : > { %v991_v19 = vadd.f32 %v990_v26, %v688_v12  ;;  %v1038_v28 = vpop.f32.mrf.mxu1  ;;  %v1131_v34 = vpop.f32.mrf.mxu3  ;;  %1187 = vst.msk [vmem:[%s1630_s5 + $0x140] sm:$0xff] %vm1146_vm2, %v1075_v16  ;;  %v691_v12 = vmul.f32 %v1614_v55, %v1685_v48 }
  0xf0   : > { %v1039_v36 = vadd.f32 %v1038_v28, %v704_v20  ;;  %1186 = vst.msk [vmem:[%s1630_s5 + $0x138] sm:$0xff] %vm1146_vm2, %v1072_v24  ;;  %v707_v20 = vmul.f32 %v1614_v55, %v1765_v10 }
  0xf1   : > { %1159 = vst.msk [vmem:[%s1630_s5 + $0x60] sm:$0xff] %vm1146_vm2, %v991_v19  ;;  %v621_v33 = vpop.permute.xlu2 %620 }
  0xf2   : > { %v571_v43 = vpop.permute.xlu1 %570  ;;  %1175 = vst.msk [vmem:[%s1630_s5 + $0xe0] sm:$0xff] %vm1146_vm2, %v1039_v36  ;;  %v729_v51 = vmul.f32 %v1614_v55, %v621_v33  ;;  %v566_v13 = vpop.permute.xlu0 %565 }
  0xf3   : > { %v719_v63 = vmul.f32 %v1614_v55, %v571_v43  ;;  %v718_v40 = vmul.f32 %v1614_v55, %v566_v13 }
  0xf4   : > { %v1114_v8 = vadd.f32 %v1728_v39, %v729_v51  ;;  %v723_v51 = vmul.f32 %v1614_v55, %v1799_v35 }
  0xf5   : > { %v1084_v41 = vadd.f32 %v1083_v17, %v719_v63  ;;  %v1081_v47 = vadd.f32 %v1080_v4, %v718_v40 }
  0xf6   : > { %v1086_v42 = vpop.f32.mrf.mxu2  ;;  %v993_v18 = vpop.f32.mrf.mxu0  ;;  %1200 = vst.msk [vmem:[%s1630_s5 + $0x1a8] sm:$0xff] %vm1146_vm2, %v1114_v8 }
  0xf7   : > { %v1087_v49 = vadd.f32 %v1086_v42, %v720_v37  ;;  %v994_v25 = vadd.f32 %v993_v18, %v689_v5  ;;  %v1041_v21 = vpop.f32.mrf.mxu1  ;;  %v1851_v44 = vpop.f32.mrf.mxu3  ;;  %1190 = vst.msk [vmem:[%s1630_s5 + $0x158] sm:$0xff] %vm1146_vm2, %v1084_v41 }
  0xf8   : > { %v1042_v32 = vadd.f32 %v1041_v21, %v705_v45  ;;  %1189 = vst.msk [vmem:[%s1630_s5 + $0x150] sm:$0xff] %vm1146_vm2, %v1081_v47 }
  0xf9   : > { %1191 = vst.msk [vmem:[%s1630_s5 + $0x160] sm:$0xff] %vm1146_vm2, %v1087_v49  ;;  %v636_v39 = vpop.permute.xlu2 %635 }
  0xfa   : > { %v586_v22 = vpop.permute.xlu1 %585  ;;  %1160 = vst.msk [vmem:[%s1630_s5 + $0x68] sm:$0xff] %vm1146_vm2, %v994_v25  ;;  %v732_v52 = vmul.f32 %v1614_v55, %v636_v39  ;;  %v581_v53 = vpop.permute.xlu0 %580 }
  0xfb   : > { %1176 = vst.msk [vmem:[%s1630_s5 + $0xe8] sm:$0xff] %vm1146_vm2, %v1042_v32  ;;  %v721_v54 = vmul.f32 %v1614_v55, %v581_v53  ;;  %v722_v9 = vmul.f32 %v1614_v55, %v586_v22 }
  0xfc   : > { %v1123_v4 = vadd.f32 %v1772_v23, %v732_v52 }
  0xfe   : > { %v1089_v31 = vpop.f32.mrf.mxu2  ;;  %v996_v0 = vpop.f32.mrf.mxu0  ;;  %1203 = vst.msk [vmem:[%s1630_s5 + $0x1c0] sm:$0xff] %vm1146_vm2, %v1123_v4 }
  0xff   : > { %v1090_v62 = vadd.f32 %v1089_v31, %v721_v54  ;;  %v997_v1 = vadd.f32 %v996_v0, %v690_v58  ;;  %v1044_v3 = vpop.f32.mrf.mxu1  ;;  %v1876_v27 = vpop.f32.mrf.mxu3 }
 0x100   : > { %v1045_v46 = vadd.f32 %v1044_v3, %v706_v60 }
 0x101   : > { %1192 = vst.msk [vmem:[%s1630_s5 + $0x168] sm:$0xff] %vm1146_vm2, %v1090_v62  ;;  %v651_v56 = vpop.permute.xlu2 %650 }
 0x102   : > { %1161 = vst.msk [vmem:[%s1630_s5 + $0x70] sm:$0xff] %vm1146_vm2, %v997_v1  ;;  %v601_v23 = vpop.permute.xlu1 %600  ;;  %v735_v11 = vmul.f32 %v1614_v55, %v651_v56  ;;  %v596_v59 = vpop.permute.xlu0 %595 }
 0x103   : > { %1177 = vst.msk [vmem:[%s1630_s5 + $0xf0] sm:$0xff] %vm1146_vm2, %v1045_v46  ;;  %v725_v7 = vmul.f32 %v1614_v55, %v601_v23  ;;  %v724_v38 = vmul.f32 %v1614_v55, %v596_v59 }
 0x104   : > { %v1132_v30 = vadd.f32 %v1131_v34, %v735_v11 }
 0x105   : > { %v1102_v16 = vadd.f32 %v1662_v29, %v725_v7  ;;  %v1099_v24 = vadd.f32 %v1646_v15, %v724_v38 }
 0x106   : > { %v1092_v17 = vpop.f32.mrf.mxu2  ;;  %v999_v19 = vpop.f32.mrf.mxu0  ;;  %1206 = vst.msk [vmem:[%s1630_s5 + $0x1d8] sm:$0xff] %vm1146_vm2, %v1132_v30 }
 0x107   : > { %v1093_v26 = vadd.f32 %v1092_v17, %v722_v9  ;;  %v1000_v28 = vadd.f32 %v999_v19, %v691_v12  ;;  %v1047_v36 = vpop.f32.mrf.mxu1  ;;  %1196 = vst.msk [vmem:[%s1630_s5 + $0x188] sm:$0xff] %vm1146_vm2, %v1102_v16  ;;  %v1140_v43 = vpop.f32.mrf.mxu3 }
 0x108   : > { %v1048_v48 = vadd.f32 %v1047_v36, %v707_v20  ;;  %1195 = vst.msk [vmem:[%s1630_s5 + $0x180] sm:$0xff] %vm1146_vm2, %v1099_v24 }
 0x109   : > { %1193 = vst.msk [vmem:[%s1630_s5 + $0x170] sm:$0xff] %vm1146_vm2, %v1093_v26  ;;  %v666_v29 = vpop.permute.xlu2 %665 }
 0x10a   : > { %v616_v10 = vpop.permute.xlu1 %615  ;;  %1162 = vst.msk [vmem:[%s1630_s5 + $0x78] sm:$0xff] %vm1146_vm2, %v1000_v28  ;;  %v738_v15 = vmul.f32 %v1614_v55, %v666_v29  ;;  %v611_v33 = vpop.permute.xlu0 %610 }
 0x10b   : > { %v728_v34 = vmul.f32 %v1614_v55, %v616_v10  ;;  %1178 = vst.msk [vmem:[%s1630_s5 + $0xf8] sm:$0xff] %vm1146_vm2, %v1048_v48  ;;  %v727_v63 = vmul.f32 %v1614_v55, %v611_v33 }
 0x10c   : > { %v1141_v8 = vadd.f32 %v1140_v43, %v738_v15 }
 0x10d   : > { %v1111_v13 = vadd.f32 %v1712_v14, %v728_v34  ;;  %v1108_v40 = vadd.f32 %v1695_v61, %v727_v63 }
 0x10e   : > { %v1095_v37 = vpop.f32.mrf.mxu2  ;;  %1209 = vst.msk [vmem:[%s1630_s5 + $0x1f0] sm:$0xff] %vm1146_vm2, %v1141_v8 }
 0x10f   : > { %v1096_v5 = vadd.f32 %v1095_v37, %v723_v51  ;;  %1199 = vst.msk [vmem:[%s1630_s5 + $0x1a0] sm:$0xff] %vm1146_vm2, %v1111_v13 }
 0x110   : > { %1198 = vst.msk [vmem:[%s1630_s5 + $0x198] sm:$0xff] %vm1146_vm2, %v1108_v40 }
 0x111   : > { %1194 = vst.msk [vmem:[%s1630_s5 + $0x178] sm:$0xff] %vm1146_vm2, %v1096_v5 }
 0x112   : > { %v631_v35 = vpop.permute.xlu1 %630  ;;  %v626_v14 = vpop.permute.xlu0 %625 }
 0x113   : > { %v731_v41 = vmul.f32 %v1614_v55, %v631_v35  ;;  %v730_v42 = vmul.f32 %v1614_v55, %v626_v14 }
 0x115   : > { %v1120_v61 = vadd.f32 %v1759_v6, %v731_v41  ;;  %v1117_v45 = vadd.f32 %v1743_v57, %v730_v42 }
 0x117   : > { %1202 = vst.msk [vmem:[%s1630_s5 + $0x1b8] sm:$0xff] %vm1146_vm2, %v1120_v61 }
 0x118   : > { %1201 = vst.msk [vmem:[%s1630_s5 + $0x1b0] sm:$0xff] %vm1146_vm2, %v1117_v45 }
 0x11a   : > { %v646_v47 = vpop.permute.xlu1 %645  ;;  %v641_v18 = vpop.permute.xlu0 %640 }
 0x11b   : > { %v734_v49 = vmul.f32 %v1614_v55, %v646_v47  ;;  %v733_v25 = vmul.f32 %v1614_v55, %v641_v18 }
 0x11d   : > { %v1129_v21 = vadd.f32 %v1812_v2, %v734_v49  ;;  %v1126_v32 = vadd.f32 %v1791_v50, %v733_v25  ;;  %v1143_v50 = vpop.f32.mrf.mxu3 }
 0x11f   : > { %1205 = vst.msk [vmem:[%s1630_s5 + $0x1d0] sm:$0xff] %vm1146_vm2, %v1129_v21 }
 0x120   : > { %1204 = vst.msk [vmem:[%s1630_s5 + $0x1c8] sm:$0xff] %vm1146_vm2, %v1126_v32 }
 0x122   : > { %v661_v57 = vpop.permute.xlu1 %660  ;;  %v656_v39 = vpop.permute.xlu0 %655 }
 0x123   : > { %v737_v6 = vmul.f32 %v1614_v55, %v661_v57  ;;  %v736_v22 = vmul.f32 %v1614_v55, %v656_v39 }
 0x125   : > { %v1138_v52 = vadd.f32 %v1876_v27, %v737_v6  ;;  %v1135_v53 = vadd.f32 %v1851_v44, %v736_v22 }
 0x127   : > { %1208 = vst.msk [vmem:[%s1630_s5 + $0x1e8] sm:$0xff] %vm1146_vm2, %v1138_v52 }
 0x128   : > { %1207 = vst.msk [vmem:[%s1630_s5 + $0x1e0] sm:$0xff] %vm1146_vm2, %v1135_v53 }
 0x12a   : > { %v671_v2 = vpop.permute.xlu0 %670 }
 0x12b   : > { %v739_v54 = vmul.f32 %v1614_v55, %v671_v2 }
 0x12d   : > { %v1144_v58 = vadd.f32 %v1143_v50, %v739_v54 }
 0x12f   : > { %1210 = vst.msk [vmem:[%s1630_s5 + $0x1f8] sm:$0xff] %vm1146_vm2, %v1144_v58 }
 0x130 PF: > { %s14_s15 = sadd.s32 1, %s1379_s15  }
 0x131   : > { %p11_p4 = scmp.ge.s32.totalorder %s14_s15, 4  }
 0x133   :  { %13 = sbr.rel (!%p11_p4) target bundleno = 1 (0x1), region = 69 }

// kernel: _device_forward.11
= control target key start
LH: loop header
LB: loop body
LE: loop exit
PB: predicated region body
PF: predicated region fallthrough
CT: control target
= control target key end

     0   :  { %s1439_s15 = smov 0   ;;  %s2006_s0 = inlined_call_operand.vmem [shape: f32[1024,70], index: 0, kind: input, shape index: {}]   ;;  %s2007_s1 = inlined_call_operand.vmem [shape: f32[1024,1], index: 1, kind: input, shape index: {}]   ;;  %s2008_s2 = inlined_call_operand.vmem [shape: f32[70,32], index: 2, kind: input, shape index: {}]   ;;  %s2009_s3 = inlined_call_operand.vmem [shape: f32[1,32], index: 3, kind: input, shape index: {}]   ;;  %s2010_s4 = inlined_call_operand.vmem [shape: f32[1024,32], index: 4, kind: output, shape index: {}]  }
   0x1 LB: > { %s1287_s16 = sadd.s32 4294967295, %s1411_s15   ;;  %p1291_p0 = scmp.ge.s32.totalorder %s1411_s15, 1  ;;  %s1411_s15 = sphi %s1439_s15, %s14_s15  }
   0x2   : > { %p174_p1 = scmp.lt.s32.totalorder %s1411_s15, 3 }
   0x4   : > { %p175_p2 = pnand %p1291_p0, %p174_p1 }
   0x5   : > { %s1292_s21 = sshll.u32 (!%p175_p2), %s1287_s16, 6 }
   0x6   : > { %178 = sbr.rel (%p175_p2) target bundleno = 312 (0x138), region = 36  ;;  %p206_p3 = scmp.lt.s32.totalorder (!%p175_p2), %s1292_s21, 127 }
   0xb   : > { %v295_v0 = vld [vmem:[%s2008_s2 + $0x40] sm:$0x3f]  ;;  %vm941_vm0 = vcmask 1045504   ;;  %v294_v1 = vld [vmem:[%s2008_s2 + $0x38] sm:$0xff]  ;;  %v293_v2 = vld [vmem:[%s2008_s2 + $0x30] sm:$0xff]  ;;  %s2012_s21 = smov (!%p206_p3, %s1292_s21), 127 }
   0xc   : > { %1298 = vmatpush.msk.msra.mxu0 %vm941_vm0, %v295_v0  ;;  %1365 = vmatpush.msk.msra.mxu1 %vm941_vm0, %v295_v0  ;;  %v292_v3 = vld [vmem:[%s2008_s2 + $0x28] sm:$0xff]  ;;  %s1459_s26 = sshll.u32 %s2012_s21, 3  ;;  %v1413_v4 = vmov 0   ;;  %v291_v8 = vld [vmem:[%s2008_s2 + $0x20] sm:$0xff]  ;;  %v290_v9 = vld [vmem:[%s2008_s2 + $0x18] sm:$0xff]  ;;  %vm748_vm1 = vcmask 572416  }
   0xd   : > { %1366 = vmatpush.msk.msra.mxu2 %vm941_vm0, %v295_v0  ;;  %1367 = vmatpush.msk.msra.mxu3 %vm941_vm0, %v295_v0  ;;  %s1465_s29 = scalar_lea.vmem %s2007_s1, %s1459_s26  ;;  %v289_v10 = vld [vmem:[%s2008_s2 + $0x10] sm:$0xff]  ;;  %v288_v11 = vld [vmem:[%s2008_s2 + $0x8] sm:$0xff]  ;;  %s1488_s14 = scalar_lea.vmem %s2006_s0, %s1459_s26  ;;  %v287_v15 = vld [vmem:[%s2008_s2] sm:$0xff]  ;;  %vm1154_vm2 = vcmask 261120  }
   0xe   : > { %953 = vmatpush.msra.mxu0 %v294_v1  ;;  %1368 = vmatpush.msra.mxu1 %v294_v1  ;;  %v300_v5 = vld [vmem:[%s1465_s29 + $0x20] sm:$0xff]  ;;  %v298_v6 = vld [vmem:[%s1465_s29 + $0x10] sm:$0xff]  ;;  %v301_v12 = vld [vmem:[%s1465_s29 + $0x28] sm:$0xff]  ;;  %s1698_s22 = scalar_lea.vmem %s2010_s4, %s1459_s26 }
   0xf   : > { %1369 = vmatpush.msra.mxu2 %v294_v1  ;;  %1370 = vmatpush.msra.mxu3 %v294_v1  ;;  %v296_v7 = vld [vmem:[%s1465_s29] sm:$0xff]  ;;  %v299_v13 = vld [vmem:[%s1465_s29 + $0x18] sm:$0xff]  ;;  %v297_v14 = vld [vmem:[%s1465_s29 + $0x8] sm:$0xff] }
  0x10   : > { %954 = vmatpush.msra.mxu0 %v293_v2  ;;  %1371 = vmatpush.msra.mxu1 %v293_v2  ;;  %v223_v16 = vld [vmem:[%s1488_s14] sm:$0xff]  ;;  %v303_v21 = vld [vmem:[%s1465_s29 + $0x38] sm:$0xff]  ;;  %v302_v22 = vld [vmem:[%s1465_s29 + $0x30] sm:$0xff] }
  0x11   : > { %1372 = vmatpush.msra.mxu2 %v293_v2  ;;  %1373 = vmatpush.msra.mxu3 %v293_v2  ;;  %v239_v17 = vld [vmem:[%s1488_s14 + $0x80] sm:$0xff]  ;;  %v224_v23 = vld [vmem:[%s1488_s14 + $0x8] sm:$0xff]  ;;  %v307_v27 = vld [vmem:[%s1465_s29 + $0x58] sm:$0xff] }
  0x12   : > { %1403 = vset.pattern.permute.xlu2 %v1413_v4  ;;  %1402 = vset.pattern.permute.xlu1 %v1413_v4  ;;  %v255_v18 = vld [vmem:[%s1488_s14 + $0x100] sm:$0xff]  ;;  %v240_v24 = vld [vmem:[%s1488_s14 + $0x88] sm:$0xff]  ;;  %v306_v28 = vld [vmem:[%s1465_s29 + $0x50] sm:$0xff] }
  0x13   : > { %1401 = vset.pattern.permute.xlu0 %v1413_v4  ;;  %955 = vmatpush.msra.mxu0 %v292_v3  ;;  %v271_v19 = vld [vmem:[%s1488_s14 + $0x180] sm:$0xff]  ;;  %v256_v25 = vld [vmem:[%s1488_s14 + $0x108] sm:$0xff]  ;;  %v225_v30 = vld [vmem:[%s1488_s14 + $0x10] sm:$0xff] }
  0x14   : > { %1374 = vmatpush.msra.mxu1 %v292_v3  ;;  %1375 = vmatpush.msra.mxu2 %v292_v3  ;;  %v304_v20 = vld [vmem:[%s1465_s29 + $0x40] sm:$0xff]  ;;  %v272_v26 = vld [vmem:[%s1488_s14 + $0x188] sm:$0xff]  ;;  %v241_v31 = vld [vmem:[%s1488_s14 + $0x90] sm:$0xff] }
  0x15   : > { %1376 = vmatpush.msra.mxu3 %v292_v3  ;;  %383 = vperm.xlu2 %1403, %v300_v5   ;;  %v305_v29 = vld [vmem:[%s1465_s29 + $0x48] sm:$0xff]  ;;  %v257_v32 = vld [vmem:[%s1488_s14 + $0x110] sm:$0xff]  ;;  %v308_v36 = vld [vmem:[%s1465_s29 + $0x60] sm:$0xff] }
  0x16   : > { %373 = vperm.xlu1 %1402, %v298_v6   ;;  %363 = vperm.xlu0 %1401, %v296_v7   ;;  %v273_v33 = vld [vmem:[%s1488_s14 + $0x190] sm:$0xff]  ;;  %v309_v35 = vld [vmem:[%s1465_s29 + $0x68] sm:$0xff]  ;;  %v226_v37 = vld [vmem:[%s1488_s14 + $0x18] sm:$0xff] }
  0x17   : > { %956 = vmatpush.msra.mxu0 %v291_v8  ;;  %1377 = vmatpush.msra.mxu1 %v291_v8  ;;  %v310_v34 = vld [vmem:[%s1465_s29 + $0x70] sm:$0xff]  ;;  %v242_v38 = vld [vmem:[%s1488_s14 + $0x98] sm:$0xff]  ;;  %v313_v41 = vld [vmem:[%s1465_s29 + $0x88] sm:$0xff] }
  0x18   : > { %1378 = vmatpush.msra.mxu2 %v291_v8  ;;  %1379 = vmatpush.msra.mxu3 %v291_v8  ;;  %v258_v39 = vld [vmem:[%s1488_s14 + $0x118] sm:$0xff]  ;;  %v312_v42 = vld [vmem:[%s1465_s29 + $0x80] sm:$0xff]  ;;  %v314_v50 = vld [vmem:[%s1465_s29 + $0x90] sm:$0xff] }
  0x19   : > { %957 = vmatpush.msra.mxu0 %v290_v9  ;;  %1380 = vmatpush.msra.mxu1 %v290_v9  ;;  %v274_v40 = vld [vmem:[%s1488_s14 + $0x198] sm:$0xff]  ;;  %v227_v44 = vld [vmem:[%s1488_s14 + $0x20] sm:$0xff]  ;;  %v228_v51 = vld [vmem:[%s1488_s14 + $0x28] sm:$0xff] }
  0x1a   : > { %1381 = vmatpush.msra.mxu2 %v290_v9  ;;  %1382 = vmatpush.msra.mxu3 %v290_v9  ;;  %v311_v43 = vld [vmem:[%s1465_s29 + $0x78] sm:$0xff]  ;;  %v243_v45 = vld [vmem:[%s1488_s14 + $0xa0] sm:$0xff]  ;;  %v244_v52 = vld [vmem:[%s1488_s14 + $0xa8] sm:$0xff] }
  0x1b   : > { %958 = vmatpush.msra.mxu0 %v289_v10  ;;  %1383 = vmatpush.msra.mxu1 %v289_v10  ;;  %v259_v46 = vld [vmem:[%s1488_s14 + $0x120] sm:$0xff]  ;;  %v315_v49 = vld [vmem:[%s1465_s29 + $0x98] sm:$0xff]  ;;  %v260_v53 = vld [vmem:[%s1488_s14 + $0x128] sm:$0xff] }
  0x1c   : > { %1384 = vmatpush.msra.mxu2 %v289_v10  ;;  %1385 = vmatpush.msra.mxu3 %v289_v10  ;;  %v275_v47 = vld [vmem:[%s1488_s14 + $0x1a0] sm:$0xff]  ;;  %v276_v54 = vld [vmem:[%s1488_s14 + $0x1a8] sm:$0xff]  ;;  %v319_v55 = vld [vmem:[%s1465_s29 + $0xb8] sm:$0xff] }
  0x1d   : > { %959 = vmatpush.msra.mxu0 %v288_v11  ;;  %1386 = vmatpush.msra.mxu1 %v288_v11  ;;  %v316_v48 = vld [vmem:[%s1465_s29 + $0xa0] sm:$0xff]  ;;  %v318_v56 = vld [vmem:[%s1465_s29 + $0xb0] sm:$0xff]  ;;  %v317_v57 = vld [vmem:[%s1465_s29 + $0xa8] sm:$0xff] }
  0x1e   : > { %1387 = vmatpush.msra.mxu2 %v288_v11  ;;  %1388 = vmatpush.msra.mxu3 %v288_v11  ;;  %v229_v58 = vld [vmem:[%s1488_s14 + $0x30] sm:$0xff]  ;;  %v321_v63 = vld [vmem:[%s1465_s29 + $0xc8] sm:$0xff]  ;;  %v320_v0 = vld [vmem:[%s1465_s29 + $0xc0] sm:$0xff] }
  0x1f   : > { %388 = vperm.xlu2 %1403, %v301_v12   ;;  %378 = vperm.xlu1 %1402, %v299_v13   ;;  %v245_v59 = vld [vmem:[%s1488_s14 + $0xb0] sm:$0xff]  ;;  %v230_v1 = vld [vmem:[%s1488_s14 + $0x38] sm:$0xff]  ;;  %v325_v5 = vld [vmem:[%s1465_s29 + $0xe8] sm:$0xff] }
  0x20   : > { %368 = vperm.xlu0 %1401, %v297_v14   ;;  %960 = vmatpush.msra.mxu0 %v287_v15  ;;  %v261_v60 = vld [vmem:[%s1488_s14 + $0x130] sm:$0xff]  ;;  %v246_v2 = vld [vmem:[%s1488_s14 + $0xb8] sm:$0xff]  ;;  %v324_v6 = vld [vmem:[%s1465_s29 + $0xe0] sm:$0xff] }
  0x21   : > { %1389 = vmatpush.msra.mxu1 %v287_v15  ;;  %1390 = vmatpush.msra.mxu2 %v287_v15  ;;  %v277_v61 = vld [vmem:[%s1488_s14 + $0x1b0] sm:$0xff]  ;;  %v262_v3 = vld [vmem:[%s1488_s14 + $0x138] sm:$0xff]  ;;  %v231_v8 = vld [vmem:[%s1488_s14 + $0x40] sm:$0xff] }
  0x22   : > { %1391 = vmatpush.msra.mxu3 %v287_v15  ;;  %1299 = vmatmul.msk.f32.vlgmr.msra.gmra.mxu0 %vm748_vm1, %v223_v16  ;;  %v322_v62 = vld [vmem:[%s1465_s29 + $0xd0] sm:$0xff]  ;;  %v278_v4 = vld [vmem:[%s1488_s14 + $0x1b8] sm:$0xff]  ;;  %v247_v9 = vld [vmem:[%s1488_s14 + $0xc0] sm:$0xff] }
  0x23   : > { %1315 = vmatmul.msk.f32.vlgmr.msra.gmra.mxu1 %vm748_vm1, %v239_v17  ;;  %1331 = vmatmul.msk.f32.vlgmr.msra.gmra.mxu2 %vm748_vm1, %v255_v18  ;;  %v323_v7 = vld [vmem:[%s1465_s29 + $0xd8] sm:$0xff]  ;;  %v263_v10 = vld [vmem:[%s1488_s14 + $0x140] sm:$0xff]  ;;  %v326_v14 = vld [vmem:[%s1465_s29 + $0xf0] sm:$0xff] }
  0x24   : > { %1347 = vmatmul.msk.f32.vlgmr.msra.gmra.mxu3 %vm748_vm1, %v271_v19  ;;  %v279_v11 = vld [vmem:[%s1488_s14 + $0x1c0] sm:$0xff]  ;;  %v327_v13 = vld [vmem:[%s1465_s29 + $0xf8] sm:$0xff]  ;;  %v232_v15 = vld [vmem:[%s1488_s14 + $0x48] sm:$0xff] }
  0x25   : > { %v328_v12 = vld [vmem:[%s1465_s29 + $0x100] sm:$0xff]  ;;  %v248_v16 = vld [vmem:[%s1488_s14 + $0xc8] sm:$0xff]  ;;  %v331_v19 = vld [vmem:[%s1465_s29 + $0x118] sm:$0xff] }
  0x26   : > { %v264_v17 = vld [vmem:[%s1488_s14 + $0x148] sm:$0xff] }
  0x27   : > { %403 = vperm.xlu2 %1403, %v304_v20   ;;  %398 = vperm.xlu1 %1402, %v303_v21   ;;  %v280_v18 = vld [vmem:[%s1488_s14 + $0x1c8] sm:$0xff]  ;;  %v330_v20 = vld [vmem:[%s1465_s29 + $0x110] sm:$0xff] }
  0x28   : > { %393 = vperm.xlu0 %1401, %v302_v22   ;;  %v329_v21 = vld [vmem:[%s1465_s29 + $0x108] sm:$0xff] }
  0x2a   : > { %1300 = vmatmul.msk.f32.gmra.mxu0 %vm748_vm1, %v224_v23  ;;  %v233_v23 = vld [vmem:[%s1488_s14 + $0x50] sm:$0xff] }
  0x2b   : > { %1316 = vmatmul.msk.f32.gmra.mxu1 %vm748_vm1, %v240_v24  ;;  %1332 = vmatmul.msk.f32.gmra.mxu2 %vm748_vm1, %v256_v25  ;;  %v249_v24 = vld [vmem:[%s1488_s14 + $0xd0] sm:$0xff] }
  0x2c   : > { %1348 = vmatmul.msk.f32.gmra.mxu3 %vm748_vm1, %v272_v26  ;;  %v265_v25 = vld [vmem:[%s1488_s14 + $0x150] sm:$0xff] }
  0x2d   : > { %v281_v26 = vld [vmem:[%s1488_s14 + $0x1d0] sm:$0xff] }
  0x2f   : > { %418 = vperm.xlu2 %1403, %v307_v27   ;;  %413 = vperm.xlu1 %1402, %v306_v28   ;;  %v334_v27 = vld [vmem:[%s1465_s29 + $0x130] sm:$0xff]  ;;  %v333_v28 = vld [vmem:[%s1465_s29 + $0x128] sm:$0xff] }
  0x30   : > { %408 = vperm.xlu0 %1401, %v305_v29   ;;  %v332_v29 = vld [vmem:[%s1465_s29 + $0x120] sm:$0xff] }
  0x32   : > { %1301 = vmatmul.msk.f32.gmra.mxu0 %vm748_vm1, %v225_v30  ;;  %v234_v30 = vld [vmem:[%s1488_s14 + $0x58] sm:$0xff] }
  0x33   : > { %1317 = vmatmul.msk.f32.gmra.mxu1 %vm748_vm1, %v241_v31  ;;  %1333 = vmatmul.msk.f32.gmra.mxu2 %vm748_vm1, %v257_v32  ;;  %v250_v31 = vld [vmem:[%s1488_s14 + $0xd8] sm:$0xff] }
  0x34   : > { %1349 = vmatmul.msk.f32.gmra.mxu3 %vm748_vm1, %v273_v33  ;;  %v266_v32 = vld [vmem:[%s1488_s14 + $0x158] sm:$0xff] }
  0x37   : > { %433 = vperm.xlu2 %1403, %v310_v34   ;;  %428 = vperm.xlu1 %1402, %v309_v35   ;;  %v282_v34 = vld [vmem:[%s1488_s14 + $0x1d8] sm:$0xff]  ;;  %v337_v35 = vld [vmem:[%s1465_s29 + $0x148] sm:$0xff] }
  0x38   : > { %423 = vperm.xlu0 %1401, %v308_v36   ;;  %v336_v36 = vld [vmem:[%s1465_s29 + $0x140] sm:$0xff] }
  0x3a   : > { %1302 = vmatmul.msk.f32.gmra.mxu0 %vm748_vm1, %v226_v37  ;;  %v335_v37 = vld [vmem:[%s1465_s29 + $0x138] sm:$0xff] }
  0x3b   : > { %1318 = vmatmul.msk.f32.gmra.mxu1 %vm748_vm1, %v242_v38  ;;  %1334 = vmatmul.msk.f32.gmra.mxu2 %vm748_vm1, %v258_v39  ;;  %v235_v38 = vld [vmem:[%s1488_s14 + $0x60] sm:$0xff] }
  0x3c   : > { %1350 = vmatmul.msk.f32.gmra.mxu3 %vm748_vm1, %v274_v40  ;;  %v251_v39 = vld [vmem:[%s1488_s14 + $0xe0] sm:$0xff] }
  0x3d   : > { %v267_v40 = vld [vmem:[%s1488_s14 + $0x160] sm:$0xff] }
  0x3f   : > { %448 = vperm.xlu2 %1403, %v313_v41   ;;  %443 = vperm.xlu1 %1402, %v312_v42   ;;  %v283_v42 = vld [vmem:[%s1488_s14 + $0x1e0] sm:$0xff] }
  0x40   : > { %438 = vperm.xlu0 %1401, %v311_v43   ;;  %v340_v43 = vld [vmem:[%s1465_s29 + $0x160] sm:$0xff] }
  0x42   : > { %1303 = vmatmul.msk.f32.gmra.mxu0 %vm748_vm1, %v227_v44  ;;  %v339_v44 = vld [vmem:[%s1465_s29 + $0x158] sm:$0xff] }
  0x43   : > { %1319 = vmatmul.msk.f32.gmra.mxu1 %vm748_vm1, %v243_v45  ;;  %1335 = vmatmul.msk.f32.gmra.mxu2 %vm748_vm1, %v259_v46  ;;  %v338_v45 = vld [vmem:[%s1465_s29 + $0x150] sm:$0xff]  ;;  %v236_v46 = vld [vmem:[%s1488_s14 + $0x68] sm:$0xff] }
  0x44   : > { %1351 = vmatmul.msk.f32.gmra.mxu3 %vm748_vm1, %v275_v47 }
  0x47   : > { %463 = vperm.xlu2 %1403, %v316_v48   ;;  %458 = vperm.xlu1 %1402, %v315_v49   ;;  %v252_v49 = vld [vmem:[%s1488_s14 + $0xe8] sm:$0xff] }
  0x48   : > { %453 = vperm.xlu0 %1401, %v314_v50   ;;  %v268_v50 = vld [vmem:[%s1488_s14 + $0x168] sm:$0xff] }
  0x4a   : > { %1304 = vmatmul.msk.f32.gmra.mxu0 %vm748_vm1, %v228_v51 }
  0x4b   : > { %1320 = vmatmul.msk.f32.gmra.mxu1 %vm748_vm1, %v244_v52  ;;  %1336 = vmatmul.msk.f32.gmra.mxu2 %vm748_vm1, %v260_v53  ;;  %v284_v52 = vld [vmem:[%s1488_s14 + $0x1e8] sm:$0xff]  ;;  %v343_v53 = vld [vmem:[%s1465_s29 + $0x178] sm:$0xff] }
  0x4c   : > { %1352 = vmatmul.msk.f32.gmra.mxu3 %vm748_vm1, %v276_v54  ;;  %v342_v54 = vld [vmem:[%s1465_s29 + $0x170] sm:$0xff] }
  0x4f   : > { %478 = vperm.xlu2 %1403, %v319_v55   ;;  %473 = vperm.xlu1 %1402, %v318_v56   ;;  %v341_v55 = vld [vmem:[%s1465_s29 + $0x168] sm:$0xff]  ;;  %v237_v56 = vld [vmem:[%s1488_s14 + $0x70] sm:$0xff] }
  0x50   : > { %468 = vperm.xlu0 %1401, %v317_v57   ;;  %v253_v57 = vld [vmem:[%s1488_s14 + $0xf0] sm:$0xff] }
  0x52   : > { %1305 = vmatmul.msk.f32.gmra.mxu0 %vm748_vm1, %v229_v58  ;;  %v269_v58 = vld [vmem:[%s1488_s14 + $0x170] sm:$0xff] }
  0x53   : > { %1321 = vmatmul.msk.f32.gmra.mxu1 %vm748_vm1, %v245_v59  ;;  %1337 = vmatmul.msk.f32.gmra.mxu2 %vm748_vm1, %v261_v60 }
  0x54   : > { %1353 = vmatmul.msk.f32.gmra.mxu3 %vm748_vm1, %v277_v61  ;;  %v285_v61 = vld [vmem:[%s1488_s14 + $0x1f0] sm:$0xff] }
  0x57   : > { %493 = vperm.xlu2 %1403, %v322_v62   ;;  %488 = vperm.xlu1 %1402, %v321_v63   ;;  %v346_v63 = vld [vmem:[%s1465_s29 + $0x190] sm:$0xff] }
  0x58   : > { %483 = vperm.xlu0 %1401, %v320_v0   ;;  %v345_v0 = vld [vmem:[%s1465_s29 + $0x188] sm:$0xff] }
  0x5a   : > { %1306 = vmatmul.msk.f32.gmra.mxu0 %vm748_vm1, %v230_v1  ;;  %v344_v1 = vld [vmem:[%s1465_s29 + $0x180] sm:$0xff] }
  0x5b   : > { %1322 = vmatmul.msk.f32.gmra.mxu1 %vm748_vm1, %v246_v2  ;;  %1338 = vmatmul.msk.f32.gmra.mxu2 %vm748_vm1, %v262_v3  ;;  %v238_v2 = vld [vmem:[%s1488_s14 + $0x78] sm:$0xff] }
  0x5c   : > { %1354 = vmatmul.msk.f32.gmra.mxu3 %vm748_vm1, %v278_v4  ;;  %v254_v3 = vld [vmem:[%s1488_s14 + $0xf8] sm:$0xff] }
  0x5d   : > { %v270_v4 = vld [vmem:[%s1488_s14 + $0x178] sm:$0xff] }
  0x5f   : > { %508 = vperm.xlu2 %1403, %v325_v5   ;;  %503 = vperm.xlu1 %1402, %v324_v6  }
  0x60   : > { %498 = vperm.xlu0 %1401, %v323_v7   ;;  %v286_v7 = vld [vmem:[%s1488_s14 + $0x1f8] sm:$0xff] }
  0x62   : > { %1307 = vmatmul.msk.f32.gmra.mxu0 %vm748_vm1, %v231_v8  ;;  %v1682_v8 = vld [vmem:[%s2009_s3] ss:$0 sm:$0xff] }
  0x63   : > { %1323 = vmatmul.msk.f32.gmra.mxu1 %vm748_vm1, %v247_v9  ;;  %1339 = vmatmul.msk.f32.gmra.mxu2 %vm748_vm1, %v263_v10  ;;  %v349_v10 = vld [vmem:[%s1465_s29 + $0x1a8] sm:$0xff] }
  0x64   : > { %1355 = vmatmul.msk.f32.gmra.mxu3 %vm748_vm1, %v279_v11  ;;  %v348_v11 = vld [vmem:[%s1465_s29 + $0x1a0] sm:$0xff] }
  0x67   : > { %523 = vperm.xlu2 %1403, %v328_v12   ;;  %518 = vperm.xlu1 %1402, %v327_v13   ;;  %v347_v12 = vld [vmem:[%s1465_s29 + $0x198] sm:$0xff] }
  0x68   : > { %513 = vperm.xlu0 %1401, %v326_v14  }
  0x6a   : > { %1308 = vmatmul.msk.f32.gmra.mxu0 %vm748_vm1, %v232_v15 }
  0x6b   : > { %1324 = vmatmul.msk.f32.gmra.mxu1 %vm748_vm1, %v248_v16  ;;  %1340 = vmatmul.msk.f32.gmra.mxu2 %vm748_vm1, %v264_v17 }
  0x6c   : > { %1356 = vmatmul.msk.f32.gmra.mxu3 %vm748_vm1, %v280_v18 }
  0x6f   : > { %538 = vperm.xlu2 %1403, %v331_v19   ;;  %533 = vperm.xlu1 %1402, %v330_v20   ;;  %v1604_v22 = vpop.permute.xlu2 %383  ;;  %v352_v20 = vld [vmem:[%s1465_s29 + $0x1c0] sm:$0xff] }
  0x70   : > { %528 = vperm.xlu0 %1401, %v329_v21   ;;  %v351_v21 = vld [vmem:[%s1465_s29 + $0x1b8] sm:$0xff] }
  0x72   : > { %1309 = vmatmul.msk.f32.gmra.mxu0 %vm748_vm1, %v233_v23  ;;  %v350_v23 = vld [vmem:[%s1465_s29 + $0x1b0] sm:$0xff] }
  0x73   : > { %1325 = vmatmul.msk.f32.gmra.mxu1 %vm748_vm1, %v249_v24  ;;  %1341 = vmatmul.msk.f32.gmra.mxu2 %vm748_vm1, %v265_v25 }
  0x74   : > { %1357 = vmatmul.msk.f32.gmra.mxu3 %vm748_vm1, %v281_v26 }
  0x77   : > { %553 = vperm.xlu2 %1403, %v334_v27   ;;  %548 = vperm.xlu1 %1402, %v333_v28  }
  0x78   : > { %543 = vperm.xlu0 %1401, %v332_v29  }
  0x79   : > { %v1620_v33 = vpop.permute.xlu2 %388 }
  0x7a   : > { %1310 = vmatmul.msk.f32.gmra.mxu0 %vm748_vm1, %v234_v30 }
  0x7b   : > { %1326 = vmatmul.msk.f32.gmra.mxu1 %vm748_vm1, %v250_v31  ;;  %1342 = vmatmul.msk.f32.gmra.mxu2 %vm748_vm1, %v266_v32 }
  0x7c   : > { %1358 = vmatmul.msk.f32.gmra.mxu3 %vm748_vm1, %v282_v34 }
  0x7f   : > { %568 = vperm.xlu2 %1403, %v337_v35   ;;  %563 = vperm.xlu1 %1402, %v336_v36   ;;  %v355_v36 = vld [vmem:[%s1465_s29 + $0x1d8] sm:$0xff] }
  0x80   : > { %558 = vperm.xlu0 %1401, %v335_v37   ;;  %v354_v37 = vld [vmem:[%s1465_s29 + $0x1d0] sm:$0xff] }
  0x81   : > { %v1633_v41 = vpop.permute.xlu2 %403 }
  0x82   : > { %1311 = vmatmul.msk.f32.gmra.mxu0 %vm748_vm1, %v235_v38  ;;  %v353_v38 = vld [vmem:[%s1465_s29 + $0x1c8] sm:$0xff] }
  0x83   : > { %1327 = vmatmul.msk.f32.gmra.mxu1 %vm748_vm1, %v251_v39  ;;  %1343 = vmatmul.msk.f32.gmra.mxu2 %vm748_vm1, %v267_v40 }
  0x84   : > { %1359 = vmatmul.msk.f32.gmra.mxu3 %vm748_vm1, %v283_v42 }
  0x87   : > { %583 = vperm.xlu2 %1403, %v340_v43   ;;  %578 = vperm.xlu1 %1402, %v339_v44  }
  0x88   : > { %573 = vperm.xlu0 %1401, %v338_v45   ;;  %v1644_v47 = vpop.permute.xlu1 %373  ;;  %v364_v48 = vpop.permute.xlu0 %363 }
  0x89   : > { %v1648_v51 = vpop.permute.xlu2 %418  ;;  %v684_v13 = vmul.f32 %v1682_v8, %v364_v48  ;;  %v686_v39 = vmul.f32 %v1682_v8, %v1644_v47 }
  0x8a   : > { %1312 = vmatmul.msk.f32.gmra.mxu0 %vm748_vm1, %v236_v46 }
  0x8b   : > { %1328 = vmatmul.msk.f32.gmra.mxu1 %vm748_vm1, %v252_v49  ;;  %1344 = vmatmul.msk.f32.gmra.mxu2 %vm748_vm1, %v268_v50 }
  0x8c   : > { %1360 = vmatmul.msk.f32.gmra.mxu3 %vm748_vm1, %v284_v52  ;;  %v358_v52 = vld [vmem:[%s1465_s29 + $0x1f0] sm:$0xff] }
  0x8f   : > { %598 = vperm.xlu2 %1403, %v343_v53   ;;  %593 = vperm.xlu1 %1402, %v342_v54   ;;  %v357_v53 = vld [vmem:[%s1465_s29 + $0x1e8] sm:$0xff]  ;;  %v356_v54 = vld [vmem:[%s1465_s29 + $0x1e0] sm:$0xff] }
  0x90   : > { %588 = vperm.xlu0 %1401, %v341_v55  }
  0x91   : > { %v1661_v59 = vpop.permute.xlu2 %433  ;;  %v1663_v60 = vpop.permute.xlu1 %378 }
  0x92   : > { %v369_v62 = vpop.permute.xlu0 %368  ;;  %1313 = vmatmul.msk.f32.gmra.mxu0 %vm748_vm1, %v237_v56  ;;  %v687_v55 = vmul.f32 %v1682_v8, %v1663_v60 }
  0x93   : > { %1329 = vmatmul.msk.f32.gmra.mxu1 %vm748_vm1, %v253_v57  ;;  %1345 = vmatmul.msk.f32.gmra.mxu2 %vm748_vm1, %v269_v58  ;;  %v685_v24 = vmul.f32 %v1682_v8, %v369_v62 }
  0x94   : > { %1361 = vmatmul.msk.f32.gmra.mxu3 %vm748_vm1, %v285_v61 }
  0x97   : > { %613 = vperm.xlu2 %1403, %v346_v63   ;;  %608 = vperm.xlu1 %1402, %v345_v0  }
  0x98   : > { %603 = vperm.xlu0 %1401, %v344_v1  }
  0x99   : > { %v449_v5 = vpop.permute.xlu2 %448  ;;  %v1676_v6 = vpop.permute.xlu1 %398 }
  0x9a   : > { %v1684_v9 = vpop.permute.xlu0 %393  ;;  %1314 = vmatmul.msk.f32.gmra.mxu0 %vm748_vm1, %v238_v2  ;;  %v701_v26 = vmul.f32 %v1682_v8, %v449_v5  ;;  %v359_v5 = vld [vmem:[%s1465_s29 + $0x1f8] sm:$0xff] }
  0x9b   : > { %1330 = vmatmul.msk.f32.gmra.mxu1 %vm748_vm1, %v254_v3  ;;  %1346 = vmatmul.msk.f32.gmra.mxu2 %vm748_vm1, %v270_v4 }
  0x9c   : > { %1362 = vmatmul.msk.f32.gmra.mxu3 %vm748_vm1, %v286_v7  ;;  %v688_v7 = vmul.f32 %v1682_v8, %v1604_v22 }
  0x9f   : > { %v962_v14 = vpop.f32.mrf.mxu0  ;;  %628 = vperm.xlu2 %1403, %v349_v10   ;;  %623 = vperm.xlu1 %1402, %v348_v11  }
  0xa0   : > { %v963_v15 = vadd.f32 %v962_v14, %v684_v13  ;;  %v1010_v16 = vpop.f32.mrf.mxu1  ;;  %618 = vperm.xlu0 %1401, %v347_v12  }
  0xa1   : > { %v1700_v17 = vpop.permute.xlu2 %463  ;;  %v1702_v18 = vpop.permute.xlu1 %413 }
  0xa2   : > { %1155 = vst.msk [vmem:[%s1698_s22] sm:$0xff] %vm1154_vm2, %v963_v15  ;;  %v1706_v19 = vpop.permute.xlu0 %408  ;;  %v704_v11 = vmul.f32 %v1682_v8, %v1700_v17 }
  0xa6   : > { %v1712_v25 = vpop.f32.mrf.mxu2 }
  0xa7   : > { %v1715_v27 = vpop.f32.mrf.mxu3  ;;  %v965_v28 = vpop.f32.mrf.mxu0  ;;  %643 = vperm.xlu2 %1403, %v352_v20   ;;  %638 = vperm.xlu1 %1402, %v351_v21  }
  0xa8   : > { %v966_v29 = vadd.f32 %v965_v28, %v685_v24  ;;  %v1013_v30 = vpop.f32.mrf.mxu1  ;;  %633 = vperm.xlu0 %1401, %v350_v23   ;;  %v689_v24 = vmul.f32 %v1682_v8, %v1620_v33 }
  0xa9   : > { %v1014_v31 = vadd.f32 %v1013_v30, %v701_v26  ;;  %v1717_v32 = vpop.permute.xlu2 %478  ;;  %v1719_v34 = vpop.permute.xlu1 %428 }
  0xaa   : > { %1156 = vst.msk [vmem:[%s1698_s22 + $0x8] sm:$0xff] %vm1154_vm2, %v966_v29  ;;  %v1723_v35 = vpop.permute.xlu0 %423 }
  0xab   : > { %1172 = vst.msk [vmem:[%s1698_s22 + $0x88] sm:$0xff] %vm1154_vm2, %v1014_v31 }
  0xae   : > { %v1732_v40 = vpop.f32.mrf.mxu2 }
  0xaf   : > { %v1734_v42 = vpop.f32.mrf.mxu3  ;;  %v968_v43 = vpop.f32.mrf.mxu0  ;;  %658 = vperm.xlu2 %1403, %v355_v36   ;;  %653 = vperm.xlu1 %1402, %v354_v37  }
  0xb0   : > { %v969_v44 = vadd.f32 %v968_v43, %v686_v39  ;;  %v1016_v45 = vpop.f32.mrf.mxu1  ;;  %648 = vperm.xlu0 %1401, %v353_v38  }
  0xb1   : > { %v1736_v46 = vpop.permute.xlu2 %493  ;;  %v444_v48 = vpop.permute.xlu1 %443 }
  0xb2   : > { %1157 = vst.msk [vmem:[%s1698_s22 + $0x10] sm:$0xff] %vm1154_vm2, %v969_v44  ;;  %v700_v47 = vmul.f32 %v1682_v8, %v444_v48  ;;  %v1741_v49 = vpop.permute.xlu0 %438  ;;  %v690_v44 = vmul.f32 %v1682_v8, %v1684_v9 }
  0xb4   : > { %v1011_v50 = vadd.f32 %v1010_v16, %v700_v47 }
  0xb6   : > { %1171 = vst.msk [vmem:[%s1698_s22 + $0x80] sm:$0xff] %vm1154_vm2, %v1011_v50  ;;  %v1750_v56 = vpop.f32.mrf.mxu2 }
  0xb7   : > { %v1752_v57 = vpop.f32.mrf.mxu3  ;;  %v971_v58 = vpop.f32.mrf.mxu0  ;;  %673 = vperm.xlu2 %1403, %v358_v52   ;;  %668 = vperm.xlu1 %1402, %v357_v53  }
  0xb8   : > { %v972_v61 = vadd.f32 %v971_v58, %v687_v55  ;;  %v1019_v62 = vpop.f32.mrf.mxu1  ;;  %663 = vperm.xlu0 %1401, %v356_v54  }
  0xb9   : > { %v1754_v63 = vpop.permute.xlu2 %508  ;;  %v459_v0 = vpop.permute.xlu1 %458 }
  0xba   : > { %1158 = vst.msk [vmem:[%s1698_s22 + $0x18] sm:$0xff] %vm1154_vm2, %v972_v61  ;;  %v703_v60 = vmul.f32 %v1682_v8, %v459_v0  ;;  %v454_v1 = vpop.permute.xlu0 %453 }
  0xbb   : > { %v702_v2 = vmul.f32 %v1682_v8, %v454_v1 }
  0xbc   : > { %v1020_v3 = vadd.f32 %v1019_v62, %v703_v60  ;;  %v691_v62 = vmul.f32 %v1682_v8, %v1676_v6  ;;  %v707_v60 = vmul.f32 %v1682_v8, %v1717_v32  ;;  %v692_v32 = vmul.f32 %v1682_v8, %v1633_v41 }
  0xbd   : > { %v1017_v4 = vadd.f32 %v1016_v45, %v702_v2 }
  0xbe   : > { %1174 = vst.msk [vmem:[%s1698_s22 + $0x98] sm:$0xff] %vm1154_vm2, %v1020_v3  ;;  %v1067_v10 = vpop.f32.mrf.mxu2 }
  0xbf   : > { %1173 = vst.msk [vmem:[%s1698_s22 + $0x90] sm:$0xff] %vm1154_vm2, %v1017_v4  ;;  %v1769_v12 = vpop.f32.mrf.mxu3  ;;  %v974_v13 = vpop.f32.mrf.mxu0 }
  0xc0   : > { %v975_v14 = vadd.f32 %v974_v13, %v688_v7  ;;  %v1022_v15 = vpop.f32.mrf.mxu1  ;;  %678 = vperm.xlu0 %1401, %v359_v5  }
  0xc1   : > { %v1023_v16 = vadd.f32 %v1022_v15, %v704_v11  ;;  %v524_v20 = vpop.permute.xlu2 %523  ;;  %v474_v21 = vpop.permute.xlu1 %473 }
  0xc2   : > { %1159 = vst.msk [vmem:[%s1698_s22 + $0x20] sm:$0xff] %vm1154_vm2, %v975_v14  ;;  %v716_v22 = vmul.f32 %v1682_v8, %v524_v20  ;;  %v469_v23 = vpop.permute.xlu0 %468  ;;  %v706_v48 = vmul.f32 %v1682_v8, %v474_v21 }
  0xc3   : > { %1175 = vst.msk [vmem:[%s1698_s22 + $0xa0] sm:$0xff] %vm1154_vm2, %v1023_v16  ;;  %v705_v28 = vmul.f32 %v1682_v8, %v469_v23 }
  0xc4   : > { %v1059_v17 = vadd.f32 %v1712_v25, %v716_v22 }
  0xc6   : > { %1187 = vst.msk [vmem:[%s1698_s22 + $0x100] sm:$0xff] %vm1154_vm2, %v1059_v17  ;;  %v1781_v26 = vpop.f32.mrf.mxu2 }
  0xc7   : > { %v1784_v29 = vpop.f32.mrf.mxu3  ;;  %v977_v30 = vpop.f32.mrf.mxu0 }
  0xc8   : > { %v978_v31 = vadd.f32 %v977_v30, %v689_v24  ;;  %v1025_v36 = vpop.f32.mrf.mxu1 }
  0xc9   : > { %v1026_v37 = vadd.f32 %v1025_v36, %v705_v28  ;;  %v539_v38 = vpop.permute.xlu2 %538  ;;  %v489_v39 = vpop.permute.xlu1 %488  ;;  %v693_v36 = vmul.f32 %v1682_v8, %v1706_v19 }
  0xca   : > { %1160 = vst.msk [vmem:[%s1698_s22 + $0x28] sm:$0xff] %vm1154_vm2, %v978_v31  ;;  %v719_v33 = vmul.f32 %v1682_v8, %v539_v38  ;;  %v484_v25 = vpop.permute.xlu0 %483  ;;  %v709_v38 = vmul.f32 %v1682_v8, %v489_v39 }
  0xcb   : > { %1176 = vst.msk [vmem:[%s1698_s22 + $0xa8] sm:$0xff] %vm1154_vm2, %v1026_v37  ;;  %v708_v14 = vmul.f32 %v1682_v8, %v484_v25 }
  0xcc   : > { %v1068_v43 = vadd.f32 %v1067_v10, %v719_v33 }
  0xce   : > { %1190 = vst.msk [vmem:[%s1698_s22 + $0x118] sm:$0xff] %vm1154_vm2, %v1068_v43  ;;  %v1073_v45 = vpop.f32.mrf.mxu2 }
  0xcf   : > { %v1796_v47 = vpop.f32.mrf.mxu3  ;;  %v980_v50 = vpop.f32.mrf.mxu0 }
  0xd0   : > { %v981_v52 = vadd.f32 %v980_v50, %v690_v44  ;;  %v1028_v53 = vpop.f32.mrf.mxu1 }
  0xd1   : > { %v1029_v54 = vadd.f32 %v1028_v53, %v706_v48  ;;  %v554_v55 = vpop.permute.xlu2 %553  ;;  %v1798_v58 = vpop.permute.xlu1 %503 }
  0xd2   : > { %1161 = vst.msk [vmem:[%s1698_s22 + $0x30] sm:$0xff] %vm1154_vm2, %v981_v52  ;;  %v1802_v61 = vpop.permute.xlu0 %498  ;;  %v722_v9 = vmul.f32 %v1682_v8, %v554_v55  ;;  %v694_v55 = vmul.f32 %v1682_v8, %v1702_v18 }
  0xd3   : > { %1177 = vst.msk [vmem:[%s1698_s22 + $0xb0] sm:$0xff] %vm1154_vm2, %v1029_v54 }
  0xd6   : > { %v1076_v0 = vpop.f32.mrf.mxu2 }
  0xd7   : > { %v1077_v1 = vadd.f32 %v1076_v0, %v722_v9  ;;  %v1811_v2 = vpop.f32.mrf.mxu3  ;;  %v983_v3 = vpop.f32.mrf.mxu0 }
  0xd8   : > { %v984_v4 = vadd.f32 %v983_v3, %v691_v62  ;;  %v1031_v5 = vpop.f32.mrf.mxu1  ;;  %v710_v62 = vmul.f32 %v1682_v8, %v1736_v46 }
  0xd9   : > { %1193 = vst.msk [vmem:[%s1698_s22 + $0x130] sm:$0xff] %vm1154_vm2, %v1077_v1  ;;  %v1032_v7 = vadd.f32 %v1031_v5, %v707_v60  ;;  %v569_v10 = vpop.permute.xlu2 %568  ;;  %v1815_v11 = vpop.permute.xlu1 %518 }
  0xda   : > { %1162 = vst.msk [vmem:[%s1698_s22 + $0x38] sm:$0xff] %vm1154_vm2, %v984_v4  ;;  %v1819_v6 = vpop.permute.xlu0 %513  ;;  %v725_v53 = vmul.f32 %v1682_v8, %v569_v10 }
  0xdb   : > { %1178 = vst.msk [vmem:[%s1698_s22 + $0xb8] sm:$0xff] %vm1154_vm2, %v1032_v7 }
  0xde   : > { %v1079_v13 = vpop.f32.mrf.mxu2 }
  0xdf   : > { %v1826_v15 = vpop.f32.mrf.mxu3  ;;  %v986_v16 = vpop.f32.mrf.mxu0 }
  0xe0   : > { %v987_v20 = vadd.f32 %v986_v16, %v692_v32  ;;  %v1034_v21 = vpop.f32.mrf.mxu1 }
  0xe1   : > { %v1035_v22 = vadd.f32 %v1034_v21, %v708_v14  ;;  %v1828_v23 = vpop.permute.xlu2 %583  ;;  %v534_v17 = vpop.permute.xlu1 %533 }
  0xe2   : > { %1163 = vst.msk [vmem:[%s1698_s22 + $0x40] sm:$0xff] %vm1154_vm2, %v987_v20  ;;  %v718_v24 = vmul.f32 %v1682_v8, %v534_v17  ;;  %v529_v28 = vpop.permute.xlu0 %528  ;;  %v695_v20 = vmul.f32 %v1682_v8, %v1648_v51 }
  0xe3   : > { %1179 = vst.msk [vmem:[%s1698_s22 + $0xc0] sm:$0xff] %vm1154_vm2, %v1035_v22  ;;  %v717_v41 = vmul.f32 %v1682_v8, %v529_v28  ;;  %v711_v22 = vmul.f32 %v1682_v8, %v1802_v61 }
  0xe4   : > { %v1065_v30 = vadd.f32 %v1750_v56, %v718_v24 }
  0xe5   : > { %v1062_v31 = vadd.f32 %v1732_v40, %v717_v41 }
  0xe6   : > { %1189 = vst.msk [vmem:[%s1698_s22 + $0x110] sm:$0xff] %vm1154_vm2, %v1065_v30  ;;  %v1082_v37 = vpop.f32.mrf.mxu2 }
  0xe7   : > { %1188 = vst.msk [vmem:[%s1698_s22 + $0x108] sm:$0xff] %vm1154_vm2, %v1062_v31  ;;  %v1845_v33 = vpop.f32.mrf.mxu3  ;;  %v989_v25 = vpop.f32.mrf.mxu0 }
  0xe8   : > { %v990_v43 = vadd.f32 %v989_v25, %v693_v36  ;;  %v1037_v44 = vpop.f32.mrf.mxu1  ;;  %v696_v25 = vmul.f32 %v1682_v8, %v1723_v35 }
  0xe9   : > { %v1038_v56 = vadd.f32 %v1037_v44, %v709_v38  ;;  %v1847_v40 = vpop.permute.xlu2 %598  ;;  %v549_v48 = vpop.permute.xlu1 %548  ;;  %v712_v44 = vmul.f32 %v1682_v8, %v1798_v58 }
  0xea   : > { %1164 = vst.msk [vmem:[%s1698_s22 + $0x48] sm:$0xff] %vm1154_vm2, %v990_v43  ;;  %v721_v19 = vmul.f32 %v1682_v8, %v549_v48  ;;  %v544_v50 = vpop.permute.xlu0 %543 }
  0xeb   : > { %1180 = vst.msk [vmem:[%s1698_s22 + $0xc8] sm:$0xff] %vm1154_vm2, %v1038_v56  ;;  %v720_v39 = vmul.f32 %v1682_v8, %v544_v50 }
  0xec   : > { %v1074_v52 = vadd.f32 %v1073_v45, %v721_v19 }
  0xed   : > { %v1071_v54 = vadd.f32 %v1781_v26, %v720_v39 }
  0xee   : > { %1192 = vst.msk [vmem:[%s1698_s22 + $0x128] sm:$0xff] %vm1154_vm2, %v1074_v52  ;;  %v1085_v9 = vpop.f32.mrf.mxu2 }
  0xef   : > { %1191 = vst.msk [vmem:[%s1698_s22 + $0x120] sm:$0xff] %vm1154_vm2, %v1071_v54  ;;  %v1086_v0 = vadd.f32 %v1085_v9, %v725_v53  ;;  %v1865_v60 = vpop.f32.mrf.mxu3  ;;  %v992_v45 = vpop.f32.mrf.mxu0  ;;  %v697_v9 = vmul.f32 %v1682_v8, %v1719_v34 }
  0xf0   : > { %v993_v1 = vadd.f32 %v992_v45, %v694_v55  ;;  %v1040_v3 = vpop.f32.mrf.mxu1  ;;  %v728_v55 = vmul.f32 %v1682_v8, %v1828_v23 }
  0xf1   : > { %1196 = vst.msk [vmem:[%s1698_s22 + $0x148] sm:$0xff] %vm1154_vm2, %v1086_v0  ;;  %v1041_v26 = vadd.f32 %v1040_v3, %v710_v62  ;;  %v614_v18 = vpop.permute.xlu2 %613  ;;  %v564_v4 = vpop.permute.xlu1 %563  ;;  %v713_v0 = vmul.f32 %v1682_v8, %v1754_v63 }
  0xf2   : > { %1165 = vst.msk [vmem:[%s1698_s22 + $0x50] sm:$0xff] %vm1154_vm2, %v993_v1  ;;  %v734_v46 = vmul.f32 %v1682_v8, %v614_v18  ;;  %v724_v5 = vmul.f32 %v1682_v8, %v564_v4  ;;  %v559_v7 = vpop.permute.xlu0 %558 }
  0xf3   : > { %1181 = vst.msk [vmem:[%s1698_s22 + $0xd0] sm:$0xff] %vm1154_vm2, %v1041_v26  ;;  %v723_v10 = vmul.f32 %v1682_v8, %v559_v7 }
  0xf4   : > { %v1113_v32 = vadd.f32 %v1752_v57, %v734_v46  ;;  %v1083_v14 = vadd.f32 %v1082_v37, %v724_v5 }
  0xf5   : > { %v1080_v16 = vadd.f32 %v1079_v13, %v723_v10 }
  0xf6   : > { %1205 = vst.msk [vmem:[%s1698_s22 + $0x190] sm:$0xff] %vm1154_vm2, %v1113_v32  ;;  %v1088_v21 = vpop.f32.mrf.mxu2 }
  0xf7   : > { %1195 = vst.msk [vmem:[%s1698_s22 + $0x140] sm:$0xff] %vm1154_vm2, %v1083_v14  ;;  %v1885_v17 = vpop.f32.mrf.mxu3  ;;  %v995_v24 = vpop.f32.mrf.mxu0 }
  0xf8   : > { %1194 = vst.msk [vmem:[%s1698_s22 + $0x138] sm:$0xff] %vm1154_vm2, %v1080_v16  ;;  %v996_v57 = vadd.f32 %v995_v24, %v695_v20  ;;  %v1043_v13 = vpop.f32.mrf.mxu1  ;;  %v698_v16 = vmul.f32 %v1682_v8, %v1661_v59 }
  0xf9   : > { %v1044_v28 = vadd.f32 %v1043_v13, %v711_v22  ;;  %v629_v51 = vpop.permute.xlu2 %628  ;;  %v579_v41 = vpop.permute.xlu1 %578 }
  0xfa   : > { %1166 = vst.msk [vmem:[%s1698_s22 + $0x58] sm:$0xff] %vm1154_vm2, %v996_v57  ;;  %v737_v30 = vmul.f32 %v1682_v8, %v629_v51  ;;  %v574_v31 = vpop.permute.xlu0 %573  ;;  %v727_v61 = vmul.f32 %v1682_v8, %v579_v41 }
  0xfb   : > { %1182 = vst.msk [vmem:[%s1698_s22 + $0xd8] sm:$0xff] %vm1154_vm2, %v1044_v28  ;;  %v726_v36 = vmul.f32 %v1682_v8, %v574_v31 }
  0xfc   : > { %v1122_v37 = vadd.f32 %v1796_v47, %v737_v30 }
  0xfd   : > { %v1089_v38 = vadd.f32 %v1088_v21, %v726_v36  ;;  %v714_v21 = vmul.f32 %v1682_v8, %v1819_v6 }
  0xfe   : > { %1208 = vst.msk [vmem:[%s1698_s22 + $0x1a8] sm:$0xff] %vm1154_vm2, %v1122_v37  ;;  %v1091_v43 = vpop.f32.mrf.mxu2  ;;  %v699_v37 = vmul.f32 %v1682_v8, %v1741_v49 }
  0xff   : > { %1197 = vst.msk [vmem:[%s1698_s22 + $0x150] sm:$0xff] %vm1154_vm2, %v1089_v38  ;;  %v1092_v56 = vadd.f32 %v1091_v43, %v727_v61  ;;  %v1139_v48 = vpop.f32.mrf.mxu3  ;;  %v998_v19 = vpop.f32.mrf.mxu0 }
 0x100   : > { %v999_v50 = vadd.f32 %v998_v19, %v696_v25  ;;  %v1046_v47 = vpop.f32.mrf.mxu1  ;;  %v715_v25 = vmul.f32 %v1682_v8, %v1815_v11 }
 0x101   : > { %1198 = vst.msk [vmem:[%s1698_s22 + $0x158] sm:$0xff] %vm1154_vm2, %v1092_v56  ;;  %v1047_v39 = vadd.f32 %v1046_v47, %v712_v44  ;;  %v644_v52 = vpop.permute.xlu2 %643  ;;  %v594_v35 = vpop.permute.xlu1 %593 }
 0x102   : > { %1167 = vst.msk [vmem:[%s1698_s22 + $0x60] sm:$0xff] %vm1154_vm2, %v999_v50  ;;  %v740_v53 = vmul.f32 %v1682_v8, %v644_v52  ;;  %v589_v54 = vpop.permute.xlu0 %588  ;;  %v730_v61 = vmul.f32 %v1682_v8, %v594_v35  ;;  %v731_v52 = vmul.f32 %v1682_v8, %v1847_v40 }
 0x103   : > { %1183 = vst.msk [vmem:[%s1698_s22 + $0xe0] sm:$0xff] %vm1154_vm2, %v1047_v39  ;;  %v729_v32 = vmul.f32 %v1682_v8, %v589_v54 }
 0x104   : > { %v1131_v58 = vadd.f32 %v1845_v33, %v740_v53 }
 0x106   : > { %1211 = vst.msk [vmem:[%s1698_s22 + $0x1c0] sm:$0xff] %vm1154_vm2, %v1131_v58  ;;  %v1094_v62 = vpop.f32.mrf.mxu2 }
 0x107   : > { %v1095_v45 = vadd.f32 %v1094_v62, %v728_v55  ;;  %v1921_v1 = vpop.f32.mrf.mxu3  ;;  %v1001_v3 = vpop.f32.mrf.mxu0 }
 0x108   : > { %v1002_v26 = vadd.f32 %v1001_v3, %v697_v9  ;;  %v1049_v18 = vpop.f32.mrf.mxu1 }
 0x109   : > { %1199 = vst.msk [vmem:[%s1698_s22 + $0x160] sm:$0xff] %vm1154_vm2, %v1095_v45  ;;  %v1050_v23 = vadd.f32 %v1049_v18, %v713_v0  ;;  %v659_v33 = vpop.permute.xlu2 %658  ;;  %v609_v34 = vpop.permute.xlu1 %608 }
 0x10a   : > { %1168 = vst.msk [vmem:[%s1698_s22 + $0x68] sm:$0xff] %vm1154_vm2, %v1002_v26  ;;  %v743_v4 = vmul.f32 %v1682_v8, %v659_v33  ;;  %v733_v46 = vmul.f32 %v1682_v8, %v609_v34  ;;  %v604_v63 = vpop.permute.xlu0 %603 }
 0x10b   : > { %1184 = vst.msk [vmem:[%s1698_s22 + $0xe8] sm:$0xff] %vm1154_vm2, %v1050_v23  ;;  %v732_v5 = vmul.f32 %v1682_v8, %v604_v63 }
 0x10c   : > { %v1140_v7 = vadd.f32 %v1139_v48, %v743_v4  ;;  %v1110_v10 = vadd.f32 %v1734_v42, %v733_v46 }
 0x10d   : > { %v1107_v14 = vadd.f32 %v1715_v27, %v732_v5 }
 0x10e   : > { %1214 = vst.msk [vmem:[%s1698_s22 + $0x1d8] sm:$0xff] %vm1154_vm2, %v1140_v7  ;;  %v1097_v20 = vpop.f32.mrf.mxu2 }
 0x10f   : > { %1204 = vst.msk [vmem:[%s1698_s22 + $0x188] sm:$0xff] %vm1154_vm2, %v1110_v10  ;;  %v1098_v22 = vadd.f32 %v1097_v20, %v729_v32  ;;  %v1145_v24 = vpop.f32.mrf.mxu3  ;;  %v1004_v42 = vpop.f32.mrf.mxu0 }
 0x110   : > { %1203 = vst.msk [vmem:[%s1698_s22 + $0x180] sm:$0xff] %vm1154_vm2, %v1107_v14  ;;  %v1005_v57 = vadd.f32 %v1004_v42, %v698_v16  ;;  %v1052_v27 = vpop.f32.mrf.mxu1 }
 0x111   : > { %1200 = vst.msk [vmem:[%s1698_s22 + $0x168] sm:$0xff] %vm1154_vm2, %v1098_v22  ;;  %v1053_v59 = vadd.f32 %v1052_v27, %v714_v21  ;;  %v674_v13 = vpop.permute.xlu2 %673  ;;  %v624_v28 = vpop.permute.xlu1 %623 }
 0x112   : > { %1169 = vst.msk [vmem:[%s1698_s22 + $0x70] sm:$0xff] %vm1154_vm2, %v1005_v57  ;;  %v736_v6 = vmul.f32 %v1682_v8, %v624_v28  ;;  %v619_v51 = vpop.permute.xlu0 %618  ;;  %v746_v30 = vmul.f32 %v1682_v8, %v674_v13 }
 0x113   : > { %1185 = vst.msk [vmem:[%s1698_s22 + $0xf0] sm:$0xff] %vm1154_vm2, %v1053_v59  ;;  %v735_v41 = vmul.f32 %v1682_v8, %v619_v51 }
 0x114   : > { %v1119_v31 = vadd.f32 %v1784_v29, %v736_v6 }
 0x115   : > { %v1116_v36 = vadd.f32 %v1769_v12, %v735_v41 }
 0x116   : > { %1207 = vst.msk [vmem:[%s1698_s22 + $0x1a0] sm:$0xff] %vm1154_vm2, %v1119_v31  ;;  %v1100_v38 = vpop.f32.mrf.mxu2 }
 0x117   : > { %1206 = vst.msk [vmem:[%s1698_s22 + $0x198] sm:$0xff] %vm1154_vm2, %v1116_v36  ;;  %v1101_v43 = vadd.f32 %v1100_v38, %v730_v61  ;;  %v1148_v29 = vpop.f32.mrf.mxu3  ;;  %v1007_v44 = vpop.f32.mrf.mxu0 }
 0x118   : > { %v1149_v56 = vadd.f32 %v1148_v29, %v746_v30  ;;  %v1008_v48 = vadd.f32 %v1007_v44, %v699_v37  ;;  %v1055_v12 = vpop.f32.mrf.mxu1 }
 0x119   : > { %1201 = vst.msk [vmem:[%s1698_s22 + $0x170] sm:$0xff] %vm1154_vm2, %v1101_v43  ;;  %v1056_v49 = vadd.f32 %v1055_v12, %v715_v25  ;;  %v639_v19 = vpop.permute.xlu1 %638 }
 0x11a   : > { %1217 = vst.msk [vmem:[%s1698_s22 + $0x1f0] sm:$0xff] %vm1154_vm2, %v1149_v56  ;;  %v739_v11 = vmul.f32 %v1682_v8, %v639_v19  ;;  %v634_v50 = vpop.permute.xlu0 %633 }
 0x11b   : > { %1170 = vst.msk [vmem:[%s1698_s22 + $0x78] sm:$0xff] %vm1154_vm2, %v1008_v48  ;;  %v738_v47 = vmul.f32 %v1682_v8, %v634_v50 }
 0x11c   : > { %1186 = vst.msk [vmem:[%s1698_s22 + $0xf8] sm:$0xff] %vm1154_vm2, %v1056_v49  ;;  %v1128_v39 = vadd.f32 %v1826_v15, %v739_v11 }
 0x11d   : > { %v1125_v35 = vadd.f32 %v1811_v2, %v738_v47 }
 0x11e   : > { %1210 = vst.msk [vmem:[%s1698_s22 + $0x1b8] sm:$0xff] %vm1154_vm2, %v1128_v39  ;;  %v1103_v53 = vpop.f32.mrf.mxu2 }
 0x11f   : > { %1209 = vst.msk [vmem:[%s1698_s22 + $0x1b0] sm:$0xff] %vm1154_vm2, %v1125_v35  ;;  %v1104_v54 = vadd.f32 %v1103_v53, %v731_v52  ;;  %v1151_v23 = vpop.f32.mrf.mxu3 }
 0x121   : > { %1202 = vst.msk [vmem:[%s1698_s22 + $0x178] sm:$0xff] %vm1154_vm2, %v1104_v54  ;;  %v654_v58 = vpop.permute.xlu1 %653 }
 0x122   : > { %v742_v55 = vmul.f32 %v1682_v8, %v654_v58  ;;  %v649_v9 = vpop.permute.xlu0 %648 }
 0x123   : > { %v741_v15 = vmul.f32 %v1682_v8, %v649_v9 }
 0x124   : > { %v1137_v40 = vadd.f32 %v1885_v17, %v742_v55 }
 0x125   : > { %v1134_v2 = vadd.f32 %v1865_v60, %v741_v15 }
 0x126   : > { %1213 = vst.msk [vmem:[%s1698_s22 + $0x1d0] sm:$0xff] %vm1154_vm2, %v1137_v40 }
 0x127   : > { %1212 = vst.msk [vmem:[%s1698_s22 + $0x1c8] sm:$0xff] %vm1154_vm2, %v1134_v2 }
 0x129   : > { %v669_v62 = vpop.permute.xlu1 %668 }
 0x12a   : > { %v745_v0 = vmul.f32 %v1682_v8, %v669_v62  ;;  %v664_v45 = vpop.permute.xlu0 %663 }
 0x12b   : > { %v744_v3 = vmul.f32 %v1682_v8, %v664_v45 }
 0x12c   : > { %v1146_v26 = vadd.f32 %v1145_v24, %v745_v0 }
 0x12d   : > { %v1143_v18 = vadd.f32 %v1921_v1, %v744_v3 }
 0x12e   : > { %1216 = vst.msk [vmem:[%s1698_s22 + $0x1e8] sm:$0xff] %vm1154_vm2, %v1146_v26 }
 0x12f   : > { %1215 = vst.msk [vmem:[%s1698_s22 + $0x1e0] sm:$0xff] %vm1154_vm2, %v1143_v18 }
 0x132   : > { %v679_v17 = vpop.permute.xlu0 %678 }
 0x133   : > { %v747_v60 = vmul.f32 %v1682_v8, %v679_v17 }
 0x135   : > { %v1152_v33 = vadd.f32 %v1151_v23, %v747_v60 }
 0x137   : > { %1218 = vst.msk [vmem:[%s1698_s22 + $0x1f8] sm:$0xff] %vm1154_vm2, %v1152_v33 }
 0x138 PF: > { %s14_s15 = sadd.s32 1, %s1411_s15  }
 0x139   : > { %p11_p4 = scmp.ge.s32.totalorder %s14_s15, 4  }
 0x13b   :  { %13 = sbr.rel (!%p11_p4) target bundleno = 1 (0x1), region = 69 }

// kernel: _device_forward.13
= control target key start
LH: loop header
LB: loop body
LE: loop exit
PB: predicated region body
PF: predicated region fallthrough
CT: control target
= control target key end

     0   :  { %vm292_vm0 = vcmask 261120   ;;  %vm649_vm1 = vcmask 254976   ;;  %s1460_s1 = inlined_call_operand.vmem [shape: f32[1568,32], index: 1, kind: input, shape index: {}]   ;;  %s1461_s0 = inlined_call_operand.vmem [shape: f32[18,1568], index: 0, kind: input, shape index: {}]   ;;  %s1462_s2 = inlined_call_operand.vmem [shape: f32[1,32], index: 2, kind: input, shape index: {}]   ;;  %s1463_s3 = inlined_call_operand.vmem [shape: f32[18,32], index: 3, kind: output, shape index: {}]  }
   0x1   :  { %v107_v0 = vld [vmem:[%s1460_s1 + $0x78] sm:$0xff]  ;;  %v106_v3 = vld [vmem:[%s1460_s1 + $0x70] sm:$0xff]  ;;  %v105_v7 = vld [vmem:[%s1460_s1 + $0x68] sm:$0xff] }
   0x2   :  { %v123_v1 = vld [vmem:[%s1460_s1 + $0xf8] sm:$0xff]  ;;  %302 = vmatpush.msra.mxu0 %v107_v0  ;;  %v122_v4 = vld [vmem:[%s1460_s1 + $0xf0] sm:$0xff]  ;;  %v121_v8 = vld [vmem:[%s1460_s1 + $0xe8] sm:$0xff] }
   0x3   :  { %v139_v2 = vld [vmem:[%s1460_s1 + $0x178] sm:$0xff]  ;;  %328 = vmatpush.msra.mxu1 %v123_v1  ;;  %v138_v5 = vld [vmem:[%s1460_s1 + $0x170] sm:$0xff]  ;;  %v137_v9 = vld [vmem:[%s1460_s1 + $0x168] sm:$0xff] }
   0x4   :  { %354 = vmatpush.msra.mxu2 %v139_v2  ;;  %v155_v6 = vld [vmem:[%s1460_s1 + $0x1f8] sm:$0xff]  ;;  %303 = vmatpush.msra.mxu0 %v106_v3  ;;  %v154_v10 = vld [vmem:[%s1460_s1 + $0x1f0] sm:$0xff]  ;;  %v104_v11 = vld [vmem:[%s1460_s1 + $0x60] sm:$0xff] }
   0x5   :  { %329 = vmatpush.msra.mxu1 %v122_v4  ;;  %380 = vmatpush.msra.mxu3 %v155_v6  ;;  %v120_v12 = vld [vmem:[%s1460_s1 + $0xe0] sm:$0xff]  ;;  %v153_v14 = vld [vmem:[%s1460_s1 + $0x1e8] sm:$0xff]  ;;  %v103_v15 = vld [vmem:[%s1460_s1 + $0x58] sm:$0xff] }
   0x6   :  { %355 = vmatpush.msra.mxu2 %v138_v5  ;;  %304 = vmatpush.msra.mxu0 %v105_v7  ;;  %v136_v13 = vld [vmem:[%s1460_s1 + $0x160] sm:$0xff]  ;;  %v119_v16 = vld [vmem:[%s1460_s1 + $0xd8] sm:$0xff]  ;;  %v102_v19 = vld [vmem:[%s1460_s1 + $0x50] sm:$0xff] }
   0x7   :  { %330 = vmatpush.msra.mxu1 %v121_v8  ;;  %381 = vmatpush.msra.mxu3 %v154_v10  ;;  %v135_v17 = vld [vmem:[%s1460_s1 + $0x158] sm:$0xff]  ;;  %v152_v18 = vld [vmem:[%s1460_s1 + $0x1e0] sm:$0xff]  ;;  %v118_v20 = vld [vmem:[%s1460_s1 + $0xd0] sm:$0xff] }
   0x8   :  { %356 = vmatpush.msra.mxu2 %v137_v9  ;;  %305 = vmatpush.msra.mxu0 %v104_v11  ;;  %v134_v21 = vld [vmem:[%s1460_s1 + $0x150] sm:$0xff]  ;;  %v151_v22 = vld [vmem:[%s1460_s1 + $0x1d8] sm:$0xff]  ;;  %v101_v23 = vld [vmem:[%s1460_s1 + $0x48] sm:$0xff] }
   0x9   :  { %331 = vmatpush.msra.mxu1 %v120_v12  ;;  %382 = vmatpush.msra.mxu3 %v153_v14  ;;  %v117_v24 = vld [vmem:[%s1460_s1 + $0xc8] sm:$0xff]  ;;  %v150_v26 = vld [vmem:[%s1460_s1 + $0x1d0] sm:$0xff]  ;;  %v100_v27 = vld [vmem:[%s1460_s1 + $0x40] sm:$0xff] }
   0xa   :  { %357 = vmatpush.msra.mxu2 %v136_v13  ;;  %306 = vmatpush.msra.mxu0 %v103_v15  ;;  %v133_v25 = vld [vmem:[%s1460_s1 + $0x148] sm:$0xff]  ;;  %v116_v28 = vld [vmem:[%s1460_s1 + $0xc0] sm:$0xff]  ;;  %v99_v31 = vld [vmem:[%s1460_s1 + $0x38] sm:$0xff] }
   0xb   :  { %332 = vmatpush.msra.mxu1 %v119_v16  ;;  %383 = vmatpush.msra.mxu3 %v152_v18  ;;  %v132_v29 = vld [vmem:[%s1460_s1 + $0x140] sm:$0xff]  ;;  %v149_v30 = vld [vmem:[%s1460_s1 + $0x1c8] sm:$0xff]  ;;  %v115_v32 = vld [vmem:[%s1460_s1 + $0xb8] sm:$0xff] }
   0xc   :  { %358 = vmatpush.msra.mxu2 %v135_v17  ;;  %307 = vmatpush.msra.mxu0 %v102_v19  ;;  %v131_v33 = vld [vmem:[%s1460_s1 + $0x138] sm:$0xff]  ;;  %v148_v34 = vld [vmem:[%s1460_s1 + $0x1c0] sm:$0xff]  ;;  %v98_v35 = vld [vmem:[%s1460_s1 + $0x30] sm:$0xff] }
   0xd   :  { %333 = vmatpush.msra.mxu1 %v118_v20  ;;  %384 = vmatpush.msra.mxu3 %v151_v22  ;;  %v114_v36 = vld [vmem:[%s1460_s1 + $0xb0] sm:$0xff]  ;;  %v147_v38 = vld [vmem:[%s1460_s1 + $0x1b8] sm:$0xff]  ;;  %v97_v39 = vld [vmem:[%s1460_s1 + $0x28] sm:$0xff] }
   0xe   :  { %359 = vmatpush.msra.mxu2 %v134_v21  ;;  %308 = vmatpush.msra.mxu0 %v101_v23  ;;  %v130_v37 = vld [vmem:[%s1460_s1 + $0x130] sm:$0xff]  ;;  %v113_v40 = vld [vmem:[%s1460_s1 + $0xa8] sm:$0xff]  ;;  %v96_v43 = vld [vmem:[%s1460_s1 + $0x20] sm:$0xff] }
   0xf   :  { %334 = vmatpush.msra.mxu1 %v117_v24  ;;  %385 = vmatpush.msra.mxu3 %v150_v26  ;;  %v129_v41 = vld [vmem:[%s1460_s1 + $0x128] sm:$0xff]  ;;  %v146_v42 = vld [vmem:[%s1460_s1 + $0x1b0] sm:$0xff]  ;;  %v112_v44 = vld [vmem:[%s1460_s1 + $0xa0] sm:$0xff] }
  0x10   :  { %360 = vmatpush.msra.mxu2 %v133_v25  ;;  %309 = vmatpush.msra.mxu0 %v100_v27  ;;  %v128_v45 = vld [vmem:[%s1460_s1 + $0x120] sm:$0xff]  ;;  %v145_v46 = vld [vmem:[%s1460_s1 + $0x1a8] sm:$0xff]  ;;  %v95_v47 = vld [vmem:[%s1460_s1 + $0x18] sm:$0xff] }
  0x11   :  { %335 = vmatpush.msra.mxu1 %v116_v28  ;;  %386 = vmatpush.msra.mxu3 %v149_v30  ;;  %v111_v48 = vld [vmem:[%s1460_s1 + $0x98] sm:$0xff]  ;;  %v144_v50 = vld [vmem:[%s1460_s1 + $0x1a0] sm:$0xff]  ;;  %v94_v51 = vld [vmem:[%s1460_s1 + $0x10] sm:$0xff] }
  0x12   :  { %361 = vmatpush.msra.mxu2 %v132_v29  ;;  %310 = vmatpush.msra.mxu0 %v99_v31  ;;  %v127_v49 = vld [vmem:[%s1460_s1 + $0x118] sm:$0xff]  ;;  %v110_v52 = vld [vmem:[%s1460_s1 + $0x90] sm:$0xff]  ;;  %v93_v55 = vld [vmem:[%s1460_s1 + $0x8] sm:$0xff] }
  0x13   :  { %336 = vmatpush.msra.mxu1 %v115_v32  ;;  %387 = vmatpush.msra.mxu3 %v148_v34  ;;  %v126_v53 = vld [vmem:[%s1460_s1 + $0x110] sm:$0xff]  ;;  %v143_v54 = vld [vmem:[%s1460_s1 + $0x198] sm:$0xff]  ;;  %v109_v56 = vld [vmem:[%s1460_s1 + $0x88] sm:$0xff] }
  0x14   :  { %362 = vmatpush.msra.mxu2 %v131_v33  ;;  %311 = vmatpush.msra.mxu0 %v98_v35  ;;  %v125_v57 = vld [vmem:[%s1460_s1 + $0x108] sm:$0xff]  ;;  %v142_v58 = vld [vmem:[%s1460_s1 + $0x190] sm:$0xff]  ;;  %v92_v59 = vld [vmem:[%s1460_s1] sm:$0xff] }
  0x15   :  { %337 = vmatpush.msra.mxu1 %v114_v36  ;;  %388 = vmatpush.msra.mxu3 %v147_v38  ;;  %v108_v60 = vld [vmem:[%s1460_s1 + $0x80] sm:$0xff]  ;;  %v141_v62 = vld [vmem:[%s1460_s1 + $0x188] sm:$0xff]  ;;  %v171_v63 = vld [vmem:[%s1460_s1 + $0x278] sm:$0xff] }
  0x16   :  { %363 = vmatpush.msra.mxu2 %v130_v37  ;;  %312 = vmatpush.msra.mxu0 %v97_v39  ;;  %v124_v61 = vld [vmem:[%s1460_s1 + $0x100] sm:$0xff]  ;;  %v187_v0 = vld [vmem:[%s1460_s1 + $0x2f8] sm:$0xff]  ;;  %v170_v3 = vld [vmem:[%s1460_s1 + $0x270] sm:$0xff] }
  0x17   :  { %338 = vmatpush.msra.mxu1 %v113_v40  ;;  %389 = vmatpush.msra.mxu3 %v146_v42  ;;  %v203_v1 = vld [vmem:[%s1460_s1 + $0x378] sm:$0xff]  ;;  %v140_v2 = vld [vmem:[%s1460_s1 + $0x180] sm:$0xff]  ;;  %v186_v4 = vld [vmem:[%s1460_s1 + $0x2f0] sm:$0xff] }
  0x18   :  { %364 = vmatpush.msra.mxu2 %v129_v41  ;;  %313 = vmatpush.msra.mxu0 %v96_v43  ;;  %v202_v5 = vld [vmem:[%s1460_s1 + $0x370] sm:$0xff]  ;;  %v219_v6 = vld [vmem:[%s1460_s1 + $0x3f8] sm:$0xff]  ;;  %v169_v7 = vld [vmem:[%s1460_s1 + $0x268] sm:$0xff] }
  0x19   :  { %339 = vmatpush.msra.mxu1 %v112_v44  ;;  %390 = vmatpush.msra.mxu3 %v145_v46  ;;  %v185_v8 = vld [vmem:[%s1460_s1 + $0x2e8] sm:$0xff]  ;;  %v14_v9 = vld [vmem:[%s1461_s0] sm:$0xff]  ;;  %v16_v10 = vld [vmem:[%s1461_s0 + $0x10] sm:$0xff] }
  0x1a   :  { %365 = vmatpush.msra.mxu2 %v128_v45  ;;  %314 = vmatpush.msra.mxu0 %v95_v47  ;;  %v201_v11 = vld [vmem:[%s1460_s1 + $0x368] sm:$0xff]  ;;  %v218_v12 = vld [vmem:[%s1460_s1 + $0x3f0] sm:$0xff]  ;;  %v168_v13 = vld [vmem:[%s1460_s1 + $0x260] sm:$0xff]  ;;  %v53_v17 = vmax.f32 %v14_v9, 0.0  ;;  %v55_v18 = vmax.f32 %v16_v10, 0.0 }
  0x1b   :  { %340 = vmatpush.msra.mxu1 %v111_v48  ;;  %391 = vmatpush.msra.mxu3 %v144_v50  ;;  %v184_v14 = vld [vmem:[%s1460_s1 + $0x2e0] sm:$0xff]  ;;  %v217_v16 = vld [vmem:[%s1460_s1 + $0x3e8] sm:$0xff]  ;;  %v17_v20 = vld [vmem:[%s1461_s0 + $0x18] sm:$0xff] }
  0x1c   :  { %366 = vmatpush.msra.mxu2 %v127_v49  ;;  %315 = vmatpush.msra.mxu0 %v94_v51  ;;  %v200_v15 = vld [vmem:[%s1460_s1 + $0x360] sm:$0xff]  ;;  %v15_v19 = vld [vmem:[%s1461_s0 + $0x8] sm:$0xff]  ;;  %v167_v21 = vld [vmem:[%s1460_s1 + $0x258] sm:$0xff]  ;;  %v56_v26 = vmax.f32 %v17_v20, 0.0 }
  0x1d   :  { %341 = vmatpush.msra.mxu1 %v110_v52  ;;  %392 = vmatpush.msra.mxu3 %v143_v54  ;;  %v183_v22 = vld [vmem:[%s1460_s1 + $0x2d8] sm:$0xff]  ;;  %v216_v24 = vld [vmem:[%s1460_s1 + $0x3e0] sm:$0xff]  ;;  %v54_v25 = vmax.f32 %v15_v19, 0.0  ;;  %v166_v27 = vld [vmem:[%s1460_s1 + $0x250] sm:$0xff] }
  0x1e   :  { %367 = vmatpush.msra.mxu2 %v126_v53  ;;  %316 = vmatpush.msra.mxu0 %v93_v55  ;;  %v199_v23 = vld [vmem:[%s1460_s1 + $0x358] sm:$0xff]  ;;  %v182_v28 = vld [vmem:[%s1460_s1 + $0x2d0] sm:$0xff]  ;;  %v165_v31 = vld [vmem:[%s1460_s1 + $0x248] sm:$0xff] }
  0x1f   :  { %342 = vmatpush.msra.mxu1 %v109_v56  ;;  %393 = vmatpush.msra.mxu3 %v142_v58  ;;  %v198_v29 = vld [vmem:[%s1460_s1 + $0x350] sm:$0xff]  ;;  %v215_v30 = vld [vmem:[%s1460_s1 + $0x3d8] sm:$0xff]  ;;  %v181_v32 = vld [vmem:[%s1460_s1 + $0x2c8] sm:$0xff] }
  0x20   :  { %368 = vmatpush.msra.mxu2 %v125_v57  ;;  %317 = vmatpush.msra.mxu0 %v92_v59  ;;  %v27_v33 = vld [vmem:[%s1461_s0 + $0x68] sm:$0xff]  ;;  %v29_v34 = vld [vmem:[%s1461_s0 + $0x78] sm:$0xff]  ;;  %v214_v36 = vld [vmem:[%s1460_s1 + $0x3d0] sm:$0xff] }
  0x21   :  { %343 = vmatpush.msra.mxu1 %v108_v60  ;;  %394 = vmatpush.msra.mxu3 %v141_v62  ;;  %v197_v35 = vld [vmem:[%s1460_s1 + $0x348] sm:$0xff]  ;;  %v164_v37 = vld [vmem:[%s1460_s1 + $0x240] sm:$0xff]  ;;  %v66_v41 = vmax.f32 %v27_v33, 0.0  ;;  %v68_v42 = vmax.f32 %v29_v34, 0.0  ;;  %v28_v43 = vld [vmem:[%s1461_s0 + $0x70] sm:$0xff] }
  0x22   :  { %369 = vmatpush.msra.mxu2 %v124_v61  ;;  %406 = vmatpush.msrb.mxu0 %v171_v63  ;;  %v180_v38 = vld [vmem:[%s1460_s1 + $0x2c0] sm:$0xff]  ;;  %v213_v40 = vld [vmem:[%s1460_s1 + $0x3c8] sm:$0xff]  ;;  %v163_v45 = vld [vmem:[%s1460_s1 + $0x238] sm:$0xff]  ;;  %v67_v49 = vmax.f32 %v28_v43, 0.0 }
  0x23   :  { %432 = vmatpush.msrb.mxu1 %v187_v0  ;;  %395 = vmatpush.msra.mxu3 %v140_v2  ;;  %v196_v39 = vld [vmem:[%s1460_s1 + $0x340] sm:$0xff]  ;;  %v179_v46 = vld [vmem:[%s1460_s1 + $0x2b8] sm:$0xff]  ;;  %v162_v51 = vld [vmem:[%s1460_s1 + $0x230] sm:$0xff] }
  0x24   :  { %458 = vmatpush.msrb.mxu2 %v203_v1  ;;  %407 = vmatpush.msrb.mxu0 %v170_v3  ;;  %v30_v44 = vld [vmem:[%s1461_s0 + $0x80] sm:$0xff]  ;;  %v195_v47 = vld [vmem:[%s1460_s1 + $0x338] sm:$0xff]  ;;  %v178_v52 = vld [vmem:[%s1460_s1 + $0x2b0] sm:$0xff] }
  0x25   :  { %433 = vmatpush.msrb.mxu1 %v186_v4  ;;  %484 = vmatpush.msrb.mxu3 %v219_v6  ;;  %v212_v48 = vld [vmem:[%s1460_s1 + $0x3c0] sm:$0xff]  ;;  %v69_v50 = vmax.f32 %v30_v44, 0.0  ;;  %v194_v53 = vld [vmem:[%s1460_s1 + $0x330] sm:$0xff]  ;;  %v211_v54 = vld [vmem:[%s1460_s1 + $0x3b8] sm:$0xff] }
  0x26   :  { %459 = vmatpush.msrb.mxu2 %v202_v5  ;;  %408 = vmatpush.msrb.mxu0 %v169_v7  ;;  %v161_v55 = vld [vmem:[%s1460_s1 + $0x228] sm:$0xff]  ;;  %v40_v57 = vld [vmem:[%s1461_s0 + $0xd0] sm:$0x3]  ;;  %v42_v58 = vld [vmem:[%s1461_s0 + $0xe0] sm:$0x3] }
  0x27   :  { %434 = vmatpush.msrb.mxu1 %v185_v8  ;;  %485 = vmatpush.msrb.mxu3 %v218_v12  ;;  %v177_v56 = vld [vmem:[%s1460_s1 + $0x2a8] sm:$0xff]  ;;  %v210_v60 = vld [vmem:[%s1460_s1 + $0x3b0] sm:$0xff]  ;;  %v160_v61 = vld [vmem:[%s1460_s1 + $0x220] sm:$0xff]  ;;  %v79_v1 = vmax.f32 %v40_v57, 0.0  ;;  %v81_v2 = vmax.f32 %v42_v58, 0.0 }
  0x28   :  { %460 = vmatpush.msrb.mxu2 %v201_v11  ;;  %409 = vmatpush.msrb.mxu0 %v168_v13  ;;  %v193_v59 = vld [vmem:[%s1460_s1 + $0x328] sm:$0xff]  ;;  %v176_v62 = vld [vmem:[%s1460_s1 + $0x2a0] sm:$0xff]  ;;  %v41_v3 = vld [vmem:[%s1461_s0 + $0xd8] sm:$0x3] }
  0x29   :  { %435 = vmatpush.msrb.mxu1 %v184_v14  ;;  %486 = vmatpush.msrb.mxu3 %v217_v16  ;;  %v192_v63 = vld [vmem:[%s1460_s1 + $0x320] sm:$0xff]  ;;  %v209_v0 = vld [vmem:[%s1460_s1 + $0x3a8] sm:$0xff]  ;;  %v159_v5 = vld [vmem:[%s1460_s1 + $0x218] sm:$0xff]  ;;  %v80_v9 = vmax.f32 %v41_v3, 0.0 }
  0x2a   :  { %461 = vmatpush.msrb.mxu2 %v200_v15  ;;  %318 = vmatmul.f32.vlgmr.msra.gmra.mxu0 %v53_v17  ;;  %v43_v4 = vld [vmem:[%s1461_s0 + $0xe8] sm:$0x3]  ;;  %v175_v6 = vld [vmem:[%s1460_s1 + $0x298] sm:$0xff]  ;;  %v208_v8 = vld [vmem:[%s1460_s1 + $0x3a0] sm:$0xff] }
  0x2b   :  { %370 = vmatmul.f32.vlgmr.msra.gmra.mxu2 %v55_v18  ;;  %410 = vmatpush.msrb.mxu0 %v167_v21  ;;  %v191_v7 = vld [vmem:[%s1460_s1 + $0x318] sm:$0xff]  ;;  %v82_v10 = vmax.f32 %v43_v4, 0.0  ;;  %v158_v11 = vld [vmem:[%s1460_s1 + $0x210] sm:$0xff]  ;;  %v157_v15 = vld [vmem:[%s1460_s1 + $0x208] sm:$0xff] }
  0x2c   :  { %436 = vmatpush.msrb.mxu1 %v183_v22  ;;  %462 = vmatpush.msrb.mxu2 %v199_v23  ;;  %v174_v12 = vld [vmem:[%s1460_s1 + $0x290] sm:$0xff]  ;;  %v207_v14 = vld [vmem:[%s1460_s1 + $0x398] sm:$0xff]  ;;  %v173_v16 = vld [vmem:[%s1460_s1 + $0x288] sm:$0xff] }
  0x2d   :  { %487 = vmatpush.msrb.mxu3 %v216_v24  ;;  %344 = vmatmul.f32.vlgmr.msra.gmra.mxu1 %v54_v25  ;;  %v190_v13 = vld [vmem:[%s1460_s1 + $0x310] sm:$0xff]  ;;  %v18_v17 = vld [vmem:[%s1461_s0 + $0x20] sm:$0xff]  ;;  %v189_v19 = vld [vmem:[%s1460_s1 + $0x308] sm:$0xff] }
  0x2e   :  { %396 = vmatmul.f32.vlgmr.msra.gmra.mxu3 %v56_v26  ;;  %411 = vmatpush.msrb.mxu0 %v166_v27  ;;  %v20_v18 = vld [vmem:[%s1461_s0 + $0x30] sm:$0xff]  ;;  %v156_v21 = vld [vmem:[%s1460_s1 + $0x200] sm:$0xff]  ;;  %v205_v24 = vld [vmem:[%s1460_s1 + $0x388] sm:$0xff]  ;;  %v57_v25 = vmax.f32 %v18_v17, 0.0 }
  0x2f   :  { %437 = vmatpush.msrb.mxu1 %v182_v28  ;;  %463 = vmatpush.msrb.mxu2 %v198_v29  ;;  %v206_v20 = vld [vmem:[%s1460_s1 + $0x390] sm:$0xff]  ;;  %v172_v22 = vld [vmem:[%s1460_s1 + $0x280] sm:$0xff]  ;;  %v59_v26 = vmax.f32 %v20_v18, 0.0  ;;  %v19_v27 = vld [vmem:[%s1461_s0 + $0x28] sm:$0xff] }
  0x30   :  { %488 = vmatpush.msrb.mxu3 %v215_v30  ;;  %412 = vmatpush.msrb.mxu0 %v165_v31  ;;  %v188_v23 = vld [vmem:[%s1460_s1 + $0x300] sm:$0xff]  ;;  %v21_v28 = vld [vmem:[%s1461_s0 + $0x38] sm:$0xff]  ;;  %v58_v33 = vmax.f32 %v19_v27, 0.0  ;;  %v265_v43 = vld [vmem:[%s1460_s1 + $0x568] sm:$0xff] }
  0x31   :  { %438 = vmatpush.msrb.mxu1 %v181_v32  ;;  %464 = vmatpush.msrb.mxu2 %v197_v35  ;;  %v235_v29 = vld [vmem:[%s1460_s1 + $0x478] sm:$0xff]  ;;  %v204_v32 = vld [vmem:[%s1460_s1 + $0x380] sm:$0xff]  ;;  %v60_v34 = vmax.f32 %v21_v28, 0.0  ;;  %v234_v35 = vld [vmem:[%s1460_s1 + $0x470] sm:$0xff] }
  0x32   :  { %489 = vmatpush.msrb.mxu3 %v214_v36  ;;  %413 = vmatpush.msrb.mxu0 %v164_v37  ;;  %v251_v30 = vld [vmem:[%s1460_s1 + $0x4f8] sm:$0xff]  ;;  %v250_v36 = vld [vmem:[%s1460_s1 + $0x4f0] sm:$0xff]  ;;  %v261_v3 = vld [vmem:[%s1460_s1 + $0x548] sm:$0xff] }
  0x33   :  { %439 = vmatpush.msrb.mxu1 %v180_v38  ;;  %465 = vmatpush.msrb.mxu2 %v196_v39  ;;  %v267_v31 = vld [vmem:[%s1460_s1 + $0x578] sm:$0xff]  ;;  %v266_v37 = vld [vmem:[%s1460_s1 + $0x570] sm:$0xff]  ;;  %v233_v39 = vld [vmem:[%s1460_s1 + $0x468] sm:$0xff] }
  0x34   :  { %490 = vmatpush.msrb.mxu3 %v213_v40  ;;  %321 = vmatmul.f32.gmra.mxu0 %v66_v41  ;;  %v283_v38 = vld [vmem:[%s1460_s1 + $0x5f8] sm:$0xff]  ;;  %v249_v40 = vld [vmem:[%s1460_s1 + $0x4e8] sm:$0xff]  ;;  %v282_v44 = vld [vmem:[%s1460_s1 + $0x5f0] sm:$0xff] }
  0x35   :  { %373 = vmatmul.f32.gmra.mxu2 %v68_v42  ;;  %414 = vmatpush.msrb.mxu0 %v163_v45  ;;  %v31_v41 = vld [vmem:[%s1461_s0 + $0x88] sm:$0xff]  ;;  %v33_v42 = vld [vmem:[%s1461_s0 + $0x98] sm:$0xff]  ;;  %v232_v45 = vld [vmem:[%s1460_s1 + $0x460] sm:$0xff] }
  0x36   :  { %440 = vmatpush.msrb.mxu1 %v179_v46  ;;  %466 = vmatpush.msrb.mxu2 %v195_v47  ;;  %v248_v46 = vld [vmem:[%s1460_s1 + $0x4e0] sm:$0xff]  ;;  %v278_v4 = vld [vmem:[%s1460_s1 + $0x5d0] sm:$0xff] }
  0x37   :  { %491 = vmatpush.msrb.mxu3 %v212_v48  ;;  %347 = vmatmul.f32.gmra.mxu1 %v67_v49  ;;  %v264_v47 = vld [vmem:[%s1460_s1 + $0x560] sm:$0xff]  ;;  %v281_v48 = vld [vmem:[%s1460_s1 + $0x5e8] sm:$0xff]  ;;  %v70_v49 = vmax.f32 %v31_v41, 0.0 }
  0x38   :  { %399 = vmatmul.f32.gmra.mxu3 %v69_v50  ;;  %415 = vmatpush.msrb.mxu0 %v162_v51  ;;  %v72_v50 = vmax.f32 %v33_v42, 0.0  ;;  %v32_v51 = vld [vmem:[%s1461_s0 + $0x90] sm:$0xff]  ;;  %v224_v27 = vld [vmem:[%s1460_s1 + $0x420] sm:$0xff]  ;;  %v23_v42 = vld [vmem:[%s1461_s0 + $0x48] sm:$0xff] }
  0x39   :  { %441 = vmatpush.msrb.mxu1 %v178_v52  ;;  %467 = vmatpush.msrb.mxu2 %v194_v53  ;;  %v34_v52 = vld [vmem:[%s1461_s0 + $0xa0] sm:$0xff]  ;;  %v231_v53 = vld [vmem:[%s1460_s1 + $0x458] sm:$0xff]  ;;  %v71_v57 = vmax.f32 %v32_v51, 0.0  ;;  %v62_v51 = vmax.f32 %v23_v42, 0.0 }
  0x3a   :  { %492 = vmatpush.msrb.mxu3 %v211_v54  ;;  %416 = vmatpush.msrb.mxu0 %v161_v55  ;;  %v247_v54 = vld [vmem:[%s1460_s1 + $0x4d8] sm:$0xff]  ;;  %v73_v58 = vmax.f32 %v34_v52, 0.0  ;;  %v240_v28 = vld [vmem:[%s1460_s1 + $0x4a0] sm:$0xff] }
  0x3b   :  { %442 = vmatpush.msrb.mxu1 %v177_v56  ;;  %468 = vmatpush.msrb.mxu2 %v193_v59  ;;  %v263_v55 = vld [vmem:[%s1460_s1 + $0x558] sm:$0xff]  ;;  %v280_v56 = vld [vmem:[%s1460_s1 + $0x5e0] sm:$0xff]  ;;  %v230_v59 = vld [vmem:[%s1460_s1 + $0x450] sm:$0xff] }
  0x3c   :  { %493 = vmatpush.msrb.mxu3 %v210_v60  ;;  %417 = vmatpush.msrb.mxu0 %v160_v61  ;;  %v246_v60 = vld [vmem:[%s1460_s1 + $0x4d0] sm:$0xff]  ;;  %v22_v41 = vld [vmem:[%s1461_s0 + $0x40] sm:$0xff]  ;;  %v25_v52 = vld [vmem:[%s1461_s0 + $0x58] sm:$0xff] }
  0x3d   :  { %443 = vmatpush.msrb.mxu1 %v176_v62  ;;  %469 = vmatpush.msrb.mxu2 %v192_v63  ;;  %v262_v61 = vld [vmem:[%s1460_s1 + $0x550] sm:$0xff]  ;;  %v279_v62 = vld [vmem:[%s1460_s1 + $0x5d8] sm:$0xff]  ;;  %v229_v63 = vld [vmem:[%s1460_s1 + $0x448] sm:$0xff] }
  0x3e   :  { %494 = vmatpush.msrb.mxu3 %v209_v0  ;;  %324 = vmatmul.f32.gmra.mxu0 %v79_v1  ;;  %v245_v0 = vld [vmem:[%s1460_s1 + $0x4c8] sm:$0xff]  ;;  %v44_v1 = vld [vmem:[%s1461_s0 + $0xf0] sm:$0x3] }
  0x3f   :  { %376 = vmatmul.f32.gmra.mxu2 %v81_v2  ;;  %418 = vmatpush.msrb.mxu0 %v159_v5  ;;  %v46_v2 = vld [vmem:[%s1461_s0 + $0x100] sm:$0x3] }
  0x40   :  { %444 = vmatpush.msrb.mxu1 %v175_v6  ;;  %470 = vmatpush.msrb.mxu2 %v191_v7  ;;  %v228_v5 = vld [vmem:[%s1460_s1 + $0x440] sm:$0xff] }
  0x41   :  { %495 = vmatpush.msrb.mxu3 %v208_v8  ;;  %350 = vmatmul.f32.gmra.mxu1 %v80_v9  ;;  %v244_v6 = vld [vmem:[%s1460_s1 + $0x4c0] sm:$0xff]  ;;  %v277_v8 = vld [vmem:[%s1460_s1 + $0x5c8] sm:$0xff]  ;;  %v83_v9 = vmax.f32 %v44_v1, 0.0 }
  0x42   :  { %402 = vmatmul.f32.gmra.mxu3 %v82_v10  ;;  %419 = vmatpush.msrb.mxu0 %v158_v11  ;;  %v260_v7 = vld [vmem:[%s1460_s1 + $0x540] sm:$0xff]  ;;  %v85_v10 = vmax.f32 %v46_v2, 0.0  ;;  %v45_v11 = vld [vmem:[%s1461_s0 + $0xf8] sm:$0x3] }
  0x43   :  { %445 = vmatpush.msrb.mxu1 %v174_v12  ;;  %471 = vmatpush.msrb.mxu2 %v190_v13  ;;  %v47_v12 = vld [vmem:[%s1461_s0 + $0x108] sm:$0x3]  ;;  %v227_v13 = vld [vmem:[%s1460_s1 + $0x438] sm:$0xff]  ;;  %v84_v17 = vmax.f32 %v45_v11, 0.0  ;;  %v284_v1 = vld [vmem:[%s1460_s1 + $0x600] sm:$0xff] }
  0x44   :  { %496 = vmatpush.msrb.mxu3 %v207_v14  ;;  %420 = vmatpush.msrb.mxu0 %v157_v15  ;;  %v243_v14 = vld [vmem:[%s1460_s1 + $0x4b8] sm:$0xff]  ;;  %v86_v18 = vmax.f32 %v47_v12, 0.0  ;;  %v26_v12 = vld [vmem:[%s1461_s0 + $0x60] sm:$0xff] }
  0x45   :  { %446 = vmatpush.msrb.mxu1 %v173_v16  ;;  %472 = vmatpush.msrb.mxu2 %v189_v19  ;;  %v259_v15 = vld [vmem:[%s1460_s1 + $0x538] sm:$0xff]  ;;  %v276_v16 = vld [vmem:[%s1460_s1 + $0x5c0] sm:$0xff]  ;;  %v226_v19 = vld [vmem:[%s1460_s1 + $0x430] sm:$0xff] }
  0x46   :  { %497 = vmatpush.msrb.mxu3 %v206_v20  ;;  %421 = vmatpush.msrb.mxu0 %v156_v21  ;;  %v242_v20 = vld [vmem:[%s1460_s1 + $0x4b0] sm:$0xff] }
  0x47   :  { %447 = vmatpush.msrb.mxu1 %v172_v22  ;;  %473 = vmatpush.msrb.mxu2 %v188_v23  ;;  %v258_v21 = vld [vmem:[%s1460_s1 + $0x530] sm:$0xff]  ;;  %v275_v22 = vld [vmem:[%s1460_s1 + $0x5b8] sm:$0xff]  ;;  %v225_v23 = vld [vmem:[%s1460_s1 + $0x428] sm:$0xff] }
  0x48   :  { %498 = vmatpush.msrb.mxu3 %v205_v24  ;;  %422 = vmatmul.f32.vlgmr.msrb.gmra.mxu0 %v57_v25  ;;  %v241_v24 = vld [vmem:[%s1460_s1 + $0x4a8] sm:$0xff] }
  0x49   :  { %474 = vmatmul.f32.vlgmr.msrb.gmra.mxu2 %v59_v26  ;;  %510 = vmatpush.msra.mxu0 %v235_v29  ;;  %v257_v25 = vld [vmem:[%s1460_s1 + $0x528] sm:$0xff]  ;;  %v274_v26 = vld [vmem:[%s1460_s1 + $0x5b0] sm:$0xff]  ;;  %v256_v29 = vld [vmem:[%s1460_s1 + $0x520] sm:$0xff] }
  0x4a   :  { %536 = vmatpush.msra.mxu1 %v251_v30  ;;  %562 = vmatpush.msra.mxu2 %v267_v31  ;;  %v273_v30 = vld [vmem:[%s1460_s1 + $0x5a8] sm:$0xff]  ;;  %v223_v31 = vld [vmem:[%s1460_s1 + $0x418] sm:$0xff] }
  0x4b   :  { %499 = vmatpush.msrb.mxu3 %v204_v32  ;;  %448 = vmatmul.f32.vlgmr.msrb.gmra.mxu1 %v58_v33  ;;  %v239_v32 = vld [vmem:[%s1460_s1 + $0x498] sm:$0xff] }
  0x4c   :  { %500 = vmatmul.f32.vlgmr.msrb.gmra.mxu3 %v60_v34  ;;  %511 = vmatpush.msra.mxu0 %v234_v35  ;;  %v255_v33 = vld [vmem:[%s1460_s1 + $0x518] sm:$0xff]  ;;  %v272_v34 = vld [vmem:[%s1460_s1 + $0x5a0] sm:$0xff]  ;;  %v222_v35 = vld [vmem:[%s1460_s1 + $0x410] sm:$0xff] }
  0x4d   :  { %537 = vmatpush.msra.mxu1 %v250_v36  ;;  %563 = vmatpush.msra.mxu2 %v266_v37  ;;  %v238_v36 = vld [vmem:[%s1460_s1 + $0x490] sm:$0xff] }
  0x4e   :  { %588 = vmatpush.msra.mxu3 %v283_v38  ;;  %512 = vmatpush.msra.mxu0 %v233_v39  ;;  %v254_v37 = vld [vmem:[%s1460_s1 + $0x510] sm:$0xff]  ;;  %v271_v38 = vld [vmem:[%s1460_s1 + $0x598] sm:$0xff]  ;;  %v221_v39 = vld [vmem:[%s1460_s1 + $0x408] sm:$0xff] }
  0x4f   :  { %538 = vmatpush.msra.mxu1 %v249_v40  ;;  %564 = vmatpush.msra.mxu2 %v265_v43  ;;  %v237_v40 = vld [vmem:[%s1460_s1 + $0x488] sm:$0xff] }
  0x50   :  { %589 = vmatpush.msra.mxu3 %v282_v44  ;;  %513 = vmatpush.msra.mxu0 %v232_v45  ;;  %v253_v43 = vld [vmem:[%s1460_s1 + $0x508] sm:$0xff]  ;;  %v270_v44 = vld [vmem:[%s1460_s1 + $0x590] sm:$0xff] }
  0x51   :  { %539 = vmatpush.msra.mxu1 %v248_v46  ;;  %565 = vmatpush.msra.mxu2 %v264_v47  ;;  %v24_v45 = vld [vmem:[%s1461_s0 + $0x50] sm:$0xff]  ;;  %v220_v46 = vld [vmem:[%s1460_s1 + $0x400] sm:$0xff] }
  0x52   :  { %590 = vmatpush.msra.mxu3 %v281_v48  ;;  %425 = vmatmul.f32.gmra.mxu0 %v70_v49  ;;  %v236_v47 = vld [vmem:[%s1460_s1 + $0x480] sm:$0xff]  ;;  %v269_v49 = vld [vmem:[%s1460_s1 + $0x588] sm:$0xff] }
  0x53   :  { %477 = vmatmul.f32.gmra.mxu2 %v72_v50  ;;  %514 = vmatpush.msra.mxu0 %v231_v53  ;;  %v252_v48 = vld [vmem:[%s1460_s1 + $0x500] sm:$0xff]  ;;  %v61_v50 = vmax.f32 %v22_v41, 0.0  ;;  %v63_v53 = vmax.f32 %v24_v45, 0.0 }
  0x54   :  { %540 = vmatpush.msra.mxu1 %v247_v54  ;;  %566 = vmatpush.msra.mxu2 %v263_v55  ;;  %v287_v54 = vld [vmem:[%s1460_s1 + $0x618] sm:$0xff]  ;;  %v268_v55 = vld [vmem:[%s1460_s1 + $0x580] sm:$0xff] }
  0x55   :  { %591 = vmatpush.msra.mxu3 %v280_v56  ;;  %451 = vmatmul.f32.gmra.mxu1 %v71_v57  ;;  %v64_v56 = vmax.f32 %v25_v52, 0.0  ;;  %v286_v57 = vld [vmem:[%s1460_s1 + $0x610] sm:$0xff] }
  0x56   :  { %503 = vmatmul.f32.gmra.mxu3 %v73_v58  ;;  %515 = vmatpush.msra.mxu0 %v230_v59  ;;  %v35_v58 = vld [vmem:[%s1461_s0 + $0xa8] sm:$0xff]  ;;  %v36_v59 = vld [vmem:[%s1461_s0 + $0xb0] sm:$0xff] }
  0x57   :  { %541 = vmatpush.msra.mxu1 %v246_v60  ;;  %567 = vmatpush.msra.mxu2 %v262_v61  ;;  %v37_v60 = vld [vmem:[%s1461_s0 + $0xb8] sm:$0xff]  ;;  %v285_v61 = vld [vmem:[%s1460_s1 + $0x608] sm:$0xff] }
  0x58   :  { %592 = vmatpush.msra.mxu3 %v279_v62  ;;  %516 = vmatpush.msra.mxu0 %v229_v63  ;;  %v74_v62 = vmax.f32 %v35_v58, 0.0  ;;  %v75_v63 = vmax.f32 %v36_v59, 0.0  ;;  %v76_v2 = vmax.f32 %v37_v60, 0.0 }
  0x59   :  { %542 = vmatpush.msra.mxu1 %v245_v0  ;;  %568 = vmatpush.msra.mxu2 %v261_v3  ;;  %v38_v0 = vld [vmem:[%s1461_s0 + $0xc0] sm:$0xff] }
  0x5a   :  { %593 = vmatpush.msra.mxu3 %v278_v4  ;;  %517 = vmatpush.msra.mxu0 %v228_v5  ;;  %v77_v3 = vmax.f32 %v38_v0, 0.0  ;;  %v48_v4 = vld [vmem:[%s1461_s0 + $0x110] sm:$0x3]  ;;  %v49_v5 = vld [vmem:[%s1461_s0 + $0x118] sm:$0x3] }
  0x5b   :  { %543 = vmatpush.msra.mxu1 %v244_v6  ;;  %569 = vmatpush.msra.mxu2 %v260_v7  ;;  %v50_v6 = vld [vmem:[%s1461_s0 + $0x120] sm:$0x3]  ;;  %v87_v7 = vmax.f32 %v48_v4, 0.0 }
  0x5c   :  { %594 = vmatpush.msra.mxu3 %v277_v8  ;;  %428 = vmatmul.f32.gmra.mxu0 %v83_v9  ;;  %v88_v8 = vmax.f32 %v49_v5, 0.0  ;;  %v51_v9 = vld [vmem:[%s1461_s0 + $0x128] sm:$0x3] }
  0x5d   :  { %480 = vmatmul.f32.gmra.mxu2 %v85_v10  ;;  %518 = vmatpush.msra.mxu0 %v227_v13  ;;  %v89_v10 = vmax.f32 %v50_v6, 0.0  ;;  %v90_v11 = vmax.f32 %v51_v9, 0.0  ;;  %v39_v13 = vld [vmem:[%s1461_s0 + $0xc8] sm:$0xff] }
  0x5e   :  { %544 = vmatpush.msra.mxu1 %v243_v14  ;;  %570 = vmatpush.msra.mxu2 %v259_v15  ;;  %v52_v14 = vld [vmem:[%s1461_s0 + $0x130] sm:$0x3]  ;;  %v65_v15 = vmax.f32 %v26_v12, 0.0 }
  0x5f   :  { %595 = vmatpush.msra.mxu3 %v276_v16  ;;  %454 = vmatmul.f32.gmra.mxu1 %v84_v17  ;;  %v78_v16 = vmax.f32 %v39_v13, 0.0  ;;  %v91_v17 = vmax.f32 %v52_v14, 0.0 }
  0x60   :  { %506 = vmatmul.f32.gmra.mxu3 %v86_v18  ;;  %519 = vmatpush.msra.mxu0 %v226_v19 }
  0x61   :  { %545 = vmatpush.msra.mxu1 %v242_v20  ;;  %571 = vmatpush.msra.mxu2 %v258_v21 }
  0x62   :  { %596 = vmatpush.msra.mxu3 %v275_v22  ;;  %520 = vmatpush.msra.mxu0 %v225_v23 }
  0x63   :  { %546 = vmatpush.msra.mxu1 %v241_v24  ;;  %572 = vmatpush.msra.mxu2 %v257_v25 }
  0x64   :  { %597 = vmatpush.msra.mxu3 %v274_v26  ;;  %521 = vmatpush.msra.mxu0 %v224_v27 }
  0x65   :  { %547 = vmatpush.msra.mxu1 %v240_v28  ;;  %573 = vmatpush.msra.mxu2 %v256_v29 }
  0x66   :  { %598 = vmatpush.msra.mxu3 %v273_v30  ;;  %522 = vmatpush.msra.mxu0 %v223_v31 }
  0x67   :  { %548 = vmatpush.msra.mxu1 %v239_v32  ;;  %574 = vmatpush.msra.mxu2 %v255_v33 }
  0x68   :  { %599 = vmatpush.msra.mxu3 %v272_v34  ;;  %523 = vmatpush.msra.mxu0 %v222_v35 }
  0x69   :  { %549 = vmatpush.msra.mxu1 %v238_v36  ;;  %575 = vmatpush.msra.mxu2 %v254_v37  ;;  %v707_v36 = vld [vmem:[%s1462_s2] ss:$0 sm:$0xff] }
  0x6a   :  { %600 = vmatpush.msra.mxu3 %v271_v38  ;;  %524 = vmatpush.msra.mxu0 %v221_v39 }
  0x6b   :  { %550 = vmatpush.msra.mxu1 %v237_v40  ;;  %576 = vmatpush.msra.mxu2 %v253_v43 }
  0x6c   :  { %601 = vmatpush.msra.mxu3 %v270_v44  ;;  %525 = vmatpush.msra.mxu0 %v220_v46 }
  0x6d   :  { %551 = vmatpush.msra.mxu1 %v236_v47  ;;  %577 = vmatpush.msra.mxu2 %v252_v48 }
  0x6e   :  { %602 = vmatpush.msra.mxu3 %v269_v49  ;;  %526 = vmatmul.f32.vlgmr.msra.gmra.mxu0 %v61_v50 }
  0x6f   :  { %552 = vmatmul.f32.vlgmr.msra.gmra.mxu1 %v62_v51  ;;  %578 = vmatmul.f32.vlgmr.msra.gmra.mxu2 %v63_v53 }
  0x70   :  { %626 = vmatpush.msrb.mxu0 %v287_v54  ;;  %603 = vmatpush.msra.mxu3 %v268_v55 }
  0x71   :  { %700 = vmatpush.msrb.mxu2 %v287_v54  ;;  %604 = vmatmul.f32.vlgmr.msra.gmra.mxu3 %v64_v56 }
  0x72   :  { %627 = vmatpush.msrb.mxu0 %v286_v57  ;;  %699 = vmatpush.msrb.mxu1 %v287_v54 }
  0x73   :  { %702 = vmatpush.msrb.mxu2 %v286_v57 }
  0x74   :  { %628 = vmatpush.msrb.mxu0 %v285_v61  ;;  %701 = vmatpush.msrb.mxu1 %v286_v57 }
  0x75   :  { %704 = vmatpush.msrb.mxu2 %v285_v61 }
  0x76   :  { %629 = vmatpush.msrb.mxu0 %v284_v1  ;;  %703 = vmatpush.msrb.mxu1 %v285_v61 }
  0x77   :  { %529 = vmatmul.f32.gmra.mxu0 %v74_v62  ;;  %555 = vmatmul.f32.gmra.mxu1 %v75_v63 }
  0x78   :  { %581 = vmatmul.f32.gmra.mxu2 %v76_v2  ;;  %705 = vmatpush.msrb.mxu1 %v284_v1 }
  0x79   :  { %706 = vmatpush.msrb.mxu2 %v284_v1  ;;  %607 = vmatmul.f32.gmra.mxu3 %v77_v3 }
  0x7f   :  { %532 = vmatmul.f32.gmra.mxu0 %v87_v7  ;;  %558 = vmatmul.f32.gmra.mxu1 %v88_v8 }
  0x80   :  { %584 = vmatmul.f32.gmra.mxu2 %v89_v10 }
  0x81   :  { %610 = vmatmul.f32.gmra.mxu3 %v90_v11 }
  0x87   :  { %696 = vmatmul.msk.f32.vlgmr.msrb.gmra.mxu0 %vm292_vm0, %v65_v15  ;;  %697 = vmatmul.msk.f32.vlgmr.msrb.gmra.mxu1 %vm292_vm0, %v78_v16 }
  0x88   :  { %698 = vmatmul.msk.f32.vlgmr.msrb.gmra.mxu2 %vm292_vm0, %v91_v17 }
  0xa7   :  { %v319_v18 = vpop.f32.mrf.mxu0 }
  0xa8   :  { %v320_v37 = vadd.f32 %v707_v36, %v319_v18 }
  0xaa   :  { %v345_v19 = vpop.f32.mrf.mxu1 }
  0xab   :  { %v346_v39 = vadd.f32 %v345_v19, %v320_v37 }
  0xae   :  { %v371_v20 = vpop.f32.mrf.mxu2 }
  0xaf   :  { %v372_v45 = vadd.f32 %v371_v20, %v346_v39 }
  0xb1   :  { %v397_v21 = vpop.f32.mrf.mxu3  ;;  %v322_v22 = vpop.f32.mrf.mxu0 }
  0xb2   :  { %v323_v40 = vadd.f32 %v707_v36, %v322_v22  ;;  %v398_v48 = vadd.f32 %v397_v21, %v372_v45 }
  0xb4   :  { %v348_v23 = vpop.f32.mrf.mxu1 }
  0xb5   :  { %v349_v46 = vadd.f32 %v348_v23, %v323_v40 }
  0xb8   :  { %v374_v24 = vpop.f32.mrf.mxu2 }
  0xb9   :  { %v375_v49 = vadd.f32 %v374_v24, %v349_v46 }
  0xbb   :  { %v400_v25 = vpop.f32.mrf.mxu3  ;;  %v325_v26 = vpop.f32.mrf.mxu0 }
  0xbc   :  { %v326_v44 = vadd.f32 %v707_v36, %v325_v26  ;;  %v401_v56 = vadd.f32 %v400_v25, %v375_v49 }
  0xbe   :  { %v351_v27 = vpop.f32.mrf.mxu1 }
  0xbf   :  { %v352_v47 = vadd.f32 %v351_v27, %v326_v44 }
  0xc2   :  { %v377_v28 = vpop.f32.mrf.mxu2 }
  0xc3   :  { %v378_v55 = vadd.f32 %v377_v28, %v352_v47 }
  0xc5   :  { %v403_v29 = vpop.f32.mrf.mxu3  ;;  %v423_v30 = vpop.f32.mrf.mxu0 }
  0xc6   :  { %v424_v53 = vadd.f32 %v423_v30, %v398_v48  ;;  %v404_v59 = vadd.f32 %v403_v29, %v378_v55 }
  0xc8   :  { %v449_v31 = vpop.f32.mrf.mxu1 }
  0xc9   :  { %v450_v57 = vadd.f32 %v449_v31, %v424_v53 }
  0xcc   :  { %v475_v32 = vpop.f32.mrf.mxu2 }
  0xcd   :  { %v476_v60 = vadd.f32 %v475_v32, %v450_v57 }
  0xcf   :  { %v501_v33 = vpop.f32.mrf.mxu3  ;;  %v426_v34 = vpop.f32.mrf.mxu0 }
  0xd0   :  { %v427_v58 = vadd.f32 %v426_v34, %v401_v56  ;;  %v502_v3 = vadd.f32 %v501_v33, %v476_v60 }
  0xd2   :  { %v452_v35 = vpop.f32.mrf.mxu1 }
  0xd3   :  { %v453_v1 = vadd.f32 %v452_v35, %v427_v58 }
  0xd6   :  { %v478_v38 = vpop.f32.mrf.mxu2 }
  0xd7   :  { %v479_v4 = vadd.f32 %v478_v38, %v453_v1 }
  0xd9   :  { %v504_v41 = vpop.f32.mrf.mxu3  ;;  %v429_v42 = vpop.f32.mrf.mxu0 }
  0xda   :  { %v430_v62 = vadd.f32 %v429_v42, %v404_v59  ;;  %v505_v8 = vadd.f32 %v504_v41, %v479_v4 }
  0xdc   :  { %v455_v43 = vpop.f32.mrf.mxu1 }
  0xdd   :  { %v456_v5 = vadd.f32 %v455_v43, %v430_v62 }
  0xe0   :  { %v481_v50 = vpop.f32.mrf.mxu2 }
  0xe1   :  { %v482_v7 = vadd.f32 %v481_v50, %v456_v5 }
  0xe3   :  { %v507_v54 = vpop.f32.mrf.mxu3 }
  0xe4   :  { %v508_v15 = vadd.f32 %v507_v54, %v482_v7 }
  0xeb   :  { %v527_v51 = vpop.f32.mrf.mxu0 }
  0xec   :  { %v553_v52 = vpop.f32.mrf.mxu1  ;;  %v528_v6 = vadd.f32 %v527_v51, %v502_v3 }
  0xee   :  { %v554_v12 = vadd.f32 %v553_v52, %v528_v6 }
  0xf2   :  { %v579_v61 = vpop.f32.mrf.mxu2 }
  0xf3   :  { %v580_v16 = vadd.f32 %v579_v61, %v554_v12 }
  0xf4   :  { %v530_v63 = vpop.f32.mrf.mxu0  ;;  %v556_v0 = vpop.f32.mrf.mxu1 }
  0xf5   :  { %v605_v2 = vpop.f32.mrf.mxu3  ;;  %v531_v13 = vadd.f32 %v530_v63, %v505_v8 }
  0xf6   :  { %v606_v19 = vadd.f32 %v605_v2, %v580_v16 }
  0xf7   :  { %v557_v18 = vadd.f32 %v556_v0, %v531_v13 }
  0xfb   :  { %v582_v9 = vpop.f32.mrf.mxu2 }
  0xfc   :  { %v533_v10 = vpop.f32.mrf.mxu0  ;;  %v559_v11 = vpop.f32.mrf.mxu1  ;;  %v583_v20 = vadd.f32 %v582_v9, %v557_v18 }
  0xfd   :  { %v608_v14 = vpop.f32.mrf.mxu3  ;;  %v534_v17 = vadd.f32 %v533_v10, %v508_v15 }
  0xfe   :  { %v609_v27 = vadd.f32 %v608_v14, %v583_v20 }
  0xff   :  { %v560_v22 = vadd.f32 %v559_v11, %v534_v17 }
 0x103   :  { %v585_v21 = vpop.f32.mrf.mxu2 }
 0x104   :  { %v631_v23 = vpop.f32.mrf.mxu0  ;;  %v586_v25 = vadd.f32 %v585_v21, %v560_v22  ;;  %v634_v26 = vpop.f32.mrf.mxu1 }
 0x105   :  { %v632_v24 = vadd.f32 %v631_v23, %v606_v19  ;;  %v611_v28 = vpop.f32.mrf.mxu3  ;;  %v635_v30 = vadd.f32 %v634_v26, %v609_v27 }
 0x106   :  { %v612_v32 = vadd.f32 %v611_v28, %v586_v25 }
 0x107   :  { %v640_v29 = vmul.f32 %v632_v24, %v632_v24  ;;  %v641_v35 = vmul.f32 %v635_v30, %v635_v30 }
 0x109   :  { %v643_v31 = vsel %vm292_vm0, %v640_v29, 0.0  ;;  %v646_v38 = vsel %vm292_vm0, %v641_v35, 0.0 }
 0x10a   :  { %644 = vadd.xlane.f32.xlu0 %v643_v31 }
 0x10b   :  { %v637_v33 = vpop.f32.mrf.mxu2 }
 0x10c   :  { %v638_v34 = vadd.f32 %v637_v33, %v612_v32 }
 0x10e   :  { %v642_v36 = vmul.f32 %v638_v34, %v638_v34 }
 0x110   :  { %v650_v37 = vsel %vm649_vm1, %v642_v36, 0.0 }
 0x111   :  { %651 = vadd.xlane.f32.xlu1 %v650_v37 }
 0x112   :  { %647 = vadd.xlane.f32.xlu0 %v646_v38 }
 0x17d   :  { %v645_v39 = vpop.xlane.xlu0 %644 }
 0x17e   :  { %v653_v40 = vadd.f32 1e-12, %v645_v39 }
 0x180   :  { %708 = vrsqrt.f32 %v653_v40  ;;  %vm662_vm3 = vweird.f32 %v653_v40 }
 0x184   :  { %v652_v41 = vpop.xlane.xlu1 %651 }
 0x185   :  { %v655_v42 = vadd.f32 1e-12, %v652_v41  ;;  %v648_v43 = vpop.xlane.xlu0 %647 }
 0x186   :  { %v709_v44 = vpop.eup %708  ;;  %v654_v45 = vadd.f32 1e-12, %v648_v43 }
 0x187   :  { %v657_v46 = vmul.f32 %v709_v44, %v653_v40  ;;  %710 = vrsqrt.f32 %v655_v42  ;;  %vm663_vm2 = vweird.f32 %v709_v44  ;;  %vm682_vm7 = vweird.f32 %v655_v42 }
 0x188   :  { %712 = vrsqrt.f32 %v654_v45  ;;  %vm664_vm4 = vmor %vm662_vm3, %vm663_vm2  ;;  %vm672_vm9 = vweird.f32 %v654_v45 }
 0x189   :  { %v658_v47 = vmul.f32 %v709_v44, %v657_v46 }
 0x18b   :  { %v659_v48 = vmul.f32 0.5, %v658_v47 }
 0x18d   :  { %v711_v49 = vpop.eup %710  ;;  %v660_v50 = vsub.f32 1.5, %v659_v48 }
 0x18e   :  { %v713_v51 = vpop.eup %712  ;;  %v677_v52 = vmul.f32 %v711_v49, %v655_v42  ;;  %vm683_vm5 = vweird.f32 %v711_v49 }
 0x18f   :  { %v661_v53 = vmul.f32 %v709_v44, %v660_v50  ;;  %v667_v54 = vmul.f32 %v713_v51, %v654_v45  ;;  %vm673_vm6 = vweird.f32 %v713_v51  ;;  %vm684_vm8 = vmor %vm682_vm7, %vm683_vm5 }
 0x190   :  { %v678_v55 = vmul.f32 %v711_v49, %v677_v52  ;;  %vm674_vm10 = vmor %vm672_vm9, %vm673_vm6 }
 0x191   :  { %v665_v56 = vsel %vm664_vm4, %v709_v44, %v661_v53  ;;  %v668_v57 = vmul.f32 %v713_v51, %v667_v54 }
 0x192   :  { %v686_v58 = vmul.f32 %v665_v56, %v632_v24  ;;  %v679_v59 = vmul.f32 0.5, %v678_v55 }
 0x193   :  { %v669_v60 = vmul.f32 0.5, %v668_v57 }
 0x194   :  { %689 = vst.msk [vmem:[%s1463_s3] sm:$0xff] %vm292_vm0, %v686_v58  ;;  %v680_v61 = vsub.f32 1.5, %v679_v59 }
 0x195   :  { %v670_v62 = vsub.f32 1.5, %v669_v60 }
 0x196   :  { %v681_v63 = vmul.f32 %v711_v49, %v680_v61 }
 0x197   :  { %v671_v0 = vmul.f32 %v713_v51, %v670_v62 }
 0x198   :  { %v685_v1 = vsel %vm684_vm8, %v711_v49, %v681_v63 }
 0x199   :  { %v688_v2 = vmul.f32 %v685_v1, %v638_v34  ;;  %v675_v3 = vsel %vm674_vm10, %v713_v51, %v671_v0 }
 0x19a   :  { %v687_v4 = vmul.f32 %v675_v3, %v635_v30 }
 0x19b   :  { %691 = vst.msk [vmem:[%s1463_s3 + $0x10] sm:$0x3] %vm649_vm1, %v688_v2 }
 0x19c   :  { %690 = vst.msk [vmem:[%s1463_s3 + $0x8] sm:$0xff] %vm292_vm0, %v687_v4 }

// kernel: _device_forward.12
= control target key start
LH: loop header
LB: loop body
LE: loop exit
PB: predicated region body
PF: predicated region fallthrough
CT: control target
= control target key end

     0   :  { %vm240_vm0 = vcmask 261120   ;;  %vm505_vm1 = vcmask 259072   ;;  %s1185_s1 = inlined_call_operand.vmem [shape: f32[1568,32], index: 1, kind: input, shape index: {}]   ;;  %s1186_s0 = inlined_call_operand.vmem [shape: f32[6,1568], index: 0, kind: input, shape index: {}]   ;;  %s1187_s2 = inlined_call_operand.vmem [shape: f32[1,32], index: 2, kind: input, shape index: {}]   ;;  %s1188_s3 = inlined_call_operand.vmem [shape: f32[6,32], index: 3, kind: output, shape index: {}]  }
   0x1   :  { %v55_v0 = vld [vmem:[%s1185_s1 + $0x78] sm:$0xff]  ;;  %v54_v2 = vld [vmem:[%s1185_s1 + $0x70] sm:$0xff]  ;;  %v53_v6 = vld [vmem:[%s1185_s1 + $0x68] sm:$0xff] }
   0x2   :  { %v87_v1 = vld [vmem:[%s1185_s1 + $0x178] sm:$0xff]  ;;  %244 = vmatpush.msra.mxu0 %v55_v0  ;;  %v86_v4 = vld [vmem:[%s1185_s1 + $0x170] sm:$0xff]  ;;  %v85_v8 = vld [vmem:[%s1185_s1 + $0x168] sm:$0xff] }
   0x3   :  { %284 = vmatpush.msra.mxu2 %v87_v1  ;;  %v71_v3 = vld [vmem:[%s1185_s1 + $0xf8] sm:$0xff]  ;;  %v70_v7 = vld [vmem:[%s1185_s1 + $0xf0] sm:$0xff]  ;;  %v69_v10 = vld [vmem:[%s1185_s1 + $0xe8] sm:$0xff] }
   0x4   :  { %v103_v5 = vld [vmem:[%s1185_s1 + $0x1f8] sm:$0xff]  ;;  %264 = vmatpush.msra.mxu1 %v71_v3  ;;  %245 = vmatpush.msra.mxu0 %v54_v2  ;;  %v102_v9 = vld [vmem:[%s1185_s1 + $0x1f0] sm:$0xff]  ;;  %v52_v11 = vld [vmem:[%s1185_s1 + $0x60] sm:$0xff] }
   0x5   :  { %304 = vmatpush.msra.mxu3 %v103_v5  ;;  %285 = vmatpush.msra.mxu2 %v86_v4  ;;  %v84_v12 = vld [vmem:[%s1185_s1 + $0x160] sm:$0xff]  ;;  %v101_v13 = vld [vmem:[%s1185_s1 + $0x1e8] sm:$0xff]  ;;  %v51_v16 = vld [vmem:[%s1185_s1 + $0x58] sm:$0xff] }
   0x6   :  { %265 = vmatpush.msra.mxu1 %v70_v7  ;;  %246 = vmatpush.msra.mxu0 %v53_v6  ;;  %v68_v14 = vld [vmem:[%s1185_s1 + $0xe0] sm:$0xff]  ;;  %v83_v17 = vld [vmem:[%s1185_s1 + $0x158] sm:$0xff]  ;;  %v50_v20 = vld [vmem:[%s1185_s1 + $0x50] sm:$0xff] }
   0x7   :  { %305 = vmatpush.msra.mxu3 %v102_v9  ;;  %286 = vmatpush.msra.mxu2 %v85_v8  ;;  %v100_v15 = vld [vmem:[%s1185_s1 + $0x1e0] sm:$0xff]  ;;  %v67_v18 = vld [vmem:[%s1185_s1 + $0xd8] sm:$0xff]  ;;  %v82_v21 = vld [vmem:[%s1185_s1 + $0x150] sm:$0xff] }
   0x8   :  { %266 = vmatpush.msra.mxu1 %v69_v10  ;;  %247 = vmatpush.msra.mxu0 %v52_v11  ;;  %v99_v19 = vld [vmem:[%s1185_s1 + $0x1d8] sm:$0xff]  ;;  %v66_v22 = vld [vmem:[%s1185_s1 + $0xd0] sm:$0xff]  ;;  %v49_v24 = vld [vmem:[%s1185_s1 + $0x48] sm:$0xff] }
   0x9   :  { %306 = vmatpush.msra.mxu3 %v101_v13  ;;  %287 = vmatpush.msra.mxu2 %v84_v12  ;;  %v98_v23 = vld [vmem:[%s1185_s1 + $0x1d0] sm:$0xff]  ;;  %v81_v25 = vld [vmem:[%s1185_s1 + $0x148] sm:$0xff]  ;;  %v48_v28 = vld [vmem:[%s1185_s1 + $0x40] sm:$0xff] }
   0xa   :  { %267 = vmatpush.msra.mxu1 %v68_v14  ;;  %248 = vmatpush.msra.mxu0 %v51_v16  ;;  %v65_v26 = vld [vmem:[%s1185_s1 + $0xc8] sm:$0xff]  ;;  %v80_v29 = vld [vmem:[%s1185_s1 + $0x140] sm:$0xff]  ;;  %v47_v32 = vld [vmem:[%s1185_s1 + $0x38] sm:$0xff] }
   0xb   :  { %307 = vmatpush.msra.mxu3 %v100_v15  ;;  %288 = vmatpush.msra.mxu2 %v83_v17  ;;  %v97_v27 = vld [vmem:[%s1185_s1 + $0x1c8] sm:$0xff]  ;;  %v64_v30 = vld [vmem:[%s1185_s1 + $0xc0] sm:$0xff]  ;;  %v79_v33 = vld [vmem:[%s1185_s1 + $0x138] sm:$0xff] }
   0xc   :  { %268 = vmatpush.msra.mxu1 %v67_v18  ;;  %249 = vmatpush.msra.mxu0 %v50_v20  ;;  %v96_v31 = vld [vmem:[%s1185_s1 + $0x1c0] sm:$0xff]  ;;  %v63_v34 = vld [vmem:[%s1185_s1 + $0xb8] sm:$0xff]  ;;  %v46_v36 = vld [vmem:[%s1185_s1 + $0x30] sm:$0xff] }
   0xd   :  { %308 = vmatpush.msra.mxu3 %v99_v19  ;;  %289 = vmatpush.msra.mxu2 %v82_v21  ;;  %v95_v35 = vld [vmem:[%s1185_s1 + $0x1b8] sm:$0xff]  ;;  %v78_v37 = vld [vmem:[%s1185_s1 + $0x130] sm:$0xff]  ;;  %v45_v40 = vld [vmem:[%s1185_s1 + $0x28] sm:$0xff] }
   0xe   :  { %269 = vmatpush.msra.mxu1 %v66_v22  ;;  %250 = vmatpush.msra.mxu0 %v49_v24  ;;  %v62_v38 = vld [vmem:[%s1185_s1 + $0xb0] sm:$0xff]  ;;  %v77_v41 = vld [vmem:[%s1185_s1 + $0x128] sm:$0xff]  ;;  %v44_v44 = vld [vmem:[%s1185_s1 + $0x20] sm:$0xff] }
   0xf   :  { %309 = vmatpush.msra.mxu3 %v98_v23  ;;  %290 = vmatpush.msra.mxu2 %v81_v25  ;;  %v94_v39 = vld [vmem:[%s1185_s1 + $0x1b0] sm:$0xff]  ;;  %v61_v42 = vld [vmem:[%s1185_s1 + $0xa8] sm:$0xff]  ;;  %v76_v45 = vld [vmem:[%s1185_s1 + $0x120] sm:$0xff] }
  0x10   :  { %270 = vmatpush.msra.mxu1 %v65_v26  ;;  %251 = vmatpush.msra.mxu0 %v48_v28  ;;  %v93_v43 = vld [vmem:[%s1185_s1 + $0x1a8] sm:$0xff]  ;;  %v60_v46 = vld [vmem:[%s1185_s1 + $0xa0] sm:$0xff]  ;;  %v43_v48 = vld [vmem:[%s1185_s1 + $0x18] sm:$0xff] }
  0x11   :  { %310 = vmatpush.msra.mxu3 %v97_v27  ;;  %291 = vmatpush.msra.mxu2 %v80_v29  ;;  %v92_v47 = vld [vmem:[%s1185_s1 + $0x1a0] sm:$0xff]  ;;  %v75_v49 = vld [vmem:[%s1185_s1 + $0x118] sm:$0xff]  ;;  %v42_v52 = vld [vmem:[%s1185_s1 + $0x10] sm:$0xff] }
  0x12   :  { %271 = vmatpush.msra.mxu1 %v64_v30  ;;  %252 = vmatpush.msra.mxu0 %v47_v32  ;;  %v59_v50 = vld [vmem:[%s1185_s1 + $0x98] sm:$0xff]  ;;  %v74_v53 = vld [vmem:[%s1185_s1 + $0x110] sm:$0xff]  ;;  %v41_v56 = vld [vmem:[%s1185_s1 + $0x8] sm:$0xff] }
  0x13   :  { %311 = vmatpush.msra.mxu3 %v96_v31  ;;  %292 = vmatpush.msra.mxu2 %v79_v33  ;;  %v91_v51 = vld [vmem:[%s1185_s1 + $0x198] sm:$0xff]  ;;  %v58_v54 = vld [vmem:[%s1185_s1 + $0x90] sm:$0xff]  ;;  %v73_v57 = vld [vmem:[%s1185_s1 + $0x108] sm:$0xff] }
  0x14   :  { %272 = vmatpush.msra.mxu1 %v63_v34  ;;  %253 = vmatpush.msra.mxu0 %v46_v36  ;;  %v90_v55 = vld [vmem:[%s1185_s1 + $0x190] sm:$0xff]  ;;  %v57_v58 = vld [vmem:[%s1185_s1 + $0x88] sm:$0xff]  ;;  %v40_v60 = vld [vmem:[%s1185_s1] sm:$0xff] }
  0x15   :  { %312 = vmatpush.msra.mxu3 %v95_v35  ;;  %293 = vmatpush.msra.mxu2 %v78_v37  ;;  %v89_v59 = vld [vmem:[%s1185_s1 + $0x188] sm:$0xff]  ;;  %v72_v61 = vld [vmem:[%s1185_s1 + $0x100] sm:$0xff]  ;;  %v119_v62 = vld [vmem:[%s1185_s1 + $0x278] sm:$0xff] }
  0x16   :  { %273 = vmatpush.msra.mxu1 %v62_v38  ;;  %254 = vmatpush.msra.mxu0 %v45_v40  ;;  %v151_v63 = vld [vmem:[%s1185_s1 + $0x378] sm:$0xff]  ;;  %v56_v0 = vld [vmem:[%s1185_s1 + $0x80] sm:$0xff]  ;;  %v118_v2 = vld [vmem:[%s1185_s1 + $0x270] sm:$0xff] }
  0x17   :  { %313 = vmatpush.msra.mxu3 %v94_v39  ;;  %294 = vmatpush.msra.mxu2 %v77_v41  ;;  %v88_v1 = vld [vmem:[%s1185_s1 + $0x180] sm:$0xff]  ;;  %v135_v3 = vld [vmem:[%s1185_s1 + $0x2f8] sm:$0xff]  ;;  %v150_v4 = vld [vmem:[%s1185_s1 + $0x370] sm:$0xff] }
  0x18   :  { %274 = vmatpush.msra.mxu1 %v61_v42  ;;  %255 = vmatpush.msra.mxu0 %v44_v44  ;;  %v167_v5 = vld [vmem:[%s1185_s1 + $0x3f8] sm:$0xff]  ;;  %v117_v6 = vld [vmem:[%s1185_s1 + $0x268] sm:$0xff]  ;;  %v134_v7 = vld [vmem:[%s1185_s1 + $0x2f0] sm:$0xff] }
  0x19   :  { %314 = vmatpush.msra.mxu3 %v93_v43  ;;  %295 = vmatpush.msra.mxu2 %v76_v45  ;;  %v149_v8 = vld [vmem:[%s1185_s1 + $0x368] sm:$0xff]  ;;  %v166_v9 = vld [vmem:[%s1185_s1 + $0x3f0] sm:$0xff]  ;;  %v116_v10 = vld [vmem:[%s1185_s1 + $0x260] sm:$0xff] }
  0x1a   :  { %275 = vmatpush.msra.mxu1 %v60_v46  ;;  %256 = vmatpush.msra.mxu0 %v43_v48  ;;  %v133_v11 = vld [vmem:[%s1185_s1 + $0x2e8] sm:$0xff]  ;;  %v148_v12 = vld [vmem:[%s1185_s1 + $0x360] sm:$0xff]  ;;  %v115_v14 = vld [vmem:[%s1185_s1 + $0x258] sm:$0xff] }
  0x1b   :  { %315 = vmatpush.msra.mxu3 %v92_v47  ;;  %296 = vmatpush.msra.mxu2 %v75_v49  ;;  %v165_v13 = vld [vmem:[%s1185_s1 + $0x3e8] sm:$0xff]  ;;  %v132_v15 = vld [vmem:[%s1185_s1 + $0x2e0] sm:$0xff]  ;;  %v147_v16 = vld [vmem:[%s1185_s1 + $0x358] sm:$0xff] }
  0x1c   :  { %276 = vmatpush.msra.mxu1 %v59_v50  ;;  %257 = vmatpush.msra.mxu0 %v42_v52  ;;  %v164_v17 = vld [vmem:[%s1185_s1 + $0x3e0] sm:$0xff]  ;;  %v114_v18 = vld [vmem:[%s1185_s1 + $0x250] sm:$0xff]  ;;  %v131_v19 = vld [vmem:[%s1185_s1 + $0x2d8] sm:$0xff] }
  0x1d   :  { %316 = vmatpush.msra.mxu3 %v91_v51  ;;  %297 = vmatpush.msra.mxu2 %v74_v53  ;;  %v146_v20 = vld [vmem:[%s1185_s1 + $0x350] sm:$0xff]  ;;  %v163_v21 = vld [vmem:[%s1185_s1 + $0x3d8] sm:$0xff]  ;;  %v113_v22 = vld [vmem:[%s1185_s1 + $0x248] sm:$0xff] }
  0x1e   :  { %277 = vmatpush.msra.mxu1 %v58_v54  ;;  %258 = vmatpush.msra.mxu0 %v41_v56  ;;  %v130_v23 = vld [vmem:[%s1185_s1 + $0x2d0] sm:$0xff]  ;;  %v145_v24 = vld [vmem:[%s1185_s1 + $0x348] sm:$0xff]  ;;  %v112_v26 = vld [vmem:[%s1185_s1 + $0x240] sm:$0xff] }
  0x1f   :  { %317 = vmatpush.msra.mxu3 %v90_v55  ;;  %298 = vmatpush.msra.mxu2 %v73_v57  ;;  %v162_v25 = vld [vmem:[%s1185_s1 + $0x3d0] sm:$0xff]  ;;  %v129_v27 = vld [vmem:[%s1185_s1 + $0x2c8] sm:$0xff]  ;;  %v144_v28 = vld [vmem:[%s1185_s1 + $0x340] sm:$0xff] }
  0x20   :  { %278 = vmatpush.msra.mxu1 %v57_v58  ;;  %259 = vmatpush.msra.mxu0 %v40_v60  ;;  %v161_v29 = vld [vmem:[%s1185_s1 + $0x3c8] sm:$0xff]  ;;  %v111_v30 = vld [vmem:[%s1185_s1 + $0x238] sm:$0xff]  ;;  %v128_v31 = vld [vmem:[%s1185_s1 + $0x2c0] sm:$0xff] }
  0x21   :  { %318 = vmatpush.msra.mxu3 %v89_v59  ;;  %299 = vmatpush.msra.mxu2 %v72_v61  ;;  %v143_v32 = vld [vmem:[%s1185_s1 + $0x338] sm:$0xff]  ;;  %v160_v33 = vld [vmem:[%s1185_s1 + $0x3c0] sm:$0xff]  ;;  %v110_v34 = vld [vmem:[%s1185_s1 + $0x230] sm:$0xff] }
  0x22   :  { %324 = vmatpush.msrb.mxu0 %v119_v62  ;;  %279 = vmatpush.msra.mxu1 %v56_v0  ;;  %v127_v35 = vld [vmem:[%s1185_s1 + $0x2b8] sm:$0xff]  ;;  %v142_v36 = vld [vmem:[%s1185_s1 + $0x330] sm:$0xff]  ;;  %v109_v38 = vld [vmem:[%s1185_s1 + $0x228] sm:$0xff] }
  0x23   :  { %364 = vmatpush.msrb.mxu2 %v151_v63  ;;  %319 = vmatpush.msra.mxu3 %v88_v1  ;;  %v159_v37 = vld [vmem:[%s1185_s1 + $0x3b8] sm:$0xff]  ;;  %v126_v39 = vld [vmem:[%s1185_s1 + $0x2b0] sm:$0xff]  ;;  %v141_v40 = vld [vmem:[%s1185_s1 + $0x328] sm:$0xff] }
  0x24   :  { %325 = vmatpush.msrb.mxu0 %v118_v2  ;;  %344 = vmatpush.msrb.mxu1 %v135_v3  ;;  %v158_v41 = vld [vmem:[%s1185_s1 + $0x3b0] sm:$0xff]  ;;  %v108_v42 = vld [vmem:[%s1185_s1 + $0x220] sm:$0xff]  ;;  %v125_v43 = vld [vmem:[%s1185_s1 + $0x2a8] sm:$0xff] }
  0x25   :  { %365 = vmatpush.msrb.mxu2 %v150_v4  ;;  %384 = vmatpush.msrb.mxu3 %v167_v5  ;;  %v140_v44 = vld [vmem:[%s1185_s1 + $0x320] sm:$0xff]  ;;  %v157_v45 = vld [vmem:[%s1185_s1 + $0x3a8] sm:$0xff]  ;;  %v107_v46 = vld [vmem:[%s1185_s1 + $0x218] sm:$0xff] }
  0x26   :  { %326 = vmatpush.msrb.mxu0 %v117_v6  ;;  %345 = vmatpush.msrb.mxu1 %v134_v7  ;;  %v124_v47 = vld [vmem:[%s1185_s1 + $0x2a0] sm:$0xff]  ;;  %v139_v48 = vld [vmem:[%s1185_s1 + $0x318] sm:$0xff]  ;;  %v106_v50 = vld [vmem:[%s1185_s1 + $0x210] sm:$0xff] }
  0x27   :  { %366 = vmatpush.msrb.mxu2 %v149_v8  ;;  %385 = vmatpush.msrb.mxu3 %v166_v9  ;;  %v156_v49 = vld [vmem:[%s1185_s1 + $0x3a0] sm:$0xff]  ;;  %v123_v51 = vld [vmem:[%s1185_s1 + $0x298] sm:$0xff]  ;;  %v138_v52 = vld [vmem:[%s1185_s1 + $0x310] sm:$0xff] }
  0x28   :  { %327 = vmatpush.msrb.mxu0 %v116_v10  ;;  %346 = vmatpush.msrb.mxu1 %v133_v11  ;;  %v155_v53 = vld [vmem:[%s1185_s1 + $0x398] sm:$0xff]  ;;  %v105_v54 = vld [vmem:[%s1185_s1 + $0x208] sm:$0xff]  ;;  %v122_v55 = vld [vmem:[%s1185_s1 + $0x290] sm:$0xff] }
  0x29   :  { %367 = vmatpush.msrb.mxu2 %v148_v12  ;;  %386 = vmatpush.msrb.mxu3 %v165_v13  ;;  %v14_v56 = vld [vmem:[%s1186_s0] sm:$0x3f]  ;;  %v16_v57 = vld [vmem:[%s1186_s0 + $0x10] sm:$0x3f]  ;;  %v137_v58 = vld [vmem:[%s1185_s1 + $0x308] sm:$0xff] }
  0x2a   :  { %328 = vmatpush.msrb.mxu0 %v115_v14  ;;  %347 = vmatpush.msrb.mxu1 %v132_v15  ;;  %v154_v59 = vld [vmem:[%s1185_s1 + $0x390] sm:$0xff]  ;;  %v104_v60 = vld [vmem:[%s1185_s1 + $0x200] sm:$0xff]  ;;  %v121_v61 = vld [vmem:[%s1185_s1 + $0x288] sm:$0xff]  ;;  %v27_v0 = vmax.f32 %v14_v56, 0.0  ;;  %v29_v1 = vmax.f32 %v16_v57, 0.0 }
  0x2b   :  { %368 = vmatpush.msrb.mxu2 %v147_v16  ;;  %387 = vmatpush.msrb.mxu3 %v164_v17  ;;  %v136_v62 = vld [vmem:[%s1185_s1 + $0x300] sm:$0xff]  ;;  %v153_v63 = vld [vmem:[%s1185_s1 + $0x388] sm:$0xff]  ;;  %v17_v3 = vld [vmem:[%s1186_s0 + $0x18] sm:$0x3f] }
  0x2c   :  { %329 = vmatpush.msrb.mxu0 %v114_v18  ;;  %348 = vmatpush.msrb.mxu1 %v131_v19  ;;  %v15_v2 = vld [vmem:[%s1186_s0 + $0x8] sm:$0x3f]  ;;  %v183_v4 = vld [vmem:[%s1185_s1 + $0x478] sm:$0xff]  ;;  %v120_v6 = vld [vmem:[%s1185_s1 + $0x280] sm:$0xff]  ;;  %v30_v9 = vmax.f32 %v17_v3, 0.0 }
  0x2d   :  { %369 = vmatpush.msrb.mxu2 %v146_v20  ;;  %388 = vmatpush.msrb.mxu3 %v163_v21  ;;  %v215_v5 = vld [vmem:[%s1185_s1 + $0x578] sm:$0xff]  ;;  %v152_v7 = vld [vmem:[%s1185_s1 + $0x380] sm:$0xff]  ;;  %v28_v8 = vmax.f32 %v15_v2, 0.0  ;;  %v182_v10 = vld [vmem:[%s1185_s1 + $0x470] sm:$0xff] }
  0x2e   :  { %330 = vmatpush.msrb.mxu0 %v113_v22  ;;  %349 = vmatpush.msrb.mxu1 %v130_v23  ;;  %v199_v11 = vld [vmem:[%s1185_s1 + $0x4f8] sm:$0xff]  ;;  %v214_v12 = vld [vmem:[%s1185_s1 + $0x570] sm:$0xff]  ;;  %v181_v14 = vld [vmem:[%s1185_s1 + $0x468] sm:$0xff] }
  0x2f   :  { %370 = vmatpush.msrb.mxu2 %v145_v24  ;;  %389 = vmatpush.msrb.mxu3 %v162_v25  ;;  %v231_v13 = vld [vmem:[%s1185_s1 + $0x5f8] sm:$0xff]  ;;  %v198_v15 = vld [vmem:[%s1185_s1 + $0x4f0] sm:$0xff]  ;;  %v213_v17 = vld [vmem:[%s1185_s1 + $0x568] sm:$0xff] }
  0x30   :  { %331 = vmatpush.msrb.mxu0 %v112_v26  ;;  %350 = vmatpush.msrb.mxu1 %v129_v27  ;;  %v20_v16 = vld [vmem:[%s1186_s0 + $0x30] sm:$0x3f]  ;;  %v180_v19 = vld [vmem:[%s1185_s1 + $0x460] sm:$0xff]  ;;  %v197_v20 = vld [vmem:[%s1185_s1 + $0x4e8] sm:$0xff] }
  0x31   :  { %371 = vmatpush.msrb.mxu2 %v144_v28  ;;  %390 = vmatpush.msrb.mxu3 %v161_v29  ;;  %v230_v18 = vld [vmem:[%s1185_s1 + $0x5f0] sm:$0xff]  ;;  %v18_v21 = vld [vmem:[%s1186_s0 + $0x20] sm:$0x3f]  ;;  %v229_v23 = vld [vmem:[%s1185_s1 + $0x5e8] sm:$0xff]  ;;  %v33_v24 = vmax.f32 %v20_v16, 0.0 }
  0x32   :  { %332 = vmatpush.msrb.mxu0 %v111_v30  ;;  %351 = vmatpush.msrb.mxu1 %v128_v31  ;;  %v212_v22 = vld [vmem:[%s1185_s1 + $0x560] sm:$0xff]  ;;  %v21_v25 = vld [vmem:[%s1186_s0 + $0x38] sm:$0x3f]  ;;  %v31_v29 = vmax.f32 %v18_v21, 0.0  ;;  %v19_v30 = vld [vmem:[%s1186_s0 + $0x28] sm:$0x3f] }
  0x33   :  { %372 = vmatpush.msrb.mxu2 %v143_v32  ;;  %391 = vmatpush.msrb.mxu3 %v160_v33  ;;  %v179_v26 = vld [vmem:[%s1185_s1 + $0x458] sm:$0xff]  ;;  %v196_v27 = vld [vmem:[%s1185_s1 + $0x4e0] sm:$0xff]  ;;  %v34_v32 = vmax.f32 %v21_v25, 0.0  ;;  %v178_v33 = vld [vmem:[%s1185_s1 + $0x450] sm:$0xff] }
  0x34   :  { %333 = vmatpush.msrb.mxu0 %v110_v34  ;;  %352 = vmatpush.msrb.mxu1 %v127_v35  ;;  %v211_v28 = vld [vmem:[%s1185_s1 + $0x558] sm:$0xff]  ;;  %v228_v31 = vld [vmem:[%s1185_s1 + $0x5e0] sm:$0xff]  ;;  %v210_v35 = vld [vmem:[%s1185_s1 + $0x550] sm:$0xff] }
  0x35   :  { %373 = vmatpush.msrb.mxu2 %v142_v36  ;;  %392 = vmatpush.msrb.mxu3 %v159_v37  ;;  %v195_v34 = vld [vmem:[%s1185_s1 + $0x4d8] sm:$0xff]  ;;  %v32_v36 = vmax.f32 %v19_v30, 0.0  ;;  %v205_v56 = vld [vmem:[%s1185_s1 + $0x528] sm:$0xff]  ;;  %v222_v57 = vld [vmem:[%s1185_s1 + $0x5b0] sm:$0xff] }
  0x36   :  { %334 = vmatpush.msrb.mxu0 %v109_v38  ;;  %353 = vmatpush.msrb.mxu1 %v126_v39  ;;  %v227_v37 = vld [vmem:[%s1185_s1 + $0x5d8] sm:$0xff]  ;;  %v177_v38 = vld [vmem:[%s1185_s1 + $0x448] sm:$0xff]  ;;  %v194_v39 = vld [vmem:[%s1185_s1 + $0x4d0] sm:$0xff] }
  0x37   :  { %374 = vmatpush.msrb.mxu2 %v141_v40  ;;  %393 = vmatpush.msrb.mxu3 %v158_v41  ;;  %v209_v40 = vld [vmem:[%s1185_s1 + $0x548] sm:$0xff]  ;;  %v226_v41 = vld [vmem:[%s1185_s1 + $0x5d0] sm:$0xff]  ;;  %v187_v3 = vld [vmem:[%s1185_s1 + $0x498] sm:$0xff] }
  0x38   :  { %335 = vmatpush.msrb.mxu0 %v108_v42  ;;  %354 = vmatpush.msrb.mxu1 %v125_v43  ;;  %v176_v42 = vld [vmem:[%s1185_s1 + $0x440] sm:$0xff]  ;;  %v193_v43 = vld [vmem:[%s1185_s1 + $0x4c8] sm:$0xff]  ;;  %v170_v2 = vld [vmem:[%s1185_s1 + $0x410] sm:$0xff] }
  0x39   :  { %375 = vmatpush.msrb.mxu2 %v140_v44  ;;  %394 = vmatpush.msrb.mxu3 %v157_v45  ;;  %v208_v44 = vld [vmem:[%s1185_s1 + $0x540] sm:$0xff]  ;;  %v225_v45 = vld [vmem:[%s1185_s1 + $0x5c8] sm:$0xff]  ;;  %v234_v25 = vld [vmem:[%s1185_s1 + $0x610] sm:$0xff] }
  0x3a   :  { %336 = vmatpush.msrb.mxu0 %v107_v46  ;;  %355 = vmatpush.msrb.mxu1 %v124_v47  ;;  %v175_v46 = vld [vmem:[%s1185_s1 + $0x438] sm:$0xff]  ;;  %v192_v47 = vld [vmem:[%s1185_s1 + $0x4c0] sm:$0xff] }
  0x3b   :  { %376 = vmatpush.msrb.mxu2 %v139_v48  ;;  %395 = vmatpush.msrb.mxu3 %v156_v49  ;;  %v207_v48 = vld [vmem:[%s1185_s1 + $0x538] sm:$0xff]  ;;  %v224_v49 = vld [vmem:[%s1185_s1 + $0x5c0] sm:$0xff] }
  0x3c   :  { %337 = vmatpush.msrb.mxu0 %v106_v50  ;;  %356 = vmatpush.msrb.mxu1 %v123_v51  ;;  %v174_v50 = vld [vmem:[%s1185_s1 + $0x430] sm:$0xff]  ;;  %v191_v51 = vld [vmem:[%s1185_s1 + $0x4b8] sm:$0xff]  ;;  %v200_v16 = vld [vmem:[%s1185_s1 + $0x500] sm:$0xff] }
  0x3d   :  { %377 = vmatpush.msrb.mxu2 %v138_v52  ;;  %396 = vmatpush.msrb.mxu3 %v155_v53  ;;  %v206_v52 = vld [vmem:[%s1185_s1 + $0x530] sm:$0xff]  ;;  %v223_v53 = vld [vmem:[%s1185_s1 + $0x5b8] sm:$0xff]  ;;  %v216_v21 = vld [vmem:[%s1185_s1 + $0x580] sm:$0xff] }
  0x3e   :  { %338 = vmatpush.msrb.mxu0 %v105_v54  ;;  %357 = vmatpush.msrb.mxu1 %v122_v55  ;;  %v173_v54 = vld [vmem:[%s1185_s1 + $0x428] sm:$0xff]  ;;  %v190_v55 = vld [vmem:[%s1185_s1 + $0x4b0] sm:$0xff]  ;;  %v527_v30 = vld [vmem:[%s1187_s2] ss:$0 sm:$0xff] }
  0x3f   :  { %378 = vmatpush.msrb.mxu2 %v137_v58  ;;  %397 = vmatpush.msrb.mxu3 %v154_v59  ;;  %v172_v58 = vld [vmem:[%s1185_s1 + $0x420] sm:$0xff]  ;;  %v189_v59 = vld [vmem:[%s1185_s1 + $0x4a8] sm:$0xff] }
  0x40   :  { %339 = vmatpush.msrb.mxu0 %v104_v60  ;;  %358 = vmatpush.msrb.mxu1 %v121_v61  ;;  %v204_v60 = vld [vmem:[%s1185_s1 + $0x520] sm:$0xff]  ;;  %v221_v61 = vld [vmem:[%s1185_s1 + $0x5a8] sm:$0xff] }
  0x41   :  { %379 = vmatpush.msrb.mxu2 %v136_v62  ;;  %398 = vmatpush.msrb.mxu3 %v153_v63  ;;  %v171_v62 = vld [vmem:[%s1185_s1 + $0x418] sm:$0xff]  ;;  %v188_v63 = vld [vmem:[%s1185_s1 + $0x4a0] sm:$0xff] }
  0x42   :  { %260 = vmatmul.f32.vlgmr.msra.gmra.mxu0 %v27_v0  ;;  %300 = vmatmul.f32.vlgmr.msra.gmra.mxu2 %v29_v1  ;;  %v203_v0 = vld [vmem:[%s1185_s1 + $0x518] sm:$0xff]  ;;  %v220_v1 = vld [vmem:[%s1185_s1 + $0x5a0] sm:$0xff] }
  0x43   :  { %404 = vmatpush.msra.mxu0 %v183_v4  ;;  %444 = vmatpush.msra.mxu2 %v215_v5  ;;  %v202_v4 = vld [vmem:[%s1185_s1 + $0x510] sm:$0xff]  ;;  %v219_v5 = vld [vmem:[%s1185_s1 + $0x598] sm:$0xff] }
  0x44   :  { %359 = vmatpush.msrb.mxu1 %v120_v6  ;;  %399 = vmatpush.msrb.mxu3 %v152_v7  ;;  %v169_v6 = vld [vmem:[%s1185_s1 + $0x408] sm:$0xff]  ;;  %v186_v7 = vld [vmem:[%s1185_s1 + $0x490] sm:$0xff] }
  0x45   :  { %280 = vmatmul.f32.vlgmr.msra.gmra.mxu1 %v28_v8  ;;  %320 = vmatmul.f32.vlgmr.msra.gmra.mxu3 %v30_v9  ;;  %v22_v8 = vld [vmem:[%s1186_s0 + $0x40] sm:$0x3f]  ;;  %v24_v9 = vld [vmem:[%s1186_s0 + $0x50] sm:$0x3f] }
  0x46   :  { %405 = vmatpush.msra.mxu0 %v182_v10  ;;  %424 = vmatpush.msra.mxu1 %v199_v11  ;;  %v201_v10 = vld [vmem:[%s1185_s1 + $0x508] sm:$0xff]  ;;  %v218_v11 = vld [vmem:[%s1185_s1 + $0x590] sm:$0xff] }
  0x47   :  { %445 = vmatpush.msra.mxu2 %v214_v12  ;;  %464 = vmatpush.msra.mxu3 %v231_v13  ;;  %v168_v12 = vld [vmem:[%s1185_s1 + $0x400] sm:$0xff]  ;;  %v185_v13 = vld [vmem:[%s1185_s1 + $0x488] sm:$0xff] }
  0x48   :  { %406 = vmatpush.msra.mxu0 %v181_v14  ;;  %425 = vmatpush.msra.mxu1 %v198_v15  ;;  %v23_v14 = vld [vmem:[%s1186_s0 + $0x48] sm:$0x3f]  ;;  %v25_v15 = vld [vmem:[%s1186_s0 + $0x58] sm:$0x3f] }
  0x49   :  { %446 = vmatpush.msra.mxu2 %v213_v17  ;;  %465 = vmatpush.msra.mxu3 %v230_v18  ;;  %v217_v17 = vld [vmem:[%s1185_s1 + $0x588] sm:$0xff]  ;;  %v35_v18 = vmax.f32 %v22_v8, 0.0 }
  0x4a   :  { %407 = vmatpush.msra.mxu0 %v180_v19  ;;  %426 = vmatpush.msra.mxu1 %v197_v20  ;;  %v37_v19 = vmax.f32 %v24_v9, 0.0  ;;  %v184_v20 = vld [vmem:[%s1185_s1 + $0x480] sm:$0xff] }
  0x4b   :  { %447 = vmatpush.msra.mxu2 %v212_v22  ;;  %466 = vmatpush.msra.mxu3 %v229_v23  ;;  %v36_v22 = vmax.f32 %v23_v14, 0.0  ;;  %v38_v23 = vmax.f32 %v25_v15, 0.0 }
  0x4c   :  { %380 = vmatmul.f32.vlgmr.msrb.gmra.mxu2 %v33_v24  ;;  %408 = vmatpush.msra.mxu0 %v179_v26  ;;  %v235_v24 = vld [vmem:[%s1185_s1 + $0x618] sm:$0xff]  ;;  %v26_v26 = vld [vmem:[%s1186_s0 + $0x60] sm:$0x3f] }
  0x4d   :  { %427 = vmatpush.msra.mxu1 %v196_v27  ;;  %448 = vmatpush.msra.mxu2 %v211_v28  ;;  %v233_v27 = vld [vmem:[%s1185_s1 + $0x608] sm:$0xff]  ;;  %v232_v28 = vld [vmem:[%s1185_s1 + $0x600] sm:$0xff] }
  0x4e   :  { %467 = vmatpush.msra.mxu3 %v228_v31  ;;  %340 = vmatmul.f32.vlgmr.msrb.gmra.mxu0 %v31_v29  ;;  %v39_v29 = vmax.f32 %v26_v26, 0.0 }
  0x4f   :  { %400 = vmatmul.f32.vlgmr.msrb.gmra.mxu3 %v34_v32  ;;  %409 = vmatpush.msra.mxu0 %v178_v33 }
  0x50   :  { %428 = vmatpush.msra.mxu1 %v195_v34  ;;  %449 = vmatpush.msra.mxu2 %v210_v35 }
  0x51   :  { %468 = vmatpush.msra.mxu3 %v227_v37  ;;  %360 = vmatmul.f32.vlgmr.msrb.gmra.mxu1 %v32_v36 }
  0x52   :  { %410 = vmatpush.msra.mxu0 %v177_v38  ;;  %429 = vmatpush.msra.mxu1 %v194_v39 }
  0x53   :  { %450 = vmatpush.msra.mxu2 %v209_v40  ;;  %469 = vmatpush.msra.mxu3 %v226_v41 }
  0x54   :  { %411 = vmatpush.msra.mxu0 %v176_v42  ;;  %430 = vmatpush.msra.mxu1 %v193_v43 }
  0x55   :  { %451 = vmatpush.msra.mxu2 %v208_v44  ;;  %470 = vmatpush.msra.mxu3 %v225_v45 }
  0x56   :  { %412 = vmatpush.msra.mxu0 %v175_v46  ;;  %431 = vmatpush.msra.mxu1 %v192_v47 }
  0x57   :  { %452 = vmatpush.msra.mxu2 %v207_v48  ;;  %471 = vmatpush.msra.mxu3 %v224_v49 }
  0x58   :  { %413 = vmatpush.msra.mxu0 %v174_v50  ;;  %432 = vmatpush.msra.mxu1 %v191_v51 }
  0x59   :  { %453 = vmatpush.msra.mxu2 %v206_v52  ;;  %472 = vmatpush.msra.mxu3 %v223_v53 }
  0x5a   :  { %414 = vmatpush.msra.mxu0 %v173_v54  ;;  %433 = vmatpush.msra.mxu1 %v190_v55 }
  0x5b   :  { %454 = vmatpush.msra.mxu2 %v205_v56  ;;  %473 = vmatpush.msra.mxu3 %v222_v57 }
  0x5c   :  { %415 = vmatpush.msra.mxu0 %v172_v58  ;;  %434 = vmatpush.msra.mxu1 %v189_v59 }
  0x5d   :  { %455 = vmatpush.msra.mxu2 %v204_v60  ;;  %474 = vmatpush.msra.mxu3 %v221_v61 }
  0x5e   :  { %416 = vmatpush.msra.mxu0 %v171_v62  ;;  %435 = vmatpush.msra.mxu1 %v188_v63 }
  0x5f   :  { %456 = vmatpush.msra.mxu2 %v203_v0  ;;  %475 = vmatpush.msra.mxu3 %v220_v1 }
  0x60   :  { %417 = vmatpush.msra.mxu0 %v170_v2  ;;  %436 = vmatpush.msra.mxu1 %v187_v3 }
  0x61   :  { %457 = vmatpush.msra.mxu2 %v202_v4  ;;  %476 = vmatpush.msra.mxu3 %v219_v5 }
  0x62   :  { %418 = vmatpush.msra.mxu0 %v169_v6  ;;  %437 = vmatpush.msra.mxu1 %v186_v7 }
  0x63   :  { %458 = vmatpush.msra.mxu2 %v201_v10  ;;  %477 = vmatpush.msra.mxu3 %v218_v11 }
  0x64   :  { %419 = vmatpush.msra.mxu0 %v168_v12  ;;  %438 = vmatpush.msra.mxu1 %v185_v13 }
  0x65   :  { %459 = vmatpush.msra.mxu2 %v200_v16  ;;  %478 = vmatpush.msra.mxu3 %v217_v17 }
  0x66   :  { %420 = vmatmul.f32.vlgmr.msra.gmra.mxu0 %v35_v18  ;;  %460 = vmatmul.f32.vlgmr.msra.gmra.mxu2 %v37_v19 }
  0x67   :  { %439 = vmatpush.msra.mxu1 %v184_v20  ;;  %479 = vmatpush.msra.mxu3 %v216_v21 }
  0x68   :  { %440 = vmatmul.f32.vlgmr.msra.gmra.mxu1 %v36_v22  ;;  %480 = vmatmul.f32.vlgmr.msra.gmra.mxu3 %v38_v23 }
  0x69   :  { %496 = vmatpush.msrb.mxu0 %v235_v24 }
  0x6b   :  { %497 = vmatpush.msrb.mxu0 %v234_v25 }
  0x6d   :  { %498 = vmatpush.msrb.mxu0 %v233_v27 }
  0x6f   :  { %499 = vmatpush.msrb.mxu0 %v232_v28 }
  0x70   :  { %526 = vmatmul.msk.f32.vlgmr.msrb.gmra.mxu0 %vm240_vm0, %v39_v29 }
  0xbf   :  { %v261_v31 = vpop.f32.mrf.mxu0 }
  0xc0   :  { %v262_v32 = vadd.f32 %v527_v30, %v261_v31 }
  0xc2   :  { %v281_v33 = vpop.f32.mrf.mxu1 }
  0xc3   :  { %v282_v34 = vadd.f32 %v281_v33, %v262_v32 }
  0xc5   :  { %v301_v35 = vpop.f32.mrf.mxu2 }
  0xc6   :  { %v302_v36 = vadd.f32 %v301_v35, %v282_v34 }
  0xc8   :  { %v321_v37 = vpop.f32.mrf.mxu3 }
  0xc9   :  { %v322_v38 = vadd.f32 %v321_v37, %v302_v36 }
  0xcb   :  { %v341_v39 = vpop.f32.mrf.mxu0 }
  0xcc   :  { %v342_v40 = vadd.f32 %v341_v39, %v322_v38 }
  0xce   :  { %v361_v41 = vpop.f32.mrf.mxu1 }
  0xcf   :  { %v362_v42 = vadd.f32 %v361_v41, %v342_v40  ;;  %v381_v43 = vpop.f32.mrf.mxu2 }
  0xd1   :  { %v382_v44 = vadd.f32 %v381_v43, %v362_v42 }
  0xd2   :  { %v401_v45 = vpop.f32.mrf.mxu3 }
  0xd3   :  { %v402_v46 = vadd.f32 %v401_v45, %v382_v44 }
  0xe3   :  { %v421_v47 = vpop.f32.mrf.mxu0 }
  0xe4   :  { %v422_v48 = vadd.f32 %v421_v47, %v402_v46 }
  0xe5   :  { %v441_v49 = vpop.f32.mrf.mxu1 }
  0xe6   :  { %v442_v50 = vadd.f32 %v441_v49, %v422_v48 }
  0xe9   :  { %v461_v51 = vpop.f32.mrf.mxu2 }
  0xea   :  { %v462_v52 = vadd.f32 %v461_v51, %v442_v50 }
  0xeb   :  { %v481_v53 = vpop.f32.mrf.mxu3 }
  0xec   :  { %v482_v54 = vadd.f32 %v481_v53, %v462_v52 }
  0xed   :  { %v501_v55 = vpop.f32.mrf.mxu0 }
  0xee   :  { %v502_v56 = vadd.f32 %v501_v55, %v482_v54 }
  0xf0   :  { %v504_v57 = vmul.f32 %v502_v56, %v502_v56 }
  0xf2   :  { %v506_v58 = vsel %vm505_vm1, %v504_v57, 0.0 }
  0xf3   :  { %507 = vadd.xlane.f32.xlu0 %v506_v58 }
 0x166   :  { %v508_v59 = vpop.xlane.xlu0 %507 }
 0x167   :  { %v509_v60 = vadd.f32 1e-12, %v508_v59 }
 0x169   :  { %528 = vrsqrt.f32 %v509_v60  ;;  %vm516_vm3 = vweird.f32 %v509_v60 }
 0x16f   :  { %v529_v61 = vpop.eup %528 }
 0x170   :  { %v511_v62 = vmul.f32 %v529_v61, %v509_v60  ;;  %vm517_vm2 = vweird.f32 %v529_v61 }
 0x171   :  { %vm518_vm4 = vmor %vm516_vm3, %vm517_vm2 }
 0x172   :  { %v512_v63 = vmul.f32 %v529_v61, %v511_v62 }
 0x174   :  { %v513_v0 = vmul.f32 0.5, %v512_v63 }
 0x176   :  { %v514_v1 = vsub.f32 1.5, %v513_v0 }
 0x178   :  { %v515_v2 = vmul.f32 %v529_v61, %v514_v1 }
 0x17a   :  { %v519_v3 = vsel %vm518_vm4, %v529_v61, %v515_v2 }
 0x17b   :  { %v520_v4 = vmul.f32 %v519_v3, %v502_v56 }
 0x17d   :  { %521 = vst.msk [vmem:[%s1188_s3] sm:$0x3f] %vm505_vm1, %v520_v4 }

</bundles_post_ra>
